<compile_context>
chip_gen: v7x
topology: tpu7x:2x2x1
jax: 0.10.0
libtpu: 0.0.40
codegen_flags: <defaults>
</compile_context>

<pallas_src>
import functools

import jax
import jax.numpy as jnp
from jax import lax
from jax.experimental import pallas as pl
from jax.experimental.pallas import tpu as pltpu

EPS = 1e-5  # nn.BatchNorm2d default


def _round_up(a, b):
    return ((a + b - 1) // b) * b


def _assemble_window(win_ref, x_ref, xh_ref, tile):
    # main block + halo block -> one contiguous f32 window in VMEM scratch
    win_ref[0:tile, :] = x_ref[...].astype(jnp.float32)
    win_ref[tile:, :] = xh_ref[...].astype(jnp.float32)


def _conv3x3(win_ref, w_ref, tile, wp, cout):
    """3x3 conv of `tile` output rows as 9 row-shifted (tile,Cin)@(Cin,Cout) MXU matmuls."""
    xv = win_ref[...]                                # (tile + HALO, Cin) f32
    acc = jnp.zeros((tile, cout), jnp.float32)
    for dx in range(3):
        # one (possibly sublane-misaligned) shifted view per dx, reused for all dy;
        # the dy*wp shifts below are sublane-aligned because wp % 8 == 0.
        xd = xv[dx:dx + tile + 2 * wp, :]
        for dy in range(3):
            patch = xd[dy * wp:dy * wp + tile, :]    # (tile, Cin)
            acc = acc + jnp.dot(patch, w_ref[dy * 3 + dx],
                                preferred_element_type=jnp.float32)
    return acc


def _conv_stats_kernel(x_ref, xh_ref, w_ref, mask_ref,
                       psum_ref, psumsq_ref, win_ref, *, tile, wp):
    cout = psum_ref.shape[-1]
    _assemble_window(win_ref, x_ref, xh_ref, tile)
    acc = _conv3x3(win_ref, w_ref, tile, wp, cout)

    # masked partial batch statistics; row reduction rides the MXU:
    #   (1, tile) @ (tile, Cout)
    am = acc * mask_ref[...]                          # (tile, Cout)
    ones = jnp.ones((1, tile), jnp.float32)
    s = jnp.dot(ones, am, preferred_element_type=jnp.float32)          # (1, Cout)
    sq = jnp.dot(ones, am * acc, preferred_element_type=jnp.float32)   # (1, Cout)
    psum_ref[...] = jnp.broadcast_to(s, psum_ref.shape)
    psumsq_ref[...] = jnp.broadcast_to(sq, psumsq_ref.shape)


def _conv_apply_kernel(x_ref, xh_ref, w_ref, scale_ref, shift_ref,
                       o_ref, win_ref, *, tile, wp):
    cout = o_ref.shape[-1]
    _assemble_window(win_ref, x_ref, xh_ref, tile)
    acc = _conv3x3(win_ref, w_ref, tile, wp, cout)
    y = acc * scale_ref[...] + shift_ref[...]         # folded BN affine
    o_ref[...] = jnp.maximum(y, 0.0)


def unet_backbone_forward(x_nchw, w_oihw, gamma, beta, *, max_rows_per_tile=512):
    """Matches Unet_backbone.forward(x) for a freshly constructed (training-mode) module."""
    N, Cin, H, W = x_nchw.shape
    Cout = w_oihw.shape[0]

    Wp = _round_up(W + 2, 8)        # padded row length -> sublane-aligned dy*Wp shifts
    Hp = H + 2
    L = N * Hp * Wp                 # flattened padded grid rows
    HALO = _round_up(2 * Wp + 2, 64)
    TILE = _round_up(pl.cdiv(L, pl.cdiv(L, max_rows_per_tile)), HALO)
    T = pl.cdiv(L, TILE)
    LR = T * TILE                   # rows covered by the grid
    LX = LR + HALO                  # rows of the extended input

    # --- wrapper-side layout glue (plain JAX) ---
    # NCHW -> NHWC, zero-pad to (Hp, Wp), cast the HBM activation copy to bf16.
    x_nhwc = jnp.transpose(x_nchw, (0, 2, 3, 1))
    x_pad = jnp.pad(x_nhwc, ((0, 0), (1, 1), (1, Wp - W - 1), (0, 0)))
    x_flat = x_pad.reshape(L, Cin).astype(jnp.bfloat16)
    # Wp+1 guard rows in front (every tap offset i + dy*Wp + dx stays >= 0),
    # remaining zero rows at the back so the last tile's halo block is in bounds.
    x_ext = jnp.pad(x_flat, ((Wp + 1, LX - (Wp + 1) - L), (0, 0)))

    # OIHW -> (9, Cin, Cout), k = dy*3 + dx
    w_r = jnp.transpose(w_oihw, (2, 3, 1, 0)).reshape(9, Cin, Cout).astype(jnp.float32)

    # interior mask (1.0 on real output pixels) over the LR grid rows
    idx = jnp.arange(LR)
    py = (idx // Wp) % Hp
    px = idx % Wp
    mask = ((idx < L) & (py >= 1) & (py <= H) & (px >= 1) & (px <= W))
    mask = mask.astype(jnp.float32)[:, None]          # (LR, 1)

    count = float(N * H * W)
    cp = pltpu.CompilerParams(dimension_semantics=("parallel",),
                              vmem_limit_bytes=32 * 1024 * 1024)

    # ---- pass 1: conv + masked partial sums / sums of squares per tile ----
    k1 = functools.partial(_conv_stats_kernel, tile=TILE, wp=Wp)
    psum, psumsq = pl.pallas_call(
        k1,
        out_shape=(jax.ShapeDtypeStruct((T * 8, Cout), jnp.float32),
                   jax.ShapeDtypeStruct((T * 8, Cout), jnp.float32)),
        grid=(T,),
        in_specs=[
            pl.BlockSpec((TILE, Cin), lambda t: (t, 0)),                         # main rows
            pl.BlockSpec((HALO, Cin), lambda t: ((t + 1) * (TILE // HALO), 0)),  # halo rows
            pl.BlockSpec((9, Cin, Cout), lambda t: (0, 0, 0)),                   # weights
            pl.BlockSpec((TILE, 1), lambda t: (t, 0)),                           # mask
        ],
        out_specs=(pl.BlockSpec((8, Cout), lambda t: (t, 0)),
                   pl.BlockSpec((8, Cout), lambda t: (t, 0))),
        scratch_shapes=[pltpu.VMEM((TILE + HALO, Cin), jnp.float32)],
        compiler_params=cp,
    )(x_ext, x_ext, w_r, mask)

    # ---- tiny cross-tile reduction + BN affine folding (plain JAX, O(T*Cout)) ----
    sums = psum.reshape(T, 8, Cout)[:, 0, :].sum(axis=0)
    sqs = psumsq.reshape(T, 8, Cout)[:, 0, :].sum(axis=0)
    mean = sums / count
    var = sqs / count - mean * mean                   # biased variance (training-mode BN)
    inv = lax.rsqrt(var + EPS)
    g = gamma.astype(jnp.float32)
    b = beta.astype(jnp.float32)
    scale = (g * inv).reshape(1, Cout)
    shift = (b - mean * g * inv).reshape(1, Cout)

    # ---- pass 2: recompute conv, apply folded BN affine + ReLU ----
    k2 = functools.partial(_conv_apply_kernel, tile=TILE, wp=Wp)
    out_flat = pl.pallas_call(
        k2,
        out_shape=jax.ShapeDtypeStruct((LR, Cout), jnp.float32),
        grid=(T,),
        in_specs=[
            pl.BlockSpec((TILE, Cin), lambda t: (t, 0)),
            pl.BlockSpec((HALO, Cin), lambda t: ((t + 1) * (TILE // HALO), 0)),
            pl.BlockSpec((9, Cin, Cout), lambda t: (0, 0, 0)),
            pl.BlockSpec((1, Cout), lambda t: (0, 0)),                           # scale
            pl.BlockSpec((1, Cout), lambda t: (0, 0)),                           # shift
        ],
        out_specs=pl.BlockSpec((TILE, Cout), lambda t: (t, 0)),
        scratch_shapes=[pltpu.VMEM((TILE + HALO, Cin), jnp.float32)],
        compiler_params=cp,
    )(x_ext, x_ext, w_r, scale, shift)

    # drop guard/pad rows & border, back to NCHW
    out_nhwc = out_flat[:L].reshape(N, Hp, Wp, Cout)[:, 1:H + 1, 1:W + 1, :]
    return jnp.transpose(out_nhwc, (0, 3, 1, 2))


def reference(x_nchw, w_oihw, gamma, beta):
    conv = lax.conv_general_dilated(
        x_nchw, w_oihw, window_strides=(1, 1), padding=((1, 1), (1, 1)),
        dimension_numbers=('NCHW', 'OIHW', 'NCHW'),
        precision=lax.Precision.HIGHEST)
    mean = jnp.mean(conv, axis=(0, 2, 3), keepdims=True)
    var = jnp.mean((conv - mean) ** 2, axis=(0, 2, 3), keepdims=True)
    y = (conv - mean) * lax.rsqrt(var + EPS)
    y = y * gamma.reshape(1, -1, 1, 1) + beta.reshape(1, -1, 1, 1)
    return jnp.maximum(y, 0.0)


if __name__ == "__main__":
    key = jax.random.PRNGKey(0)
    k1, k2, k3, k4 = jax.random.split(key, 4)

    N, Cin, Cout, H, W = 2, 4, 8, 16, 16
    x = jax.random.normal(k1, (N, Cin, H, W), jnp.float32)
    w = 0.1 * jax.random.normal(k2, (Cout, Cin, 3, 3), jnp.float32)   # Conv2d weight (no bias)
    gamma = 1.0 + 0.1 * jax.random.normal(k3, (Cout,), jnp.float32)   # BN weight
    beta = 0.1 * jax.random.normal(k4, (Cout,), jnp.float32)          # BN bias

    fwd = jax.jit(unet_backbone_forward)
    out = jax.block_until_ready(fwd(x, w, gamma, beta))

    ref = reference(x, w, gamma, beta)
    assert out.shape == ref.shape == (N, Cout, H, W)
    max_err = float(jnp.max(jnp.abs(out - ref)))
    # The HBM activation copy is bf16 (input rounding only; all accumulation and BN
    # math are f32), so agreement with the f32 reference is ~1e-3; assert a safe bound.
    assert max_err < 2e-2, f"max_err={max_err}"
    print("KERNEL_OK")
</pallas_src>

<mosaic_0001>
module attributes {stable_mosaic.version = 11 : i64} {
  func.func @_conv_stats_kernel(%arg0: i32, %arg1: memref<448x4xbf16, #tpu.memory_space<vmem>>, %arg2: memref<64x4xbf16, #tpu.memory_space<vmem>>, %arg3: memref<9x4x8xf32, #tpu.memory_space<vmem>>, %arg4: memref<448x1xf32, #tpu.memory_space<vmem>>, %arg5: memref<8x8xf32, #tpu.memory_space<vmem>>, %arg6: memref<8x8xf32, #tpu.memory_space<vmem>>, %arg7: memref<512x4xf32, #tpu.memory_space<vmem>>) attributes {dimension_semantics = [#tpu.dimension_semantics<parallel>], iteration_bounds = array<i64: 2>, scalar_prefetch = 0 : i64, scratch_operands = 1 : i64, tpu.core_type = #tpu.core_type<tc>, window_params = [{transform_indices = @transform_0, window_bounds = array<i64: 448, 4>}, {transform_indices = @transform_1, window_bounds = array<i64: 64, 4>}, {pipeline_mode = #tpu.pipeline_mode<synchronous>, transform_indices = @transform_2, window_bounds = array<i64: 9, 4, 8>}, {transform_indices = @transform_3, window_bounds = array<i64: 448, 1>}, {transform_indices = @transform_4, window_bounds = array<i64: 8, 8>}, {transform_indices = @transform_5, window_bounds = array<i64: 8, 8>}]} {
    %c0 = arith.constant 0 : index
    %c0_0 = arith.constant 0 : index
    %0 = vector.load %arg1[%c0, %c0_0] : memref<448x4xbf16, #tpu.memory_space<vmem>>, vector<448x4xbf16>
    %1 = arith.extf %0 : vector<448x4xbf16> to vector<448x4xf32>
    %c0_1 = arith.constant 0 : index
    %c0_2 = arith.constant 0 : index
    %2 = vector.load %arg7[%c0_1, %c0_2] : memref<512x4xf32, #tpu.memory_space<vmem>>, vector<448x4xf32>
    tpu.vector_store %arg7[%c0_1, %c0_2], %1 {strides = array<i32>} : memref<512x4xf32, #tpu.memory_space<vmem>>, vector<448x4xf32>,
    %c0_3 = arith.constant 0 : index
    %c0_4 = arith.constant 0 : index
    %3 = vector.load %arg2[%c0_3, %c0_4] : memref<64x4xbf16, #tpu.memory_space<vmem>>, vector<64x4xbf16>
    %4 = arith.extf %3 : vector<64x4xbf16> to vector<64x4xf32>
    %c448 = arith.constant 448 : index
    %c0_5 = arith.constant 0 : index
    %5 = vector.load %arg7[%c448, %c0_5] : memref<512x4xf32, #tpu.memory_space<vmem>>, vector<64x4xf32>
    tpu.vector_store %arg7[%c448, %c0_5], %4 {strides = array<i32>} : memref<512x4xf32, #tpu.memory_space<vmem>>, vector<64x4xf32>,
    %c0_6 = arith.constant 0 : index
    %c0_7 = arith.constant 0 : index
    %6 = vector.load %arg7[%c0_6, %c0_7] : memref<512x4xf32, #tpu.memory_space<vmem>>, vector<512x4xf32>
    %cst = arith.constant 0.000000e+00 : f32
    %7 = vector.broadcast %cst : f32 to vector<448x8xf32>
    %8 = vector.extract_strided_slice %6 {offsets = [0, 0], sizes = [496, 4], strides = [1, 1]} : vector<512x4xf32> to vector<496x4xf32>
    %9 = vector.extract_strided_slice %8 {offsets = [0, 0], sizes = [448, 4], strides = [1, 1]} : vector<496x4xf32> to vector<448x4xf32>
    %c0_8 = arith.constant 0 : index
    %c0_9 = arith.constant 0 : index
    %c0_10 = arith.constant 0 : index
    %10 = vector.load %arg3[%c0_8, %c0_9, %c0_10] : memref<9x4x8xf32, #tpu.memory_space<vmem>>, vector<1x4x8xf32>
    %11 = vector.shape_cast %10 : vector<1x4x8xf32> to vector<4x8xf32>
    %cst_11 = arith.constant dense<0.000000e+00> : vector<448x8xf32>
    %12 = tpu.matmul %9, %11, %cst_11 {dimension_numbers = #tpu.dot_dimension_numbers<[1], [0], [0], [1], [0, 0, 1, 1], [], []>} : vector<448x4xf32>, vector<4x8xf32>, vector<448x8xf32> -> vector<448x8xf32>
    %13 = arith.addf %7, %12 : vector<448x8xf32>
    %14 = vector.extract_strided_slice %8 {offsets = [24, 0], sizes = [448, 4], strides = [1, 1]} : vector<496x4xf32> to vector<448x4xf32>
    %c3 = arith.constant 3 : index
    %c0_12 = arith.constant 0 : index
    %c0_13 = arith.constant 0 : index
    %15 = vector.load %arg3[%c3, %c0_12, %c0_13] : memref<9x4x8xf32, #tpu.memory_space<vmem>>, vector<1x4x8xf32>
    %16 = vector.shape_cast %15 : vector<1x4x8xf32> to vector<4x8xf32>
    %cst_14 = arith.constant dense<0.000000e+00> : vector<448x8xf32>
    %17 = tpu.matmul %14, %16, %cst_14 {dimension_numbers = #tpu.dot_dimension_numbers<[1], [0], [0], [1], [0, 0, 1, 1], [], []>} : vector<448x4xf32>, vector<4x8xf32>, vector<448x8xf32> -> vector<448x8xf32>
    %18 = arith.addf %13, %17 : vector<448x8xf32>
    %19 = vector.extract_strided_slice %8 {offsets = [48, 0], sizes = [448, 4], strides = [1, 1]} : vector<496x4xf32> to vector<448x4xf32>
    %c6 = arith.constant 6 : index
    %c0_15 = arith.constant 0 : index
    %c0_16 = arith.constant 0 : index
    %20 = vector.load %arg3[%c6, %c0_15, %c0_16] : memref<9x4x8xf32, #tpu.memory_space<vmem>>, vector<1x4x8xf32>
    %21 = vector.shape_cast %20 : vector<1x4x8xf32> to vector<4x8xf32>
    %cst_17 = arith.constant dense<0.000000e+00> : vector<448x8xf32>
    %22 = tpu.matmul %19, %21, %cst_17 {dimension_numbers = #tpu.dot_dimension_numbers<[1], [0], [0], [1], [0, 0, 1, 1], [], []>} : vector<448x4xf32>, vector<4x8xf32>, vector<448x8xf32> -> vector<448x8xf32>
    %23 = arith.addf %18, %22 : vector<448x8xf32>
    %24 = vector.extract_strided_slice %6 {offsets = [1, 0], sizes = [496, 4], strides = [1, 1]} : vector<512x4xf32> to vector<496x4xf32>
    %25 = vector.extract_strided_slice %24 {offsets = [0, 0], sizes = [448, 4], strides = [1, 1]} : vector<496x4xf32> to vector<448x4xf32>
    %c1 = arith.constant 1 : index
    %c0_18 = arith.constant 0 : index
    %c0_19 = arith.constant 0 : index
    %26 = vector.load %arg3[%c1, %c0_18, %c0_19] : memref<9x4x8xf32, #tpu.memory_space<vmem>>, vector<1x4x8xf32>
    %27 = vector.shape_cast %26 : vector<1x4x8xf32> to vector<4x8xf32>
    %cst_20 = arith.constant dense<0.000000e+00> : vector<448x8xf32>
    %28 = tpu.matmul %25, %27, %cst_20 {dimension_numbers = #tpu.dot_dimension_numbers<[1], [0], [0], [1], [0, 0, 1, 1], [], []>} : vector<448x4xf32>, vector<4x8xf32>, vector<448x8xf32> -> vector<448x8xf32>
    %29 = arith.addf %23, %28 : vector<448x8xf32>
    %30 = vector.extract_strided_slice %24 {offsets = [24, 0], sizes = [448, 4], strides = [1, 1]} : vector<496x4xf32> to vector<448x4xf32>
    %c4 = arith.constant 4 : index
    %c0_21 = arith.constant 0 : index
    %c0_22 = arith.constant 0 : index
    %31 = vector.load %arg3[%c4, %c0_21, %c0_22] : memref<9x4x8xf32, #tpu.memory_space<vmem>>, vector<1x4x8xf32>
    %32 = vector.shape_cast %31 : vector<1x4x8xf32> to vector<4x8xf32>
    %cst_23 = arith.constant dense<0.000000e+00> : vector<448x8xf32>
    %33 = tpu.matmul %30, %32, %cst_23 {dimension_numbers = #tpu.dot_dimension_numbers<[1], [0], [0], [1], [0, 0, 1, 1], [], []>} : vector<448x4xf32>, vector<4x8xf32>, vector<448x8xf32> -> vector<448x8xf32>
    %34 = arith.addf %29, %33 : vector<448x8xf32>
    %35 = vector.extract_strided_slice %24 {offsets = [48, 0], sizes = [448, 4], strides = [1, 1]} : vector<496x4xf32> to vector<448x4xf32>
    %c7 = arith.constant 7 : index
    %c0_24 = arith.constant 0 : index
    %c0_25 = arith.constant 0 : index
    %36 = vector.load %arg3[%c7, %c0_24, %c0_25] : memref<9x4x8xf32, #tpu.memory_space<vmem>>, vector<1x4x8xf32>
    %37 = vector.shape_cast %36 : vector<1x4x8xf32> to vector<4x8xf32>
    %cst_26 = arith.constant dense<0.000000e+00> : vector<448x8xf32>
    %38 = tpu.matmul %35, %37, %cst_26 {dimension_numbers = #tpu.dot_dimension_numbers<[1], [0], [0], [1], [0, 0, 1, 1], [], []>} : vector<448x4xf32>, vector<4x8xf32>, vector<448x8xf32> -> vector<448x8xf32>
    %39 = arith.addf %34, %38 : vector<448x8xf32>
    %40 = vector.extract_strided_slice %6 {offsets = [2, 0], sizes = [496, 4], strides = [1, 1]} : vector<512x4xf32> to vector<496x4xf32>
    %41 = vector.extract_strided_slice %40 {offsets = [0, 0], sizes = [448, 4], strides = [1, 1]} : vector<496x4xf32> to vector<448x4xf32>
    %c2 = arith.constant 2 : index
    %c0_27 = arith.constant 0 : index
    %c0_28 = arith.constant 0 : index
    %42 = vector.load %arg3[%c2, %c0_27, %c0_28] : memref<9x4x8xf32, #tpu.memory_space<vmem>>, vector<1x4x8xf32>
    %43 = vector.shape_cast %42 : vector<1x4x8xf32> to vector<4x8xf32>
    %cst_29 = arith.constant dense<0.000000e+00> : vector<448x8xf32>
    %44 = tpu.matmul %41, %43, %cst_29 {dimension_numbers = #tpu.dot_dimension_numbers<[1], [0], [0], [1], [0, 0, 1, 1], [], []>} : vector<448x4xf32>, vector<4x8xf32>, vector<448x8xf32> -> vector<448x8xf32>
    %45 = arith.addf %39, %44 : vector<448x8xf32>
    %46 = vector.extract_strided_slice %40 {offsets = [24, 0], sizes = [448, 4], strides = [1, 1]} : vector<496x4xf32> to vector<448x4xf32>
    %c5 = arith.constant 5 : index
    %c0_30 = arith.constant 0 : index
    %c0_31 = arith.constant 0 : index
    %47 = vector.load %arg3[%c5, %c0_30, %c0_31] : memref<9x4x8xf32, #tpu.memory_space<vmem>>, vector<1x4x8xf32>
    %48 = vector.shape_cast %47 : vector<1x4x8xf32> to vector<4x8xf32>
    %cst_32 = arith.constant dense<0.000000e+00> : vector<448x8xf32>
    %49 = tpu.matmul %46, %48, %cst_32 {dimension_numbers = #tpu.dot_dimension_numbers<[1], [0], [0], [1], [0, 0, 1, 1], [], []>} : vector<448x4xf32>, vector<4x8xf32>, vector<448x8xf32> -> vector<448x8xf32>
    %50 = arith.addf %45, %49 : vector<448x8xf32>
    %51 = vector.extract_strided_slice %40 {offsets = [48, 0], sizes = [448, 4], strides = [1, 1]} : vector<496x4xf32> to vector<448x4xf32>
    %c8 = arith.constant 8 : index
    %c0_33 = arith.constant 0 : index
    %c0_34 = arith.constant 0 : index
    %52 = vector.load %arg3[%c8, %c0_33, %c0_34] : memref<9x4x8xf32, #tpu.memory_space<vmem>>, vector<1x4x8xf32>
    %53 = vector.shape_cast %52 : vector<1x4x8xf32> to vector<4x8xf32>
    %cst_35 = arith.constant dense<0.000000e+00> : vector<448x8xf32>
    %54 = tpu.matmul %51, %53, %cst_35 {dimension_numbers = #tpu.dot_dimension_numbers<[1], [0], [0], [1], [0, 0, 1, 1], [], []>} : vector<448x4xf32>, vector<4x8xf32>, vector<448x8xf32> -> vector<448x8xf32>
    %55 = arith.addf %50, %54 : vector<448x8xf32>
    %c0_36 = arith.constant 0 : index
    %c0_37 = arith.constant 0 : index
    %56 = vector.load %arg4[%c0_36, %c0_37] : memref<448x1xf32, #tpu.memory_space<vmem>>, vector<448x1xf32>
    %57 = vector.broadcast %56 : vector<448x1xf32> to vector<448x8xf32>
    %58 = arith.mulf %55, %57 : vector<448x8xf32>
    %cst_38 = arith.constant 1.000000e+00 : f32
    %59 = vector.broadcast %cst_38 : f32 to vector<1x448xf32>
    %cst_39 = arith.constant dense<0.000000e+00> : vector<1x8xf32>
    %60 = tpu.matmul %59, %58, %cst_39 {dimension_numbers = #tpu.dot_dimension_numbers<[1], [0], [0], [1], [0, 0, 1, 1], [], []>} : vector<1x448xf32>, vector<448x8xf32>, vector<1x8xf32> -> vector<1x8xf32>
    %61 = arith.mulf %58, %55 : vector<448x8xf32>
    %cst_40 = arith.constant dense<0.000000e+00> : vector<1x8xf32>
    %62 = tpu.matmul %59, %61, %cst_40 {dimension_numbers = #tpu.dot_dimension_numbers<[1], [0], [0], [1], [0, 0, 1, 1], [], []>} : vector<1x448xf32>, vector<448x8xf32>, vector<1x8xf32> -> vector<1x8xf32>
    %63 = vector.shape_cast %60 : vector<1x8xf32> to vector<1x8xf32>
    %64 = vector.broadcast %63 : vector<1x8xf32> to vector<8x8xf32>
    %c0_41 = arith.constant 0 : index
    %c0_42 = arith.constant 0 : index
    %65 = vector.load %arg5[%c0_41, %c0_42] : memref<8x8xf32, #tpu.memory_space<vmem>>, vector<8x8xf32>
    tpu.vector_store %arg5[%c0_41, %c0_42], %64 {strides = array<i32>} : memref<8x8xf32, #tpu.memory_space<vmem>>, vector<8x8xf32>,
    %66 = vector.shape_cast %62 : vector<1x8xf32> to vector<1x8xf32>
    %67 = vector.broadcast %66 : vector<1x8xf32> to vector<8x8xf32>
    %c0_43 = arith.constant 0 : index
    %c0_44 = arith.constant 0 : index
    %68 = vector.load %arg6[%c0_43, %c0_44] : memref<8x8xf32, #tpu.memory_space<vmem>>, vector<8x8xf32>
    tpu.vector_store %arg6[%c0_43, %c0_44], %67 {strides = array<i32>} : memref<8x8xf32, #tpu.memory_space<vmem>>, vector<8x8xf32>,
    return
  }
  func.func @transform_0(%arg0: i32) -> (i32, i32) {
    %c0_i32 = arith.constant 0 : i32
    %c0_i32_0 = arith.constant 0 : i32
    return %arg0, %c0_i32 : i32, i32
  }
  func.func @transform_1(%arg0: i32) -> (i32, i32) {
    %c1_i32 = arith.constant 1 : i32
    %0 = arith.addi %arg0, %c1_i32 : i32
    %c7_i32 = arith.constant 7 : i32
    %1 = arith.muli %0, %c7_i32 : i32
    %c0_i32 = arith.constant 0 : i32
    %c0_i32_0 = arith.constant 0 : i32
    return %1, %c0_i32 : i32, i32
  }
  func.func @transform_2(%arg0: i32) -> (i32, i32, i32) {
    %c0_i32 = arith.constant 0 : i32
    %c0_i32_0 = arith.constant 0 : i32
    %c0_i32_1 = arith.constant 0 : i32
    %c0_i32_2 = arith.constant 0 : i32
    return %c0_i32, %c0_i32_0, %c0_i32_1 : i32, i32, i32
  }
  func.func @transform_3(%arg0: i32) -> (i32, i32) {
    %c0_i32 = arith.constant 0 : i32
    %c0_i32_0 = arith.constant 0 : i32
    return %arg0, %c0_i32 : i32, i32
  }
  func.func @transform_4(%arg0: i32) -> (i32, i32) {
    %c0_i32 = arith.constant 0 : i32
    %c0_i32_0 = arith.constant 0 : i32
    return %arg0, %c0_i32 : i32, i32
  }
  func.func @transform_5(%arg0: i32) -> (i32, i32) {
    %c0_i32 = arith.constant 0 : i32
    %c0_i32_0 = arith.constant 0 : i32
    return %arg0, %c0_i32 : i32, i32
  }
}

module attributes {stable_mosaic.version = 11 : i64} {
  func.func @_conv_apply_kernel(%arg0: i32, %arg1: memref<448x4xbf16, #tpu.memory_space<vmem>>, %arg2: memref<64x4xbf16, #tpu.memory_space<vmem>>, %arg3: memref<9x4x8xf32, #tpu.memory_space<vmem>>, %arg4: memref<1x8xf32, #tpu.memory_space<vmem>>, %arg5: memref<1x8xf32, #tpu.memory_space<vmem>>, %arg6: memref<448x8xf32, #tpu.memory_space<vmem>>, %arg7: memref<512x4xf32, #tpu.memory_space<vmem>>) attributes {dimension_semantics = [#tpu.dimension_semantics<parallel>], iteration_bounds = array<i64: 2>, scalar_prefetch = 0 : i64, scratch_operands = 1 : i64, tpu.core_type = #tpu.core_type<tc>, window_params = [{transform_indices = @transform_0, window_bounds = array<i64: 448, 4>}, {transform_indices = @transform_1, window_bounds = array<i64: 64, 4>}, {pipeline_mode = #tpu.pipeline_mode<synchronous>, transform_indices = @transform_2, window_bounds = array<i64: 9, 4, 8>}, {pipeline_mode = #tpu.pipeline_mode<synchronous>, transform_indices = @transform_3, window_bounds = array<i64: 1, 8>}, {pipeline_mode = #tpu.pipeline_mode<synchronous>, transform_indices = @transform_4, window_bounds = array<i64: 1, 8>}, {transform_indices = @transform_5, window_bounds = array<i64: 448, 8>}]} {
    %c0 = arith.constant 0 : index
    %c0_0 = arith.constant 0 : index
    %0 = vector.load %arg1[%c0, %c0_0] : memref<448x4xbf16, #tpu.memory_space<vmem>>, vector<448x4xbf16>
    %1 = arith.extf %0 : vector<448x4xbf16> to vector<448x4xf32>
    %c0_1 = arith.constant 0 : index
    %c0_2 = arith.constant 0 : index
    %2 = vector.load %arg7[%c0_1, %c0_2] : memref<512x4xf32, #tpu.memory_space<vmem>>, vector<448x4xf32>
    tpu.vector_store %arg7[%c0_1, %c0_2], %1 {strides = array<i32>} : memref<512x4xf32, #tpu.memory_space<vmem>>, vector<448x4xf32>,
    %c0_3 = arith.constant 0 : index
    %c0_4 = arith.constant 0 : index
    %3 = vector.load %arg2[%c0_3, %c0_4] : memref<64x4xbf16, #tpu.memory_space<vmem>>, vector<64x4xbf16>
    %4 = arith.extf %3 : vector<64x4xbf16> to vector<64x4xf32>
    %c448 = arith.constant 448 : index
    %c0_5 = arith.constant 0 : index
    %5 = vector.load %arg7[%c448, %c0_5] : memref<512x4xf32, #tpu.memory_space<vmem>>, vector<64x4xf32>
    tpu.vector_store %arg7[%c448, %c0_5], %4 {strides = array<i32>} : memref<512x4xf32, #tpu.memory_space<vmem>>, vector<64x4xf32>,
    %c0_6 = arith.constant 0 : index
    %c0_7 = arith.constant 0 : index
    %6 = vector.load %arg7[%c0_6, %c0_7] : memref<512x4xf32, #tpu.memory_space<vmem>>, vector<512x4xf32>
    %cst = arith.constant 0.000000e+00 : f32
    %7 = vector.broadcast %cst : f32 to vector<448x8xf32>
    %8 = vector.extract_strided_slice %6 {offsets = [0, 0], sizes = [496, 4], strides = [1, 1]} : vector<512x4xf32> to vector<496x4xf32>
    %9 = vector.extract_strided_slice %8 {offsets = [0, 0], sizes = [448, 4], strides = [1, 1]} : vector<496x4xf32> to vector<448x4xf32>
    %c0_8 = arith.constant 0 : index
    %c0_9 = arith.constant 0 : index
    %c0_10 = arith.constant 0 : index
    %10 = vector.load %arg3[%c0_8, %c0_9, %c0_10] : memref<9x4x8xf32, #tpu.memory_space<vmem>>, vector<1x4x8xf32>
    %11 = vector.shape_cast %10 : vector<1x4x8xf32> to vector<4x8xf32>
    %cst_11 = arith.constant dense<0.000000e+00> : vector<448x8xf32>
    %12 = tpu.matmul %9, %11, %cst_11 {dimension_numbers = #tpu.dot_dimension_numbers<[1], [0], [0], [1], [0, 0, 1, 1], [], []>} : vector<448x4xf32>, vector<4x8xf32>, vector<448x8xf32> -> vector<448x8xf32>
    %13 = arith.addf %7, %12 : vector<448x8xf32>
    %14 = vector.extract_strided_slice %8 {offsets = [24, 0], sizes = [448, 4], strides = [1, 1]} : vector<496x4xf32> to vector<448x4xf32>
    %c3 = arith.constant 3 : index
    %c0_12 = arith.constant 0 : index
    %c0_13 = arith.constant 0 : index
    %15 = vector.load %arg3[%c3, %c0_12, %c0_13] : memref<9x4x8xf32, #tpu.memory_space<vmem>>, vector<1x4x8xf32>
    %16 = vector.shape_cast %15 : vector<1x4x8xf32> to vector<4x8xf32>
    %cst_14 = arith.constant dense<0.000000e+00> : vector<448x8xf32>
    %17 = tpu.matmul %14, %16, %cst_14 {dimension_numbers = #tpu.dot_dimension_numbers<[1], [0], [0], [1], [0, 0, 1, 1], [], []>} : vector<448x4xf32>, vector<4x8xf32>, vector<448x8xf32> -> vector<448x8xf32>
    %18 = arith.addf %13, %17 : vector<448x8xf32>
    %19 = vector.extract_strided_slice %8 {offsets = [48, 0], sizes = [448, 4], strides = [1, 1]} : vector<496x4xf32> to vector<448x4xf32>
    %c6 = arith.constant 6 : index
    %c0_15 = arith.constant 0 : index
    %c0_16 = arith.constant 0 : index
    %20 = vector.load %arg3[%c6, %c0_15, %c0_16] : memref<9x4x8xf32, #tpu.memory_space<vmem>>, vector<1x4x8xf32>
    %21 = vector.shape_cast %20 : vector<1x4x8xf32> to vector<4x8xf32>
    %cst_17 = arith.constant dense<0.000000e+00> : vector<448x8xf32>
    %22 = tpu.matmul %19, %21, %cst_17 {dimension_numbers = #tpu.dot_dimension_numbers<[1], [0], [0], [1], [0, 0, 1, 1], [], []>} : vector<448x4xf32>, vector<4x8xf32>, vector<448x8xf32> -> vector<448x8xf32>
    %23 = arith.addf %18, %22 : vector<448x8xf32>
    %24 = vector.extract_strided_slice %6 {offsets = [1, 0], sizes = [496, 4], strides = [1, 1]} : vector<512x4xf32> to vector<496x4xf32>
    %25 = vector.extract_strided_slice %24 {offsets = [0, 0], sizes = [448, 4], strides = [1, 1]} : vector<496x4xf32> to vector<448x4xf32>
    %c1 = arith.constant 1 : index
    %c0_18 = arith.constant 0 : index
    %c0_19 = arith.constant 0 : index
    %26 = vector.load %arg3[%c1, %c0_18, %c0_19] : memref<9x4x8xf32, #tpu.memory_space<vmem>>, vector<1x4x8xf32>
    %27 = vector.shape_cast %26 : vector<1x4x8xf32> to vector<4x8xf32>
    %cst_20 = arith.constant dense<0.000000e+00> : vector<448x8xf32>
    %28 = tpu.matmul %25, %27, %cst_20 {dimension_numbers = #tpu.dot_dimension_numbers<[1], [0], [0], [1], [0, 0, 1, 1], [], []>} : vector<448x4xf32>, vector<4x8xf32>, vector<448x8xf32> -> vector<448x8xf32>
    %29 = arith.addf %23, %28 : vector<448x8xf32>
    %30 = vector.extract_strided_slice %24 {offsets = [24, 0], sizes = [448, 4], strides = [1, 1]} : vector<496x4xf32> to vector<448x4xf32>
    %c4 = arith.constant 4 : index
    %c0_21 = arith.constant 0 : index
    %c0_22 = arith.constant 0 : index
    %31 = vector.load %arg3[%c4, %c0_21, %c0_22] : memref<9x4x8xf32, #tpu.memory_space<vmem>>, vector<1x4x8xf32>
    %32 = vector.shape_cast %31 : vector<1x4x8xf32> to vector<4x8xf32>
    %cst_23 = arith.constant dense<0.000000e+00> : vector<448x8xf32>
    %33 = tpu.matmul %30, %32, %cst_23 {dimension_numbers = #tpu.dot_dimension_numbers<[1], [0], [0], [1], [0, 0, 1, 1], [], []>} : vector<448x4xf32>, vector<4x8xf32>, vector<448x8xf32> -> vector<448x8xf32>
    %34 = arith.addf %29, %33 : vector<448x8xf32>
    %35 = vector.extract_strided_slice %24 {offsets = [48, 0], sizes = [448, 4], strides = [1, 1]} : vector<496x4xf32> to vector<448x4xf32>
    %c7 = arith.constant 7 : index
    %c0_24 = arith.constant 0 : index
    %c0_25 = arith.constant 0 : index
    %36 = vector.load %arg3[%c7, %c0_24, %c0_25] : memref<9x4x8xf32, #tpu.memory_space<vmem>>, vector<1x4x8xf32>
    %37 = vector.shape_cast %36 : vector<1x4x8xf32> to vector<4x8xf32>
    %cst_26 = arith.constant dense<0.000000e+00> : vector<448x8xf32>
    %38 = tpu.matmul %35, %37, %cst_26 {dimension_numbers = #tpu.dot_dimension_numbers<[1], [0], [0], [1], [0, 0, 1, 1], [], []>} : vector<448x4xf32>, vector<4x8xf32>, vector<448x8xf32> -> vector<448x8xf32>
    %39 = arith.addf %34, %38 : vector<448x8xf32>
    %40 = vector.extract_strided_slice %6 {offsets = [2, 0], sizes = [496, 4], strides = [1, 1]} : vector<512x4xf32> to vector<496x4xf32>
    %41 = vector.extract_strided_slice %40 {offsets = [0, 0], sizes = [448, 4], strides = [1, 1]} : vector<496x4xf32> to vector<448x4xf32>
    %c2 = arith.constant 2 : index
    %c0_27 = arith.constant 0 : index
    %c0_28 = arith.constant 0 : index
    %42 = vector.load %arg3[%c2, %c0_27, %c0_28] : memref<9x4x8xf32, #tpu.memory_space<vmem>>, vector<1x4x8xf32>
    %43 = vector.shape_cast %42 : vector<1x4x8xf32> to vector<4x8xf32>
    %cst_29 = arith.constant dense<0.000000e+00> : vector<448x8xf32>
    %44 = tpu.matmul %41, %43, %cst_29 {dimension_numbers = #tpu.dot_dimension_numbers<[1], [0], [0], [1], [0, 0, 1, 1], [], []>} : vector<448x4xf32>, vector<4x8xf32>, vector<448x8xf32> -> vector<448x8xf32>
    %45 = arith.addf %39, %44 : vector<448x8xf32>
    %46 = vector.extract_strided_slice %40 {offsets = [24, 0], sizes = [448, 4], strides = [1, 1]} : vector<496x4xf32> to vector<448x4xf32>
    %c5 = arith.constant 5 : index
    %c0_30 = arith.constant 0 : index
    %c0_31 = arith.constant 0 : index
    %47 = vector.load %arg3[%c5, %c0_30, %c0_31] : memref<9x4x8xf32, #tpu.memory_space<vmem>>, vector<1x4x8xf32>
    %48 = vector.shape_cast %47 : vector<1x4x8xf32> to vector<4x8xf32>
    %cst_32 = arith.constant dense<0.000000e+00> : vector<448x8xf32>
    %49 = tpu.matmul %46, %48, %cst_32 {dimension_numbers = #tpu.dot_dimension_numbers<[1], [0], [0], [1], [0, 0, 1, 1], [], []>} : vector<448x4xf32>, vector<4x8xf32>, vector<448x8xf32> -> vector<448x8xf32>
    %50 = arith.addf %45, %49 : vector<448x8xf32>
    %51 = vector.extract_strided_slice %40 {offsets = [48, 0], sizes = [448, 4], strides = [1, 1]} : vector<496x4xf32> to vector<448x4xf32>
    %c8 = arith.constant 8 : index
    %c0_33 = arith.constant 0 : index
    %c0_34 = arith.constant 0 : index
    %52 = vector.load %arg3[%c8, %c0_33, %c0_34] : memref<9x4x8xf32, #tpu.memory_space<vmem>>, vector<1x4x8xf32>
    %53 = vector.shape_cast %52 : vector<1x4x8xf32> to vector<4x8xf32>
    %cst_35 = arith.constant dense<0.000000e+00> : vector<448x8xf32>
    %54 = tpu.matmul %51, %53, %cst_35 {dimension_numbers = #tpu.dot_dimension_numbers<[1], [0], [0], [1], [0, 0, 1, 1], [], []>} : vector<448x4xf32>, vector<4x8xf32>, vector<448x8xf32> -> vector<448x8xf32>
    %55 = arith.addf %50, %54 : vector<448x8xf32>
    %c0_36 = arith.constant 0 : index
    %c0_37 = arith.constant 0 : index
    %56 = vector.load %arg4[%c0_36, %c0_37] : memref<1x8xf32, #tpu.memory_space<vmem>>, vector<1x8xf32>
    %57 = vector.broadcast %56 : vector<1x8xf32> to vector<448x8xf32>
    %58 = arith.mulf %55, %57 : vector<448x8xf32>
    %c0_38 = arith.constant 0 : index
    %c0_39 = arith.constant 0 : index
    %59 = vector.load %arg5[%c0_38, %c0_39] : memref<1x8xf32, #tpu.memory_space<vmem>>, vector<1x8xf32>
    %60 = vector.broadcast %59 : vector<1x8xf32> to vector<448x8xf32>
    %61 = arith.addf %58, %60 : vector<448x8xf32>
    %cst_40 = arith.constant 0.000000e+00 : f32
    %62 = vector.broadcast %cst_40 : f32 to vector<448x8xf32>
    %63 = arith.maximumf %61, %62 : vector<448x8xf32>
    %c0_41 = arith.constant 0 : index
    %c0_42 = arith.constant 0 : index
    %64 = vector.load %arg6[%c0_41, %c0_42] : memref<448x8xf32, #tpu.memory_space<vmem>>, vector<448x8xf32>
    tpu.vector_store %arg6[%c0_41, %c0_42], %63 {strides = array<i32>} : memref<448x8xf32, #tpu.memory_space<vmem>>, vector<448x8xf32>,
    return
  }
  func.func @transform_0(%arg0: i32) -> (i32, i32) {
    %c0_i32 = arith.constant 0 : i32
    %c0_i32_0 = arith.constant 0 : i32
    return %arg0, %c0_i32 : i32, i32
  }
  func.func @transform_1(%arg0: i32) -> (i32, i32) {
    %c1_i32 = arith.constant 1 : i32
    %0 = arith.addi %arg0, %c1_i32 : i32
    %c7_i32 = arith.constant 7 : i32
    %1 = arith.muli %0, %c7_i32 : i32
    %c0_i32 = arith.constant 0 : i32
    %c0_i32_0 = arith.constant 0 : i32
    return %1, %c0_i32 : i32, i32
  }
  func.func @transform_2(%arg0: i32) -> (i32, i32, i32) {
    %c0_i32 = arith.constant 0 : i32
    %c0_i32_0 = arith.constant 0 : i32
    %c0_i32_1 = arith.constant 0 : i32
    %c0_i32_2 = arith.constant 0 : i32
    return %c0_i32, %c0_i32_0, %c0_i32_1 : i32, i32, i32
  }
  func.func @transform_3(%arg0: i32) -> (i32, i32) {
    %c0_i32 = arith.constant 0 : i32
    %c0_i32_0 = arith.constant 0 : i32
    %c0_i32_1 = arith.constant 0 : i32
    return %c0_i32, %c0_i32_0 : i32, i32
  }
  func.func @transform_4(%arg0: i32) -> (i32, i32) {
    %c0_i32 = arith.constant 0 : i32
    %c0_i32_0 = arith.constant 0 : i32
    %c0_i32_1 = arith.constant 0 : i32
    return %c0_i32, %c0_i32_0 : i32, i32
  }
  func.func @transform_5(%arg0: i32) -> (i32, i32) {
    %c0_i32 = arith.constant 0 : i32
    %c0_i32_0 = arith.constant 0 : i32
    return %arg0, %c0_i32 : i32, i32
  }
}

</mosaic_0001>

<bundles_post_ra>
// kernel: unet_backbone_forward.2
= control target key start
LH: loop header
LB: loop body
LE: loop exit
PB: predicated region body
PF: predicated region fallthrough
CT: control target
= control target key end

     0   :  { %s8352_s18 = smov 0   ;;  %s10795_s0 = inlined_call_operand.vmem [shape: bf16[960,4], index: 0, kind: input, shape index: {}, may-alias: {0,1}]   ;;  %s10796_s1 = inlined_call_operand.vmem [shape: bf16[960,4], index: 1, kind: input, shape index: {}, may-alias: {0,1}]   ;;  %s10797_s2 = inlined_call_operand.vmem [shape: f32[9,4,8], index: 2, kind: input, shape index: {}]   ;;  %s10798_s3 = inlined_call_operand.vmem [shape: f32[896,1], index: 3, kind: input, shape index: {}]   ;;  %s10799_s4 = inlined_call_operand.vmem [shape: f32[16,8], index: 4, kind: output, shape index: {0}]   ;;  %s10800_s5 = inlined_call_operand.vmem [shape: f32[16,8], index: 5, kind: output, shape index: {1}]  }
   0x1 LB: > { %s8358_s19 = sadd.s32 4294967295, %s8317_s18   ;;  %p5654_p0 = scmp.ge.s32.totalorder %s8317_s18, 1  ;;  %s8317_s18 = sphi %s8352_s18, %s16_s18  }
   0x2   : > { %p229_p1 = scmp.lt.s32.totalorder %s8317_s18, 3 }
   0x4   : > { %p230_p2 = pnand %p5654_p0, %p229_p1 }
   0x6   : > { %233 = sbr.rel (%p230_p2) target bundleno = 1126 (0x466), region = 36 }
   0xd   : > { %v5661_v0 = vld [vmem:[%s10797_s2 + $0xc] sm:$0xf]  ;;  %vm741_vm0 = vcmask 1043456   ;;  %s8366_s22 = smul.u32 56, %s8358_s19  ;;  %v8372_v1 = vld [vmem:[%s10797_s2 + $0x4] sm:$0xf] }
   0xe   : > { %6927 = vmatprep.subr.msk.mxu1 %vm741_vm0, %v5661_v0  ;;  %v8377_v2 = vld [vmem:[%s10797_s2 + $0x10] sm:$0xf]  ;;  %7185 = vmatprep.subr.msk.mxu0 %vm741_vm0, %v8372_v1  ;;  %v8386_v3 = vld [vmem:[%s10797_s2] sm:$0xf]  ;;  %vm426_vm1 = vcmask 31744   ;;  %vm1864_vm2 = vcmask 1046528  }
   0xf   : > { %6928 = vmatpush3.msk.msra.mxu1 %vm741_vm0, %v5661_v0  ;;  %p281_p3 = scmp.lt.s32.totalorder %s8366_s22, 119  ;;  %7186 = vmatpush3.msk.msra.mxu0 %vm741_vm0, %v8372_v1  ;;  %s290_s9 = sadd.s32 1, %s8358_s19  ;;  %vm3333_vm3 = vcmask 1045504   ;;  %vm5191_vm4 = vcmask 523264   ;;  %vm5535_vm5 = vcmask 64512  }
  0x10   : > { %7013 = vmatprep.subr.msk.mxu1 %vm741_vm0, %v8386_v3  ;;  %7271 = vmatprep.subr.msk.mxu0 %vm741_vm0, %v8377_v2  ;;  %s5656_s10 = smul.u32 56, %s290_s9  ;;  %p301_p5 = scmp.lt.s32.totalorder %s8366_s22, 111 }
  0x11   : > { %s282_s29 = scalar_select %p281_p3, %s8366_s22, 119 }
  0x12   : > { %p293_p4 = scmp.lt.s32.totalorder %s5656_s10, 119  ;;  %s11268_s22 = smov (!%p301_p5, %s8366_s22), 111 }
  0x13   : > { %s5655_s30 = sshll.u32 %s282_s29, 2  ;;  %p306_p6 = scmp.lt.s32.totalorder %s8358_s19, 1 }
  0x14   : > { %s8398_s8 = scalar_lea.vmem %s10795_s0, %s5655_s30  ;;  %s11266_s10 = smov (!%p293_p4, %s5656_s10), 119 }
  0x15   : > { %v6314_v4 = vld [vmem:[%s8398_s8 + $0x8] sm:$0xff]   ;;  %v6315_v5 = vld [vmem:[%s8398_s8 + $0x10] sm:$0xff]   ;;  %v6187_v6 = vld [vmem:[%s8398_s8] sm:$0xff]   ;;  %s5657_s13 = sshll.u32 %s11266_s10, 2  ;;  %s5658_s30 = sshll.u32 %s11268_s22, 3 }
  0x16   : > { %v6192_v7 = vunpack.c.l.bf16 %v6314_v4  ;;  %v6193_v8 = vunpack.c.h.bf16 %v6314_v4  ;;  %v6196_v9 = vunpack.c.l.bf16 %v6315_v5  ;;  %v6188_v10 = vunpack.c.l.bf16 %v6187_v6  ;;  %v6316_v11 = vld [vmem:[%s8398_s8 + $0x18] sm:$0xff]   ;;  %v6317_v12 = vld [vmem:[%s8398_s8 + $0x20] sm:$0xff]   ;;  %v6318_v13 = vld [vmem:[%s8398_s8 + $0x28] sm:$0xff]   ;;  %s8556_s16 = scalar_lea.vmem %s10796_s1, %s5657_s13  ;;  %s9667_s22 = scalar_lea.vmem %s10798_s3, %s5658_s30 }
  0x17   : > { %v6189_v14 = vunpack.c.h.bf16 %v6187_v6  ;;  %v6197_v15 = vunpack.c.h.bf16 %v6315_v5  ;;  %v6200_v16 = vunpack.c.l.bf16 %v6316_v11  ;;  %v6201_v17 = vunpack.c.h.bf16 %v6316_v11  ;;  %v6319_v18 = vld [vmem:[%s8398_s8 + $0x30] sm:$0xff]   ;;  %v6320_v19 = vld [vmem:[%s8398_s8 + $0x38] sm:$0xff]   ;;  %v6321_v20 = vld [vmem:[%s8398_s8 + $0x40] sm:$0xff]   ;;  %s11270_s19 = smov (!%p306_p6, %s8358_s19), 1 }
  0x18   : > { %429 = vst.msk [vmem:[#allocation2 + $0x10] sm:$0xff] %vm426_vm1, %v6192_v7  ;;  %430 = vst.msk [vmem:[#allocation2 + $0x18] sm:$0xff] %vm426_vm1, %v6193_v8  ;;  %v6204_v21 = vunpack.c.l.bf16 %v6317_v12  ;;  %v6205_v22 = vunpack.c.h.bf16 %v6317_v12  ;;  %v6208_v23 = vunpack.c.l.bf16 %v6318_v13  ;;  %v6209_v24 = vunpack.c.h.bf16 %v6318_v13  ;;  %v6322_v25 = vld [vmem:[%s8398_s8 + $0x48] sm:$0xff]   ;;  %v6323_v26 = vld [vmem:[%s8398_s8 + $0x50] sm:$0xff]  }
  0x19   : > { %431 = vst.msk [vmem:[#allocation2 + $0x20] sm:$0xff] %vm426_vm1, %v6196_v9  ;;  %427 = vst.msk [vmem:[#allocation2] sm:$0xff] %vm426_vm1, %v6188_v10  ;;  %v6324_v27 = vld [vmem:[%s8398_s8 + $0x58] sm:$0xff]   ;;  %v6212_v28 = vunpack.c.l.bf16 %v6319_v18  ;;  %v6213_v29 = vunpack.c.h.bf16 %v6319_v18  ;;  %v6216_v30 = vunpack.c.l.bf16 %v6320_v19  ;;  %v6217_v31 = vunpack.c.h.bf16 %v6320_v19  ;;  %v6325_v32 = vld [vmem:[%s8398_s8 + $0x60] sm:$0xff]  }
  0x1a   : > { %428 = vst.msk [vmem:[#allocation2 + $0x8] sm:$0xff] %vm426_vm1, %v6189_v14  ;;  %432 = vst.msk [vmem:[#allocation2 + $0x28] sm:$0xff] %vm426_vm1, %v6197_v15  ;;  %v6326_v33 = vld [vmem:[%s8398_s8 + $0x68] sm:$0xff]   ;;  %v6220_v34 = vunpack.c.l.bf16 %v6321_v20  ;;  %v6221_v35 = vunpack.c.h.bf16 %v6321_v20  ;;  %v6224_v36 = vunpack.c.l.bf16 %v6322_v25  ;;  %v6225_v37 = vunpack.c.h.bf16 %v6322_v25  ;;  %v6327_v38 = vld [vmem:[%s8398_s8 + $0x70] sm:$0xff]  }
  0x1b   : > { %433 = vst.msk [vmem:[#allocation2 + $0x30] sm:$0xff] %vm426_vm1, %v6200_v16  ;;  %434 = vst.msk [vmem:[#allocation2 + $0x38] sm:$0xff] %vm426_vm1, %v6201_v17  ;;  %v6328_v39 = vld [vmem:[%s8398_s8 + $0x78] sm:$0xff]   ;;  %v6228_v40 = vunpack.c.l.bf16 %v6323_v26  ;;  %v6229_v41 = vunpack.c.h.bf16 %v6323_v26  ;;  %v6232_v42 = vunpack.c.l.bf16 %v6324_v27  ;;  %v6233_v43 = vunpack.c.h.bf16 %v6324_v27  ;;  %v6329_v44 = vld [vmem:[%s8398_s8 + $0x80] sm:$0xff]  }
  0x1c   : > { %435 = vst.msk [vmem:[#allocation2 + $0x40] sm:$0xff] %vm426_vm1, %v6204_v21  ;;  %436 = vst.msk [vmem:[#allocation2 + $0x48] sm:$0xff] %vm426_vm1, %v6205_v22  ;;  %v6330_v45 = vld [vmem:[%s8398_s8 + $0x88] sm:$0xff]   ;;  %v6236_v46 = vunpack.c.l.bf16 %v6325_v32  ;;  %v6237_v47 = vunpack.c.h.bf16 %v6325_v32  ;;  %v6240_v48 = vunpack.c.l.bf16 %v6326_v33  ;;  %v6241_v49 = vunpack.c.h.bf16 %v6326_v33  ;;  %v6331_v50 = vld [vmem:[%s8398_s8 + $0x90] sm:$0xff]  }
  0x1d   : > { %437 = vst.msk [vmem:[#allocation2 + $0x50] sm:$0xff] %vm426_vm1, %v6208_v23  ;;  %438 = vst.msk [vmem:[#allocation2 + $0x58] sm:$0xff] %vm426_vm1, %v6209_v24  ;;  %v6332_v51 = vld [vmem:[%s8398_s8 + $0x98] sm:$0xff]   ;;  %v6244_v52 = vunpack.c.l.bf16 %v6327_v38  ;;  %v6245_v53 = vunpack.c.h.bf16 %v6327_v38  ;;  %v6248_v54 = vunpack.c.l.bf16 %v6328_v39  ;;  %v6249_v55 = vunpack.c.h.bf16 %v6328_v39  ;;  %v6334_v32 = vld [vmem:[%s8398_s8 + $0xa8] sm:$0xff]  }
  0x1e   : > { %439 = vst.msk [vmem:[#allocation2 + $0x60] sm:$0xff] %vm426_vm1, %v6212_v28  ;;  %440 = vst.msk [vmem:[#allocation2 + $0x68] sm:$0xff] %vm426_vm1, %v6213_v29  ;;  %v6252_v56 = vunpack.c.l.bf16 %v6329_v44  ;;  %v6253_v57 = vunpack.c.h.bf16 %v6329_v44  ;;  %v6256_v58 = vunpack.c.l.bf16 %v6330_v45  ;;  %v6257_v59 = vunpack.c.h.bf16 %v6330_v45  ;;  %v6333_v29 = vld [vmem:[%s8398_s8 + $0xa0] sm:$0xff]  }
  0x1f   : > { %441 = vst.msk [vmem:[#allocation2 + $0x70] sm:$0xff] %vm426_vm1, %v6216_v30  ;;  %442 = vst.msk [vmem:[#allocation2 + $0x78] sm:$0xff] %vm426_vm1, %v6217_v31  ;;  %v8448_v60 = vld [vmem:[#allocation2 + $0x18] sm:$0xff]  ;;  %v6260_v63 = vunpack.c.l.bf16 %v6331_v50  ;;  %v6261_v0 = vunpack.c.h.bf16 %v6331_v50  ;;  %v6264_v4 = vunpack.c.l.bf16 %v6332_v51  ;;  %v6265_v5 = vunpack.c.h.bf16 %v6332_v51  ;;  %v8474_v11 = vld [vmem:[#allocation2 + $0x10] sm:$0xff] }
  0x20   : > { %443 = vst.msk [vmem:[#allocation2 + $0x80] sm:$0xff] %vm426_vm1, %v6220_v34  ;;  %444 = vst.msk [vmem:[#allocation2 + $0x88] sm:$0xff] %vm426_vm1, %v6221_v35  ;;  %v8450_v61 = vld [vmem:[#allocation2 + $0x20] sm:$0xff]  ;;  %6929 = vmatprep.mubr.msk.f32.mxu1 %vm426_vm1, %v8448_v60  ;;  %v1870_v6 = vrot.slane %v8448_v60, 1  ;;  %v1868_v13 = vrot.slane %v8474_v11, 1  ;;  %v6268_v34 = vunpack.c.l.bf16 %v6333_v29  ;;  %v6335_v35 = vld [vmem:[%s8398_s8 + $0xb0] sm:$0xff]   ;;  %v6269_v38 = vunpack.c.h.bf16 %v6333_v29 }
  0x21   : > { %445 = vst.msk [vmem:[#allocation2 + $0x90] sm:$0xff] %vm426_vm1, %v6224_v36  ;;  %446 = vst.msk [vmem:[#allocation2 + $0x98] sm:$0xff] %vm426_vm1, %v6225_v37  ;;  %v8452_v62 = vld [vmem:[#allocation2] sm:$0xff]  ;;  %v8461_v7 = vld [vmem:[#allocation2 + $0x8] sm:$0xff]  ;;  %6930 = vmatmul.mubr.msk.f32.vlgmr.msra.gmra.mrb[0].mxu1 %vm426_vm1, %v8450_v61  ;;  %v1872_v12 = vrot.slane %v8450_v61, 1  ;;  %v6272_v39 = vunpack.c.l.bf16 %v6334_v32  ;;  %v6273_v44 = vunpack.c.h.bf16 %v6334_v32 }
  0x22   : > { %447 = vst.msk [vmem:[#allocation2 + $0xa0] sm:$0xff] %vm426_vm1, %v6228_v40  ;;  %448 = vst.msk [vmem:[#allocation2 + $0xa8] sm:$0xff] %vm426_vm1, %v6229_v41  ;;  %v8463_v8 = vld [vmem:[#allocation2 + $0x28] sm:$0xff]  ;;  %v1865_v9 = vrot.slane %v8452_v62, 1  ;;  %v1866_v10 = vrot.slane %v8461_v7, 1  ;;  %v8484_v14 = vld [vmem:[#allocation2 + $0x30] sm:$0xff]  ;;  %7014 = vmatpush3.msk.msra.mxu1 %vm741_vm0, %v8386_v3  ;;  %v1871_v19 = vsel %vm1864_vm2, %v1868_v13, %v1870_v6 }
  0x23   : > { %449 = vst.msk [vmem:[#allocation2 + $0xb0] sm:$0xff] %vm426_vm1, %v6232_v42  ;;  %450 = vst.msk [vmem:[#allocation2 + $0xb8] sm:$0xff] %vm426_vm1, %v6233_v43  ;;  %6932 = vmatprep.mubr.msk.f32.mxu1 %vm426_vm1, %v8463_v8  ;;  %v1874_v16 = vrot.slane %v8463_v8, 1  ;;  %v8490_v17 = vld [vmem:[#allocation2 + $0x38] sm:$0xff]  ;;  %v1873_v20 = vsel %vm1864_vm2, %v1870_v6, %v1872_v12  ;;  %v8505_v21 = vld [vmem:[#allocation2 + $0x40] sm:$0xff]  ;;  %v1876_v22 = vrot.slane %v8484_v14, 1 }
  0x24   : > { %451 = vst.msk [vmem:[#allocation2 + $0xc0] sm:$0xff] %vm426_vm1, %v6236_v46  ;;  %452 = vst.msk [vmem:[#allocation2 + $0xc8] sm:$0xff] %vm426_vm1, %v6237_v47  ;;  %v1867_v15 = vsel %vm1864_vm2, %v1865_v9, %v1866_v10  ;;  %v1869_v18 = vsel %vm1864_vm2, %v1866_v10, %v1868_v13  ;;  %v5950_v3 = vld [vmem:[%s10797_s2 + $0x1c] sm:$0xf]  ;;  %v8509_v24 = vld [vmem:[#allocation2 + $0x48] sm:$0xff]  ;;  %v1878_v28 = vrot.slane %v8490_v17, 1  ;;  %v6276_v46 = vunpack.c.l.bf16 %v6335_v35 }
  0x25   : > { %453 = vst.msk [vmem:[#allocation2 + $0xd0] sm:$0xff] %vm426_vm1, %v6240_v48  ;;  %454 = vst.msk [vmem:[#allocation2 + $0xd8] sm:$0xff] %vm426_vm1, %v6241_v49  ;;  %7187 = vmatprep.mubr.msk.f32.mxu0 %vm426_vm1, %v1867_v15  ;;  %6933 = vmatmul.mubr.msk.f32.gmra.mrb[2].mxu1 %vm426_vm1, %v8484_v14  ;;  %v1875_v23 = vsel %vm1864_vm2, %v1872_v12, %v1874_v16  ;;  %v1877_v25 = vsel %vm1864_vm2, %v1874_v16, %v1876_v22  ;;  %v8521_v26 = vld [vmem:[#allocation2 + $0x50] sm:$0xff]  ;;  %v8531_v27 = vld [vmem:[#allocation2 + $0x60] sm:$0xff]  ;;  %v1880_v31 = vrot.slane %v8505_v21, 1 }
  0x26   : > { %455 = vst.msk [vmem:[#allocation2 + $0xe0] sm:$0xff] %vm426_vm1, %v6244_v52  ;;  %456 = vst.msk [vmem:[#allocation2 + $0xe8] sm:$0xff] %vm426_vm1, %v6245_v53  ;;  %7188 = vmatmul.mubr.msk.f32.vlgmr.msra.gmra.mrb[0].mxu0 %vm426_vm1, %v1869_v18  ;;  %6935 = vmatprep.mubr.msk.f32.mxu1 %vm426_vm1, %v8490_v17  ;;  %v8535_v30 = vld [vmem:[#allocation2 + $0x68] sm:$0xff]  ;;  %v1882_v33 = vrot.slane %v8509_v24, 1  ;;  %v8548_v36 = vsel %vm1864_vm2, %v1876_v22, %v1878_v28  ;;  %v8550_v37 = vld [vmem:[#allocation2 + $0x70] sm:$0xff]  ;;  %v1884_v43 = vrot.slane %v8521_v26, 1  ;;  %v6277_v47 = vunpack.c.h.bf16 %v6335_v35 }
  0x27   : > { %457 = vst.msk [vmem:[#allocation2 + $0xf0] sm:$0xff] %vm426_vm1, %v6248_v54  ;;  %458 = vst.msk [vmem:[#allocation2 + $0xf8] sm:$0xff] %vm426_vm1, %v6249_v55  ;;  %7190 = vmatprep.mubr.msk.f32.mxu0 %vm426_vm1, %v1871_v19  ;;  %7272 = vmatpush3.msk.msra.mxu0 %vm741_vm0, %v8377_v2  ;;  %v8523_v2 = vld [vmem:[#allocation2 + $0x58] sm:$0xff]  ;;  %v8559_v41 = vsel %vm1864_vm2, %v1878_v28, %v1880_v31  ;;  %v6337_v45 = vld [vmem:[%s8398_s8 + $0xc0] sm:$0xff]   ;;  %v1890_v22 = vrot.slane %v8535_v30, 1  ;;  %v1892_v28 = vrot.slane %v8550_v37, 1 }
  0x28   : > { %459 = vst.msk [vmem:[#allocation2 + $0x100] sm:$0xff] %vm426_vm1, %v6252_v56  ;;  %460 = vst.msk [vmem:[#allocation2 + $0x108] sm:$0xff] %vm426_vm1, %v6253_v57  ;;  %7357 = vmatprep.subr.msk.mxu0 %vm741_vm0, %v5950_v3  ;;  %v6336_v40 = vld [vmem:[%s8398_s8 + $0xb8] sm:$0xff]   ;;  %v6338_v48 = vld [vmem:[%s8398_s8 + $0xc8] sm:$0xff]   ;;  %v8576_v50 = vsel %vm1864_vm2, %v1880_v31, %v1882_v33  ;;  %v1886_v51 = vrot.slane %v8523_v2, 1  ;;  %v1888_v56 = vrot.slane %v8531_v27, 1 }
  0x29   : > { %461 = vst.msk [vmem:[#allocation2 + $0x110] sm:$0xff] %vm426_vm1, %v6256_v58  ;;  %462 = vst.msk [vmem:[#allocation2 + $0x118] sm:$0xff] %vm426_vm1, %v6257_v59  ;;  %6936 = vmatmul.mubr.msk.f32.gmra.mrb[4].mxu1 %vm426_vm1, %v8505_v21  ;;  %v8561_v42 = vld [vmem:[#allocation2 + $0x78] sm:$0xff]  ;;  %v6339_v49 = vld [vmem:[%s8398_s8 + $0xd0] sm:$0xff]   ;;  %v6280_v52 = vunpack.c.l.bf16 %v6336_v40  ;;  %v6281_v57 = vunpack.c.h.bf16 %v6336_v40  ;;  %v6284_v58 = vunpack.c.l.bf16 %v6337_v45  ;;  %v6285_v59 = vunpack.c.h.bf16 %v6337_v45 }
  0x2a   : > { %463 = vst.msk [vmem:[#allocation2 + $0x120] sm:$0xff] %vm426_vm1, %v6260_v63  ;;  %464 = vst.msk [vmem:[#allocation2 + $0x128] sm:$0xff] %vm426_vm1, %v6261_v0  ;;  %7191 = vmatmul.mubr.msk.f32.gmra.mrb[2].mxu0 %vm426_vm1, %v1873_v20  ;;  %6938 = vmatprep.mubr.msk.f32.mxu1 %vm426_vm1, %v8509_v24  ;;  %v6340_v53 = vld [vmem:[%s8398_s8 + $0xd8] sm:$0xff]   ;;  %v6299_v54 = vld [vmem:[%s8556_s16] sm:$0xff]   ;;  %v8593_v0 = vsel %vm1864_vm2, %v1882_v33, %v1884_v43  ;;  %v6289_v6 = vunpack.c.h.bf16 %v6338_v48  ;;  %v6292_v9 = vunpack.c.l.bf16 %v6339_v49  ;;  %v6293_v10 = vunpack.c.h.bf16 %v6339_v49  ;;  %s5659_s8 = sshll.u32 %s11270_s19, 3 }
  0x2b   : > { %465 = vst.msk [vmem:[#allocation2 + $0x130] sm:$0xff] %vm426_vm1, %v6264_v4  ;;  %466 = vst.msk [vmem:[#allocation2 + $0x138] sm:$0xff] %vm426_vm1, %v6265_v5  ;;  %7193 = vmatprep.mubr.msk.f32.mxu0 %vm426_vm1, %v1875_v23  ;;  %v8586_v55 = vld [vmem:[#allocation2 + $0x80] sm:$0xff]  ;;  %v6341_v63 = vld [vmem:[%s8556_s16 + $0x8] sm:$0xff]   ;;  %v6288_v5 = vunpack.c.l.bf16 %v6338_v48  ;;  %v6296_v12 = vunpack.c.l.bf16 %v6340_v53  ;;  %v6297_v13 = vunpack.c.h.bf16 %v6340_v53  ;;  %v6300_v15 = vunpack.c.l.bf16 %v6299_v54  ;;  %s309_s11 = scalar_lea.vmem %s10799_s4, %s5659_s8  ;;  %s313_s19 = scalar_lea.vmem %s10800_s5, %s5659_s8 }
  0x2c   : > { %10957 = vst [vmem:[#allocation3_spill] sm:$0xff] %v8548_v36  ;;  %10958 = vst [vmem:[#allocation4_spill] sm:$0xff] %v8559_v41  ;;  %v8595_v4 = vld [vmem:[#allocation2 + $0x88] sm:$0xff]  ;;  %v6301_v16 = vunpack.c.h.bf16 %v6299_v54  ;;  %v6304_v18 = vunpack.c.l.bf16 %v6341_v63  ;;  %v6305_v19 = vunpack.c.h.bf16 %v6341_v63  ;;  %v8640_v29 = vsel %vm1864_vm2, %v1888_v56, %v1890_v22  ;;  %v8642_v31 = vld [vmem:[#allocation2 + $0xa0] sm:$0xff] }
  0x2d   : > { %6939 = vmatmul.mubr.msk.f32.gmra.mrb[6].mxu1 %vm426_vm1, %v8521_v26  ;;  %467 = vst.msk [vmem:[#allocation2 + $0x140] sm:$0xff] %vm426_vm1, %v6268_v34  ;;  %468 = vst.msk [vmem:[#allocation2 + $0x148] sm:$0xff] %vm426_vm1, %v6269_v38  ;;  %v1894_v32 = vrot.slane %v8561_v42, 1  ;;  %v8646_v33 = vsel %vm1864_vm2, %v1890_v22, %v1892_v28  ;;  %v8648_v34 = vld [vmem:[#allocation2 + $0xa8] sm:$0xff]  ;;  %v1896_v35 = vrot.slane %v8586_v55, 1  ;;  %v1898_v40 = vrot.slane %v8595_v4, 1 }
  0x2e   : > { %7194 = vmatmul.mubr.msk.f32.gmra.mrb[4].mxu0 %vm426_vm1, %v1877_v25  ;;  %6941 = vmatprep.mubr.msk.f32.mxu1 %vm426_vm1, %v8523_v2  ;;  %469 = vst.msk [vmem:[#allocation2 + $0x150] sm:$0xff] %vm426_vm1, %v6272_v39  ;;  %10959 = vst [vmem:[#allocation5_spill] sm:$0xff] %v8576_v50  ;;  %v8662_v39 = vld [vmem:[#allocation2 + $0xb0] sm:$0xff] }
  0x2f   : > { %7273 = vmatprep.mubr.msk.f32.mxu0 %vm426_vm1, %v1873_v20  ;;  %470 = vst.msk [vmem:[#allocation2 + $0x158] sm:$0xff] %vm426_vm1, %v6273_v44  ;;  %471 = vst.msk [vmem:[#allocation2 + $0x160] sm:$0xff] %vm426_vm1, %v6276_v46  ;;  %v8615_v20 = vld [vmem:[#allocation2 + $0x90] sm:$0xff]  ;;  %v8660_v38 = vsel %vm1864_vm2, %v1892_v28, %v1894_v32  ;;  %v8668_v44 = vld [vmem:[#allocation2 + $0xb8] sm:$0xff]  ;;  %v8680_v46 = vsel %vm1864_vm2, %v1896_v35, %v1898_v40 }
  0x30   : > { %472 = vst.msk [vmem:[#allocation2 + $0x168] sm:$0xff] %vm426_vm1, %v6277_v47  ;;  %10960 = vst [vmem:[#allocation6_spill] sm:$0xff] %v8593_v0  ;;  %v1900_v45 = vrot.slane %v8615_v20, 1  ;;  %v8682_v47 = vld [vmem:[#allocation2 + $0xc0] sm:$0xff]  ;;  %v8702_v54 = vld [vmem:[#allocation2 + $0xd0] sm:$0xff] }
  0x31   : > { %6942 = vmatmul.mubr.msk.f32.gmra.mrb[8].mxu1 %vm426_vm1, %v8531_v27  ;;  %473 = vst.msk [vmem:[#allocation2 + $0x170] sm:$0xff] %vm426_vm1, %v6280_v52  ;;  %474 = vst.msk [vmem:[#allocation2 + $0x178] sm:$0xff] %vm426_vm1, %v6281_v57  ;;  %v1904_v52 = vrot.slane %v8642_v31, 1  ;;  %v1916_v22 = vrot.slane %v8702_v54, 1 }
  0x32   : > { %7274 = vmatmul.mubr.msk.f32.vlgmr.msra.gmra.mrb[0].mxu0 %vm426_vm1, %v1875_v23  ;;  %6944 = vmatprep.mubr.msk.f32.mxu1 %vm426_vm1, %v8535_v30  ;;  %475 = vst.msk [vmem:[#allocation2 + $0x180] sm:$0xff] %vm426_vm1, %v6284_v58  ;;  %476 = vst.msk [vmem:[#allocation2 + $0x188] sm:$0xff] %vm426_vm1, %v6285_v59  ;;  %v8623_v23 = vsel %vm1864_vm2, %v1886_v51, %v1888_v56  ;;  %v8686_v49 = vsel %vm1864_vm2, %v1898_v40, %v1900_v45  ;;  %v1906_v56 = vrot.slane %v8648_v34, 1  ;;  %v8708_v58 = vld [vmem:[#allocation2 + $0xd8] sm:$0xff] }
  0x33   : > { %7276 = vmatprep.mubr.msk.f32.mxu0 %vm426_vm1, %v1877_v25  ;;  %7358 = vmatpush3.msk.msra.mxu0 %vm741_vm0, %v5950_v3  ;;  %477 = vst.msk [vmem:[#allocation2 + $0x190] sm:$0xff] %vm426_vm1, %v6288_v5  ;;  %478 = vst.msk [vmem:[#allocation2 + $0x198] sm:$0xff] %vm426_vm1, %v6289_v6  ;;  %v8613_v3 = vsel %vm1864_vm2, %v1884_v43, %v1886_v51  ;;  %v8625_v25 = vld [vmem:[#allocation2 + $0x98] sm:$0xff]  ;;  %v8666_v43 = vsel %vm1864_vm2, %v1894_v32, %v1896_v35  ;;  %v8688_v51 = vld [vmem:[#allocation2 + $0xc8] sm:$0xff]  ;;  %v1908_v59 = vrot.slane %v8662_v39, 1 }
  0x34   : > { %479 = vst.msk [vmem:[#allocation2 + $0x1a0] sm:$0xff] %vm426_vm1, %v6292_v9  ;;  %10961 = vst [vmem:[#allocation7_spill] sm:$0xff] %v8613_v3  ;;  %v1902_v48 = vrot.slane %v8625_v25, 1  ;;  %v8720_v63 = vsel %vm1864_vm2, %v1904_v52, %v1906_v56  ;;  %v8722_v5 = vld [vmem:[#allocation2 + $0xe0] sm:$0xff]  ;;  %v1910_v6 = vrot.slane %v8668_v44, 1  ;;  %v1918_v35 = vrot.slane %v8708_v58, 1 }
  0x35   : > { %6945 = vmatmul.mubr.msk.f32.gmra.mrb[10].mxu1 %vm426_vm1, %v8550_v37  ;;  %480 = vst.msk [vmem:[#allocation2 + $0x1a8] sm:$0xff] %vm426_vm1, %v6293_v10  ;;  %481 = vst.msk [vmem:[#allocation2 + $0x1b0] sm:$0xff] %vm426_vm1, %v6296_v12  ;;  %v8726_v9 = vsel %vm1864_vm2, %v1906_v56, %v1908_v59  ;;  %v8728_v10 = vld [vmem:[#allocation2 + $0xe8] sm:$0xff]  ;;  %v1912_v12 = vrot.slane %v8682_v47, 1  ;;  %v8762_v32 = vld [vmem:[#allocation2 + $0x100] sm:$0xff] }
  0x36   : > { %7277 = vmatmul.mubr.msk.f32.gmra.mrb[2].mxu0 %vm426_vm1, %v8548_v36  ;;  %6947 = vmatprep.mubr.msk.f32.mxu1 %vm426_vm1, %v8561_v42  ;;  %482 = vst.msk [vmem:[#allocation2 + $0x1b8] sm:$0xff] %vm426_vm1, %v6297_v13  ;;  %499 = vst.msk [vmem:[#allocation2 + $0x1c0] sm:$0xff] %vm426_vm1, %v6300_v15  ;;  %v8700_v53 = vsel %vm1864_vm2, %v1900_v45, %v1902_v48  ;;  %v8706_v57 = vsel %vm1864_vm2, %v1902_v48, %v1904_v52  ;;  %v8742_v15 = vld [vmem:[#allocation2 + $0xf0] sm:$0xff]  ;;  %v8768_v45 = vld [vmem:[#allocation2 + $0x108] sm:$0xff]  ;;  %v1920_v48 = vrot.slane %v8722_v5, 1 }
  0x37   : > { %7279 = vmatprep.mubr.msk.f32.mxu0 %vm426_vm1, %v8559_v41  ;;  %10962 = vst [vmem:[#allocation8_spill] sm:$0xff] %v8623_v23  ;;  %500 = vst.msk [vmem:[#allocation2 + $0x1c8] sm:$0xff] %vm426_vm1, %v6301_v16  ;;  %v8740_v13 = vsel %vm1864_vm2, %v1908_v59, %v1910_v6  ;;  %v1914_v16 = vrot.slane %v8688_v51, 1  ;;  %v8780_v52 = vsel %vm1864_vm2, %v1916_v22, %v1918_v35  ;;  %v8782_v56 = vld [vmem:[#allocation2 + $0x110] sm:$0xff]  ;;  %v1922_v59 = vrot.slane %v8728_v10, 1 }
  0x38   : > { %501 = vst.msk [vmem:[#allocation2 + $0x1d0] sm:$0xff] %vm426_vm1, %v6304_v18  ;;  %502 = vst.msk [vmem:[#allocation2 + $0x1d8] sm:$0xff] %vm426_vm1, %v6305_v19  ;;  %v8746_v18 = vsel %vm1864_vm2, %v1910_v6, %v1912_v12  ;;  %v8748_v19 = vld [vmem:[#allocation2 + $0xf8] sm:$0xff]  ;;  %v8786_v6 = vsel %vm1864_vm2, %v1918_v35, %v1920_v48  ;;  %v8802_v35 = vld [vmem:[#allocation2 + $0x120] sm:$0xff] }
  0x39   : > { %6948 = vmatmul.mubr.msk.f32.gmra.mrb[12].mxu1 %vm426_vm1, %v8586_v55  ;;  %10963 = vst [vmem:[#allocation9_spill] sm:$0xff] %v8640_v29  ;;  %10964 = vst [vmem:[#allocation10_spill] sm:$0xff] %v8646_v33  ;;  %v8760_v28 = vsel %vm1864_vm2, %v1912_v12, %v1914_v16  ;;  %v8766_v40 = vsel %vm1864_vm2, %v1914_v16, %v1916_v22  ;;  %v8788_v12 = vld [vmem:[#allocation2 + $0x118] sm:$0xff]  ;;  %v1924_v16 = vrot.slane %v8742_v15, 1 }
  0x3a   : > { %7280 = vmatmul.mubr.msk.f32.gmra.mrb[4].mxu0 %vm426_vm1, %v8576_v50  ;;  %6950 = vmatprep.mubr.msk.f32.mxu1 %vm426_vm1, %v8595_v4  ;;  %10965 = vst [vmem:[#allocation11_spill] sm:$0xff] %v8660_v38  ;;  %10966 = vst [vmem:[#allocation12_spill] sm:$0xff] %v8666_v43  ;;  %v8800_v22 = vsel %vm1864_vm2, %v1920_v48, %v1922_v59 }
  0x3b   : > { %7282 = vmatprep.mubr.msk.f32.mxu0 %vm426_vm1, %v8593_v0  ;;  %10967 = vst [vmem:[#allocation13_spill] sm:$0xff] %v8680_v46  ;;  %10968 = vst [vmem:[#allocation14_spill] sm:$0xff] %v8686_v49 }
  0x3c   : > { %10969 = vst [vmem:[#allocation15_spill] sm:$0xff] %v8688_v51  ;;  %10970 = vst [vmem:[#allocation16_spill] sm:$0xff] %v8700_v53 }
  0x3d   : > { %6951 = vmatmul.mubr.msk.f32.gmra.mrb[14].mxu1 %vm426_vm1, %v8615_v20  ;;  %10971 = vst [vmem:[#allocation17_spill] sm:$0xff] %v8702_v54  ;;  %10972 = vst [vmem:[#allocation18_spill] sm:$0xff] %v8706_v57 }
  0x3e   : > { %7283 = vmatmul.mubr.msk.f32.gmra.mrb[6].mxu0 %vm426_vm1, %v8613_v3  ;;  %6953 = vmatprep.mubr.msk.f32.mxu1 %vm426_vm1, %v8625_v25  ;;  %10973 = vst [vmem:[#allocation19_spill] sm:$0xff] %v8708_v58  ;;  %10974 = vst [vmem:[#allocation20_spill] sm:$0xff] %v8720_v63 }
  0x3f   : > { %7285 = vmatprep.mubr.msk.f32.mxu0 %vm426_vm1, %v8623_v23  ;;  %10975 = vst [vmem:[#allocation21_spill] sm:$0xff] %v8722_v5  ;;  %10976 = vst [vmem:[#allocation22_spill] sm:$0xff] %v8726_v9 }
  0x40   : > { %10977 = vst [vmem:[#allocation23_spill] sm:$0xff] %v8728_v10  ;;  %10978 = vst [vmem:[#allocation24_spill] sm:$0xff] %v8740_v13 }
  0x41   : > { %6954 = vmatmul.mubr.msk.f32.gmra.mrb[16].mxu1 %vm426_vm1, %v8642_v31  ;;  %10979 = vst [vmem:[#allocation25_spill] sm:$0xff] %v8742_v15  ;;  %10980 = vst [vmem:[#allocation26_spill] sm:$0xff] %v8746_v18 }
  0x42   : > { %7286 = vmatmul.mubr.msk.f32.gmra.mrb[8].mxu0 %vm426_vm1, %v8640_v29  ;;  %6956 = vmatprep.mubr.msk.f32.mxu1 %vm426_vm1, %v8648_v34  ;;  %10981 = vst [vmem:[#allocation27_spill] sm:$0xff] %v8748_v19  ;;  %10982 = vst [vmem:[#allocation28_spill] sm:$0xff] %v8760_v28 }
  0x43   : > { %7288 = vmatprep.mubr.msk.f32.mxu0 %vm426_vm1, %v8646_v33  ;;  %10983 = vst [vmem:[#allocation29_spill] sm:$0xff] %v8762_v32  ;;  %10984 = vst [vmem:[#allocation30_spill] sm:$0xff] %v8766_v40 }
  0x44   : > { %10985 = vst [vmem:[#allocation31_spill] sm:$0xff] %v8768_v45  ;;  %10986 = vst [vmem:[#allocation32_spill] sm:$0xff] %v8780_v52 }
  0x45   : > { %6957 = vmatmul.mubr.msk.f32.gmra.mrb[18].mxu1 %vm426_vm1, %v8662_v39  ;;  %10987 = vst [vmem:[#allocation33_spill] sm:$0xff] %v8782_v56  ;;  %10988 = vst [vmem:[#allocation34_spill] sm:$0xff] %v8786_v6 }
  0x46   : > { %7289 = vmatmul.mubr.msk.f32.gmra.mrb[10].mxu0 %vm426_vm1, %v8660_v38  ;;  %6959 = vmatprep.mubr.msk.f32.mxu1 %vm426_vm1, %v8668_v44  ;;  %10989 = vst [vmem:[#allocation35_spill] sm:$0xff] %v8788_v12  ;;  %10990 = vst [vmem:[#allocation36_spill] sm:$0xff] %v8800_v22 }
  0x47   : > { %7291 = vmatprep.mubr.msk.f32.mxu0 %vm426_vm1, %v8666_v43  ;;  %10991 = vst [vmem:[#allocation37_spill] sm:$0xff] %v8802_v35 }
  0x49   : > { %6960 = vmatmul.mubr.msk.f32.gmra.mrb[20].mxu1 %vm426_vm1, %v8682_v47 }
  0x4a   : > { %7292 = vmatmul.mubr.msk.f32.gmra.mrb[12].mxu0 %vm426_vm1, %v8680_v46  ;;  %6962 = vmatprep.mubr.msk.f32.mxu1 %vm426_vm1, %v8688_v51  ;;  %v6343_v51 = vld [vmem:[%s8556_s16 + $0x18] sm:$0xff]  }
  0x4b   : > { %7294 = vmatprep.mubr.msk.f32.mxu0 %vm426_vm1, %v8686_v49 }
  0x4d   : > { %6963 = vmatmul.mubr.msk.f32.gmra.mrb[22].mxu1 %vm426_vm1, %v8702_v54  ;;  %v8980_v54 = vld [vmem:[#allocation2 + $0x1a8] sm:$0xff] }
  0x4e   : > { %7295 = vmatmul.mubr.msk.f32.gmra.mrb[14].mxu0 %vm426_vm1, %v8700_v53  ;;  %6965 = vmatprep.mubr.msk.f32.mxu1 %vm426_vm1, %v8708_v58  ;;  %v1936_v58 = vrot.slane %v8802_v35, 1  ;;  %11024 = vst [vmem:[#allocation70_spill] sm:$0xff] %v8980_v54 }
  0x4f   : > { %7297 = vmatprep.mubr.msk.f32.mxu0 %vm426_vm1, %v8706_v57 }
  0x51   : > { %6966 = vmatmul.mubr.msk.f32.gmra.mrb[24].mxu1 %vm426_vm1, %v8722_v5  ;;  %v8808_v5 = vld [vmem:[#allocation2 + $0x128] sm:$0xff] }
  0x52   : > { %7298 = vmatmul.mubr.msk.f32.gmra.mrb[16].mxu0 %vm426_vm1, %v8720_v63  ;;  %6968 = vmatprep.mubr.msk.f32.mxu1 %vm426_vm1, %v8728_v10  ;;  %v1926_v10 = vrot.slane %v8748_v19, 1  ;;  %10993 = vst [vmem:[#allocation39_spill] sm:$0xff] %v8808_v5 }
  0x53   : > { %7300 = vmatprep.mubr.msk.f32.mxu0 %vm426_vm1, %v8726_v9 }
  0x54   : > { %v8820_v48 = vsel %vm1864_vm2, %v1924_v16, %v1926_v10 }
  0x55   : > { %6969 = vmatmul.mubr.msk.f32.gmra.mrb[26].mxu1 %vm426_vm1, %v8742_v15  ;;  %v8806_v15 = vsel %vm1864_vm2, %v1922_v59, %v1924_v16  ;;  %10994 = vst [vmem:[#allocation40_spill] sm:$0xff] %v8820_v48  ;;  %v8822_v59 = vld [vmem:[#allocation2 + $0x130] sm:$0xff]  ;;  %v8849_v16 = vld [vmem:[#allocation2 + $0x140] sm:$0xff] }
  0x56   : > { %7301 = vmatmul.mubr.msk.f32.gmra.mrb[18].mxu0 %vm426_vm1, %v8740_v13  ;;  %6971 = vmatprep.mubr.msk.f32.mxu1 %vm426_vm1, %v8748_v19  ;;  %10992 = vst [vmem:[#allocation38_spill] sm:$0xff] %v8806_v15  ;;  %10995 = vst [vmem:[#allocation41_spill] sm:$0xff] %v8822_v59  ;;  %v1930_v19 = vrot.slane %v8768_v45, 1 }
  0x57   : > { %7303 = vmatprep.mubr.msk.f32.mxu0 %vm426_vm1, %v8746_v18  ;;  %10999 = vst [vmem:[#allocation45_spill] sm:$0xff] %v8849_v16  ;;  %v6312_v18 = vunpack.c.l.bf16 %v6343_v51 }
  0x59   : > { %6972 = vmatmul.mubr.msk.f32.gmra.mrb[28].mxu1 %vm426_vm1, %v8762_v32  ;;  %505 = vst.msk [vmem:[#allocation2 + $0x1f0] sm:$0xff] %vm426_vm1, %v6312_v18 }
  0x5a   : > { %7304 = vmatmul.mubr.msk.f32.gmra.mrb[20].mxu0 %vm426_vm1, %v8760_v28  ;;  %6974 = vmatprep.mubr.msk.f32.mxu1 %vm426_vm1, %v8768_v45 }
  0x5b   : > { %7306 = vmatprep.mubr.msk.f32.mxu0 %vm426_vm1, %v8766_v40  ;;  %v6342_v40 = vld [vmem:[%s8556_s16 + $0x10] sm:$0xff]  }
  0x5d   : > { %6975 = vmatmul.mubr.msk.f32.gmra.mrb[30].mxu1 %vm426_vm1, %v8782_v56 }
  0x5e   : > { %7307 = vmatmul.mubr.msk.f32.gmra.mrb[22].mxu0 %vm426_vm1, %v8780_v52  ;;  %6977 = vmatprep.mubr.msk.f32.mxu1 %vm426_vm1, %v8788_v12  ;;  %v1928_v52 = vrot.slane %v8762_v32, 1  ;;  %v8828_v32 = vld [vmem:[%s10797_s2 + $0x8] sm:$0xf] }
  0x5f   : > { %7309 = vmatprep.mubr.msk.f32.mxu0 %vm426_vm1, %v8786_v6  ;;  %v8833_v6 = vld [vmem:[#allocation2 + $0x138] sm:$0xff]  ;;  %7443 = vmatprep.subr.msk.mxu0 %vm741_vm0, %v8828_v32 }
  0x60   : > { %10997 = vst [vmem:[#allocation43_spill] sm:$0xff] %v8833_v6 }
  0x61   : > { %6978 = vmatmul.mubr.msk.f32.gmra.mrb[32].mxu1 %vm426_vm1, %v8802_v35 }
  0x62   : > { %7310 = vmatmul.mubr.msk.f32.gmra.mrb[24].mxu0 %vm426_vm1, %v8800_v22  ;;  %6980 = vmatprep.mubr.msk.f32.mxu1 %vm426_vm1, %v8808_v5  ;;  %v8831_v22 = vsel %vm1864_vm2, %v1926_v10, %v1928_v52  ;;  %v8847_v10 = vsel %vm1864_vm2, %v1928_v52, %v1930_v19 }
  0x63   : > { %7312 = vmatprep.mubr.msk.f32.mxu0 %vm426_vm1, %v8806_v15  ;;  %10996 = vst [vmem:[#allocation42_spill] sm:$0xff] %v8831_v22  ;;  %v1932_v15 = vrot.slane %v8782_v56, 1  ;;  %10998 = vst [vmem:[#allocation44_spill] sm:$0xff] %v8847_v10  ;;  %v1934_v56 = vrot.slane %v8788_v12, 1  ;;  %v1938_v12 = vrot.slane %v8808_v5, 1  ;;  %v1942_v5 = vrot.slane %v8833_v6, 1 }
  0x65   : > { %6981 = vmatmul.mubr.msk.f32.gmra.mrb[34].mxu1 %vm426_vm1, %v8822_v59  ;;  %v8853_v45 = vsel %vm1864_vm2, %v1930_v19, %v1932_v15  ;;  %v8867_v52 = vsel %vm1864_vm2, %v1932_v15, %v1934_v56  ;;  %v8869_v19 = vld [vmem:[#allocation2 + $0x150] sm:$0xff]  ;;  %v8873_v35 = vsel %vm1864_vm2, %v1934_v56, %v1936_v58  ;;  %v8887_v15 = vsel %vm1864_vm2, %v1936_v58, %v1938_v12  ;;  %v8889_v56 = vld [vmem:[#allocation2 + $0x160] sm:$0xff] }
  0x66   : > { %7313 = vmatmul.mubr.msk.f32.gmra.mrb[26].mxu0 %vm426_vm1, %v8820_v48  ;;  %6983 = vmatprep.mubr.msk.f32.mxu1 %vm426_vm1, %v8833_v6  ;;  %11000 = vst [vmem:[#allocation46_spill] sm:$0xff] %v8853_v45  ;;  %v8855_v48 = vld [vmem:[#allocation2 + $0x148] sm:$0xff]  ;;  %11002 = vst [vmem:[#allocation48_spill] sm:$0xff] %v8867_v52 }
  0x67   : > { %7315 = vmatprep.mubr.msk.f32.mxu0 %vm426_vm1, %v8831_v22  ;;  %11001 = vst [vmem:[#allocation47_spill] sm:$0xff] %v8855_v48  ;;  %11003 = vst [vmem:[#allocation49_spill] sm:$0xff] %v8869_v19  ;;  %v1940_v22 = vrot.slane %v8822_v59, 1  ;;  %v1946_v6 = vrot.slane %v8855_v48, 1 }
  0x68   : > { %11004 = vst [vmem:[#allocation50_spill] sm:$0xff] %v8873_v35  ;;  %11006 = vst [vmem:[#allocation52_spill] sm:$0xff] %v8887_v15 }
  0x69   : > { %6984 = vmatmul.mubr.msk.f32.gmra.mrb[36].mxu1 %vm426_vm1, %v8849_v16  ;;  %11007 = vst [vmem:[#allocation53_spill] sm:$0xff] %v8889_v56  ;;  %v8893_v59 = vsel %vm1864_vm2, %v1938_v12, %v1940_v22  ;;  %v8907_v58 = vsel %vm1864_vm2, %v1940_v22, %v1942_v5  ;;  %v8909_v12 = vld [vmem:[#allocation2 + $0x170] sm:$0xff] }
  0x6a   : > { %7316 = vmatmul.mubr.msk.f32.gmra.mrb[28].mxu0 %vm426_vm1, %v8847_v10  ;;  %6986 = vmatprep.mubr.msk.f32.mxu1 %vm426_vm1, %v8855_v48  ;;  %v8875_v10 = vld [vmem:[#allocation2 + $0x158] sm:$0xff]  ;;  %11008 = vst [vmem:[#allocation54_spill] sm:$0xff] %v8893_v59  ;;  %11010 = vst [vmem:[#allocation56_spill] sm:$0xff] %v8907_v58 }
  0x6b   : > { %7318 = vmatprep.mubr.msk.f32.mxu0 %vm426_vm1, %v8853_v45  ;;  %11005 = vst [vmem:[#allocation51_spill] sm:$0xff] %v8875_v10  ;;  %v1944_v45 = vrot.slane %v8849_v16, 1  ;;  %11011 = vst [vmem:[#allocation57_spill] sm:$0xff] %v8909_v12 }
  0x6d   : > { %6987 = vmatmul.mubr.msk.f32.gmra.mrb[38].mxu1 %vm426_vm1, %v8869_v19  ;;  %v8913_v16 = vsel %vm1864_vm2, %v1942_v5, %v1944_v45  ;;  %v8927_v22 = vsel %vm1864_vm2, %v1944_v45, %v1946_v6  ;;  %v8929_v5 = vld [vmem:[#allocation2 + $0x180] sm:$0xff] }
  0x6e   : > { %7319 = vmatmul.mubr.msk.f32.gmra.mrb[30].mxu0 %vm426_vm1, %v8867_v52  ;;  %6989 = vmatprep.mubr.msk.f32.mxu1 %vm426_vm1, %v8875_v10  ;;  %v8895_v52 = vld [vmem:[#allocation2 + $0x168] sm:$0xff]  ;;  %11012 = vst [vmem:[#allocation58_spill] sm:$0xff] %v8913_v16  ;;  %11013 = vst [vmem:[#allocation59_spill] sm:$0xff] %v8927_v22  ;;  %v1960_v28 = vrot.slane %v8929_v5, 1 }
  0x6f   : > { %7321 = vmatprep.mubr.msk.f32.mxu0 %vm426_vm1, %v8873_v35  ;;  %11009 = vst [vmem:[#allocation55_spill] sm:$0xff] %v8895_v52  ;;  %v1948_v35 = vrot.slane %v8869_v19, 1  ;;  %11014 = vst [vmem:[#allocation60_spill] sm:$0xff] %v8929_v5  ;;  %v1950_v19 = vrot.slane %v8875_v10, 1  ;;  %v1954_v10 = vrot.slane %v8895_v52, 1 }
  0x71   : > { %6990 = vmatmul.mubr.msk.f32.gmra.mrb[40].mxu1 %vm426_vm1, %v8889_v56  ;;  %v8933_v48 = vsel %vm1864_vm2, %v1946_v6, %v1948_v35  ;;  %v8947_v45 = vsel %vm1864_vm2, %v1948_v35, %v1950_v19  ;;  %v8949_v6 = vld [vmem:[#allocation2 + $0x190] sm:$0xff]  ;;  %v5776_v35 = vld [vmem:[%s10797_s2 + $0x18] sm:$0xf] }
  0x72   : > { %7322 = vmatmul.mubr.msk.f32.gmra.mrb[32].mxu0 %vm426_vm1, %v8887_v15  ;;  %6992 = vmatprep.mubr.msk.f32.mxu1 %vm426_vm1, %v8895_v52  ;;  %v8915_v15 = vld [vmem:[#allocation2 + $0x178] sm:$0xff]  ;;  %11015 = vst [vmem:[#allocation61_spill] sm:$0xff] %v8933_v48  ;;  %11017 = vst [vmem:[#allocation63_spill] sm:$0xff] %v8947_v45 }
  0x73   : > { %7324 = vmatprep.mubr.msk.f32.mxu0 %vm426_vm1, %v8893_v59  ;;  %v1952_v59 = vrot.slane %v8889_v56, 1  ;;  %11018 = vst [vmem:[#allocation64_spill] sm:$0xff] %v8949_v6  ;;  %v1958_v52 = vrot.slane %v8915_v15, 1  ;;  %7099 = vmatprep.subr.msk.mxu1 %vm741_vm0, %v5776_v35 }
  0x75   : > { %6993 = vmatmul.mubr.msk.f32.gmra.mrb[42].mxu1 %vm426_vm1, %v8909_v12  ;;  %v8953_v56 = vsel %vm1864_vm2, %v1950_v19, %v1952_v59  ;;  %v8971_v19 = vsel %vm1864_vm2, %v1952_v59, %v1954_v10  ;;  %v9002_v59 = vsel %vm1864_vm2, %v1958_v52, %v1960_v28 }
  0x76   : > { %7325 = vmatmul.mubr.msk.f32.gmra.mrb[34].mxu0 %vm426_vm1, %v8907_v58  ;;  %6995 = vmatprep.mubr.msk.f32.mxu1 %vm426_vm1, %v8915_v15  ;;  %v8935_v58 = vld [vmem:[#allocation2 + $0x188] sm:$0xff]  ;;  %11019 = vst [vmem:[#allocation65_spill] sm:$0xff] %v8953_v56  ;;  %11021 = vst [vmem:[#allocation67_spill] sm:$0xff] %v8971_v19 }
  0x77   : > { %7327 = vmatprep.mubr.msk.f32.mxu0 %vm426_vm1, %v8913_v16  ;;  %11016 = vst [vmem:[#allocation62_spill] sm:$0xff] %v8935_v58  ;;  %v1956_v16 = vrot.slane %v8909_v12, 1  ;;  %v8973_v12 = vld [vmem:[#allocation2 + $0x1a0] sm:$0xff]  ;;  %v1962_v51 = vrot.slane %v8935_v58, 1  ;;  %11027 = vst [vmem:[#allocation73_spill] sm:$0xff] %v9002_v59 }
  0x78   : > { %11022 = vst [vmem:[#allocation68_spill] sm:$0xff] %v8973_v12 }
  0x79   : > { %6996 = vmatmul.mubr.msk.f32.gmra.mrb[44].mxu1 %vm426_vm1, %v8929_v5  ;;  %v9016_v18 = vsel %vm1864_vm2, %v1960_v28, %v1962_v51  ;;  %v1968_v5 = vrot.slane %v8973_v12, 1 }
  0x7a   : > { %7328 = vmatmul.mubr.msk.f32.gmra.mrb[36].mxu0 %vm426_vm1, %v8927_v22  ;;  %6998 = vmatprep.mubr.msk.f32.mxu1 %vm426_vm1, %v8935_v58  ;;  %v8955_v22 = vld [vmem:[#allocation2 + $0x198] sm:$0xff]  ;;  %11029 = vst [vmem:[#allocation75_spill] sm:$0xff] %v9016_v18  ;;  %v9024_v58 = vld [vmem:[#allocation2 + $0x1c8] sm:$0xff] }
  0x7b   : > { %7330 = vmatprep.mubr.msk.f32.mxu0 %vm426_vm1, %v8933_v48  ;;  %11020 = vst [vmem:[#allocation66_spill] sm:$0xff] %v8955_v22  ;;  %v6308_v48 = vunpack.c.l.bf16 %v6342_v40  ;;  %11032 = vst [vmem:[#allocation78_spill] sm:$0xff] %v9024_v58 }
  0x7d   : > { %6999 = vmatmul.mubr.msk.f32.gmra.mrb[46].mxu1 %vm426_vm1, %v8949_v6  ;;  %503 = vst.msk [vmem:[#allocation2 + $0x1e0] sm:$0xff] %vm426_vm1, %v6308_v48  ;;  %v8995_v48 = vsel %vm1864_vm2, %v1956_v16, %v1958_v52  ;;  %v1966_v52 = vrot.slane %v8955_v22, 1 }
  0x7e   : > { %7331 = vmatmul.mubr.msk.f32.gmra.mrb[38].mxu0 %vm426_vm1, %v8947_v45  ;;  %7001 = vmatprep.mubr.msk.f32.mxu1 %vm426_vm1, %v8955_v22  ;;  %v8978_v45 = vsel %vm1864_vm2, %v1954_v10, %v1956_v16  ;;  %11025 = vst [vmem:[#allocation71_spill] sm:$0xff] %v8995_v48  ;;  %v9004_v10 = vld [vmem:[#allocation2 + $0x1b8] sm:$0xff]  ;;  %v9018_v16 = vld [vmem:[#allocation2 + $0x1c0] sm:$0xff]  ;;  %v1970_v22 = vrot.slane %v8980_v54, 1 }
  0x7f   : > { %7333 = vmatprep.mubr.msk.f32.mxu0 %vm426_vm1, %v8953_v56  ;;  %11023 = vst [vmem:[#allocation69_spill] sm:$0xff] %v8978_v45  ;;  %v6309_v56 = vunpack.c.h.bf16 %v6342_v40  ;;  %v8997_v40 = vld [vmem:[#allocation2 + $0x1b0] sm:$0xff]  ;;  %11028 = vst [vmem:[#allocation74_spill] sm:$0xff] %v9004_v10 }
  0x80   : > { %11026 = vst [vmem:[#allocation72_spill] sm:$0xff] %v8997_v40  ;;  %11030 = vst [vmem:[#allocation76_spill] sm:$0xff] %v9018_v16 }
  0x81   : > { %7002 = vmatmul.mubr.msk.f32.gmra.mrb[48].mxu1 %vm426_vm1, %v8973_v12  ;;  %504 = vst.msk [vmem:[#allocation2 + $0x1e8] sm:$0xff] %vm426_vm1, %v6309_v56  ;;  %v1964_v56 = vrot.slane %v8949_v6, 1  ;;  %v9042_v12 = vsel %vm1864_vm2, %v1966_v52, %v1968_v5 }
  0x82   : > { %7334 = vmatmul.mubr.msk.f32.gmra.mrb[40].mxu0 %vm426_vm1, %v8971_v19  ;;  %7004 = vmatprep.mubr.msk.f32.mxu1 %vm426_vm1, %v8980_v54  ;;  %11035 = vst [vmem:[#allocation81_spill] sm:$0xff] %v9042_v12  ;;  %v1976_v54 = vrot.slane %v9018_v16, 1 }
  0x83   : > { %7336 = vmatprep.mubr.msk.f32.mxu0 %vm426_vm1, %v8978_v45  ;;  %v9022_v6 = vsel %vm1864_vm2, %v1962_v51, %v1964_v56  ;;  %v9036_v28 = vsel %vm1864_vm2, %v1964_v56, %v1966_v52  ;;  %v9038_v51 = vld [vmem:[#allocation2 + $0x1d0] sm:$0xff]  ;;  %v9054_v56 = vsel %vm1864_vm2, %v1968_v5, %v1970_v22  ;;  %v1974_v52 = vrot.slane %v9004_v10, 1 }
  0x84   : > { %11031 = vst [vmem:[#allocation77_spill] sm:$0xff] %v9022_v6  ;;  %11033 = vst [vmem:[#allocation79_spill] sm:$0xff] %v9036_v28 }
  0x85   : > { %7005 = vmatmul.mubr.msk.f32.gmra.mrb[50].mxu1 %vm426_vm1, %v8997_v40  ;;  %11034 = vst [vmem:[#allocation80_spill] sm:$0xff] %v9038_v51  ;;  %11036 = vst [vmem:[#allocation82_spill] sm:$0xff] %v9054_v56  ;;  %v9075_v5 = vsel %vm1864_vm2, %v1974_v52, %v1976_v54 }
  0x86   : > { %7337 = vmatmul.mubr.msk.f32.gmra.mrb[42].mxu0 %vm426_vm1, %v8995_v48  ;;  %7007 = vmatprep.mubr.msk.f32.mxu1 %vm426_vm1, %v9004_v10  ;;  %11039 = vst [vmem:[#allocation85_spill] sm:$0xff] %v9075_v5 }
  0x87   : > { %7339 = vmatprep.mubr.msk.f32.mxu0 %vm426_vm1, %v9002_v59 }
  0x89   : > { %7008 = vmatmul.mubr.msk.f32.gmra.mrb[52].mxu1 %vm426_vm1, %v9018_v16  ;;  %v9077_v16 = vld [vmem:[#allocation2 + $0x1d8] sm:$0xff] }
  0x8a   : > { %7340 = vmatmul.mubr.msk.f32.gmra.mrb[44].mxu0 %vm426_vm1, %v9016_v18  ;;  %7010 = vmatprep.mubr.msk.f32.mxu1 %vm426_vm1, %v9024_v58  ;;  %v1972_v18 = vrot.slane %v8997_v40, 1 }
  0x8b   : > { %7342 = vmatprep.mubr.msk.f32.mxu0 %vm426_vm1, %v9022_v6 }
  0x8c   : > { %v9059_v40 = vsel %vm1864_vm2, %v1970_v22, %v1972_v18  ;;  %v2498_v22 = vrot.slane %v9038_v51, 1 }
  0x8d   : > { %7011 = vmatmul.mubr.msk.f32.gmra.mrb[54].mxu1 %vm426_vm1, %v9038_v51  ;;  %11037 = vst [vmem:[#allocation83_spill] sm:$0xff] %v9059_v40  ;;  %v11081_v51 = vld [vmem:[#allocation55_spill] sm:$0xff] }
  0x8e   : > { %7343 = vmatmul.mubr.msk.f32.gmra.mrb[46].mxu0 %vm426_vm1, %v9036_v28  ;;  %7015 = vmatprep.mubr.msk.f32.mxu1 %vm426_vm1, %v8452_v62  ;;  %v9071_v62 = vsel %vm1864_vm2, %v1972_v18, %v1974_v52 }
  0x8f   : > { %7345 = vmatprep.mubr.msk.f32.mxu0 %vm426_vm1, %v9042_v12  ;;  %v2496_v12 = vrot.slane %v9024_v58, 1  ;;  %11038 = vst [vmem:[#allocation84_spill] sm:$0xff] %v9071_v62  ;;  %v11090_v58 = vld [vmem:[#allocation70_spill] sm:$0xff] }
  0x91   : > { %7016 = vmatmul.mubr.msk.f32.vlgmr.msra.gmra.mrb[0].mxu1 %vm426_vm1, %v8461_v7  ;;  %v9091_v18 = vsel %vm1864_vm2, %v1976_v54, %v2496_v12  ;;  %v9095_v52 = vsel %vm1864_vm2, %v2496_v12, %v2498_v22  ;;  %v11043_v54 = vld [vmem:[#allocation17_spill] sm:$0xff]  ;;  %v11045_v12 = vld [vmem:[#allocation19_spill] sm:$0xff] }
  0x92   : > { %7346 = vmatmul.mubr.msk.f32.gmra.mrb[48].mxu0 %vm426_vm1, %v9054_v56  ;;  %7018 = vmatprep.mubr.msk.f32.mxu1 %vm426_vm1, %v8474_v11 }
  0x93   : > { %7348 = vmatprep.mubr.msk.f32.mxu0 %vm426_vm1, %v9059_v40  ;;  %7100 = vmatpush3.msk.msra.mxu1 %vm741_vm0, %v5776_v35  ;;  %v10907_v35 = vrot.slane %v9077_v16, 1 }
  0x94   : > { %7837 = vmatprep.subr.msk.mxu1 %vm741_vm0, %v8372_v1 }
  0x95   : > { %7019 = vmatmul.mubr.msk.f32.gmra.mrb[2].mxu1 %vm426_vm1, %v8448_v60  ;;  %v9108_v1 = vsel %vm1864_vm2, %v2498_v22, %v10907_v35  ;;  %v11040_v60 = vld [vmem:[#allocation26_spill] sm:$0xff]  ;;  %v11046_v22 = vld [vmem:[#allocation32_spill] sm:$0xff]  ;;  %v11047_v35 = vld [vmem:[#allocation21_spill] sm:$0xff] }
  0x96   : > { %7349 = vmatmul.mubr.msk.f32.gmra.mrb[50].mxu0 %vm426_vm1, %v9071_v62  ;;  %7021 = vmatprep.mubr.msk.f32.mxu1 %vm426_vm1, %v8450_v61  ;;  %v11041_v61 = vld [vmem:[#allocation15_spill] sm:$0xff] }
  0x97   : > { %7351 = vmatprep.mubr.msk.f32.mxu0 %vm426_vm1, %v9075_v5 }
  0x99   : > { %7022 = vmatmul.mubr.msk.f32.gmra.mrb[4].mxu1 %vm426_vm1, %v8463_v8  ;;  %v11042_v8 = vld [vmem:[#allocation28_spill] sm:$0xff] }
  0x9a   : > { %7352 = vmatmul.mubr.msk.f32.gmra.mrb[52].mxu0 %vm426_vm1, %v9091_v18  ;;  %7024 = vmatprep.mubr.msk.f32.mxu1 %vm426_vm1, %v8484_v14 }
  0x9b   : > { %7354 = vmatprep.mubr.msk.f32.mxu0 %vm426_vm1, %v9095_v52 }
  0x9d   : > { %7025 = vmatmul.mubr.msk.f32.gmra.mrb[6].mxu1 %vm426_vm1, %v8490_v17 }
  0x9e   : > { %7355 = vmatmul.mubr.msk.f32.gmra.mrb[54].mxu0 %vm426_vm1, %v9108_v1  ;;  %7027 = vmatprep.mubr.msk.f32.mxu1 %vm426_vm1, %v8505_v21 }
  0x9f   : > { %7359 = vmatprep.mubr.msk.f32.mxu0 %vm426_vm1, %v8548_v36  ;;  %v11079_v36 = vld [vmem:[#allocation53_spill] sm:$0xff] }
  0xa1   : > { %7028 = vmatmul.mubr.msk.f32.gmra.mrb[8].mxu1 %vm426_vm1, %v8509_v24 }
  0xa2   : > { %7360 = vmatmul.mubr.msk.f32.vlgmr.msra.gmra.mrb[0].mxu0 %vm426_vm1, %v8559_v41  ;;  %7030 = vmatprep.mubr.msk.f32.mxu1 %vm426_vm1, %v8521_v26  ;;  %v11077_v41 = vld [vmem:[#allocation51_spill] sm:$0xff] }
  0xa3   : > { %7362 = vmatprep.mubr.msk.f32.mxu0 %vm426_vm1, %v8576_v50  ;;  %7444 = vmatpush3.msk.msra.mxu0 %vm741_vm0, %v8828_v32  ;;  %v11044_v32 = vld [vmem:[#allocation30_spill] sm:$0xff]  ;;  %v11075_v50 = vld [vmem:[#allocation49_spill] sm:$0xff] }
  0xa5   : > { %7031 = vmatmul.mubr.msk.f32.gmra.mrb[10].mxu1 %vm426_vm1, %v8523_v2 }
  0xa6   : > { %7363 = vmatmul.mubr.msk.f32.gmra.mrb[2].mxu0 %vm426_vm1, %v8593_v0  ;;  %7033 = vmatprep.mubr.msk.f32.mxu1 %vm426_vm1, %v8531_v27  ;;  %v11073_v0 = vld [vmem:[#allocation47_spill] sm:$0xff] }
  0xa7   : > { %7365 = vmatprep.mubr.msk.f32.mxu0 %vm426_vm1, %v8613_v3  ;;  %v11071_v3 = vld [vmem:[#allocation45_spill] sm:$0xff] }
  0xa9   : > { %7034 = vmatmul.mubr.msk.f32.gmra.mrb[12].mxu1 %vm426_vm1, %v8535_v30 }
  0xaa   : > { %7366 = vmatmul.mubr.msk.f32.gmra.mrb[4].mxu0 %vm426_vm1, %v8623_v23  ;;  %7036 = vmatprep.mubr.msk.f32.mxu1 %vm426_vm1, %v8550_v37  ;;  %v11069_v23 = vld [vmem:[#allocation43_spill] sm:$0xff] }
  0xab   : > { %7368 = vmatprep.mubr.msk.f32.mxu0 %vm426_vm1, %v8640_v29  ;;  %v11067_v29 = vld [vmem:[#allocation41_spill] sm:$0xff] }
  0xad   : > { %7037 = vmatmul.mubr.msk.f32.gmra.mrb[14].mxu1 %vm426_vm1, %v8561_v42 }
  0xae   : > { %7369 = vmatmul.mubr.msk.f32.gmra.mrb[6].mxu0 %vm426_vm1, %v8646_v33  ;;  %7039 = vmatprep.mubr.msk.f32.mxu1 %vm426_vm1, %v8586_v55  ;;  %v11066_v33 = vld [vmem:[#allocation52_spill] sm:$0xff] }
  0xaf   : > { %7371 = vmatprep.mubr.msk.f32.mxu0 %vm426_vm1, %v8660_v38  ;;  %v11065_v38 = vld [vmem:[#allocation39_spill] sm:$0xff] }
  0xb1   : > { %7040 = vmatmul.mubr.msk.f32.gmra.mrb[16].mxu1 %vm426_vm1, %v8595_v4 }
  0xb2   : > { %7372 = vmatmul.mubr.msk.f32.gmra.mrb[8].mxu0 %vm426_vm1, %v8666_v43  ;;  %7042 = vmatprep.mubr.msk.f32.mxu1 %vm426_vm1, %v8615_v20  ;;  %v11064_v43 = vld [vmem:[#allocation50_spill] sm:$0xff] }
  0xb3   : > { %7374 = vmatprep.mubr.msk.f32.mxu0 %vm426_vm1, %v8680_v46  ;;  %v11062_v46 = vld [vmem:[#allocation48_spill] sm:$0xff] }
  0xb5   : > { %7043 = vmatmul.mubr.msk.f32.gmra.mrb[18].mxu1 %vm426_vm1, %v8625_v25 }
  0xb6   : > { %7375 = vmatmul.mubr.msk.f32.gmra.mrb[10].mxu0 %vm426_vm1, %v8686_v49  ;;  %7045 = vmatprep.mubr.msk.f32.mxu1 %vm426_vm1, %v8642_v31  ;;  %v11059_v49 = vld [vmem:[#allocation33_spill] sm:$0xff] }
  0xb7   : > { %7377 = vmatprep.mubr.msk.f32.mxu0 %vm426_vm1, %v8700_v53  ;;  %v11057_v53 = vld [vmem:[#allocation31_spill] sm:$0xff] }
  0xb9   : > { %7046 = vmatmul.mubr.msk.f32.gmra.mrb[20].mxu1 %vm426_vm1, %v8648_v34 }
  0xba   : > { %7378 = vmatmul.mubr.msk.f32.gmra.mrb[12].mxu0 %vm426_vm1, %v8706_v57  ;;  %7048 = vmatprep.mubr.msk.f32.mxu1 %vm426_vm1, %v8662_v39  ;;  %v11055_v57 = vld [vmem:[#allocation29_spill] sm:$0xff] }
  0xbb   : > { %7380 = vmatprep.mubr.msk.f32.mxu0 %vm426_vm1, %v8720_v63  ;;  %v11053_v63 = vld [vmem:[#allocation27_spill] sm:$0xff] }
  0xbd   : > { %7049 = vmatmul.mubr.msk.f32.gmra.mrb[22].mxu1 %vm426_vm1, %v8668_v44 }
  0xbe   : > { %7381 = vmatmul.mubr.msk.f32.gmra.mrb[14].mxu0 %vm426_vm1, %v8726_v9  ;;  %7051 = vmatprep.mubr.msk.f32.mxu1 %vm426_vm1, %v8682_v47  ;;  %v11051_v9 = vld [vmem:[#allocation25_spill] sm:$0xff] }
  0xbf   : > { %7383 = vmatprep.mubr.msk.f32.mxu0 %vm426_vm1, %v8740_v13  ;;  %v11049_v13 = vld [vmem:[#allocation23_spill] sm:$0xff] }
  0xc1   : > { %7052 = vmatmul.mubr.msk.f32.gmra.mrb[24].mxu1 %vm426_vm1, %v11041_v61 }
  0xc2   : > { %7384 = vmatmul.mubr.msk.f32.gmra.mrb[16].mxu0 %vm426_vm1, %v11040_v60  ;;  %7054 = vmatprep.mubr.msk.f32.mxu1 %vm426_vm1, %v11043_v54  ;;  %v11048_v60 = vld [vmem:[#allocation34_spill] sm:$0xff] }
  0xc3   : > { %7386 = vmatprep.mubr.msk.f32.mxu0 %vm426_vm1, %v11042_v8  ;;  %v11050_v8 = vld [vmem:[#allocation36_spill] sm:$0xff] }
  0xc5   : > { %7055 = vmatmul.mubr.msk.f32.gmra.mrb[26].mxu1 %vm426_vm1, %v11045_v12 }
  0xc6   : > { %7387 = vmatmul.mubr.msk.f32.gmra.mrb[18].mxu0 %vm426_vm1, %v11044_v32  ;;  %7057 = vmatprep.mubr.msk.f32.mxu1 %vm426_vm1, %v11047_v35  ;;  %v11052_v32 = vld [vmem:[#allocation38_spill] sm:$0xff] }
  0xc7   : > { %7389 = vmatprep.mubr.msk.f32.mxu0 %vm426_vm1, %v11046_v22  ;;  %v11054_v22 = vld [vmem:[#allocation40_spill] sm:$0xff] }
  0xc9   : > { %7058 = vmatmul.mubr.msk.f32.gmra.mrb[28].mxu1 %vm426_vm1, %v11049_v13 }
  0xca   : > { %7390 = vmatmul.mubr.msk.f32.gmra.mrb[20].mxu0 %vm426_vm1, %v11048_v60  ;;  %7060 = vmatprep.mubr.msk.f32.mxu1 %vm426_vm1, %v11051_v9  ;;  %v11056_v60 = vld [vmem:[#allocation42_spill] sm:$0xff] }
  0xcb   : > { %7392 = vmatprep.mubr.msk.f32.mxu0 %vm426_vm1, %v11050_v8  ;;  %v11058_v8 = vld [vmem:[#allocation44_spill] sm:$0xff] }
  0xcd   : > { %7061 = vmatmul.mubr.msk.f32.gmra.mrb[30].mxu1 %vm426_vm1, %v11053_v63 }
  0xce   : > { %7393 = vmatmul.mubr.msk.f32.gmra.mrb[22].mxu0 %vm426_vm1, %v11052_v32  ;;  %7063 = vmatprep.mubr.msk.f32.mxu1 %vm426_vm1, %v11055_v57  ;;  %v9227_v32 = vld [vmem:[%s10797_s2 + $0x14] sm:$0xf] }
  0xcf   : > { %7395 = vmatprep.mubr.msk.f32.mxu0 %vm426_vm1, %v11054_v22  ;;  %7529 = vmatprep.subr.msk.mxu0 %vm741_vm0, %v9227_v32  ;;  %v11060_v22 = vld [vmem:[#allocation46_spill] sm:$0xff] }
  0xd1   : > { %7064 = vmatmul.mubr.msk.f32.gmra.mrb[32].mxu1 %vm426_vm1, %v11057_v53 }
  0xd2   : > { %7396 = vmatmul.mubr.msk.f32.gmra.mrb[24].mxu0 %vm426_vm1, %v11056_v60  ;;  %7066 = vmatprep.mubr.msk.f32.mxu1 %vm426_vm1, %v11059_v49  ;;  %v11061_v60 = vld [vmem:[#allocation35_spill] sm:$0xff] }
  0xd3   : > { %7398 = vmatprep.mubr.msk.f32.mxu0 %vm426_vm1, %v11058_v8  ;;  %v11063_v8 = vld [vmem:[#allocation37_spill] sm:$0xff] }
  0xd5   : > { %7067 = vmatmul.mubr.msk.f32.gmra.mrb[34].mxu1 %vm426_vm1, %v11061_v60 }
  0xd6   : > { %7399 = vmatmul.mubr.msk.f32.gmra.mrb[26].mxu0 %vm426_vm1, %v11060_v22  ;;  %7069 = vmatprep.mubr.msk.f32.mxu1 %vm426_vm1, %v11063_v8  ;;  %v11068_v22 = vld [vmem:[#allocation54_spill] sm:$0xff] }
  0xd7   : > { %7401 = vmatprep.mubr.msk.f32.mxu0 %vm426_vm1, %v11062_v46  ;;  %v11070_v46 = vld [vmem:[#allocation56_spill] sm:$0xff] }
  0xd9   : > { %7070 = vmatmul.mubr.msk.f32.gmra.mrb[36].mxu1 %vm426_vm1, %v11065_v38 }
  0xda   : > { %7402 = vmatmul.mubr.msk.f32.gmra.mrb[28].mxu0 %vm426_vm1, %v11064_v43  ;;  %7072 = vmatprep.mubr.msk.f32.mxu1 %vm426_vm1, %v11067_v29  ;;  %v11072_v43 = vld [vmem:[#allocation58_spill] sm:$0xff] }
  0xdb   : > { %7404 = vmatprep.mubr.msk.f32.mxu0 %vm426_vm1, %v11066_v33  ;;  %v11074_v33 = vld [vmem:[#allocation59_spill] sm:$0xff] }
  0xdd   : > { %7073 = vmatmul.mubr.msk.f32.gmra.mrb[38].mxu1 %vm426_vm1, %v11069_v23 }
  0xde   : > { %7405 = vmatmul.mubr.msk.f32.gmra.mrb[30].mxu0 %vm426_vm1, %v11068_v22  ;;  %7075 = vmatprep.mubr.msk.f32.mxu1 %vm426_vm1, %v11071_v3  ;;  %v11076_v22 = vld [vmem:[#allocation61_spill] sm:$0xff] }
  0xdf   : > { %7407 = vmatprep.mubr.msk.f32.mxu0 %vm426_vm1, %v11070_v46  ;;  %v11078_v46 = vld [vmem:[#allocation63_spill] sm:$0xff] }
  0xe1   : > { %7076 = vmatmul.mubr.msk.f32.gmra.mrb[40].mxu1 %vm426_vm1, %v11073_v0 }
  0xe2   : > { %7408 = vmatmul.mubr.msk.f32.gmra.mrb[32].mxu0 %vm426_vm1, %v11072_v43  ;;  %7078 = vmatprep.mubr.msk.f32.mxu1 %vm426_vm1, %v11075_v50  ;;  %v11080_v43 = vld [vmem:[#allocation65_spill] sm:$0xff] }
  0xe3   : > { %7410 = vmatprep.mubr.msk.f32.mxu0 %vm426_vm1, %v11074_v33  ;;  %v11082_v33 = vld [vmem:[#allocation57_spill] sm:$0xff] }
  0xe5   : > { %7079 = vmatmul.mubr.msk.f32.gmra.mrb[42].mxu1 %vm426_vm1, %v11077_v41 }
  0xe6   : > { %7411 = vmatmul.mubr.msk.f32.gmra.mrb[34].mxu0 %vm426_vm1, %v11076_v22  ;;  %7081 = vmatprep.mubr.msk.f32.mxu1 %vm426_vm1, %v11079_v36  ;;  %v11086_v22 = vld [vmem:[#allocation64_spill] sm:$0xff] }
  0xe7   : > { %7413 = vmatprep.mubr.msk.f32.mxu0 %vm426_vm1, %v11078_v46  ;;  %v11083_v46 = vld [vmem:[#allocation60_spill] sm:$0xff] }
  0xe9   : > { %7082 = vmatmul.mubr.msk.f32.gmra.mrb[44].mxu1 %vm426_vm1, %v11081_v51 }
  0xea   : > { %7414 = vmatmul.mubr.msk.f32.gmra.mrb[36].mxu0 %vm426_vm1, %v11080_v43  ;;  %7084 = vmatprep.mubr.msk.f32.mxu1 %vm426_vm1, %v11082_v33  ;;  %v11084_v43 = vld [vmem:[#allocation62_spill] sm:$0xff] }
  0xeb   : > { %7416 = vmatprep.mubr.msk.f32.mxu0 %vm426_vm1, %v8971_v19  ;;  %v11085_v19 = vld [vmem:[#allocation75_spill] sm:$0xff] }
  0xed   : > { %7085 = vmatmul.mubr.msk.f32.gmra.mrb[46].mxu1 %vm426_vm1, %v8915_v15 }
  0xee   : > { %7417 = vmatmul.mubr.msk.f32.gmra.mrb[38].mxu0 %vm426_vm1, %v8978_v45  ;;  %7087 = vmatprep.mubr.msk.f32.mxu1 %vm426_vm1, %v11083_v46  ;;  %v11087_v45 = vld [vmem:[#allocation66_spill] sm:$0xff] }
  0xef   : > { %7419 = vmatprep.mubr.msk.f32.mxu0 %vm426_vm1, %v8995_v48  ;;  %v11088_v48 = vld [vmem:[#allocation68_spill] sm:$0xff] }
  0xf1   : > { %7088 = vmatmul.mubr.msk.f32.gmra.mrb[48].mxu1 %vm426_vm1, %v11084_v43 }
  0xf2   : > { %7420 = vmatmul.mubr.msk.f32.gmra.mrb[40].mxu0 %vm426_vm1, %v9002_v59  ;;  %7090 = vmatprep.mubr.msk.f32.mxu1 %vm426_vm1, %v11086_v22  ;;  %v11089_v59 = vld [vmem:[#allocation81_spill] sm:$0xff] }
  0xf3   : > { %7422 = vmatprep.mubr.msk.f32.mxu0 %vm426_vm1, %v11085_v19  ;;  %v11091_v19 = vld [vmem:[#allocation72_spill] sm:$0xff] }
  0xf5   : > { %7091 = vmatmul.mubr.msk.f32.gmra.mrb[50].mxu1 %vm426_vm1, %v11087_v45 }
  0xf6   : > { %7423 = vmatmul.mubr.msk.f32.gmra.mrb[42].mxu0 %vm426_vm1, %v9022_v6  ;;  %7093 = vmatprep.mubr.msk.f32.mxu1 %vm426_vm1, %v11088_v48  ;;  %v8300_v6 = vld [vmem:[%s10797_s2 + $0x4] sm:$0xf] }
  0xf7   : > { %7425 = vmatprep.mubr.msk.f32.mxu0 %vm426_vm1, %v9036_v28  ;;  %v9321_v28 = vld [vmem:[#allocation2 + $0x1e8] sm:$0xff] }
  0xf8   : > { %11093 = vst [vmem:[#allocation17_spill] sm:$0xff] %v9321_v28 }
  0xf9   : > { %7094 = vmatmul.mubr.msk.f32.gmra.mrb[52].mxu1 %vm426_vm1, %v11090_v58 }
  0xfa   : > { %7426 = vmatmul.mubr.msk.f32.gmra.mrb[44].mxu0 %vm426_vm1, %v11089_v59  ;;  %7096 = vmatprep.mubr.msk.f32.mxu1 %vm426_vm1, %v11091_v19  ;;  %v9319_v59 = vld [vmem:[#allocation2 + $0x1e0] sm:$0xff] }
  0xfb   : > { %7428 = vmatprep.mubr.msk.f32.mxu0 %vm426_vm1, %v9054_v56  ;;  %11092 = vst [vmem:[#allocation15_spill] sm:$0xff] %v9319_v59  ;;  %v569_v56 = vld [vmem:[#allocation2 + $0x1f0] sm:$0xff] }
  0xfd   : > { %7097 = vmatmul.mubr.msk.f32.gmra.mrb[54].mxu1 %vm426_vm1, %v9004_v10 }
  0xfe   : > { %7429 = vmatmul.mubr.msk.f32.gmra.mrb[46].mxu0 %vm426_vm1, %v9059_v40  ;;  %7101 = vmatprep.mubr.msk.f32.mxu1 %vm426_vm1, %v8484_v14  ;;  %v2917_v40 = vrot.slane %v9321_v28, 1  ;;  %v2919_v28 = vrot.slane %v569_v56, 1 }
  0xff   : > { %7431 = vmatprep.mubr.msk.f32.mxu0 %vm426_vm1, %v9071_v62  ;;  %v2915_v62 = vrot.slane %v9319_v59, 1 }
 0x100   : > { %v2920_v56 = vsel %vm1864_vm2, %v2917_v40, %v2919_v28 }
 0x101   : > { %7102 = vmatmul.mubr.msk.f32.vlgmr.msra.gmra.mrb[0].mxu1 %vm426_vm1, %v8490_v17  ;;  %v2918_v59 = vsel %vm1864_vm2, %v2915_v62, %v2917_v40 }
 0x102   : > { %7432 = vmatmul.mubr.msk.f32.gmra.mrb[48].mxu0 %vm426_vm1, %v9075_v5  ;;  %7104 = vmatprep.mubr.msk.f32.mxu1 %vm426_vm1, %v8505_v21 }
 0x103   : > { %7434 = vmatprep.mubr.msk.f32.mxu0 %vm426_vm1, %v9091_v18  ;;  %7838 = vmatpush3.msk.msra.mxu1 %vm741_vm0, %v8300_v6  ;;  %v11094_v18 = vrot.slane %v9077_v16, 1  ;;  %v8301_v6 = vld [vmem:[#allocation2] sm:$0xff] }
 0x104   : > { %v3334_v10 = vrot.slane %v8301_v6, 2 }
 0x105   : > { %7105 = vmatmul.mubr.msk.f32.gmra.mrb[2].mxu1 %vm426_vm1, %v8509_v24  ;;  %v2916_v5 = vsel %vm1864_vm2, %v11094_v18, %v2915_v62  ;;  %v8302_v62 = vld [vmem:[#allocation2 + $0x18] sm:$0xff] }
 0x106   : > { %7435 = vmatmul.mubr.msk.f32.gmra.mrb[50].mxu0 %vm426_vm1, %v9095_v52  ;;  %7107 = vmatprep.mubr.msk.f32.mxu1 %vm426_vm1, %v8521_v26  ;;  %v3335_v52 = vrot.slane %v8461_v7, 2  ;;  %v3339_v18 = vrot.slane %v8302_v62, 2  ;;  %v8303_v7 = vld [vmem:[#allocation2 + $0x20] sm:$0xff] }
 0x107   : > { %7437 = vmatprep.mubr.msk.f32.mxu0 %vm426_vm1, %v9108_v1  ;;  %v3337_v1 = vrot.slane %v8474_v11, 2 }
 0x108   : > { %v3336_v6 = vsel %vm3333_vm3, %v3334_v10, %v3335_v52 }
 0x109   : > { %7108 = vmatmul.mubr.msk.f32.gmra.mrb[4].mxu1 %vm426_vm1, %v8523_v2  ;;  %v3338_v11 = vsel %vm3333_vm3, %v3335_v52, %v3337_v1  ;;  %v3340_v28 = vsel %vm3333_vm3, %v3337_v1, %v3339_v18  ;;  %v3347_v1 = vrot.slane %v8490_v17, 2  ;;  %v3349_v17 = vrot.slane %v8505_v21, 2 }
 0x10a   : > { %7438 = vmatmul.mubr.msk.f32.gmra.mrb[52].mxu0 %vm426_vm1, %v2916_v5  ;;  %7110 = vmatprep.mubr.msk.f32.mxu1 %vm426_vm1, %v8531_v27  ;;  %v3341_v5 = vrot.slane %v8303_v7, 2  ;;  %v3353_v21 = vrot.slane %v8521_v26, 2  ;;  %v3357_v26 = vrot.slane %v8531_v27, 2  ;;  %v3361_v27 = vrot.slane %v8550_v37, 2 }
 0x10b   : > { %7440 = vmatprep.mubr.msk.f32.mxu0 %vm426_vm1, %v2918_v59  ;;  %v8304_v59 = vld [vmem:[#allocation2 + $0x28] sm:$0xff] }
 0x10c   : > { %v3343_v40 = vrot.slane %v8304_v59, 2  ;;  %v9374_v10 = vsel %vm3333_vm3, %v3339_v18, %v3341_v5  ;;  %v9408_v18 = vsel %vm3333_vm3, %v3347_v1, %v3349_v17 }
 0x10d   : > { %7111 = vmatmul.mubr.msk.f32.gmra.mrb[6].mxu1 %vm426_vm1, %v8535_v30 }
 0x10e   : > { %7441 = vmatmul.mubr.msk.f32.gmra.mrb[54].mxu0 %vm426_vm1, %v2920_v56  ;;  %7113 = vmatprep.mubr.msk.f32.mxu1 %vm426_vm1, %v8550_v37  ;;  %v3345_v56 = vrot.slane %v8484_v14, 2  ;;  %v9378_v52 = vsel %vm3333_vm3, %v3341_v5, %v3343_v40  ;;  %v3365_v37 = vrot.slane %v8586_v55, 2 }
 0x10f   : > { %7445 = vmatprep.mubr.msk.f32.mxu0 %vm426_vm1, %v3336_v6 }
 0x110   : > { %v9392_v14 = vsel %vm3333_vm3, %v3343_v40, %v3345_v56  ;;  %v9396_v62 = vsel %vm3333_vm3, %v3345_v56, %v3347_v1 }
 0x111   : > { %7114 = vmatmul.mubr.msk.f32.gmra.mrb[8].mxu1 %vm426_vm1, %v8561_v42 }
 0x112   : > { %7446 = vmatmul.mubr.msk.f32.vlgmr.msra.gmra.mrb[0].mxu0 %vm426_vm1, %v3338_v11  ;;  %7116 = vmatprep.mubr.msk.f32.mxu1 %vm426_vm1, %v8586_v55  ;;  %v3369_v55 = vrot.slane %v8615_v20, 2 }
 0x113   : > { %7448 = vmatprep.mubr.msk.f32.mxu0 %vm426_vm1, %v3340_v28  ;;  %7530 = vmatpush3.msk.msra.mxu0 %vm741_vm0, %v9227_v32  ;;  %v3351_v32 = vrot.slane %v8509_v24, 2  ;;  %v3355_v24 = vrot.slane %v8523_v2, 2  ;;  %v3359_v2 = vrot.slane %v8535_v30, 2  ;;  %v3363_v30 = vrot.slane %v8561_v42, 2 }
 0x114   : > { %v3367_v42 = vrot.slane %v8595_v4, 2 }
 0x115   : > { %7117 = vmatmul.mubr.msk.f32.gmra.mrb[10].mxu1 %vm426_vm1, %v8595_v4  ;;  %v9412_v6 = vsel %vm3333_vm3, %v3349_v17, %v3351_v32  ;;  %v9424_v7 = vsel %vm3333_vm3, %v3351_v32, %v3353_v21  ;;  %v9428_v5 = vsel %vm3333_vm3, %v3353_v21, %v3355_v24  ;;  %v9440_v11 = vsel %vm3333_vm3, %v3355_v24, %v3357_v26 }
 0x116   : > { %7449 = vmatmul.mubr.msk.f32.gmra.mrb[2].mxu0 %vm426_vm1, %v9374_v10  ;;  %7119 = vmatprep.mubr.msk.f32.mxu1 %vm426_vm1, %v8615_v20  ;;  %v9444_v59 = vsel %vm3333_vm3, %v3357_v26, %v3359_v2  ;;  %v9456_v40 = vsel %vm3333_vm3, %v3359_v2, %v3361_v27  ;;  %v9460_v28 = vsel %vm3333_vm3, %v3361_v27, %v3363_v30  ;;  %v3371_v4 = vrot.slane %v8625_v25, 2 }
 0x117   : > { %7451 = vmatprep.mubr.msk.f32.mxu0 %vm426_vm1, %v9378_v52  ;;  %v9472_v56 = vsel %vm3333_vm3, %v3363_v30, %v3365_v37  ;;  %v9476_v1 = vsel %vm3333_vm3, %v3365_v37, %v3367_v42  ;;  %v9488_v17 = vsel %vm3333_vm3, %v3367_v42, %v3369_v55  ;;  %v3373_v20 = vrot.slane %v8642_v31, 2 }
 0x118   : > { %v9492_v32 = vsel %vm3333_vm3, %v3369_v55, %v3371_v4 }
 0x119   : > { %7120 = vmatmul.mubr.msk.f32.gmra.mrb[12].mxu1 %vm426_vm1, %v8625_v25  ;;  %v3375_v25 = vrot.slane %v8648_v34, 2  ;;  %v9504_v21 = vsel %vm3333_vm3, %v3371_v4, %v3373_v20 }
 0x11a   : > { %7452 = vmatmul.mubr.msk.f32.gmra.mrb[4].mxu0 %vm426_vm1, %v9392_v14  ;;  %7122 = vmatprep.mubr.msk.f32.mxu1 %vm426_vm1, %v8642_v31  ;;  %v3377_v31 = vrot.slane %v8662_v39, 2 }
 0x11b   : > { %7454 = vmatprep.mubr.msk.f32.mxu0 %vm426_vm1, %v9396_v62  ;;  %v9508_v24 = vsel %vm3333_vm3, %v3373_v20, %v3375_v25  ;;  %v3395_v20 = vrot.slane %v11053_v63, 2 }
 0x11c   : > { %v9520_v26 = vsel %vm3333_vm3, %v3375_v25, %v3377_v31 }
 0x11d   : > { %7123 = vmatmul.mubr.msk.f32.gmra.mrb[14].mxu1 %vm426_vm1, %v8648_v34  ;;  %v3379_v34 = vrot.slane %v8668_v44, 2 }
 0x11e   : > { %7455 = vmatmul.mubr.msk.f32.gmra.mrb[6].mxu0 %vm426_vm1, %v9408_v18  ;;  %7125 = vmatprep.mubr.msk.f32.mxu1 %vm426_vm1, %v8662_v39  ;;  %v3381_v39 = vrot.slane %v8682_v47, 2 }
 0x11f   : > { %7457 = vmatprep.mubr.msk.f32.mxu0 %vm426_vm1, %v9412_v6  ;;  %v9524_v2 = vsel %vm3333_vm3, %v3377_v31, %v3379_v34  ;;  %v3399_v31 = vrot.slane %v11057_v53, 2 }
 0x120   : > { %v9536_v27 = vsel %vm3333_vm3, %v3379_v34, %v3381_v39  ;;  %v3401_v34 = vrot.slane %v11059_v49, 2 }
 0x121   : > { %7126 = vmatmul.mubr.msk.f32.gmra.mrb[16].mxu1 %vm426_vm1, %v8668_v44  ;;  %v3383_v44 = vrot.slane %v11041_v61, 2 }
 0x122   : > { %7458 = vmatmul.mubr.msk.f32.gmra.mrb[8].mxu0 %vm426_vm1, %v9424_v7  ;;  %7128 = vmatprep.mubr.msk.f32.mxu1 %vm426_vm1, %v8682_v47  ;;  %v3385_v47 = vrot.slane %v11043_v54, 2 }
 0x123   : > { %7460 = vmatprep.mubr.msk.f32.mxu0 %vm426_vm1, %v9428_v5  ;;  %v9540_v30 = vsel %vm3333_vm3, %v3381_v39, %v3383_v44  ;;  %v3403_v39 = vrot.slane %v11061_v60, 2 }
 0x124   : > { %v9552_v37 = vsel %vm3333_vm3, %v3383_v44, %v3385_v47  ;;  %v3405_v44 = vrot.slane %v11063_v8, 2 }
 0x125   : > { %7129 = vmatmul.mubr.msk.f32.gmra.mrb[18].mxu1 %vm426_vm1, %v11041_v61  ;;  %v3387_v61 = vrot.slane %v11045_v12, 2 }
 0x126   : > { %7461 = vmatmul.mubr.msk.f32.gmra.mrb[10].mxu0 %vm426_vm1, %v9440_v11  ;;  %7131 = vmatprep.mubr.msk.f32.mxu1 %vm426_vm1, %v11043_v54  ;;  %v3389_v54 = vrot.slane %v11047_v35, 2 }
 0x127   : > { %7463 = vmatprep.mubr.msk.f32.mxu0 %vm426_vm1, %v9444_v59  ;;  %v9556_v42 = vsel %vm3333_vm3, %v3385_v47, %v3387_v61  ;;  %v3407_v47 = vrot.slane %v11065_v38, 2 }
 0x128   : > { %v9568_v55 = vsel %vm3333_vm3, %v3387_v61, %v3389_v54  ;;  %v3409_v61 = vrot.slane %v11067_v29, 2 }
 0x129   : > { %7132 = vmatmul.mubr.msk.f32.gmra.mrb[20].mxu1 %vm426_vm1, %v11045_v12  ;;  %v3391_v12 = vrot.slane %v11049_v13, 2 }
 0x12a   : > { %7464 = vmatmul.mubr.msk.f32.gmra.mrb[12].mxu0 %vm426_vm1, %v9456_v40  ;;  %7134 = vmatprep.mubr.msk.f32.mxu1 %vm426_vm1, %v11047_v35  ;;  %v3393_v35 = vrot.slane %v11051_v9, 2 }
 0x12b   : > { %7466 = vmatprep.mubr.msk.f32.mxu0 %vm426_vm1, %v9460_v28  ;;  %v9577_v4 = vsel %vm3333_vm3, %v3389_v54, %v3391_v12  ;;  %v3411_v54 = vrot.slane %v11069_v23, 2 }
 0x12c   : > { %v9595_v25 = vsel %vm3333_vm3, %v3393_v35, %v3395_v20 }
 0x12d   : > { %7135 = vmatmul.mubr.msk.f32.gmra.mrb[22].mxu1 %vm426_vm1, %v11049_v13  ;;  %v9574_v13 = vld [vmem:[%s10797_s2 + $0x20] sm:$0xf] }
 0x12e   : > { %7467 = vmatmul.mubr.msk.f32.gmra.mrb[14].mxu0 %vm426_vm1, %v9472_v56  ;;  %7137 = vmatprep.mubr.msk.f32.mxu1 %vm426_vm1, %v11051_v9  ;;  %v9591_v9 = vsel %vm3333_vm3, %v3391_v12, %v3393_v35  ;;  %v3413_v12 = vrot.slane %v11071_v3, 2  ;;  %v3415_v35 = vrot.slane %v11073_v0, 2 }
 0x12f   : > { %7469 = vmatprep.mubr.msk.f32.mxu0 %vm426_vm1, %v9476_v1  ;;  %7615 = vmatprep.subr.msk.mxu0 %vm741_vm0, %v9574_v13 }
 0x131   : > { %7138 = vmatmul.mubr.msk.f32.gmra.mrb[24].mxu1 %vm426_vm1, %v11053_v63  ;;  %v3397_v63 = vrot.slane %v11055_v57, 2 }
 0x132   : > { %7470 = vmatmul.mubr.msk.f32.gmra.mrb[16].mxu0 %vm426_vm1, %v9488_v17  ;;  %7140 = vmatprep.mubr.msk.f32.mxu1 %vm426_vm1, %v11055_v57 }
 0x133   : > { %7472 = vmatprep.mubr.msk.f32.mxu0 %vm426_vm1, %v9492_v32  ;;  %v9607_v57 = vsel %vm3333_vm3, %v3395_v20, %v3397_v63  ;;  %v9682_v20 = vsel %vm3333_vm3, %v3413_v12, %v3415_v35 }
 0x135   : > { %7141 = vmatmul.mubr.msk.f32.gmra.mrb[26].mxu1 %vm426_vm1, %v11057_v53  ;;  %v9611_v53 = vsel %vm3333_vm3, %v3397_v63, %v3399_v31  ;;  %v3419_v63 = vrot.slane %v11077_v41, 2 }
 0x136   : > { %7473 = vmatmul.mubr.msk.f32.gmra.mrb[18].mxu0 %vm426_vm1, %v9504_v21  ;;  %7143 = vmatprep.mubr.msk.f32.mxu1 %vm426_vm1, %v11059_v49  ;;  %v9624_v49 = vsel %vm3333_vm3, %v3399_v31, %v3401_v34  ;;  %v8319_v31 = vmov 0  }
 0x137   : > { %7475 = vmatprep.mubr.msk.f32.mxu0 %vm426_vm1, %v9508_v24  ;;  %8298 = vset.pattern.permute.xlu0 %v8319_v31 }
 0x138   : > { %8299 = vset.pattern.permute.xlu1 %v8319_v31  ;;  %v3427_v31 = vrot.slane %v8915_v15, 2 }
 0x139   : > { %7144 = vmatmul.mubr.msk.f32.gmra.mrb[28].mxu1 %vm426_vm1, %v11061_v60  ;;  %v9628_v60 = vsel %vm3333_vm3, %v3401_v34, %v3403_v39  ;;  %v4815_v34 = vld [vmem:[%s9667_s22 + $0x80] sm:$0xff] }
 0x13a   : > { %7476 = vmatmul.mubr.msk.f32.gmra.mrb[20].mxu0 %vm426_vm1, %v9520_v26  ;;  %7146 = vmatprep.mubr.msk.f32.mxu1 %vm426_vm1, %v11063_v8  ;;  %v9641_v8 = vsel %vm3333_vm3, %v3403_v39, %v3405_v44  ;;  %v4799_v39 = vld [vmem:[%s9667_s22] sm:$0xff] }
 0x13b   : > { %7478 = vmatprep.mubr.msk.f32.mxu0 %vm426_vm1, %v9524_v2  ;;  %4937 = vperm.xlu0 %8298, %v4815_v34   ;;  %v4817_v34 = vld [vmem:[%s9667_s22 + $0x90] sm:$0xff] }
 0x13c   : > { %4857 = vperm.xlu1 %8299, %v4799_v39   ;;  %v4818_v39 = vld [vmem:[%s9667_s22 + $0x98] sm:$0xff] }
 0x13d   : > { %7147 = vmatmul.mubr.msk.f32.gmra.mrb[30].mxu1 %vm426_vm1, %v11065_v38  ;;  %v9645_v38 = vsel %vm3333_vm3, %v3405_v44, %v3407_v47 }
 0x13e   : > { %7479 = vmatmul.mubr.msk.f32.gmra.mrb[22].mxu0 %vm426_vm1, %v9536_v27  ;;  %7149 = vmatprep.mubr.msk.f32.mxu1 %vm426_vm1, %v11067_v29  ;;  %v9657_v29 = vsel %vm3333_vm3, %v3407_v47, %v3409_v61  ;;  %v3423_v47 = vrot.slane %v11081_v51, 2 }
 0x13f   : > { %7481 = vmatprep.mubr.msk.f32.mxu0 %vm426_vm1, %v9540_v30 }
 0x141   : > { %7150 = vmatmul.mubr.msk.f32.gmra.mrb[32].mxu1 %vm426_vm1, %v11069_v23  ;;  %v9661_v23 = vsel %vm3333_vm3, %v3409_v61, %v3411_v54  ;;  %v4816_v61 = vld [vmem:[%s9667_s22 + $0x88] sm:$0xff] }
 0x142   : > { %7482 = vmatmul.mubr.msk.f32.gmra.mrb[24].mxu0 %vm426_vm1, %v9552_v37  ;;  %7152 = vmatprep.mubr.msk.f32.mxu1 %vm426_vm1, %v11071_v3  ;;  %v3417_v3 = vrot.slane %v11075_v50, 2 }
 0x143   : > { %7484 = vmatprep.mubr.msk.f32.mxu0 %vm426_vm1, %v9556_v42  ;;  %4942 = vperm.xlu0 %8298, %v4816_v61   ;;  %v3431_v61 = vrot.slane %v11084_v43, 2 }
 0x144   : > { %v9700_v44 = vsel %vm3333_vm3, %v3417_v3, %v3419_v63 }
 0x145   : > { %7153 = vmatmul.mubr.msk.f32.gmra.mrb[34].mxu1 %vm426_vm1, %v11073_v0  ;;  %v9678_v0 = vsel %vm3333_vm3, %v3411_v54, %v3413_v12  ;;  %11095 = vst [vmem:[#allocation19_spill] sm:$0xff] %v9700_v44  ;;  %v4800_v54 = vld [vmem:[%s9667_s22 + $0x8] sm:$0xff]  ;;  %v11096_v12 = vld [vmem:[#allocation74_spill] sm:$0xff] }
 0x146   : > { %7485 = vmatmul.mubr.msk.f32.gmra.mrb[26].mxu0 %vm426_vm1, %v9568_v55  ;;  %7155 = vmatprep.mubr.msk.f32.mxu1 %vm426_vm1, %v11075_v50  ;;  %v3421_v50 = vrot.slane %v11079_v36, 2 }
 0x147   : > { %7487 = vmatprep.mubr.msk.f32.mxu0 %vm426_vm1, %v9577_v4  ;;  %4862 = vperm.xlu1 %8299, %v4800_v54   ;;  %v4802_v54 = vld [vmem:[%s9667_s22 + $0x18] sm:$0xff] }
 0x148   : > { %4947 = vperm.xlu0 %8298, %v4817_v34   ;;  %v3435_v34 = vrot.slane %v11087_v45, 2 }
 0x149   : > { %7156 = vmatmul.mubr.msk.f32.gmra.mrb[36].mxu1 %vm426_vm1, %v11077_v41  ;;  %v9696_v41 = vsel %vm3333_vm3, %v3415_v35, %v3417_v3  ;;  %v9714_v35 = vsel %vm3333_vm3, %v3419_v63, %v3421_v50  ;;  %v9718_v3 = vsel %vm3333_vm3, %v3421_v50, %v3423_v47 }
 0x14a   : > { %7488 = vmatmul.mubr.msk.f32.gmra.mrb[28].mxu0 %vm426_vm1, %v9591_v9  ;;  %7158 = vmatprep.mubr.msk.f32.mxu1 %vm426_vm1, %v11079_v36  ;;  %v11097_v36 = vld [vmem:[#allocation76_spill] sm:$0xff] }
 0x14b   : > { %7490 = vmatprep.mubr.msk.f32.mxu0 %vm426_vm1, %v9595_v25  ;;  %4952 = vperm.xlu1 %8299, %v4818_v39   ;;  %v4820_v39 = vld [vmem:[%s9667_s22 + $0xa8] sm:$0xff] }
 0x14d   : > { %7159 = vmatmul.mubr.msk.f32.gmra.mrb[38].mxu1 %vm426_vm1, %v11081_v51  ;;  %v3425_v51 = vrot.slane %v11082_v33, 2 }
 0x14e   : > { %7491 = vmatmul.mubr.msk.f32.gmra.mrb[30].mxu0 %vm426_vm1, %v9607_v57  ;;  %7161 = vmatprep.mubr.msk.f32.mxu1 %vm426_vm1, %v11082_v33  ;;  %v11099_v33 = vld [vmem:[#allocation80_spill] sm:$0xff] }
 0x14f   : > { %7493 = vmatprep.mubr.msk.f32.mxu0 %vm426_vm1, %v9611_v53  ;;  %v9732_v63 = vsel %vm3333_vm3, %v3423_v47, %v3425_v51  ;;  %v9736_v50 = vsel %vm3333_vm3, %v3425_v51, %v3427_v31  ;;  %4872 = vperm.xlu1 %8299, %v4802_v54   ;;  %v4803_v54 = vld [vmem:[%s9667_s22 + $0x20] sm:$0xff] }
 0x151   : > { %7162 = vmatmul.mubr.msk.f32.gmra.mrb[40].mxu1 %vm426_vm1, %v8915_v15  ;;  %v3429_v15 = vrot.slane %v11083_v46, 2 }
 0x152   : > { %7494 = vmatmul.mubr.msk.f32.gmra.mrb[32].mxu0 %vm426_vm1, %v9624_v49  ;;  %7164 = vmatprep.mubr.msk.f32.mxu1 %vm426_vm1, %v11083_v46  ;;  %v11100_v46 = vld [vmem:[#allocation15_spill] sm:$0xff] }
 0x153   : > { %7496 = vmatprep.mubr.msk.f32.mxu0 %vm426_vm1, %v9628_v60  ;;  %v9750_v47 = vsel %vm3333_vm3, %v3427_v31, %v3429_v15  ;;  %v9754_v51 = vsel %vm3333_vm3, %v3429_v15, %v3431_v61  ;;  %4962 = vperm.xlu1 %8299, %v4820_v39   ;;  %v4821_v39 = vld [vmem:[%s9667_s22 + $0xb0] sm:$0xff] }
 0x155   : > { %7165 = vmatmul.mubr.msk.f32.gmra.mrb[42].mxu1 %vm426_vm1, %v11084_v43  ;;  %v3433_v43 = vrot.slane %v11086_v22, 2 }
 0x156   : > { %7497 = vmatmul.mubr.msk.f32.gmra.mrb[34].mxu0 %vm426_vm1, %v9641_v8  ;;  %7167 = vmatprep.mubr.msk.f32.mxu1 %vm426_vm1, %v11086_v22  ;;  %v11102_v22 = vld [vmem:[#allocation3_spill] sm:$0xff] }
 0x157   : > { %7499 = vmatprep.mubr.msk.f32.mxu0 %vm426_vm1, %v9645_v38  ;;  %v9768_v31 = vsel %vm3333_vm3, %v3431_v61, %v3433_v43  ;;  %v9772_v15 = vsel %vm3333_vm3, %v3433_v43, %v3435_v34 }
 0x159   : > { %7168 = vmatmul.mubr.msk.f32.gmra.mrb[44].mxu1 %vm426_vm1, %v11087_v45  ;;  %v3437_v45 = vrot.slane %v11088_v48, 2 }
 0x15a   : > { %7500 = vmatmul.mubr.msk.f32.gmra.mrb[36].mxu0 %vm426_vm1, %v9657_v29  ;;  %7170 = vmatprep.mubr.msk.f32.mxu1 %vm426_vm1, %v11088_v48  ;;  %v11104_v48 = vld [vmem:[#allocation5_spill] sm:$0xff] }
 0x15b   : > { %7502 = vmatprep.mubr.msk.f32.mxu0 %vm426_vm1, %v9661_v23  ;;  %v9786_v61 = vsel %vm3333_vm3, %v3435_v34, %v3437_v45  ;;  %v3445_v34 = vrot.slane %v11097_v36, 2 }
 0x15d   : > { %7171 = vmatmul.mubr.msk.f32.gmra.mrb[46].mxu1 %vm426_vm1, %v11090_v58 }
 0x15e   : > { %7503 = vmatmul.mubr.msk.f32.gmra.mrb[38].mxu0 %vm426_vm1, %v9678_v0  ;;  %7173 = vmatprep.mubr.msk.f32.mxu1 %vm426_vm1, %v11091_v19 }
 0x15f   : > { %7505 = vmatprep.mubr.msk.f32.mxu0 %vm426_vm1, %v9682_v20 }
 0x161   : > { %7174 = vmatmul.mubr.msk.f32.gmra.mrb[48].mxu1 %vm426_vm1, %v11096_v12 }
 0x162   : > { %7506 = vmatmul.mubr.msk.f32.gmra.mrb[40].mxu0 %vm426_vm1, %v9696_v41  ;;  %7176 = vmatprep.mubr.msk.f32.mxu1 %vm426_vm1, %v11097_v36 }
 0x163   : > { %7508 = vmatprep.mubr.msk.f32.mxu0 %vm426_vm1, %v9700_v44  ;;  %v11098_v44 = vld [vmem:[#allocation78_spill] sm:$0xff] }
 0x165   : > { %7177 = vmatmul.mubr.msk.f32.gmra.mrb[50].mxu1 %vm426_vm1, %v11098_v44  ;;  %v4801_v44 = vld [vmem:[%s9667_s22 + $0x10] sm:$0xff] }
 0x166   : > { %7509 = vmatmul.mubr.msk.f32.gmra.mrb[42].mxu0 %vm426_vm1, %v9714_v35  ;;  %7179 = vmatprep.mubr.msk.f32.mxu1 %vm426_vm1, %v11099_v33  ;;  %v11101_v33 = vld [vmem:[#allocation17_spill] sm:$0xff] }
 0x167   : > { %7511 = vmatprep.mubr.msk.f32.mxu0 %vm426_vm1, %v9718_v3  ;;  %4867 = vperm.xlu0 %8298, %v4801_v44   ;;  %v3439_v44 = vrot.slane %v11090_v58, 2  ;;  %v3441_v58 = vrot.slane %v11091_v19, 2  ;;  %v11106_v19 = vld [vmem:[#allocation7_spill] sm:$0xff] }
 0x169   : > { %7180 = vmatmul.mubr.msk.f32.gmra.mrb[52].mxu1 %vm426_vm1, %v9077_v16  ;;  %v4819_v16 = vld [vmem:[%s9667_s22 + $0xa0] sm:$0xff]  ;;  %v9790_v43 = vsel %vm3333_vm3, %v3437_v45, %v3439_v44 }
 0x16a   : > { %7512 = vmatmul.mubr.msk.f32.gmra.mrb[44].mxu0 %vm426_vm1, %v9732_v63  ;;  %7182 = vmatprep.mubr.msk.f32.mxu1 %vm426_vm1, %v11100_v46  ;;  %v4804_v46 = vld [vmem:[%s9667_s22 + $0x28] sm:$0xff] }
 0x16b   : > { %7514 = vmatprep.mubr.msk.f32.mxu0 %vm426_vm1, %v9736_v50  ;;  %4957 = vperm.xlu0 %8298, %v4819_v16   ;;  %v3443_v16 = vrot.slane %v11096_v12, 2  ;;  %v9805_v12 = vsel %vm3333_vm3, %v3439_v44, %v3441_v58 }
 0x16c   : > { %4882 = vperm.xlu1 %8299, %v4804_v46   ;;  %v4806_v46 = vld [vmem:[%s9667_s22 + $0x38] sm:$0xff] }
 0x16d   : > { %7183 = vmatmul.mubr.msk.f32.gmra.mrb[54].mxu1 %vm426_vm1, %v11101_v33  ;;  %v11103_v33 = vld [vmem:[#allocation4_spill] sm:$0xff]  ;;  %v9808_v45 = vsel %vm3333_vm3, %v3441_v58, %v3443_v16  ;;  %v9823_v44 = vsel %vm3333_vm3, %v3443_v16, %v3445_v34  ;;  %v4823_v58 = vld [vmem:[%s9667_s22 + $0xc0] sm:$0xff] }
 0x16e   : > { %7515 = vmatmul.mubr.msk.f32.gmra.mrb[46].mxu0 %vm426_vm1, %v9750_v47  ;;  %7196 = vmatprep.mubr.msk.f32.mxu1 %vm426_vm1, %v11102_v22  ;;  %v4822_v22 = vld [vmem:[%s9667_s22 + $0xb8] sm:$0xff]  ;;  %v4807_v16 = vld [vmem:[%s9667_s22 + $0x40] sm:$0xff] }
 0x16f   : > { %7517 = vmatprep.mubr.msk.f32.mxu0 %vm426_vm1, %v9754_v51  ;;  %4877 = vperm.xlu0 %8298, %v4803_v54   ;;  %v4805_v54 = vld [vmem:[%s9667_s22 + $0x30] sm:$0xff] }
 0x170   : > { %4972 = vperm.xlu1 %8299, %v4822_v22   ;;  %v11109_v22 = vld [vmem:[#allocation10_spill] sm:$0xff] }
 0x171   : > { %7197 = vmatmul.mubr.msk.f32.vlgmr.msra.gmra.mrb[6].mxu1 %vm426_vm1, %v11103_v33  ;;  %v11105_v33 = vld [vmem:[#allocation6_spill] sm:$0xff] }
 0x172   : > { %7518 = vmatmul.mubr.msk.f32.gmra.mrb[48].mxu0 %vm426_vm1, %v9768_v31  ;;  %7199 = vmatprep.mubr.msk.f32.mxu1 %vm426_vm1, %v11104_v48  ;;  %v11107_v48 = vld [vmem:[#allocation8_spill] sm:$0xff] }
 0x173   : > { %7520 = vmatprep.mubr.msk.f32.mxu0 %vm426_vm1, %v9772_v15  ;;  %4967 = vperm.xlu0 %8298, %v4821_v39   ;;  %v4824_v39 = vld [vmem:[%s9667_s22 + $0xc8] sm:$0xff] }
 0x174   : > { %4892 = vperm.xlu1 %8299, %v4806_v46   ;;  %v4808_v46 = vld [vmem:[%s9667_s22 + $0x48] sm:$0xff] }
 0x175   : > { %7200 = vmatmul.mubr.msk.f32.gmra.mrb[8].mxu1 %vm426_vm1, %v11105_v33  ;;  %v11108_v33 = vld [vmem:[#allocation9_spill] sm:$0xff] }
 0x176   : > { %7521 = vmatmul.mubr.msk.f32.gmra.mrb[50].mxu0 %vm426_vm1, %v9786_v61  ;;  %7202 = vmatprep.mubr.msk.f32.mxu1 %vm426_vm1, %v11106_v19  ;;  %v11110_v19 = vld [vmem:[#allocation11_spill] sm:$0xff] }
 0x177   : > { %7523 = vmatprep.mubr.msk.f32.mxu0 %vm426_vm1, %v9790_v43  ;;  %4887 = vperm.xlu0 %8298, %v4805_v54   ;;  %v11111_v54 = vld [vmem:[#allocation12_spill] sm:$0xff] }
 0x178   : > { %4982 = vperm.xlu1 %8299, %v4824_v39   ;;  %v4810_v39 = vld [vmem:[%s9667_s22 + $0x58] sm:$0xff] }
 0x179   : > { %7203 = vmatmul.mubr.msk.f32.gmra.mrb[10].mxu1 %vm426_vm1, %v11107_v48  ;;  %v11112_v48 = vld [vmem:[#allocation13_spill] sm:$0xff] }
 0x17a   : > { %7524 = vmatmul.mubr.msk.f32.gmra.mrb[52].mxu0 %vm426_vm1, %v9805_v12  ;;  %7205 = vmatprep.mubr.msk.f32.mxu1 %vm426_vm1, %v11108_v33  ;;  %v4826_v33 = vld [vmem:[%s9667_s22 + $0xd8] sm:$0xff] }
 0x17b   : > { %7526 = vmatprep.mubr.msk.f32.mxu0 %vm426_vm1, %v9808_v45  ;;  %4977 = vperm.xlu0 %8298, %v4823_v58   ;;  %v11115_v58 = vld [vmem:[#allocation18_spill] sm:$0xff] }
 0x17c   : > { %4902 = vperm.xlu1 %8299, %v4808_v46   ;;  %v11118_v46 = vld [vmem:[#allocation24_spill] sm:$0xff] }
 0x17d   : > { %7206 = vmatmul.mubr.msk.f32.gmra.mrb[12].mxu1 %vm426_vm1, %v11109_v22  ;;  %v11116_v22 = vld [vmem:[#allocation20_spill] sm:$0xff] }
 0x17e   : > { %7527 = vmatmul.mubr.msk.f32.gmra.mrb[54].mxu0 %vm426_vm1, %v9823_v44  ;;  %7208 = vmatprep.mubr.msk.f32.mxu1 %vm426_vm1, %v11110_v19  ;;  %v4827_v19 = vld [vmem:[%s9667_s22 + $0xe0] sm:$0xff] }
 0x17f   : > { %7531 = vmatprep.mubr.msk.f32.mxu0 %vm426_vm1, %v9374_v10  ;;  %4897 = vperm.xlu0 %8298, %v4807_v16   ;;  %v4825_v10 = vld [vmem:[%s9667_s22 + $0xd0] sm:$0xff]  ;;  %v11117_v16 = vld [vmem:[#allocation22_spill] sm:$0xff] }
 0x180   : > { %4992 = vperm.xlu1 %8299, %v4826_v33   ;;  %v11120_v33 = vld [vmem:[#allocation28_spill] sm:$0xff] }
 0x181   : > { %7209 = vmatmul.mubr.msk.f32.gmra.mrb[14].mxu1 %vm426_vm1, %v11111_v54  ;;  %v4828_v54 = vld [vmem:[%s9667_s22 + $0xe8] sm:$0xff] }
 0x182   : > { %7532 = vmatmul.mubr.msk.f32.vlgmr.msra.gmra.mrb[0].mxu0 %vm426_vm1, %v9378_v52  ;;  %7211 = vmatprep.mubr.msk.f32.mxu1 %vm426_vm1, %v11112_v48  ;;  %v11113_v52 = vld [vmem:[#allocation14_spill] sm:$0xff]  ;;  %v4811_v48 = vld [vmem:[%s9667_s22 + $0x60] sm:$0xff] }
 0x183   : > { %7534 = vmatprep.mubr.msk.f32.mxu0 %vm426_vm1, %v9392_v14  ;;  %7616 = vmatpush3.msk.msra.mxu0 %vm741_vm0, %v9574_v13  ;;  %v11114_v14 = vld [vmem:[#allocation16_spill] sm:$0xff]  ;;  %v4809_v13 = vld [vmem:[%s9667_s22 + $0x50] sm:$0xff] }
 0x184   : > { %4987 = vperm.xlu0 %8298, %v4825_v10   ;;  %4912 = vperm.xlu1 %8299, %v4810_v39   ;;  %v11119_v10 = vld [vmem:[#allocation26_spill] sm:$0xff]  ;;  %v11122_v39 = vld [vmem:[#allocation32_spill] sm:$0xff] }
 0x185   : > { %7212 = vmatmul.mubr.msk.f32.gmra.mrb[16].mxu1 %vm426_vm1, %v11113_v52  ;;  %v4812_v52 = vld [vmem:[%s9667_s22 + $0x68] sm:$0xff] }
 0x186   : > { %7535 = vmatmul.mubr.msk.f32.gmra.mrb[2].mxu0 %vm426_vm1, %v9396_v62  ;;  %7214 = vmatprep.mubr.msk.f32.mxu1 %vm426_vm1, %v11114_v14  ;;  %v4829_v14 = vld [vmem:[%s9667_s22 + $0xf0] sm:$0xff] }
 0x187   : > { %7537 = vmatprep.mubr.msk.f32.mxu0 %vm426_vm1, %v9408_v18 }
 0x188   : > { %4907 = vperm.xlu0 %8298, %v4809_v13   ;;  %5002 = vperm.xlu1 %8299, %v4828_v54   ;;  %v11121_v13 = vld [vmem:[#allocation30_spill] sm:$0xff]  ;;  %v11124_v54 = vld [vmem:[#allocation36_spill] sm:$0xff] }
 0x189   : > { %7215 = vmatmul.mubr.msk.f32.gmra.mrb[18].mxu1 %vm426_vm1, %v11115_v58  ;;  %v4830_v58 = vld [vmem:[%s9667_s22 + $0xf8] sm:$0xff] }
 0x18a   : > { %7538 = vmatmul.mubr.msk.f32.gmra.mrb[4].mxu0 %vm426_vm1, %v9412_v6  ;;  %7217 = vmatprep.mubr.msk.f32.mxu1 %vm426_vm1, %v11116_v22  ;;  %v4813_v22 = vld [vmem:[%s9667_s22 + $0x70] sm:$0xff] }
 0x18b   : > { %7540 = vmatprep.mubr.msk.f32.mxu0 %vm426_vm1, %v9424_v7 }
 0x18c   : > { %4997 = vperm.xlu0 %8298, %v4827_v19   ;;  %4922 = vperm.xlu1 %8299, %v4812_v52   ;;  %v11123_v19 = vld [vmem:[#allocation34_spill] sm:$0xff]  ;;  %v11126_v52 = vld [vmem:[#allocation40_spill] sm:$0xff] }
 0x18d   : > { %7218 = vmatmul.mubr.msk.f32.gmra.mrb[20].mxu1 %vm426_vm1, %v11117_v16  ;;  %v4814_v16 = vld [vmem:[%s9667_s22 + $0x78] sm:$0xff] }
 0x18e   : > { %7541 = vmatmul.mubr.msk.f32.gmra.mrb[6].mxu0 %vm426_vm1, %v9428_v5  ;;  %7220 = vmatprep.mubr.msk.f32.mxu1 %vm426_vm1, %v11118_v46  ;;  %v4831_v46 = vld [vmem:[%s9667_s22 + $0x100] sm:$0xff] }
 0x18f   : > { %7543 = vmatprep.mubr.msk.f32.mxu0 %vm426_vm1, %v9440_v11 }
 0x190   : > { %4917 = vperm.xlu0 %8298, %v4811_v48   ;;  %5012 = vperm.xlu1 %8299, %v4830_v58   ;;  %v11125_v48 = vld [vmem:[#allocation38_spill] sm:$0xff]  ;;  %v11128_v58 = vld [vmem:[#allocation44_spill] sm:$0xff] }
 0x191   : > { %7221 = vmatmul.mubr.msk.f32.gmra.mrb[22].mxu1 %vm426_vm1, %v11119_v10  ;;  %v4832_v10 = vld [vmem:[%s9667_s22 + $0x108] sm:$0xff] }
 0x192   : > { %7544 = vmatmul.mubr.msk.f32.gmra.mrb[8].mxu0 %vm426_vm1, %v9444_v59  ;;  %7223 = vmatprep.mubr.msk.f32.mxu1 %vm426_vm1, %v11120_v33  ;;  %v4833_v33 = vld [vmem:[%s9667_s22 + $0x110] sm:$0xff] }
 0x193   : > { %7546 = vmatprep.mubr.msk.f32.mxu0 %vm426_vm1, %v9456_v40 }
 0x194   : > { %5007 = vperm.xlu0 %8298, %v4829_v14   ;;  %4932 = vperm.xlu1 %8299, %v4814_v16   ;;  %v11127_v14 = vld [vmem:[#allocation42_spill] sm:$0xff]  ;;  %v11130_v16 = vld [vmem:[#allocation48_spill] sm:$0xff] }
 0x195   : > { %7224 = vmatmul.mubr.msk.f32.gmra.mrb[24].mxu1 %vm426_vm1, %v11121_v13  ;;  %v4834_v13 = vld [vmem:[%s9667_s22 + $0x118] sm:$0xff] }
 0x196   : > { %7547 = vmatmul.mubr.msk.f32.gmra.mrb[10].mxu0 %vm426_vm1, %v9460_v28  ;;  %7226 = vmatprep.mubr.msk.f32.mxu1 %vm426_vm1, %v11122_v39  ;;  %v4835_v39 = vld [vmem:[%s9667_s22 + $0x120] sm:$0xff] }
 0x197   : > { %7549 = vmatprep.mubr.msk.f32.mxu0 %vm426_vm1, %v9472_v56 }
 0x198   : > { %4927 = vperm.xlu0 %8298, %v4813_v22   ;;  %5022 = vperm.xlu1 %8299, %v4832_v10   ;;  %v11129_v22 = vld [vmem:[#allocation46_spill] sm:$0xff]  ;;  %v11132_v10 = vld [vmem:[#allocation52_spill] sm:$0xff] }
 0x199   : > { %7227 = vmatmul.mubr.msk.f32.gmra.mrb[26].mxu1 %vm426_vm1, %v11123_v19  ;;  %v4836_v19 = vld [vmem:[%s9667_s22 + $0x128] sm:$0xff] }
 0x19a   : > { %7550 = vmatmul.mubr.msk.f32.gmra.mrb[12].mxu0 %vm426_vm1, %v9476_v1  ;;  %7229 = vmatprep.mubr.msk.f32.mxu1 %vm426_vm1, %v11124_v54  ;;  %v4837_v54 = vld [vmem:[%s9667_s22 + $0x130] sm:$0xff] }
 0x19b   : > { %7552 = vmatprep.mubr.msk.f32.mxu0 %vm426_vm1, %v9488_v17 }
 0x19c   : > { %5017 = vperm.xlu0 %8298, %v4831_v46   ;;  %5032 = vperm.xlu1 %8299, %v4834_v13   ;;  %v11131_v46 = vld [vmem:[#allocation50_spill] sm:$0xff]  ;;  %v11134_v13 = vld [vmem:[#allocation56_spill] sm:$0xff] }
 0x19d   : > { %7230 = vmatmul.mubr.msk.f32.gmra.mrb[28].mxu1 %vm426_vm1, %v11125_v48  ;;  %v4838_v48 = vld [vmem:[%s9667_s22 + $0x138] sm:$0xff] }
 0x19e   : > { %7553 = vmatmul.mubr.msk.f32.gmra.mrb[14].mxu0 %vm426_vm1, %v9492_v32  ;;  %7232 = vmatprep.mubr.msk.f32.mxu1 %vm426_vm1, %v11126_v52  ;;  %v4839_v52 = vld [vmem:[%s9667_s22 + $0x140] sm:$0xff] }
 0x19f   : > { %7555 = vmatprep.mubr.msk.f32.mxu0 %vm426_vm1, %v9504_v21 }
 0x1a0   : > { %5027 = vperm.xlu0 %8298, %v4833_v33   ;;  %5042 = vperm.xlu1 %8299, %v4836_v19   ;;  %v11133_v33 = vld [vmem:[#allocation54_spill] sm:$0xff]  ;;  %v11136_v19 = vld [vmem:[#allocation59_spill] sm:$0xff] }
 0x1a1   : > { %7233 = vmatmul.mubr.msk.f32.gmra.mrb[30].mxu1 %vm426_vm1, %v11127_v14  ;;  %v4840_v14 = vld [vmem:[%s9667_s22 + $0x148] sm:$0xff] }
 0x1a2   : > { %7556 = vmatmul.mubr.msk.f32.gmra.mrb[16].mxu0 %vm426_vm1, %v9508_v24  ;;  %7235 = vmatprep.mubr.msk.f32.mxu1 %vm426_vm1, %v11128_v58  ;;  %v4841_v58 = vld [vmem:[%s9667_s22 + $0x150] sm:$0xff] }
 0x1a3   : > { %7558 = vmatprep.mubr.msk.f32.mxu0 %vm426_vm1, %v9520_v26 }
 0x1a4   : > { %5037 = vperm.xlu0 %8298, %v4835_v39   ;;  %5052 = vperm.xlu1 %8299, %v4838_v48   ;;  %v11135_v39 = vld [vmem:[#allocation58_spill] sm:$0xff]  ;;  %v11138_v48 = vld [vmem:[#allocation63_spill] sm:$0xff] }
 0x1a5   : > { %7236 = vmatmul.mubr.msk.f32.gmra.mrb[32].mxu1 %vm426_vm1, %v11129_v22  ;;  %v4842_v22 = vld [vmem:[%s9667_s22 + $0x158] sm:$0xff] }
 0x1a6   : > { %7559 = vmatmul.mubr.msk.f32.gmra.mrb[18].mxu0 %vm426_vm1, %v9524_v2  ;;  %7238 = vmatprep.mubr.msk.f32.mxu1 %vm426_vm1, %v11130_v16  ;;  %v4843_v16 = vld [vmem:[%s9667_s22 + $0x160] sm:$0xff] }
 0x1a7   : > { %7561 = vmatprep.mubr.msk.f32.mxu0 %vm426_vm1, %v9536_v27 }
 0x1a8   : > { %5047 = vperm.xlu0 %8298, %v4837_v54   ;;  %5062 = vperm.xlu1 %8299, %v4840_v14   ;;  %v11137_v54 = vld [vmem:[#allocation61_spill] sm:$0xff]  ;;  %v11140_v14 = vld [vmem:[#allocation67_spill] sm:$0xff] }
 0x1a9   : > { %7239 = vmatmul.mubr.msk.f32.gmra.mrb[34].mxu1 %vm426_vm1, %v11131_v46  ;;  %v4844_v46 = vld [vmem:[%s9667_s22 + $0x168] sm:$0xff] }
 0x1aa   : > { %7562 = vmatmul.mubr.msk.f32.gmra.mrb[20].mxu0 %vm426_vm1, %v9540_v30  ;;  %7241 = vmatprep.mubr.msk.f32.mxu1 %vm426_vm1, %v11132_v10  ;;  %v4845_v10 = vld [vmem:[%s9667_s22 + $0x170] sm:$0xff] }
 0x1ab   : > { %7564 = vmatprep.mubr.msk.f32.mxu0 %vm426_vm1, %v9552_v37 }
 0x1ac   : > { %5057 = vperm.xlu0 %8298, %v4839_v52   ;;  %5072 = vperm.xlu1 %8299, %v4842_v22   ;;  %v11139_v52 = vld [vmem:[#allocation65_spill] sm:$0xff]  ;;  %v11142_v22 = vld [vmem:[#allocation71_spill] sm:$0xff] }
 0x1ad   : > { %7242 = vmatmul.mubr.msk.f32.gmra.mrb[36].mxu1 %vm426_vm1, %v11133_v33  ;;  %v4846_v33 = vld [vmem:[%s9667_s22 + $0x178] sm:$0xff] }
 0x1ae   : > { %7565 = vmatmul.mubr.msk.f32.gmra.mrb[22].mxu0 %vm426_vm1, %v9556_v42  ;;  %7244 = vmatprep.mubr.msk.f32.mxu1 %vm426_vm1, %v11134_v13  ;;  %v4847_v13 = vld [vmem:[%s9667_s22 + $0x180] sm:$0xff] }
 0x1af   : > { %7567 = vmatprep.mubr.msk.f32.mxu0 %vm426_vm1, %v9568_v55 }
 0x1b0   : > { %5067 = vperm.xlu0 %8298, %v4841_v58   ;;  %5082 = vperm.xlu1 %8299, %v4844_v46   ;;  %v11141_v58 = vld [vmem:[#allocation69_spill] sm:$0xff]  ;;  %v11144_v46 = vld [vmem:[#allocation75_spill] sm:$0xff] }
 0x1b1   : > { %7245 = vmatmul.mubr.msk.f32.gmra.mrb[38].mxu1 %vm426_vm1, %v11135_v39  ;;  %v4848_v39 = vld [vmem:[%s9667_s22 + $0x188] sm:$0xff] }
 0x1b2   : > { %7568 = vmatmul.mubr.msk.f32.gmra.mrb[24].mxu0 %vm426_vm1, %v9577_v4  ;;  %7247 = vmatprep.mubr.msk.f32.mxu1 %vm426_vm1, %v11136_v19  ;;  %v4849_v19 = vld [vmem:[%s9667_s22 + $0x190] sm:$0xff] }
 0x1b3   : > { %7570 = vmatprep.mubr.msk.f32.mxu0 %vm426_vm1, %v9591_v9 }
 0x1b4   : > { %5077 = vperm.xlu0 %8298, %v4843_v16   ;;  %5092 = vperm.xlu1 %8299, %v4846_v33   ;;  %v11143_v16 = vld [vmem:[#allocation73_spill] sm:$0xff]  ;;  %v11146_v33 = vld [vmem:[#allocation79_spill] sm:$0xff] }
 0x1b5   : > { %7248 = vmatmul.mubr.msk.f32.gmra.mrb[40].mxu1 %vm426_vm1, %v11137_v54  ;;  %v4850_v54 = vld [vmem:[%s9667_s22 + $0x198] sm:$0xff] }
 0x1b6   : > { %7571 = vmatmul.mubr.msk.f32.gmra.mrb[26].mxu0 %vm426_vm1, %v9595_v25  ;;  %7250 = vmatprep.mubr.msk.f32.mxu1 %vm426_vm1, %v11138_v48  ;;  %v4851_v48 = vld [vmem:[%s9667_s22 + $0x1a0] sm:$0xff] }
 0x1b7   : > { %7573 = vmatprep.mubr.msk.f32.mxu0 %vm426_vm1, %v9607_v57 }
 0x1b8   : > { %5087 = vperm.xlu0 %8298, %v4845_v10   ;;  %5102 = vperm.xlu1 %8299, %v4848_v39   ;;  %v11145_v10 = vld [vmem:[#allocation77_spill] sm:$0xff]  ;;  %v11148_v39 = vld [vmem:[#allocation82_spill] sm:$0xff] }
 0x1b9   : > { %7251 = vmatmul.mubr.msk.f32.gmra.mrb[42].mxu1 %vm426_vm1, %v11139_v52  ;;  %v4852_v52 = vld [vmem:[%s9667_s22 + $0x1a8] sm:$0xff] }
 0x1ba   : > { %7574 = vmatmul.mubr.msk.f32.gmra.mrb[28].mxu0 %vm426_vm1, %v9611_v53  ;;  %7253 = vmatprep.mubr.msk.f32.mxu1 %vm426_vm1, %v11140_v14  ;;  %v4853_v14 = vld [vmem:[%s9667_s22 + $0x1b0] sm:$0xff] }
 0x1bb   : > { %7576 = vmatprep.mubr.msk.f32.mxu0 %vm426_vm1, %v9624_v49 }
 0x1bc   : > { %5097 = vperm.xlu0 %8298, %v4847_v13   ;;  %5112 = vperm.xlu1 %8299, %v4850_v54   ;;  %v11147_v13 = vld [vmem:[#allocation81_spill] sm:$0xff] }
 0x1bd   : > { %7254 = vmatmul.mubr.msk.f32.gmra.mrb[44].mxu1 %vm426_vm1, %v11141_v58  ;;  %v4854_v58 = vld [vmem:[%s9667_s22 + $0x1b8] sm:$0xff]  ;;  %v11152_v54 = vld [vmem:[#allocation85_spill] sm:$0xff] }
 0x1be   : > { %7577 = vmatmul.mubr.msk.f32.gmra.mrb[30].mxu0 %vm426_vm1, %v9628_v60  ;;  %7256 = vmatprep.mubr.msk.f32.mxu1 %vm426_vm1, %v11142_v22  ;;  %v11149_v22 = vld [vmem:[#allocation19_spill] sm:$0xff] }
 0x1bf   : > { %7579 = vmatprep.mubr.msk.f32.mxu0 %vm426_vm1, %v9641_v8 }
 0x1c0   : > { %5107 = vperm.xlu0 %8298, %v4849_v19   ;;  %5122 = vperm.xlu1 %8299, %v4852_v52   ;;  %v11150_v19 = vld [vmem:[#allocation83_spill] sm:$0xff] }
 0x1c1   : > { %7257 = vmatmul.mubr.msk.f32.gmra.mrb[46].mxu1 %vm426_vm1, %v11143_v16  ;;  %v11151_v16 = vld [vmem:[#allocation84_spill] sm:$0xff] }
 0x1c2   : > { %7580 = vmatmul.mubr.msk.f32.gmra.mrb[32].mxu0 %vm426_vm1, %v9645_v38  ;;  %7259 = vmatprep.mubr.msk.f32.mxu1 %vm426_vm1, %v11144_v46 }
 0x1c3   : > { %7582 = vmatprep.mubr.msk.f32.mxu0 %vm426_vm1, %v9657_v29 }
 0x1c4   : > { %5117 = vperm.xlu0 %8298, %v4851_v48   ;;  %5132 = vperm.xlu1 %8299, %v4854_v58  }
 0x1c5   : > { %7260 = vmatmul.mubr.msk.f32.gmra.mrb[48].mxu1 %vm426_vm1, %v11145_v10 }
 0x1c6   : > { %7583 = vmatmul.mubr.msk.f32.gmra.mrb[34].mxu0 %vm426_vm1, %v9661_v23  ;;  %7262 = vmatprep.mubr.msk.f32.mxu1 %vm426_vm1, %v11146_v33 }
 0x1c7   : > { %7585 = vmatprep.mubr.msk.f32.mxu0 %vm426_vm1, %v9678_v0 }
 0x1c8   : > { %5127 = vperm.xlu0 %8298, %v4853_v14  }
 0x1c9   : > { %7263 = vmatmul.mubr.msk.f32.gmra.mrb[50].mxu1 %vm426_vm1, %v11147_v13  ;;  %v8305_v13 = vld [vmem:[#allocation2 + $0x1c8] sm:$0xff] }
 0x1ca   : > { %7586 = vmatmul.mubr.msk.f32.gmra.mrb[36].mxu0 %vm426_vm1, %v9682_v20  ;;  %7265 = vmatprep.mubr.msk.f32.mxu1 %vm426_vm1, %v11148_v39  ;;  %v3965_v58 = vrot.slane %v8305_v13, 2  ;;  %v8306_v39 = vld [vmem:[#allocation2 + $0x1d0] sm:$0xff] }
 0x1cb   : > { %7588 = vmatprep.mubr.msk.f32.mxu0 %vm426_vm1, %v9696_v41 }
 0x1cd   : > { %7266 = vmatmul.mubr.msk.f32.gmra.mrb[52].mxu1 %vm426_vm1, %v11150_v19  ;;  %v3967_v19 = vrot.slane %v8306_v39, 2 }
 0x1ce   : > { %7589 = vmatmul.mubr.msk.f32.gmra.mrb[38].mxu0 %vm426_vm1, %v11149_v22  ;;  %7268 = vmatprep.mubr.msk.f32.mxu1 %vm426_vm1, %v11151_v16  ;;  %v10076_v16 = vsel %vm3333_vm3, %v3445_v34, %v3965_v58 }
 0x1cf   : > { %7591 = vmatprep.mubr.msk.f32.mxu0 %vm426_vm1, %v9714_v35 }
 0x1d1   : > { %7269 = vmatmul.mubr.msk.f32.gmra.mrb[54].mxu1 %vm426_vm1, %v11152_v54  ;;  %v10078_v54 = vld [vmem:[#allocation2 + $0x1d8] sm:$0xff] }
 0x1d2   : > { %7592 = vmatmul.mubr.msk.f32.gmra.mrb[40].mxu0 %vm426_vm1, %v9718_v3  ;;  %v3969_v13 = vrot.slane %v10078_v54, 2 }
 0x1d3   : > { %7594 = vmatprep.mubr.msk.f32.mxu0 %vm426_vm1, %v9732_v63 }
 0x1d4   : > { %v10041_v46 = vpop.f32.mrb[0].mxu1  ;;  %v10091_v36 = vsel %vm3333_vm3, %v3967_v19, %v3969_v13 }
 0x1d5   : > { %v10045_v48 = vpop.f32.mrb[1].mxu1 }
 0x1d6   : > { %7595 = vmatmul.mubr.msk.f32.gmra.mrb[42].mxu0 %vm426_vm1, %v9736_v50 }
 0x1d7   : > { %7597 = vmatprep.mubr.msk.f32.mxu0 %vm426_vm1, %v9750_v47 }
 0x1d8   : > { %v10049_v10 = vpop.f32.mrb[2].mxu1 }
 0x1d9   : > { %v10053_v52 = vpop.f32.mrb[3].mxu1 }
 0x1da   : > { %7598 = vmatmul.mubr.msk.f32.gmra.mrb[44].mxu0 %vm426_vm1, %v9754_v51 }
 0x1db   : > { %7600 = vmatprep.mubr.msk.f32.mxu0 %vm426_vm1, %v9768_v31 }
 0x1dc   : > { %v10057_v33 = vpop.f32.mrb[4].mxu1 }
 0x1dd   : > { %v10061_v14 = vpop.f32.mrb[5].mxu1 }
 0x1de   : > { %7601 = vmatmul.mubr.msk.f32.gmra.mrb[46].mxu0 %vm426_vm1, %v9772_v15  ;;  %11153 = vst [vmem:[#allocation21_spill] sm:$0xff] %v10061_v14  ;;  %v10082_v14 = vsel %vm3333_vm3, %v3965_v58, %v3967_v19 }
 0x1df   : > { %7603 = vmatprep.mubr.msk.f32.mxu0 %vm426_vm1, %v9786_v61 }
 0x1e2   : > { %7604 = vmatmul.mubr.msk.f32.gmra.mrb[48].mxu0 %vm426_vm1, %v9790_v43 }
 0x1e3   : > { %7606 = vmatprep.mubr.msk.f32.mxu0 %vm426_vm1, %v9805_v12 }
 0x1e6   : > { %7607 = vmatmul.mubr.msk.f32.gmra.mrb[50].mxu0 %vm426_vm1, %v9808_v45 }
 0x1e7   : > { %7609 = vmatprep.mubr.msk.f32.mxu0 %vm426_vm1, %v9823_v44 }
 0x1ea   : > { %7610 = vmatmul.mubr.msk.f32.gmra.mrb[52].mxu0 %vm426_vm1, %v10076_v16 }
 0x1eb   : > { %7612 = vmatprep.mubr.msk.f32.mxu0 %vm426_vm1, %v10082_v14 }
 0x1ee   : > { %7613 = vmatmul.mubr.msk.f32.gmra.mrb[54].mxu0 %vm426_vm1, %v10091_v36 }
 0x1ef   : > { %7617 = vmatprep.mubr.msk.f32.mxu0 %vm426_vm1, %v9396_v62 }
 0x1f2   : > { %7618 = vmatmul.mubr.msk.f32.vlgmr.msra.gmra.mrb[0].mxu0 %vm426_vm1, %v9408_v18 }
 0x1f3   : > { %7620 = vmatprep.mubr.msk.f32.mxu0 %vm426_vm1, %v9412_v6 }
 0x1f6   : > { %7621 = vmatmul.mubr.msk.f32.gmra.mrb[2].mxu0 %vm426_vm1, %v9424_v7 }
 0x1f7   : > { %7623 = vmatprep.mubr.msk.f32.mxu0 %vm426_vm1, %v9428_v5 }
 0x1fa   : > { %7624 = vmatmul.mubr.msk.f32.gmra.mrb[4].mxu0 %vm426_vm1, %v9440_v11 }
 0x1fb   : > { %7626 = vmatprep.mubr.msk.f32.mxu0 %vm426_vm1, %v9444_v59 }
 0x1fe   : > { %7627 = vmatmul.mubr.msk.f32.gmra.mrb[6].mxu0 %vm426_vm1, %v9456_v40 }
 0x1ff   : > { %7629 = vmatprep.mubr.msk.f32.mxu0 %vm426_vm1, %v9460_v28  ;;  %v8308_v28 = vld [vmem:[#allocation2 + $0x1e0] sm:$0xff] }
 0x202   : > { %7630 = vmatmul.mubr.msk.f32.gmra.mrb[8].mxu0 %vm426_vm1, %v9472_v56  ;;  %v4383_v56 = vrot.slane %v8308_v28, 2 }
 0x203   : > { %7632 = vmatprep.mubr.msk.f32.mxu0 %vm426_vm1, %v9476_v1  ;;  %v8309_v1 = vld [vmem:[#allocation2 + $0x1e8] sm:$0xff] }
 0x206   : > { %7633 = vmatmul.mubr.msk.f32.gmra.mrb[10].mxu0 %vm426_vm1, %v9488_v17  ;;  %v4385_v17 = vrot.slane %v8309_v1, 2 }
 0x207   : > { %7635 = vmatprep.mubr.msk.f32.mxu0 %vm426_vm1, %v9492_v32 }
 0x20a   : > { %7636 = vmatmul.mubr.msk.f32.gmra.mrb[12].mxu0 %vm426_vm1, %v9504_v21 }
 0x20b   : > { %7638 = vmatprep.mubr.msk.f32.mxu0 %vm426_vm1, %v9508_v24  ;;  %v4384_v24 = vsel %vm3333_vm3, %v3969_v13, %v4383_v56 }
 0x20e   : > { %7639 = vmatmul.mubr.msk.f32.gmra.mrb[14].mxu0 %vm426_vm1, %v9520_v26  ;;  %v8310_v26 = vld [vmem:[#allocation2 + $0x1f0] sm:$0xff] }
 0x20f   : > { %7641 = vmatprep.mubr.msk.f32.mxu0 %vm426_vm1, %v9524_v2  ;;  %v4387_v2 = vrot.slane %v8310_v26, 2 }
 0x212   : > { %7642 = vmatmul.mubr.msk.f32.gmra.mrb[16].mxu0 %vm426_vm1, %v9536_v27  ;;  %v4386_v27 = vsel %vm3333_vm3, %v4383_v56, %v4385_v17 }
 0x213   : > { %7644 = vmatprep.mubr.msk.f32.mxu0 %vm426_vm1, %v9540_v30 }
 0x216   : > { %7645 = vmatmul.mubr.msk.f32.gmra.mrb[18].mxu0 %vm426_vm1, %v9552_v37 }
 0x217   : > { %7647 = vmatprep.mubr.msk.f32.mxu0 %vm426_vm1, %v9556_v42  ;;  %v4388_v42 = vsel %vm3333_vm3, %v4385_v17, %v4387_v2 }
 0x21a   : > { %7648 = vmatmul.mubr.msk.f32.gmra.mrb[20].mxu0 %vm426_vm1, %v9568_v55 }
 0x21b   : > { %7650 = vmatprep.mubr.msk.f32.mxu0 %vm426_vm1, %v9577_v4 }
 0x21e   : > { %7651 = vmatmul.mubr.msk.f32.gmra.mrb[22].mxu0 %vm426_vm1, %v9591_v9 }
 0x21f   : > { %7653 = vmatprep.mubr.msk.f32.mxu0 %vm426_vm1, %v9595_v25 }
 0x222   : > { %7654 = vmatmul.mubr.msk.f32.gmra.mrb[24].mxu0 %vm426_vm1, %v9607_v57 }
 0x223   : > { %7656 = vmatprep.mubr.msk.f32.mxu0 %vm426_vm1, %v9611_v53 }
 0x226   : > { %7657 = vmatmul.mubr.msk.f32.gmra.mrb[26].mxu0 %vm426_vm1, %v9624_v49 }
 0x227   : > { %7659 = vmatprep.mubr.msk.f32.mxu0 %vm426_vm1, %v9628_v60 }
 0x22a   : > { %7660 = vmatmul.mubr.msk.f32.gmra.mrb[28].mxu0 %vm426_vm1, %v9641_v8 }
 0x22b   : > { %7662 = vmatprep.mubr.msk.f32.mxu0 %vm426_vm1, %v9645_v38 }
 0x22e   : > { %7663 = vmatmul.mubr.msk.f32.gmra.mrb[30].mxu0 %vm426_vm1, %v9657_v29 }
 0x22f   : > { %7665 = vmatprep.mubr.msk.f32.mxu0 %vm426_vm1, %v9661_v23 }
 0x232   : > { %7666 = vmatmul.mubr.msk.f32.gmra.mrb[32].mxu0 %vm426_vm1, %v9678_v0 }
 0x233   : > { %7668 = vmatprep.mubr.msk.f32.mxu0 %vm426_vm1, %v9682_v20 }
 0x236   : > { %7669 = vmatmul.mubr.msk.f32.gmra.mrb[34].mxu0 %vm426_vm1, %v9696_v41 }
 0x237   : > { %7671 = vmatprep.mubr.msk.f32.mxu0 %vm426_vm1, %v11149_v22 }
 0x23a   : > { %7672 = vmatmul.mubr.msk.f32.gmra.mrb[36].mxu0 %vm426_vm1, %v9714_v35 }
 0x23b   : > { %7674 = vmatprep.mubr.msk.f32.mxu0 %vm426_vm1, %v9718_v3 }
 0x23e   : > { %7675 = vmatmul.mubr.msk.f32.gmra.mrb[38].mxu0 %vm426_vm1, %v9732_v63 }
 0x23f   : > { %7677 = vmatprep.mubr.msk.f32.mxu0 %vm426_vm1, %v9736_v50 }
 0x242   : > { %7678 = vmatmul.mubr.msk.f32.gmra.mrb[40].mxu0 %vm426_vm1, %v9750_v47 }
 0x243   : > { %7680 = vmatprep.mubr.msk.f32.mxu0 %vm426_vm1, %v9754_v51 }
 0x244   : > { %v10181_v62 = vpop.f32.mrb[6].mxu1 }
 0x245   : > { %v10185_v18 = vpop.f32.mrb[7].mxu1 }
 0x246   : > { %7681 = vmatmul.mubr.msk.f32.gmra.mrb[42].mxu0 %vm426_vm1, %v9768_v31 }
 0x247   : > { %7683 = vmatprep.mubr.msk.f32.mxu0 %vm426_vm1, %v9772_v15  ;;  %v4858_v15 = vpop.permute.xlu1 %4857 }
 0x248   : > { %v10189_v6 = vpop.f32.mrb[8].mxu1 }
 0x249   : > { %v10193_v7 = vpop.f32.mrb[9].mxu1 }
 0x24a   : > { %7684 = vmatmul.mubr.msk.f32.gmra.mrb[44].mxu0 %vm426_vm1, %v9786_v61 }
 0x24b   : > { %7686 = vmatprep.mubr.msk.f32.mxu0 %vm426_vm1, %v9790_v43  ;;  %v10279_v43 = vpop.permute.xlu0 %4937  ;;  %v4863_v22 = vpop.permute.xlu1 %4862 }
 0x24c   : > { %v10197_v5 = vpop.f32.mrb[10].mxu1 }
 0x24d   : > { %v10201_v11 = vpop.f32.mrb[11].mxu1 }
 0x24e   : > { %7687 = vmatmul.mubr.msk.f32.gmra.mrb[46].mxu0 %vm426_vm1, %v9805_v12  ;;  %v10943_v12 = vmov 1.0  }
 0x24f   : > { %7689 = vmatprep.mubr.msk.f32.mxu0 %vm426_vm1, %v9808_v45  ;;  %5259 = vmatprep.mubr.f32.mxu1 %v10943_v12  ;;  %v10294_v19 = vpop.permute.xlu1 %4952 }
 0x250   : > { %v10205_v59 = vpop.f32.mrb[12].mxu1 }
 0x251   : > { %v10209_v40 = vpop.f32.mrb[13].mxu1 }
 0x252   : > { %7690 = vmatmul.mubr.msk.f32.gmra.mrb[48].mxu0 %vm426_vm1, %v9823_v44 }
 0x253   : > { %7692 = vmatprep.mubr.msk.f32.mxu0 %vm426_vm1, %v10076_v16  ;;  %v4873_v56 = vpop.permute.xlu1 %4872 }
 0x254   : > { %v10213_v32 = vpop.f32.mrb[14].mxu1 }
 0x255   : > { %v10217_v21 = vpop.f32.mrb[15].mxu1 }
 0x256   : > { %7693 = vmatmul.mubr.msk.f32.gmra.mrb[50].mxu0 %vm426_vm1, %v10082_v14  ;;  %v10288_v14 = vpop.permute.xlu0 %4942 }
 0x257   : > { %7695 = vmatprep.mubr.msk.f32.mxu0 %vm426_vm1, %v10091_v36  ;;  %v10310_v26 = vpop.permute.xlu1 %4962 }
 0x258   : > { %v10225_v30 = vpop.f32.mrb[16].mxu1 }
 0x259   : > { %v10228_v37 = vpop.f32.mrb[17].mxu1 }
 0x25a   : > { %7696 = vmatmul.mubr.msk.f32.gmra.mrb[52].mxu0 %vm426_vm1, %v4384_v24  ;;  %v10298_v54 = vpop.permute.xlu0 %4947 }
 0x25b   : > { %7698 = vmatprep.mubr.msk.f32.mxu0 %vm426_vm1, %v4386_v27 }
 0x25c   : > { %v10232_v55 = vpop.f32.mrb[18].mxu1 }
 0x25d   : > { %v10235_v4 = vpop.f32.mrb[19].mxu1 }
 0x25e   : > { %7699 = vmatmul.mubr.msk.f32.gmra.mrb[54].mxu0 %vm426_vm1, %v4388_v42  ;;  %v4868_v1 = vpop.permute.xlu0 %4867 }
 0x260   : > { %v10237_v9 = vpop.f32.mrb[20].mxu1 }
 0x261   : > { %v10239_v25 = vpop.f32.mrb[21].mxu1 }
 0x262   : > { %v10314_v27 = vpop.permute.xlu0 %4957 }
 0x264   : > { %v10241_v57 = vpop.f32.mrb[22].mxu1 }
 0x265   : > { %v10243_v53 = vpop.f32.mrb[23].mxu1 }
 0x268   : > { %v10245_v49 = vpop.f32.mrb[24].mxu1 }
 0x269   : > { %v10247_v60 = vpop.f32.mrb[25].mxu1 }
 0x26c   : > { %v10249_v8 = vpop.f32.mrb[26].mxu1 }
 0x26d   : > { %v10251_v38 = vpop.f32.mrb[27].mxu1 }
 0x270   : > { %v10253_v29 = vpop.f32.mrb[28].mxu1 }
 0x271   : > { %v10255_v23 = vpop.f32.mrb[29].mxu1 }
 0x274   : > { %v10257_v0 = vpop.f32.mrb[30].mxu1 }
 0x275   : > { %11154 = vst [vmem:[#allocation23_spill] sm:$0xff] %v10257_v0  ;;  %v10259_v20 = vpop.f32.mrb[31].mxu1 }
 0x276   : > { %11155 = vst [vmem:[#allocation25_spill] sm:$0xff] %v10259_v20 }
 0x278   : > { %v10261_v41 = vpop.f32.mrb[32].mxu1 }
 0x279   : > { %11156 = vst [vmem:[#allocation27_spill] sm:$0xff] %v10261_v41  ;;  %v10263_v35 = vpop.f32.mrb[33].mxu1 }
 0x27a   : > { %11157 = vst [vmem:[#allocation29_spill] sm:$0xff] %v10263_v35 }
 0x27c   : > { %v10265_v3 = vpop.f32.mrb[34].mxu1 }
 0x27d   : > { %11158 = vst [vmem:[#allocation31_spill] sm:$0xff] %v10265_v3  ;;  %v10267_v63 = vpop.f32.mrb[35].mxu1 }
 0x27e   : > { %11159 = vst [vmem:[#allocation33_spill] sm:$0xff] %v10267_v63 }
 0x280   : > { %v10269_v50 = vpop.f32.mrb[36].mxu1 }
 0x281   : > { %11160 = vst [vmem:[#allocation35_spill] sm:$0xff] %v10269_v50  ;;  %v10271_v47 = vpop.f32.mrb[37].mxu1 }
 0x282   : > { %11161 = vst [vmem:[#allocation37_spill] sm:$0xff] %v10271_v47 }
 0x284   : > { %v10273_v51 = vpop.f32.mrb[38].mxu1 }
 0x285   : > { %11162 = vst [vmem:[#allocation39_spill] sm:$0xff] %v10273_v51  ;;  %v10275_v31 = vpop.f32.mrb[39].mxu1 }
 0x286   : > { %11163 = vst [vmem:[#allocation41_spill] sm:$0xff] %v10275_v31 }
 0x288   : > { %v10277_v61 = vpop.f32.mrb[40].mxu1 }
 0x289   : > { %11164 = vst [vmem:[#allocation43_spill] sm:$0xff] %v10277_v61  ;;  %v10281_v34 = vpop.f32.mrb[41].mxu1 }
 0x28a   : > { %11165 = vst [vmem:[#allocation45_spill] sm:$0xff] %v10281_v34 }
 0x28c   : > { %v10284_v45 = vpop.f32.mrb[42].mxu1 }
 0x28d   : > { %11166 = vst [vmem:[#allocation47_spill] sm:$0xff] %v10284_v45  ;;  %v10286_v44 = vpop.f32.mrb[43].mxu1 }
 0x28e   : > { %11167 = vst [vmem:[#allocation49_spill] sm:$0xff] %v10286_v44 }
 0x290   : > { %v10290_v58 = vpop.f32.mrb[44].mxu1 }
 0x291   : > { %11168 = vst [vmem:[#allocation51_spill] sm:$0xff] %v10290_v58  ;;  %v10292_v39 = vpop.f32.mrb[45].mxu1 }
 0x292   : > { %11169 = vst [vmem:[#allocation53_spill] sm:$0xff] %v10292_v39 }
 0x294   : > { %v10296_v16 = vpop.f32.mrb[46].mxu1 }
 0x295   : > { %11170 = vst [vmem:[#allocation55_spill] sm:$0xff] %v10296_v16  ;;  %v10300_v13 = vpop.f32.mrb[47].mxu1 }
 0x296   : > { %11171 = vst [vmem:[#allocation57_spill] sm:$0xff] %v10300_v13 }
 0x298   : > { %v10302_v36 = vpop.f32.mrb[48].mxu1 }
 0x299   : > { %11172 = vst [vmem:[#allocation60_spill] sm:$0xff] %v10302_v36  ;;  %v10304_v28 = vpop.f32.mrb[49].mxu1  ;;  %v4883_v36 = vpop.permute.xlu1 %4882 }
 0x29a   : > { %11173 = vst [vmem:[#allocation62_spill] sm:$0xff] %v10304_v28  ;;  %v4878_v28 = vpop.permute.xlu0 %4877 }
 0x29c   : > { %v10306_v17 = vpop.f32.mrb[50].mxu1 }
 0x29d   : > { %11174 = vst [vmem:[#allocation64_spill] sm:$0xff] %v10306_v17  ;;  %v10308_v24 = vpop.f32.mrb[51].mxu1  ;;  %v10322_v16 = vpop.permute.xlu1 %4972 }
 0x29e   : > { %11175 = vst [vmem:[#allocation66_spill] sm:$0xff] %v10308_v24  ;;  %v10324_v39 = vpop.permute.xlu0 %4967 }
 0x2a0   : > { %v10312_v2 = vpop.f32.mrb[52].mxu1 }
 0x2a1   : > { %11176 = vst [vmem:[#allocation68_spill] sm:$0xff] %v10312_v2  ;;  %v10316_v42 = vpop.f32.mrb[53].mxu1  ;;  %v4893_v17 = vpop.permute.xlu1 %4892 }
 0x2a2   : > { %11177 = vst [vmem:[#allocation70_spill] sm:$0xff] %v10316_v42  ;;  %v4888_v24 = vpop.permute.xlu0 %4887 }
 0x2a4   : > { %v10318_v12 = vpop.f32.mrb[54].mxu1 }
 0x2a5   : > { %11178 = vst [vmem:[#allocation72_spill] sm:$0xff] %v10318_v12  ;;  %v10320_v13 = vpop.f32.mrb[55].mxu1  ;;  %v10326_v58 = vpop.permute.xlu1 %4982 }
 0x2a6   : > { %11179 = vst [vmem:[#allocation74_spill] sm:$0xff] %v10320_v13  ;;  %v10328_v44 = vpop.permute.xlu0 %4977 }
 0x2a9   : > { %v4903_v2 = vpop.permute.xlu1 %4902 }
 0x2aa   : > { %v4898_v45 = vpop.permute.xlu0 %4897 }
 0x2ad   : > { %v10330_v34 = vpop.permute.xlu1 %4992 }
 0x2ae   : > { %v10332_v12 = vpop.permute.xlu0 %4987 }
 0x2b1   : > { %v4913_v41 = vpop.permute.xlu1 %4912 }
 0x2c5   : > { %v7619_v42 = vpop.f32.mrb[0].mxu0 }
 0x2c6   : > { %v7839_v13 = vadd.f32 %v7619_v42, %v10041_v46  ;;  %v4464_v61 = vpop.f32.mrb[1].mxu0 }
 0x2c7   : > { %v7840_v31 = vadd.f32 %v4464_v61, %v10045_v48  ;;  %v4908_v61 = vpop.permute.xlu0 %4907 }
 0x2c8   : > { %v10336_v51 = vmul.f32 %v7839_v13, %v4863_v22 }
 0x2c9   : > { %v10338_v47 = vmul.f32 %v7840_v31, %v4858_v15  ;;  %v7622_v50 = vpop.f32.mrb[2].mxu0  ;;  %v10368_v15 = vpop.permute.xlu1 %5002 }
 0x2ca   : > { %v10341_v63 = vmul.f32 %v7839_v13, %v10336_v51  ;;  %v7841_v3 = vadd.f32 %v7622_v50, %v10049_v10  ;;  %v4474_v35 = vpop.f32.mrb[3].mxu0 }
 0x2cb   : > { %v10347_v46 = vmul.f32 %v7840_v31, %v10338_v47  ;;  %v7842_v48 = vadd.f32 %v4474_v35, %v10053_v52  ;;  %v11183_v35 = vld [vmem:[#allocation21_spill] sm:$0xff] }
 0x2cc   : > { %v10350_v22 = vmul.f32 %v7841_v3, %v4873_v56 }
 0x2cd   : > { %11180 = vst [vmem:[#allocation76_spill] sm:$0xff] %v10347_v46  ;;  %v10354_v13 = vmul.f32 %v7842_v48, %v4868_v1  ;;  %v7625_v42 = vpop.f32.mrb[4].mxu0 }
 0x2ce   : > { %v10357_v10 = vmul.f32 %v7841_v3, %v10350_v22  ;;  %v7843_v50 = vadd.f32 %v7625_v42, %v10057_v33  ;;  %v4484_v20 = vpop.f32.mrb[5].mxu0  ;;  %v10374_v33 = vpop.permute.xlu0 %4997 }
 0x2cf   : > { %v10363_v52 = vmul.f32 %v7842_v48, %v10354_v13  ;;  %v7844_v56 = vadd.f32 %v4484_v20, %v11183_v35  ;;  %v4923_v20 = vpop.permute.xlu1 %4922 }
 0x2d0   : > { %11181 = vst [vmem:[#allocation78_spill] sm:$0xff] %v10357_v10  ;;  %v10366_v0 = vmul.f32 %v7843_v50, %v4883_v36 }
 0x2d1   : > { %11182 = vst [vmem:[#allocation80_spill] sm:$0xff] %v10363_v52  ;;  %v10372_v3 = vmul.f32 %v7844_v56, %v4878_v28  ;;  %v7628_v46 = vpop.f32.mrb[6].mxu0 }
 0x2d2   : > { %v10377_v42 = vmul.f32 %v7843_v50, %v10366_v0  ;;  %v7845_v48 = vadd.f32 %v7628_v46, %v10181_v62  ;;  %v4494_v31 = vpop.f32.mrb[7].mxu0 }
 0x2d3   : > { %v10383_v36 = vmul.f32 %v7844_v56, %v10372_v3  ;;  %v7846_v35 = vadd.f32 %v4494_v31, %v10185_v18  ;;  %v4918_v31 = vpop.permute.xlu0 %4917 }
 0x2d4   : > { %v10386_v1 = vmul.f32 %v7845_v48, %v4893_v17 }
 0x2d5   : > { %11184 = vst [vmem:[#allocation15_spill] sm:$0xff] %v10383_v36  ;;  %v10390_v52 = vmul.f32 %v7846_v35, %v4888_v24  ;;  %v7631_v50 = vpop.f32.mrb[8].mxu0  ;;  %v10420_v24 = vpop.permute.xlu1 %5012 }
 0x2d6   : > { %v10393_v10 = vmul.f32 %v7845_v48, %v10386_v1  ;;  %v7847_v62 = vadd.f32 %v7631_v50, %v10189_v6  ;;  %v4504_v46 = vpop.f32.mrb[9].mxu0 }
 0x2d7   : > { %v10399_v18 = vmul.f32 %v7846_v35, %v10390_v52  ;;  %v7848_v17 = vadd.f32 %v4504_v46, %v10193_v7 }
 0x2d8   : > { %v10402_v28 = vmul.f32 %v7847_v62, %v4903_v2 }
 0x2d9   : > { %11185 = vst [vmem:[#allocation17_spill] sm:$0xff] %v10399_v18  ;;  %v10406_v48 = vmul.f32 %v7848_v17, %v4898_v45  ;;  %v7634_v36 = vpop.f32.mrb[10].mxu0 }
 0x2da   : > { %v10409_v6 = vmul.f32 %v7847_v62, %v10402_v28  ;;  %v7849_v50 = vadd.f32 %v7634_v36, %v10197_v5  ;;  %v4514_v56 = vpop.f32.mrb[11].mxu0  ;;  %v10426_v5 = vpop.permute.xlu0 %5007 }
 0x2db   : > { %v10415_v7 = vmul.f32 %v7848_v17, %v10406_v48  ;;  %v7850_v2 = vadd.f32 %v4514_v56, %v10201_v11  ;;  %v4933_v11 = vpop.permute.xlu1 %4932 }
 0x2dc   : > { %11186 = vst [vmem:[#allocation3_spill] sm:$0xff] %v10409_v6  ;;  %v10418_v46 = vmul.f32 %v7849_v50, %v4913_v41 }
 0x2dd   : > { %11187 = vst [vmem:[#allocation4_spill] sm:$0xff] %v10415_v7  ;;  %v10424_v62 = vmul.f32 %v7850_v2, %v4908_v61  ;;  %v7637_v18 = vpop.f32.mrb[12].mxu0 }
 0x2de   : > { %v10429_v36 = vmul.f32 %v7849_v50, %v10418_v46  ;;  %v7851_v17 = vadd.f32 %v7637_v18, %v10205_v59  ;;  %v4524_v35 = vpop.f32.mrb[13].mxu0 }
 0x2df   : > { %v10435_v41 = vmul.f32 %v7850_v2, %v10424_v62  ;;  %v7852_v56 = vadd.f32 %v4524_v35, %v10209_v40  ;;  %v4928_v35 = vpop.permute.xlu0 %4927 }
 0x2e0   : > { %v10438_v45 = vmul.f32 %v7851_v17, %v4923_v20 }
 0x2e1   : > { %11188 = vst [vmem:[#allocation5_spill] sm:$0xff] %v10435_v41  ;;  %v10442_v7 = vmul.f32 %v7852_v56, %v4918_v31  ;;  %v7640_v50 = vpop.f32.mrb[14].mxu0 }
 0x2e2   : > { %v10445_v6 = vmul.f32 %v7851_v17, %v10438_v45  ;;  %v7853_v59 = vadd.f32 %v7640_v50, %v10213_v32  ;;  %v4534_v18 = vpop.f32.mrb[15].mxu0 }
 0x2e3   : > { %v10451_v40 = vmul.f32 %v7852_v56, %v10442_v7  ;;  %v7854_v20 = vadd.f32 %v4534_v18, %v10217_v21 }
 0x2e4   : > { %11189 = vst [vmem:[#allocation6_spill] sm:$0xff] %v10445_v6  ;;  %v10454_v61 = vmul.f32 %v7853_v59, %v4933_v11 }
 0x2e5   : > { %11190 = vst [vmem:[#allocation7_spill] sm:$0xff] %v10451_v40  ;;  %v10458_v17 = vmul.f32 %v7854_v20, %v4928_v35  ;;  %v7643_v41 = vpop.f32.mrb[16].mxu0 }
 0x2e6   : > { %v10461_v32 = vmul.f32 %v7853_v59, %v10454_v61  ;;  %v7855_v50 = vadd.f32 %v7643_v41, %v10225_v30  ;;  %v4544_v2 = vpop.f32.mrb[17].mxu0 }
 0x2e7   : > { %v10467_v21 = vmul.f32 %v7854_v20, %v10458_v17  ;;  %v7856_v11 = vadd.f32 %v4544_v2, %v10228_v37 }
 0x2e8   : > { %v5152_v18 = vmul.f32 %v7855_v50, %v10288_v14 }
 0x2e9   : > { %v5151_v31 = vmul.f32 %v7856_v11, %v10279_v43  ;;  %v7646_v59 = vpop.f32.mrb[18].mxu0 }
 0x2ea   : > { %v10474_v40 = vmul.f32 %v7855_v50, %v5152_v18  ;;  %v7857_v30 = vadd.f32 %v7646_v59, %v10232_v55  ;;  %v4554_v41 = vpop.f32.mrb[19].mxu0 }
 0x2eb   : > { %v10477_v6 = vmul.f32 %v7856_v11, %v5151_v31  ;;  %v7858_v20 = vadd.f32 %v4554_v41, %v10235_v4  ;;  %v7701_v56 = vpack.c.bf16 %v5152_v18, %v5151_v31  ;;  %v11191_v11 = vpack.c.bf16 %v10336_v51, %v10338_v47 }
 0x2ec   : > { %v5154_v37 = vmul.f32 %v7857_v30, %v10294_v19 }
 0x2ed   : > { %v5153_v14 = vmul.f32 %v7858_v20, %v10298_v54  ;;  %v7649_v2 = vpop.f32.mrb[20].mxu0  ;;  %7702 = vmatprep.subr.bf16.mxu1 %v7701_v56  ;;  %v10494_v56 = vpop.permute.xlu1 %5022 }
 0x2ee   : > { %v10484_v35 = vmul.f32 %v7857_v30, %v5154_v37  ;;  %v7859_v50 = vadd.f32 %v7649_v2, %v10237_v9  ;;  %v4564_v55 = vpop.f32.mrb[21].mxu0  ;;  %7704 = vmatpush3.bf16.msra.mxu1 %v11191_v11  ;;  %v10499_v30 = vpop.permute.xlu0 %5017 }
 0x2ef   : > { %v10490_v4 = vmul.f32 %v7858_v20, %v5153_v14  ;;  %v7860_v19 = vadd.f32 %v4564_v55, %v10239_v25  ;;  %v7705_v31 = vpack.c.bf16 %v5154_v37, %v5153_v14  ;;  %v11192_v25 = vpack.c.bf16 %v10350_v22, %v10354_v13 }
 0x2f0   : > { %v5156_v54 = vmul.f32 %v7859_v50, %v10310_v26  ;;  %v11193_v13 = vpack.c.bf16 %v10366_v0, %v10372_v3 }
 0x2f1   : > { %v5155_v18 = vmul.f32 %v7860_v19, %v10314_v27  ;;  %v7652_v59 = vpop.f32.mrb[22].mxu0  ;;  %7706 = vmatprep.subr.bf16.mxu1 %v7705_v31 }
 0x2f2   : > { %v10501_v47 = vmul.f32 %v7859_v50, %v5156_v54  ;;  %v7861_v51 = vadd.f32 %v7652_v59, %v10241_v57  ;;  %v4574_v41 = vpop.f32.mrb[23].mxu0  ;;  %7708 = vmatpush3.bf16.msra.mxu1 %v11192_v25 }
 0x2f3   : > { %v10507_v26 = vmul.f32 %v7860_v19, %v5155_v18  ;;  %v7862_v27 = vadd.f32 %v4574_v41, %v10243_v53  ;;  %v7709_v20 = vpack.c.bf16 %v5156_v54, %v5155_v18  ;;  %v10520_v53 = vpop.permute.xlu1 %5032  ;;  %v10525_v19 = vpop.permute.xlu0 %5027 }
 0x2f4   : > { %v5158_v37 = vmul.f32 %v7861_v51, %v10322_v16 }
 0x2f5   : > { %v5157_v14 = vmul.f32 %v7862_v27, %v10324_v39  ;;  %v7655_v2 = vpop.f32.mrb[24].mxu0  ;;  %7710 = vmatprep.subr.bf16.mxu1 %v7709_v20 }
 0x2f6   : > { %v10514_v57 = vmul.f32 %v7861_v51, %v5158_v37  ;;  %v7863_v55 = vadd.f32 %v7655_v2, %v10245_v49  ;;  %v4584_v22 = vpop.f32.mrb[25].mxu0  ;;  %7712 = vmatpush3.bf16.msra.mxu1 %v11193_v13 }
 0x2f7   : > { %v10522_v11 = vmul.f32 %v7862_v27, %v5157_v14  ;;  %v7864_v39 = vadd.f32 %v4584_v22, %v10247_v60  ;;  %v7713_v16 = vpack.c.bf16 %v5158_v37, %v5157_v14  ;;  %v11194_v60 = vpack.c.bf16 %v10386_v1, %v10390_v52  ;;  %v10541_v25 = vpop.permute.xlu1 %5042  ;;  %v10546_v37 = vpop.permute.xlu0 %5037 }
 0x2f8   : > { %v5160_v31 = vmul.f32 %v7863_v55, %v10326_v58 }
 0x2f9   : > { %v5159_v54 = vmul.f32 %v7864_v39, %v10328_v44  ;;  %v7658_v18 = vpop.f32.mrb[26].mxu0  ;;  %7714 = vmatprep.subr.bf16.mxu1 %v7713_v16  ;;  %v11196_v16 = vld [vmem:[#allocation23_spill] sm:$0xff] }
 0x2fa   : > { %v10531_v0 = vmul.f32 %v7863_v55, %v5160_v31  ;;  %v7865_v3 = vadd.f32 %v7658_v18, %v10249_v8  ;;  %v4594_v59 = vpop.f32.mrb[27].mxu0  ;;  %7716 = vmatpush3.bf16.msra.mxu1 %v11194_v60 }
 0x2fb   : > { %v10537_v51 = vmul.f32 %v7864_v39, %v5159_v54  ;;  %v7866_v58 = vadd.f32 %v4594_v59, %v10251_v38  ;;  %v7717_v41 = vpack.c.bf16 %v5160_v31, %v5159_v54  ;;  %v11195_v38 = vpack.c.bf16 %v10402_v28, %v10406_v48 }
 0x2fc   : > { %v5162_v44 = vmul.f32 %v7865_v3, %v10330_v34  ;;  %v11197_v48 = vpack.c.bf16 %v10418_v46, %v10424_v62  ;;  %v11199_v46 = vld [vmem:[#allocation27_spill] sm:$0xff] }
 0x2fd   : > { %v5161_v27 = vmul.f32 %v7866_v58, %v10332_v12  ;;  %v7661_v20 = vpop.f32.mrb[28].mxu0  ;;  %7718 = vmatprep.subr.bf16.mxu1 %v7717_v41 }
 0x2fe   : > { %v10548_v52 = vmul.f32 %v7865_v3, %v5162_v44  ;;  %v7867_v1 = vadd.f32 %v7661_v20, %v10253_v29  ;;  %v4604_v14 = vpop.f32.mrb[29].mxu0  ;;  %7720 = vmatpush3.bf16.msra.mxu1 %v11195_v38  ;;  %v5048_v3 = vpop.permute.xlu0 %5047  ;;  %v11200_v20 = vpack.c.bf16 %v10438_v45, %v10442_v7  ;;  %v11202_v7 = vld [vmem:[#allocation31_spill] sm:$0xff] }
 0x2ff   : > { %v10554_v34 = vmul.f32 %v7866_v58, %v5161_v27  ;;  %v7868_v12 = vadd.f32 %v4604_v14, %v10255_v23  ;;  %v7721_v2 = vpack.c.bf16 %v5162_v44, %v5161_v27  ;;  %v5053_v23 = vpop.permute.xlu1 %5052  ;;  %v11201_v14 = vld [vmem:[#allocation29_spill] sm:$0xff] }
 0x300   : > { %v5164_v55 = vmul.f32 %v7867_v1, %v10368_v15  ;;  %v11198_v15 = vld [vmem:[#allocation25_spill] sm:$0xff] }
 0x301   : > { %v5163_v22 = vmul.f32 %v7868_v12, %v10374_v33  ;;  %v7664_v13 = vpop.f32.mrb[30].mxu0  ;;  %7722 = vmatprep.subr.bf16.mxu1 %v7721_v2 }
 0x302   : > { %v10561_v29 = vmul.f32 %v7867_v1, %v5164_v55  ;;  %v7869_v31 = vadd.f32 %v7664_v13, %v11196_v16  ;;  %v4614_v28 = vpop.f32.mrb[31].mxu0  ;;  %7724 = vmatpush3.bf16.msra.mxu1 %v11197_v48  ;;  %v5058_v13 = vpop.permute.xlu0 %5057 }
 0x303   : > { %v10567_v54 = vmul.f32 %v7868_v12, %v5163_v22  ;;  %v7870_v18 = vadd.f32 %v4614_v28, %v11198_v15  ;;  %v7725_v33 = vpack.c.bf16 %v5164_v55, %v5163_v22  ;;  %v5063_v12 = vpop.permute.xlu1 %5062  ;;  %v11203_v28 = vpack.c.bf16 %v10454_v61, %v10458_v17  ;;  %v11204_v15 = vld [vmem:[#allocation33_spill] sm:$0xff]  ;;  %v11206_v17 = vld [vmem:[#allocation35_spill] sm:$0xff] }
 0x304   : > { %v5166_v59 = vmul.f32 %v7869_v31, %v10420_v24 }
 0x305   : > { %v5165_v60 = vmul.f32 %v7870_v18, %v10426_v5  ;;  %v7667_v58 = vpop.f32.mrb[32].mxu0  ;;  %7726 = vmatprep.subr.bf16.mxu1 %v7725_v33 }
 0x306   : > { %v10574_v44 = vmul.f32 %v7869_v31, %v5166_v59  ;;  %v7871_v62 = vadd.f32 %v7667_v58, %v11199_v46  ;;  %v4624_v27 = vpop.f32.mrb[33].mxu0  ;;  %7728 = vmatpush3.bf16.msra.mxu1 %v11200_v20  ;;  %v11205_v46 = vmov 1.0  }
 0x307   : > { %v10580_v1 = vmul.f32 %v7870_v18, %v5165_v60  ;;  %v7872_v24 = vadd.f32 %v4624_v27, %v11201_v14  ;;  %v7729_v38 = vpack.c.bf16 %v5166_v59, %v5165_v60  ;;  %v8321_v18 = vmov 0.0|0.0   ;;  %v5073_v20 = vpop.permute.xlu1 %5072 }
 0x308   : > { %v5168_v5 = vmul.f32 %v7871_v62, %v10494_v56 }
 0x309   : > { %v5167_v2 = vmul.f32 %v7872_v24, %v10499_v30  ;;  %v7670_v55 = vpop.f32.mrb[34].mxu0  ;;  %7730 = vmatprep.subr.bf16.mxu1 %v7729_v38 }
 0x30a   : > { %v10587_v16 = vmul.f32 %v7871_v62, %v5168_v5  ;;  %v7873_v45 = vadd.f32 %v7670_v55, %v11202_v7  ;;  %v4634_v31 = vpop.f32.mrb[35].mxu0  ;;  %7732 = vmatpush3.bf16.msra.mxu1 %v11203_v28 }
 0x30b   : > { %v7734_v48 = vpack.c.bf16 %v5168_v5, %v5167_v2  ;;  %v10593_v56 = vmul.f32 %v7872_v24, %v5167_v2  ;;  %v7874_v30 = vadd.f32 %v4634_v31, %v11204_v15  ;;  %7733 = vmatprep.subr.bf16.mxu1 %v8321_v18  ;;  %v11207_v24 = vld [vmem:[#allocation37_spill] sm:$0xff]  ;;  %v11208_v31 = vld [vmem:[#allocation39_spill] sm:$0xff] }
 0x30c   : > { %v5170_v33 = vmul.f32 %v7873_v45, %v10520_v53 }
 0x30d   : > { %v5169_v60 = vmul.f32 %v7874_v30, %v10525_v19  ;;  %v7673_v58 = vpop.f32.mrb[36].mxu0  ;;  %5260 = vmatmul.mubr.f32.vlgmr.msra.gmra.mrb[56].mxu1 %v11205_v46  ;;  %v5068_v19 = vpop.permute.xlu0 %5067 }
 0x30e   : > { %v10602_v61 = vmul.f32 %v7873_v45, %v5170_v33  ;;  %v7875_v62 = vadd.f32 %v7673_v58, %v11206_v17  ;;  %v4644_v27 = vpop.f32.mrb[37].mxu0  ;;  %7735 = vmatpush1.bf16.msra.mxu1 %v7734_v48  ;;  %6182 = vmatprep.mubr.msk.f32.mxu1 %vm5191_vm4, %v11205_v46  ;;  %v5083_v58 = vpop.permute.xlu1 %5082 }
 0x30f   : > { %v7737_v14 = vpack.c.bf16 %v5170_v33, %v5169_v60  ;;  %v10607_v53 = vmul.f32 %v7874_v30, %v5169_v60  ;;  %v7876_v38 = vadd.f32 %v4644_v27, %v11207_v24  ;;  %7736 = vmatprep.subr.bf16.mxu1 %v8321_v18  ;;  %v11209_v33 = vld [vmem:[#allocation41_spill] sm:$0xff] }
 0x310   : > { %v5172_v5 = vmul.f32 %v7875_v62, %v10541_v25 }
 0x311   : > { %v5171_v55 = vmul.f32 %v7876_v38, %v10546_v37  ;;  %v7676_v7 = vpop.f32.mrb[38].mxu0 }
 0x312   : > { %v10615_v45 = vmul.f32 %v7875_v62, %v5172_v5  ;;  %v7877_v28 = vadd.f32 %v7676_v7, %v11208_v31  ;;  %v4654_v48 = vpop.f32.mrb[39].mxu0  ;;  %7738 = vmatpush1.bf16.msra.mxu1 %v7737_v14  ;;  %v5078_v62 = vpop.permute.xlu0 %5077  ;;  %v11210_v7 = vld [vmem:[#allocation43_spill] sm:$0xff] }
 0x313   : > { %v7740_v15 = vpack.c.bf16 %v5172_v5, %v5171_v55  ;;  %v10618_v30 = vmul.f32 %v7876_v38, %v5171_v55  ;;  %v7878_v60 = vadd.f32 %v4654_v48, %v11209_v33  ;;  %7739 = vmatprep.subr.bf16.mxu1 %v8321_v18  ;;  %v11211_v55 = vld [vmem:[#allocation45_spill] sm:$0xff] }
 0x314   : > { %v5174_v25 = vmul.f32 %v7877_v28, %v5053_v23 }
 0x315   : > { %v5173_v37 = vmul.f32 %v7878_v60, %v5048_v3  ;;  %v7679_v27 = vpop.f32.mrb[40].mxu0 }
 0x316   : > { %v10624_v24 = vmul.f32 %v7877_v28, %v5174_v25  ;;  %v7879_v31 = vadd.f32 %v7679_v27, %v11210_v7  ;;  %v4664_v14 = vpop.f32.mrb[41].mxu0  ;;  %7741 = vmatpush1.bf16.msra.mxu1 %v7740_v15  ;;  %v11212_v28 = vld [vmem:[#allocation47_spill] sm:$0xff]  ;;  %v5093_v15 = vpop.permute.xlu1 %5092 }
 0x317   : > { %v7743_v38 = vpack.c.bf16 %v5174_v25, %v5173_v37  ;;  %v10627_v5 = vmul.f32 %v7878_v60, %v5173_v37  ;;  %v7880_v48 = vadd.f32 %v4664_v14, %v11211_v55  ;;  %7742 = vmatprep.subr.bf16.mxu1 %v8321_v18  ;;  %v11213_v37 = vld [vmem:[#allocation49_spill] sm:$0xff] }
 0x318   : > { %v5176_v23 = vmul.f32 %v7879_v31, %v5063_v12  ;;  %v5088_v12 = vpop.permute.xlu0 %5087 }
 0x319   : > { %v5175_v3 = vmul.f32 %v7880_v48, %v5058_v13  ;;  %v7682_v17 = vpop.f32.mrb[42].mxu0 }
 0x31a   : > { %v10633_v2 = vmul.f32 %v7879_v31, %v5176_v23  ;;  %v7881_v59 = vadd.f32 %v7682_v17, %v11212_v28  ;;  %v4674_v27 = vpop.f32.mrb[43].mxu0  ;;  %7744 = vmatpush1.bf16.msra.mxu1 %v7743_v38  ;;  %v11214_v17 = vld [vmem:[#allocation51_spill] sm:$0xff] }
 0x31b   : > { %v7746_v25 = vpack.c.bf16 %v5176_v23, %v5175_v3  ;;  %v10636_v60 = vmul.f32 %v7880_v48, %v5175_v3  ;;  %v7882_v7 = vadd.f32 %v4674_v27, %v11213_v37  ;;  %7745 = vmatprep.subr.bf16.mxu1 %v8321_v18  ;;  %v11215_v3 = vld [vmem:[#allocation53_spill] sm:$0xff] }
 0x31c   : > { %v5178_v14 = vmul.f32 %v7881_v59, %v5073_v20  ;;  %v5103_v20 = vpop.permute.xlu1 %5102 }
 0x31d   : > { %v5177_v55 = vmul.f32 %v7882_v7, %v5068_v19  ;;  %v7685_v31 = vpop.f32.mrb[44].mxu0 }
 0x31e   : > { %v10642_v33 = vmul.f32 %v7881_v59, %v5178_v14  ;;  %v7883_v28 = vadd.f32 %v7685_v31, %v11214_v17  ;;  %v4684_v38 = vpop.f32.mrb[45].mxu0  ;;  %7747 = vmatpush1.bf16.msra.mxu1 %v7746_v25  ;;  %v5098_v59 = vpop.permute.xlu0 %5097  ;;  %v11216_v31 = vld [vmem:[#allocation55_spill] sm:$0xff] }
 0x31f   : > { %v7749_v23 = vpack.c.bf16 %v5178_v14, %v5177_v55  ;;  %v10645_v48 = vmul.f32 %v7882_v7, %v5177_v55  ;;  %v7884_v27 = vadd.f32 %v4684_v38, %v11215_v3  ;;  %7748 = vmatprep.subr.bf16.mxu1 %v8321_v18  ;;  %v11217_v55 = vld [vmem:[#allocation57_spill] sm:$0xff] }
 0x320   : > { %v5180_v37 = vmul.f32 %v7883_v28, %v5083_v58 }
 0x321   : > { %v5179_v19 = vmul.f32 %v7884_v27, %v5078_v62  ;;  %v7688_v22 = vpop.f32.mrb[46].mxu0 }
 0x322   : > { %v10651_v41 = vmul.f32 %v7883_v28, %v5180_v37  ;;  %v7885_v17 = vadd.f32 %v7688_v22, %v11216_v31  ;;  %v4694_v25 = vpop.f32.mrb[47].mxu0  ;;  %7750 = vmatpush1.bf16.msra.mxu1 %v7749_v23  ;;  %v11218_v28 = vld [vmem:[#allocation60_spill] sm:$0xff]  ;;  %v5113_v23 = vpop.permute.xlu1 %5112 }
 0x323   : > { %v7752_v7 = vpack.c.bf16 %v5180_v37, %v5179_v19  ;;  %v10654_v14 = vmul.f32 %v7884_v27, %v5179_v19  ;;  %v7886_v38 = vadd.f32 %v4694_v25, %v11217_v55  ;;  %7751 = vmatprep.subr.bf16.mxu1 %v8321_v18  ;;  %v11219_v19 = vld [vmem:[#allocation62_spill] sm:$0xff] }
 0x324   : > { %v5182_v58 = vmul.f32 %v7885_v17, %v5093_v15  ;;  %v5108_v15 = vpop.permute.xlu0 %5107 }
 0x325   : > { %v5181_v62 = vmul.f32 %v7886_v38, %v5088_v12  ;;  %v7691_v13 = vpop.f32.mrb[48].mxu0 }
 0x326   : > { %v10660_v39 = vmul.f32 %v7885_v17, %v5182_v58  ;;  %v7887_v8 = vadd.f32 %v7691_v13, %v11218_v28  ;;  %v4704_v22 = vpop.f32.mrb[49].mxu0  ;;  %7753 = vmatpush1.bf16.msra.mxu1 %v7752_v7  ;;  %v11221_v13 = vld [vmem:[#allocation64_spill] sm:$0xff] }
 0x327   : > { %v7755_v37 = vpack.c.bf16 %v5182_v58, %v5181_v62  ;;  %v10663_v27 = vmul.f32 %v7886_v38, %v5181_v62  ;;  %v7888_v31 = vadd.f32 %v4704_v22, %v11219_v19  ;;  %7754 = vmatprep.subr.bf16.mxu1 %v8321_v18  ;;  %v11223_v62 = vld [vmem:[#allocation66_spill] sm:$0xff] }
 0x328   : > { %v5184_v25 = vmul.f32 %v7887_v8, %v5103_v20  ;;  %v5123_v20 = vpop.permute.xlu1 %5122 }
 0x329   : > { %v5183_v55 = vmul.f32 %v7888_v31, %v5098_v59  ;;  %v7694_v17 = vpop.f32.mrb[50].mxu0 }
 0x32a   : > { %v10669_v3 = vmul.f32 %v7887_v8, %v5184_v25  ;;  %v7889_v28 = vadd.f32 %v7694_v17, %v11221_v13  ;;  %v4714_v7 = vpop.f32.mrb[51].mxu0  ;;  %7756 = vmatpush1.bf16.msra.mxu1 %v7755_v37  ;;  %v5118_v8 = vpop.permute.xlu0 %5117  ;;  %v11224_v17 = vld [vmem:[#allocation68_spill] sm:$0xff] }
 0x32b   : > { %v7758_v58 = vpack.c.bf16 %v5184_v25, %v5183_v55  ;;  %v10672_v38 = vmul.f32 %v7888_v31, %v5183_v55  ;;  %v7890_v22 = vadd.f32 %v4714_v7, %v11223_v62  ;;  %7757 = vmatprep.subr.bf16.mxu1 %v8321_v18  ;;  %v11225_v55 = vld [vmem:[#allocation70_spill] sm:$0xff] }
 0x32c   : > { %11220 = vst [vmem:[#allocation8_spill] sm:$0xff] %v10669_v3  ;;  %v5186_v19 = vmul.f32 %v7889_v28, %v5113_v23 }
 0x32d   : > { %11222 = vst [vmem:[#allocation9_spill] sm:$0xff] %v10672_v38  ;;  %v5185_v59 = vmul.f32 %v7890_v22, %v5108_v15  ;;  %v7697_v49 = vpop.f32.mrb[52].mxu0 }
 0x32e   : > { %v10678_v50 = vmul.f32 %v7889_v28, %v5186_v19  ;;  %v7891_v13 = vadd.f32 %v7697_v49, %v11224_v17  ;;  %v4724_v37 = vpop.f32.mrb[53].mxu0  ;;  %7759 = vmatpush1.bf16.msra.mxu1 %v7758_v58  ;;  %v11226_v28 = vld [vmem:[#allocation72_spill] sm:$0xff]  ;;  %v5133_v49 = vpop.permute.xlu1 %5132 }
 0x32f   : > { %v7761_v31 = vpack.c.bf16 %v5186_v19, %v5185_v59  ;;  %v10681_v25 = vmul.f32 %v7890_v22, %v5185_v59  ;;  %v7892_v7 = vadd.f32 %v4724_v37, %v11225_v55  ;;  %7760 = vmatprep.subr.bf16.mxu1 %v8321_v18  ;;  %v11227_v22 = vld [vmem:[#allocation74_spill] sm:$0xff]  ;;  %v5128_v17 = vpop.permute.xlu0 %5127 }
 0x330   : > { %v5188_v23 = vmul.f32 %v7891_v13, %v5123_v20 }
 0x331   : > { %v7829_v62 = vpack.c.bf16 %v10678_v50, %v10681_v25  ;;  %v5187_v15 = vmul.f32 %v7892_v7, %v5118_v8  ;;  %v7700_v12 = vpop.f32.mrb[54].mxu0  ;;  %v11233_v25 = vld [vmem:[#allocation80_spill] sm:$0xff] }
 0x332   : > { %v5388_v9 = vmul.f32 %v7891_v13, %v5188_v23  ;;  %v7893_v43 = vadd.f32 %v7700_v12, %v11226_v28  ;;  %v4734_v38 = vpop.f32.mrb[55].mxu0  ;;  %7762 = vmatpush1.bf16.msra.mxu1 %v7761_v31  ;;  %v11228_v13 = vpack.c.bf16 %v10474_v40, %v10477_v6  ;;  %v11235_v6 = vpack.c.bf16 %v10501_v47, %v10507_v26  ;;  %v11236_v40 = vld [vmem:[#allocation15_spill] sm:$0xff]  ;;  %v11243_v28 = vld [vmem:[#allocation4_spill] sm:$0xff]  ;;  %v11246_v26 = vld [vmem:[#allocation5_spill] sm:$0xff] }
 0x333   : > { %v7764_v58 = vpack.c.bf16 %v5188_v23, %v5187_v15  ;;  %v5387_v19 = vmul.f32 %v7892_v7, %v5187_v15  ;;  %v7894_v59 = vadd.f32 %v4734_v38, %v11227_v22  ;;  %7763 = vmatprep.subr.bf16.mxu1 %v8321_v18  ;;  %v11229_v38 = vld [vmem:[#allocation76_spill] sm:$0xff]  ;;  %v11237_v7 = vpack.c.bf16 %v10377_v42, %v11236_v40  ;;  %v11239_v23 = vld [vmem:[#allocation17_spill] sm:$0xff]  ;;  %v11242_v15 = vld [vmem:[#allocation3_spill] sm:$0xff] }
 0x334   : > { %v5190_v37 = vmul.f32 %v7893_v43, %v5133_v49  ;;  %v11230_v31 = vpack.c.bf16 %v10341_v63, %v11229_v38  ;;  %v11238_v63 = vpack.c.bf16 %v10514_v57, %v10522_v11  ;;  %v11244_v47 = vpack.c.bf16 %v11242_v15, %v11243_v28  ;;  %v11249_v11 = vld [vmem:[#allocation6_spill] sm:$0xff]  ;;  %v11250_v49 = vld [vmem:[#allocation7_spill] sm:$0xff] }
 0x335   : > { %v7832_v20 = vpack.c.bf16 %v5388_v9, %v5387_v19  ;;  %v5189_v55 = vmul.f32 %v7894_v59, %v5128_v17  ;;  %v11232_v9 = vld [vmem:[#allocation78_spill] sm:$0xff]  ;;  %v11245_v42 = vpack.c.bf16 %v10548_v52, %v10554_v34  ;;  %v11247_v57 = vpack.c.bf16 %v10429_v36, %v11246_v26 }
 0x336   : > { %v5390_v3 = vmul.f32 %v7893_v43, %v5190_v37  ;;  %7765 = vmatpush1.bf16.msra.mxu1 %v7764_v58  ;;  %v11231_v43 = vpack.c.bf16 %v10484_v35, %v10490_v4  ;;  %v11240_v35 = vpack.c.bf16 %v10393_v10, %v11239_v23  ;;  %v11241_v4 = vpack.c.bf16 %v10531_v0, %v10537_v51 }
 0x337   : > { %v7767_v50 = vpack.c.bf16 %v5190_v37, %v5189_v55  ;;  %v5389_v8 = vmul.f32 %v7894_v59, %v5189_v55  ;;  %7766 = vmatprep.subr.bf16.mxu1 %v8321_v18  ;;  %v11248_v10 = vpack.c.bf16 %v10561_v29, %v10567_v54  ;;  %v11251_v0 = vpack.c.bf16 %v11249_v11, %v11250_v49 }
 0x338   : > { %v11252_v51 = vpack.c.bf16 %v10574_v44, %v10580_v1  ;;  %v11253_v52 = vpack.c.bf16 %v10461_v32, %v10467_v21  ;;  %v11254_v36 = vpack.c.bf16 %v10587_v16, %v10593_v56  ;;  %v11255_v34 = vpack.c.bf16 %v10602_v61, %v10607_v53  ;;  %v11262_v16 = vld [vmem:[#allocation8_spill] sm:$0xff]  ;;  %v11263_v56 = vld [vmem:[#allocation9_spill] sm:$0xff] }
 0x339   : > { %v7835_v12 = vpack.c.bf16 %v5390_v3, %v5389_v8  ;;  %v11234_v3 = vpack.c.bf16 %v11232_v9, %v11233_v25  ;;  %v11256_v32 = vpack.c.bf16 %v10615_v45, %v10618_v30  ;;  %v11257_v21 = vpack.c.bf16 %v10624_v24, %v10627_v5 }
 0x33a   : > { %7768 = vmatpush1.bf16.msra.mxu1 %v7767_v50  ;;  %v11258_v29 = vpack.c.bf16 %v10633_v2, %v10636_v60  ;;  %v11259_v54 = vpack.c.bf16 %v10642_v33, %v10645_v48  ;;  %v11260_v44 = vpack.c.bf16 %v10651_v41, %v10654_v14  ;;  %v11261_v1 = vpack.c.bf16 %v10660_v39, %v10663_v27 }
 0x33b   : > { %7770 = vmatprep.subr.bf16.mxu1 %v11228_v13  ;;  %v11264_v61 = vpack.c.bf16 %v11262_v16, %v11263_v56  ;;  %v5531_v2 = vlaneseq }
 0x33d   : > { %5330 = vmatmul.mubr.f32.vlgmr.msra.gmra.mrb[58].mxu1 %v11205_v46  ;;  %v5532_v45 = vshrl.u32 %v5531_v2, 7 }
 0x33e   : > { %7772 = vmatpush3.bf16.msra.mxu1 %v11230_v31  ;;  %5455 = vmatprep.mubr.f32.mxu1 %v11205_v46 }
 0x33f   : > { %7774 = vmatprep.subr.bf16.mxu1 %v11231_v43  ;;  %v5533_v30 = vsub.s32 0, %v5532_v45 }
 0x342   : > { %7776 = vmatpush3.bf16.msra.mxu1 %v11234_v3 }
 0x343   : > { %7778 = vmatprep.subr.bf16.mxu1 %v11235_v6 }
 0x346   : > { %7780 = vmatpush3.bf16.msra.mxu1 %v11237_v7 }
 0x347   : > { %7782 = vmatprep.subr.bf16.mxu1 %v11238_v63 }
 0x34a   : > { %7784 = vmatpush3.bf16.msra.mxu1 %v11240_v35 }
 0x34b   : > { %7786 = vmatprep.subr.bf16.mxu1 %v11241_v4 }
 0x34e   : > { %7788 = vmatpush3.bf16.msra.mxu1 %v11244_v47 }
 0x34f   : > { %7790 = vmatprep.subr.bf16.mxu1 %v11245_v42 }
 0x352   : > { %7792 = vmatpush3.bf16.msra.mxu1 %v11247_v57 }
 0x353   : > { %7794 = vmatprep.subr.bf16.mxu1 %v11248_v10 }
 0x356   : > { %7796 = vmatpush3.bf16.msra.mxu1 %v11251_v0 }
 0x357   : > { %7798 = vmatprep.subr.bf16.mxu1 %v11252_v51 }
 0x35a   : > { %7800 = vmatpush3.bf16.msra.mxu1 %v11253_v52 }
 0x35b   : > { %7801 = vmatprep.subr.bf16.mxu1 %v8321_v18 }
 0x35d   : > { %5456 = vmatmul.mubr.f32.vlgmr.msra.gmra.mrb[60].mxu1 %v11205_v46 }
 0x35e   : > { %7803 = vmatpush1.bf16.msra.mxu1 %v11254_v36  ;;  %6183 = vmatprep.mubr.msk.f32.mxu1 %vm5191_vm4, %v11205_v46 }
 0x35f   : > { %7804 = vmatprep.subr.bf16.mxu1 %v8321_v18 }
 0x362   : > { %7806 = vmatpush1.bf16.msra.mxu1 %v11255_v34 }
 0x363   : > { %7807 = vmatprep.subr.bf16.mxu1 %v8321_v18 }
 0x366   : > { %7809 = vmatpush1.bf16.msra.mxu1 %v11256_v32 }
 0x367   : > { %7810 = vmatprep.subr.bf16.mxu1 %v8321_v18 }
 0x36a   : > { %7812 = vmatpush1.bf16.msra.mxu1 %v11257_v21 }
 0x36b   : > { %7813 = vmatprep.subr.bf16.mxu1 %v8321_v18 }
 0x36e   : > { %7815 = vmatpush1.bf16.msra.mxu1 %v11258_v29 }
 0x36f   : > { %7816 = vmatprep.subr.bf16.mxu1 %v8321_v18 }
 0x372   : > { %7818 = vmatpush1.bf16.msra.mxu1 %v11259_v54 }
 0x373   : > { %7819 = vmatprep.subr.bf16.mxu1 %v8321_v18 }
 0x376   : > { %7821 = vmatpush1.bf16.msra.mxu1 %v11260_v44 }
 0x377   : > { %7822 = vmatprep.subr.bf16.mxu1 %v8321_v18 }
 0x37a   : > { %7824 = vmatpush1.bf16.msra.mxu1 %v11261_v1 }
 0x37b   : > { %7825 = vmatprep.subr.bf16.mxu1 %v8321_v18 }
 0x37e   : > { %7827 = vmatpush1.bf16.msra.mxu1 %v11264_v61 }
 0x37f   : > { %7828 = vmatprep.subr.bf16.mxu1 %v8321_v18 }
 0x382   : > { %7830 = vmatpush1.bf16.msra.mxu1 %v7829_v62 }
 0x383   : > { %7831 = vmatprep.subr.bf16.mxu1 %v8321_v18 }
 0x386   : > { %7833 = vmatpush1.bf16.msra.mxu1 %v7832_v20 }
 0x387   : > { %7834 = vmatprep.subr.bf16.mxu1 %v8321_v18 }
 0x38a   : > { %7836 = vmatpush1.bf16.msra.mxu1 %v7835_v12 }
 0x38d   : > { %5526 = vmatmul.mubr.f32.vlgmr.msra.gmra.mrb[62].mxu1 %v11205_v46 }
 0x3e0   : > { %v6889_v39 = vpop.f32.mrb[56].mxu1 }
 0x3e1   : > { %v6890_v41 = vpop.f32.mrb[57].mxu1 }
 0x3e2   : > { %v6891_v53 = vadd.f32 %v6890_v41, %v6889_v39 }
 0x410   : > { %v5331_v24 = vpop.f32.mrb[58].mxu1 }
 0x411   : > { %v5332_v5 = vadd.f32 %v6891_v53, %v5331_v24  ;;  %v5333_v33 = vpop.f32.mrb[59].mxu1 }
 0x413   : > { %v5534_v18 = vrot.slane %v5332_v5, %v5533_v30 }
 0x415   : > { %5536 = vst.msk [vmem:[%s309_s11] sm:$0xff] %vm5535_vm5, %v5534_v18 }
 0x430   : > { %v6924_v46 = vpop.f32.mrb[60].mxu1 }
 0x431   : > { %v6925_v60 = vpop.f32.mrb[61].mxu1 }
 0x432   : > { %v6926_v48 = vadd.f32 %v6925_v60, %v6924_v46 }
 0x460   : > { %v5527_v14 = vpop.f32.mrb[62].mxu1 }
 0x461   : > { %v5528_v27 = vadd.f32 %v6926_v48, %v5527_v14  ;;  %v5529_v62 = vpop.f32.mrb[63].mxu1 }
 0x463   : > { %v5540_v58 = vrot.slane %v5528_v27, %v5533_v30 }
 0x465   : > { %5541 = vst.msk [vmem:[%s313_s19] sm:$0xff] %vm5535_vm5, %v5540_v58 }
 0x466 PF: > { %s16_s18 = sadd.s32 1, %s8317_s18  }
 0x467   : > { %p13_p7 = scmp.ge.s32.totalorder %s16_s18, 4  }
 0x469   :  { %15 = sbr.rel (!%p13_p7) target bundleno = 1 (0x1), region = 92 }

// kernel: unet_backbone_forward.3
= control target key start
LH: loop header
LB: loop body
LE: loop exit
PB: predicated region body
PF: predicated region fallthrough
CT: control target
= control target key end

     0   :  { %s7563_s18 = smov 0   ;;  %s9695_s0 = inlined_call_operand.vmem [shape: bf16[960,4], index: 0, kind: input, shape index: {}, may-alias: {0,1}]   ;;  %s9696_s1 = inlined_call_operand.vmem [shape: bf16[960,4], index: 1, kind: input, shape index: {}, may-alias: {0,1}]   ;;  %s9697_s2 = inlined_call_operand.vmem [shape: f32[9,4,8], index: 2, kind: input, shape index: {}]   ;;  %s9698_s3 = inlined_call_operand.vmem [shape: f32[1,8], index: 3, kind: input, shape index: {}]   ;;  %s9699_s4 = inlined_call_operand.vmem [shape: f32[1,8], index: 4, kind: input, shape index: {}]   ;;  %s9700_s5 = inlined_call_operand.vmem [shape: f32[896,8], index: 5, kind: output, shape index: {}]  }
   0x1 LB: > { %s5076_s19 = sadd.s32 4294967295, %s7531_s18   ;;  %p5080_p0 = scmp.ge.s32.totalorder %s7531_s18, 1  ;;  %s7531_s18 = sphi %s7563_s18, %s15_s18  }
   0x2   : > { %p215_p1 = scmp.lt.s32.totalorder %s7531_s18, 3 }
   0x4   : > { %p216_p2 = pnand %p5080_p0, %p215_p1 }
   0x6   : > { %219 = sbr.rel (%p216_p2) target bundleno = 758 (0x2f6), region = 40 }
   0xd   : > { %v5085_v0 = vld [vmem:[%s9697_s2 + $0xc] sm:$0xf]  ;;  %vm711_vm0 = vcmask 1043456   ;;  %s7576_s22 = smul.u32 56, %s5076_s19  ;;  %v5316_v1 = vld [vmem:[%s9697_s2 + $0x10] sm:$0xf] }
   0xe   : > { %6281 = vmatprep.subr.msk.mxu1 %vm711_vm0, %v5085_v0  ;;  %v7585_v2 = vld [vmem:[%s9697_s2] sm:$0xf]  ;;  %v7590_v3 = vld [vmem:[%s9697_s2 + $0x1c] sm:$0xf]  ;;  %6625 = vmatprep.subr.msk.mxu0 %vm711_vm0, %v5316_v1  ;;  %vm396_vm1 = vcmask 31744   ;;  %vm1834_vm2 = vcmask 1046528  }
   0xf   : > { %6282 = vmatpush3.msk.msra.mxu1 %vm711_vm0, %v5085_v0  ;;  %p259_p3 = scmp.lt.s32.totalorder %s7576_s22, 119  ;;  %6626 = vmatpush3.msk.msra.mxu0 %vm711_vm0, %v5316_v1  ;;  %s7640_s9 = sadd.s32 1, %s5076_s19  ;;  %vm3303_vm3 = vcmask 1045504   ;;  %vm4951_vm4 = vcmask 64512  }
  0x10   : > { %6367 = vmatprep.subr.msk.mxu1 %vm711_vm0, %v7585_v2  ;;  %6711 = vmatprep.subr.msk.mxu0 %vm711_vm0, %v7590_v3  ;;  %s5082_s10 = smul.u32 56, %s7640_s9  ;;  %p279_p5 = scmp.lt.s32.totalorder %s7576_s22, 111 }
  0x11   : > { %s260_s29 = scalar_select %p259_p3, %s7576_s22, 119 }
  0x12   : > { %p7706_p4 = scmp.lt.s32.totalorder %s5082_s10, 119  ;;  %s10047_s22 = smov (!%p279_p5, %s7576_s22), 111 }
  0x13   : > { %s5081_s30 = sshll.u32 %s260_s29, 2  ;;  %s5084_s9 = sshll.u32 %s10047_s22, 3 }
  0x14   : > { %s7604_s8 = scalar_lea.vmem %s9695_s0, %s5081_s30  ;;  %s10045_s10 = smov (!%p7706_p4, %s5082_s10), 119 }
  0x15   : > { %v7607_v4 = vld [vmem:[%s7604_s8 + $0x8] sm:$0xff]   ;;  %v5739_v5 = vld [vmem:[%s7604_s8 + $0x10] sm:$0xff]   ;;  %v5740_v6 = vld [vmem:[%s7604_s8 + $0x18] sm:$0xff]   ;;  %s5083_s16 = sshll.u32 %s10045_s10, 2  ;;  %s9448_s12 = scalar_lea.vmem %s9700_s5, %s5084_s9 }
  0x16   : > { %v5617_v7 = vunpack.c.h.bf16 %v7607_v4  ;;  %v5620_v8 = vunpack.c.l.bf16 %v5739_v5  ;;  %v5621_v9 = vunpack.c.h.bf16 %v5739_v5  ;;  %v5624_v10 = vunpack.c.l.bf16 %v5740_v6  ;;  %v5741_v11 = vld [vmem:[%s7604_s8 + $0x20] sm:$0xff]   ;;  %v5742_v12 = vld [vmem:[%s7604_s8 + $0x28] sm:$0xff]   ;;  %v5743_v13 = vld [vmem:[%s7604_s8 + $0x30] sm:$0xff]   ;;  %s7801_s20 = scalar_lea.vmem %s9696_s1, %s5083_s16 }
  0x17   : > { %v5625_v14 = vunpack.c.h.bf16 %v5740_v6  ;;  %v5628_v15 = vunpack.c.l.bf16 %v5741_v11  ;;  %v5629_v16 = vunpack.c.h.bf16 %v5741_v11  ;;  %v5632_v17 = vunpack.c.l.bf16 %v5742_v12  ;;  %v5744_v18 = vld [vmem:[%s7604_s8 + $0x38] sm:$0xff]   ;;  %v5745_v19 = vld [vmem:[%s7604_s8 + $0x40] sm:$0xff]   ;;  %v5746_v20 = vld [vmem:[%s7604_s8 + $0x48] sm:$0xff]  }
  0x18   : > { %400 = vst.msk [vmem:[#allocation2 + $0x18] sm:$0xff] %vm396_vm1, %v5617_v7  ;;  %401 = vst.msk [vmem:[#allocation2 + $0x20] sm:$0xff] %vm396_vm1, %v5620_v8  ;;  %v5633_v21 = vunpack.c.h.bf16 %v5742_v12  ;;  %v5636_v22 = vunpack.c.l.bf16 %v5743_v13  ;;  %v5637_v23 = vunpack.c.h.bf16 %v5743_v13  ;;  %v5640_v24 = vunpack.c.l.bf16 %v5744_v18  ;;  %v5747_v25 = vld [vmem:[%s7604_s8 + $0x50] sm:$0xff]   ;;  %v5748_v26 = vld [vmem:[%s7604_s8 + $0x58] sm:$0xff]  }
  0x19   : > { %402 = vst.msk [vmem:[#allocation2 + $0x28] sm:$0xff] %vm396_vm1, %v5621_v9  ;;  %403 = vst.msk [vmem:[#allocation2 + $0x30] sm:$0xff] %vm396_vm1, %v5624_v10  ;;  %v5749_v27 = vld [vmem:[%s7604_s8 + $0x60] sm:$0xff]   ;;  %v5641_v28 = vunpack.c.h.bf16 %v5744_v18  ;;  %v5644_v29 = vunpack.c.l.bf16 %v5745_v19  ;;  %v5645_v30 = vunpack.c.h.bf16 %v5745_v19  ;;  %v5648_v31 = vunpack.c.l.bf16 %v5746_v20  ;;  %v5750_v32 = vld [vmem:[%s7604_s8 + $0x68] sm:$0xff]  }
  0x1a   : > { %404 = vst.msk [vmem:[#allocation2 + $0x38] sm:$0xff] %vm396_vm1, %v5625_v14  ;;  %405 = vst.msk [vmem:[#allocation2 + $0x40] sm:$0xff] %vm396_vm1, %v5628_v15  ;;  %v5751_v33 = vld [vmem:[%s7604_s8 + $0x70] sm:$0xff]   ;;  %v5752_v34 = vld [vmem:[%s7604_s8 + $0x78] sm:$0xff]   ;;  %v5649_v35 = vunpack.c.h.bf16 %v5746_v20  ;;  %v5652_v36 = vunpack.c.l.bf16 %v5747_v25  ;;  %v5653_v37 = vunpack.c.h.bf16 %v5747_v25  ;;  %v5656_v38 = vunpack.c.l.bf16 %v5748_v26 }
  0x1b   : > { %406 = vst.msk [vmem:[#allocation2 + $0x48] sm:$0xff] %vm396_vm1, %v5629_v16  ;;  %407 = vst.msk [vmem:[#allocation2 + $0x50] sm:$0xff] %vm396_vm1, %v5632_v17  ;;  %v5753_v39 = vld [vmem:[%s7604_s8 + $0x80] sm:$0xff]   ;;  %v5754_v40 = vld [vmem:[%s7604_s8 + $0x88] sm:$0xff]   ;;  %v5657_v41 = vunpack.c.h.bf16 %v5748_v26  ;;  %v5660_v42 = vunpack.c.l.bf16 %v5749_v27  ;;  %v5661_v43 = vunpack.c.h.bf16 %v5749_v27  ;;  %v5664_v44 = vunpack.c.l.bf16 %v5750_v32 }
  0x1c   : > { %408 = vst.msk [vmem:[#allocation2 + $0x58] sm:$0xff] %vm396_vm1, %v5633_v21  ;;  %409 = vst.msk [vmem:[#allocation2 + $0x60] sm:$0xff] %vm396_vm1, %v5636_v22  ;;  %v5755_v45 = vld [vmem:[%s7604_s8 + $0x90] sm:$0xff]   ;;  %v5756_v46 = vld [vmem:[%s7604_s8 + $0x98] sm:$0xff]   ;;  %v5665_v47 = vunpack.c.h.bf16 %v5750_v32  ;;  %v5668_v48 = vunpack.c.l.bf16 %v5751_v33  ;;  %v5669_v49 = vunpack.c.h.bf16 %v5751_v33  ;;  %v5672_v50 = vunpack.c.l.bf16 %v5752_v34 }
  0x1d   : > { %410 = vst.msk [vmem:[#allocation2 + $0x68] sm:$0xff] %vm396_vm1, %v5637_v23  ;;  %411 = vst.msk [vmem:[#allocation2 + $0x70] sm:$0xff] %vm396_vm1, %v5640_v24  ;;  %v5757_v51 = vld [vmem:[%s7604_s8 + $0xa0] sm:$0xff]   ;;  %v7654_v52 = vld [vmem:[%s7604_s8 + $0xa8] sm:$0xff]   ;;  %v5673_v53 = vunpack.c.h.bf16 %v5752_v34  ;;  %v5676_v54 = vunpack.c.l.bf16 %v5753_v39  ;;  %v5677_v55 = vunpack.c.h.bf16 %v5753_v39  ;;  %v5680_v56 = vunpack.c.l.bf16 %v5754_v40 }
  0x1e   : > { %412 = vst.msk [vmem:[#allocation2 + $0x78] sm:$0xff] %vm396_vm1, %v5641_v28  ;;  %413 = vst.msk [vmem:[#allocation2 + $0x80] sm:$0xff] %vm396_vm1, %v5644_v29  ;;  %v5681_v57 = vunpack.c.h.bf16 %v5754_v40  ;;  %v5684_v58 = vunpack.c.l.bf16 %v5755_v45  ;;  %v5685_v59 = vunpack.c.h.bf16 %v5755_v45  ;;  %v5688_v60 = vunpack.c.l.bf16 %v5756_v46  ;;  %v7691_v11 = vld [vmem:[%s9697_s2 + $0x18] sm:$0xf]  ;;  %v5761_v40 = vld [vmem:[%s7604_s8 + $0xc0] sm:$0xff]  }
  0x1f   : > { %414 = vst.msk [vmem:[#allocation2 + $0x88] sm:$0xff] %vm396_vm1, %v5645_v30  ;;  %415 = vst.msk [vmem:[#allocation2 + $0x90] sm:$0xff] %vm396_vm1, %v5648_v31  ;;  %v7665_v61 = vld [vmem:[#allocation2 + $0x18] sm:$0xff]  ;;  %v7667_v62 = vld [vmem:[#allocation2 + $0x20] sm:$0xff]  ;;  %v5689_v0 = vunpack.c.h.bf16 %v5756_v46  ;;  %v5692_v1 = vunpack.c.l.bf16 %v5757_v51  ;;  %v5693_v5 = vunpack.c.h.bf16 %v5757_v51  ;;  %v5696_v6 = vunpack.c.l.bf16 %v7654_v52 }
  0x20   : > { %416 = vst.msk [vmem:[#allocation2 + $0x98] sm:$0xff] %vm396_vm1, %v5649_v35  ;;  %417 = vst.msk [vmem:[#allocation2 + $0xa0] sm:$0xff] %vm396_vm1, %v5652_v36  ;;  %v7669_v63 = vld [vmem:[#allocation2 + $0x28] sm:$0xff]  ;;  %6283 = vmatprep.mubr.msk.f32.mxu1 %vm396_vm1, %v7665_v61  ;;  %v9701_v7 = vrot.slane %v7665_v61, 1  ;;  %v1842_v8 = vrot.slane %v7667_v62, 1  ;;  %v7680_v9 = vld [vmem:[#allocation2 + $0x30] sm:$0xff]  ;;  %v5697_v19 = vunpack.c.h.bf16 %v7654_v52 }
  0x21   : > { %418 = vst.msk [vmem:[#allocation2 + $0xa8] sm:$0xff] %vm396_vm1, %v5653_v37  ;;  %419 = vst.msk [vmem:[#allocation2 + $0xb0] sm:$0xff] %vm396_vm1, %v5656_v38  ;;  %v7682_v10 = vld [vmem:[#allocation2 + $0x38] sm:$0xff]  ;;  %6284 = vmatmul.mubr.msk.f32.vlgmr.msra.gmra.mrb[0].mxu1 %vm396_vm1, %v7667_v62  ;;  %v1844_v12 = vrot.slane %v7669_v63, 1  ;;  %v1846_v13 = vrot.slane %v7680_v9, 1  ;;  %v7698_v15 = vld [vmem:[#allocation2 + $0x40] sm:$0xff] }
  0x22   : > { %420 = vst.msk [vmem:[#allocation2 + $0xb8] sm:$0xff] %vm396_vm1, %v5657_v41  ;;  %421 = vst.msk [vmem:[#allocation2 + $0xc0] sm:$0xff] %vm396_vm1, %v5660_v42  ;;  %v1848_v14 = vrot.slane %v7682_v10, 1  ;;  %v7713_v16 = vsel %vm1834_vm2, %v9701_v7, %v1842_v8  ;;  %6286 = vmatprep.mubr.msk.f32.mxu1 %vm396_vm1, %v7669_v63  ;;  %6368 = vmatpush3.msk.msra.mxu1 %vm711_vm0, %v7585_v2  ;;  %v1850_v17 = vrot.slane %v7698_v15, 1  ;;  %v7720_v18 = vld [vmem:[#allocation2 + $0x48] sm:$0xff]  ;;  %v7731_v22 = vld [vmem:[#allocation2 + $0x50] sm:$0xff] }
  0x23   : > { %422 = vst.msk [vmem:[#allocation2 + $0xc8] sm:$0xff] %vm396_vm1, %v5661_v43  ;;  %423 = vst.msk [vmem:[#allocation2 + $0xd0] sm:$0xff] %vm396_vm1, %v5664_v44  ;;  %6627 = vmatprep.mubr.msk.f32.mxu0 %vm396_vm1, %v7713_v16  ;;  %v7726_v20 = vsel %vm1834_vm2, %v1842_v8, %v1844_v12  ;;  %v7729_v21 = vsel %vm1834_vm2, %v1844_v12, %v1846_v13  ;;  %6453 = vmatprep.subr.msk.mxu1 %vm711_vm0, %v7691_v11  ;;  %v7740_v2 = vld [vmem:[%s9697_s2 + $0x8] sm:$0xf]  ;;  %v1852_v24 = vrot.slane %v7720_v18, 1  ;;  %v7763_v26 = vld [vmem:[#allocation2 + $0x58] sm:$0xff] }
  0x24   : > { %424 = vst.msk [vmem:[#allocation2 + $0xd8] sm:$0xff] %vm396_vm1, %v5665_v47  ;;  %425 = vst.msk [vmem:[#allocation2 + $0xe0] sm:$0xff] %vm396_vm1, %v5668_v48  ;;  %6628 = vmatmul.mubr.msk.f32.vlgmr.msra.gmra.mrb[0].mxu0 %vm396_vm1, %v7726_v20  ;;  %v7748_v23 = vsel %vm1834_vm2, %v1846_v13, %v1848_v14  ;;  %v7760_v25 = vsel %vm1834_vm2, %v1848_v14, %v1850_v17  ;;  %v7765_v27 = vld [vmem:[#allocation2 + $0x60] sm:$0xff]  ;;  %v7771_v28 = vld [vmem:[#allocation2 + $0x68] sm:$0xff]  ;;  %v1856_v30 = vrot.slane %v7763_v26, 1 }
  0x25   : > { %426 = vst.msk [vmem:[#allocation2 + $0xe8] sm:$0xff] %vm396_vm1, %v5669_v49  ;;  %427 = vst.msk [vmem:[#allocation2 + $0xf0] sm:$0xff] %vm396_vm1, %v5672_v50  ;;  %6712 = vmatpush3.msk.msra.mxu0 %vm711_vm0, %v7590_v3  ;;  %6287 = vmatmul.mubr.msk.f32.gmra.mrb[2].mxu1 %vm396_vm1, %v7680_v9  ;;  %v1854_v3 = vrot.slane %v7731_v22, 1  ;;  %v7778_v29 = vsel %vm1834_vm2, %v1850_v17, %v1852_v24  ;;  %v1858_v32 = vrot.slane %v7765_v27, 1  ;;  %v1860_v33 = vrot.slane %v7771_v28, 1  ;;  %v7788_v34 = vld [vmem:[#allocation2 + $0x70] sm:$0xff] }
  0x26   : > { %9853 = vst [vmem:[#allocation3_spill] sm:$0xff] %v7665_v61  ;;  %428 = vst.msk [vmem:[#allocation2 + $0xf8] sm:$0xff] %vm396_vm1, %v5673_v53  ;;  %6630 = vmatprep.mubr.msk.f32.mxu0 %vm396_vm1, %v7729_v21  ;;  %6289 = vmatprep.mubr.msk.f32.mxu1 %vm396_vm1, %v7682_v10  ;;  %v5759_v35 = vld [vmem:[%s7604_s8 + $0xb0] sm:$0xff]   ;;  %v7793_v36 = vld [vmem:[#allocation2 + $0x78] sm:$0xff]  ;;  %v1862_v43 = vrot.slane %v7788_v34, 1 }
  0x27   : > { %429 = vst.msk [vmem:[#allocation2 + $0x100] sm:$0xff] %vm396_vm1, %v5676_v54  ;;  %430 = vst.msk [vmem:[#allocation2 + $0x108] sm:$0xff] %vm396_vm1, %v5677_v55  ;;  %6797 = vmatprep.subr.msk.mxu0 %vm711_vm0, %v7740_v2  ;;  %v7784_v31 = vsel %vm1834_vm2, %v1852_v24, %v1854_v3  ;;  %v7795_v37 = vld [vmem:[#allocation2 + $0x80] sm:$0xff]  ;;  %v5760_v38 = vld [vmem:[%s7604_s8 + $0xb8] sm:$0xff]   ;;  %v7808_v39 = vsel %vm1834_vm2, %v1854_v3, %v1856_v30  ;;  %v7815_v42 = vsel %vm1834_vm2, %v1856_v30, %v1858_v32 }
  0x28   : > { %431 = vst.msk [vmem:[#allocation2 + $0x110] sm:$0xff] %vm396_vm1, %v5680_v56  ;;  %432 = vst.msk [vmem:[#allocation2 + $0x118] sm:$0xff] %vm396_vm1, %v5681_v57  ;;  %6631 = vmatmul.mubr.msk.f32.gmra.mrb[2].mxu0 %vm396_vm1, %v7748_v23  ;;  %v5762_v41 = vld [vmem:[%s7604_s8 + $0xc8] sm:$0xff]   ;;  %v5700_v44 = vunpack.c.l.bf16 %v5759_v35  ;;  %v5701_v45 = vunpack.c.h.bf16 %v5759_v35  ;;  %v5763_v46 = vld [vmem:[%s7604_s8 + $0xd0] sm:$0xff]   ;;  %v7821_v48 = vsel %vm1834_vm2, %v1858_v32, %v1860_v33  ;;  %v1864_v49 = vrot.slane %v7793_v36, 1 }
  0x29   : > { %433 = vst.msk [vmem:[#allocation2 + $0x120] sm:$0xff] %vm396_vm1, %v5684_v58  ;;  %434 = vst.msk [vmem:[#allocation2 + $0x128] sm:$0xff] %vm396_vm1, %v5685_v59  ;;  %6290 = vmatmul.mubr.msk.f32.gmra.mrb[4].mxu1 %vm396_vm1, %v7698_v15  ;;  %6633 = vmatprep.mubr.msk.f32.mxu0 %vm396_vm1, %v7760_v25  ;;  %v5764_v47 = vld [vmem:[%s7604_s8 + $0xd8] sm:$0xff]   ;;  %v1866_v50 = vrot.slane %v7795_v37, 1  ;;  %v5704_v51 = vunpack.c.l.bf16 %v5760_v38  ;;  %v5723_v52 = vld [vmem:[%s7801_s20] sm:$0xff]   ;;  %v5705_v53 = vunpack.c.h.bf16 %v5760_v38  ;;  %v5708_v54 = vunpack.c.l.bf16 %v5761_v40 }
  0x2a   : > { %435 = vst.msk [vmem:[#allocation2 + $0x130] sm:$0xff] %vm396_vm1, %v5688_v60  ;;  %436 = vst.msk [vmem:[#allocation2 + $0x138] sm:$0xff] %vm396_vm1, %v5689_v0  ;;  %6292 = vmatprep.mubr.msk.f32.mxu1 %vm396_vm1, %v7720_v18  ;;  %v5709_v55 = vunpack.c.h.bf16 %v5761_v40  ;;  %v5712_v56 = vunpack.c.l.bf16 %v5762_v41  ;;  %v5765_v57 = vld [vmem:[%s7801_s20 + $0x8] sm:$0xff]   ;;  %v5611_v58 = vld [vmem:[%s7604_s8] sm:$0xff]   ;;  %v5713_v59 = vunpack.c.h.bf16 %v5762_v41  ;;  %v5716_v60 = vunpack.c.l.bf16 %v5763_v46 }
  0x2b   : > { %437 = vst.msk [vmem:[#allocation2 + $0x140] sm:$0xff] %vm396_vm1, %v5692_v1  ;;  %438 = vst.msk [vmem:[#allocation2 + $0x148] sm:$0xff] %vm396_vm1, %v5693_v5  ;;  %v5717_v0 = vunpack.c.h.bf16 %v5763_v46  ;;  %v5720_v1 = vunpack.c.l.bf16 %v5764_v47  ;;  %v7840_v5 = vsel %vm1834_vm2, %v1860_v33, %v1862_v43  ;;  %v5721_v8 = vunpack.c.h.bf16 %v5764_v47  ;;  %v7848_v14 = vld [vmem:[#allocation2 + $0x90] sm:$0xff]  ;;  %v7877_v40 = vld [vmem:[#allocation2 + $0x98] sm:$0xff] }
  0x2c   : > { %439 = vst.msk [vmem:[#allocation2 + $0x150] sm:$0xff] %vm396_vm1, %v5696_v6  ;;  %9855 = vst [vmem:[#allocation4_spill] sm:$0xff] %v7713_v16  ;;  %6634 = vmatmul.mubr.msk.f32.gmra.mrb[4].mxu0 %vm396_vm1, %v7778_v29  ;;  %v7842_v6 = vld [vmem:[#allocation2 + $0x88] sm:$0xff]  ;;  %v5724_v12 = vunpack.c.l.bf16 %v5723_v52  ;;  %v5725_v13 = vunpack.c.h.bf16 %v5723_v52  ;;  %v5728_v17 = vunpack.c.l.bf16 %v5765_v57  ;;  %v5612_v24 = vunpack.c.l.bf16 %v5611_v58  ;;  %v7880_v41 = vld [vmem:[#allocation2 + $0xa0] sm:$0xff] }
  0x2d   : > { %9856 = vst [vmem:[#allocation5_spill] sm:$0xff] %v7726_v20  ;;  %9857 = vst [vmem:[#allocation6_spill] sm:$0xff] %v7729_v21  ;;  %6293 = vmatmul.mubr.msk.f32.gmra.mrb[6].mxu1 %vm396_vm1, %v7731_v22  ;;  %6636 = vmatprep.mubr.msk.f32.mxu0 %vm396_vm1, %v7784_v31  ;;  %v5613_v3 = vunpack.c.h.bf16 %v5611_v58  ;;  %v7864_v30 = vsel %vm1834_vm2, %v1862_v43, %v1864_v49  ;;  %v1868_v32 = vrot.slane %v7842_v6, 1  ;;  %v5616_v33 = vunpack.c.l.bf16 %v7607_v4  ;;  %v7899_v46 = vld [vmem:[#allocation2 + $0xa8] sm:$0xff]  ;;  %v7901_v47 = vld [vmem:[#allocation2 + $0xb0] sm:$0xff] }
  0x2e   : > { %440 = vst.msk [vmem:[#allocation2 + $0x158] sm:$0xff] %vm396_vm1, %v5697_v19  ;;  %9858 = vst [vmem:[#allocation7_spill] sm:$0xff] %v7748_v23  ;;  %6295 = vmatprep.mubr.msk.f32.mxu1 %vm396_vm1, %v7763_v26  ;;  %v5729_v19 = vunpack.c.h.bf16 %v5765_v57  ;;  %v7874_v35 = vsel %vm1834_vm2, %v1864_v49, %v1866_v50  ;;  %v1870_v38 = vrot.slane %v7848_v14, 1  ;;  %v1872_v43 = vrot.slane %v7877_v40, 1  ;;  %v5767_v58 = vld [vmem:[%s7801_s20 + $0x18] sm:$0xff]  }
  0x2f   : > { %9859 = vst [vmem:[#allocation8_spill] sm:$0xff] %v7760_v25  ;;  %9860 = vst [vmem:[#allocation9_spill] sm:$0xff] %v7778_v29  ;;  %v7890_v4 = vsel %vm1834_vm2, %v1866_v50, %v1868_v32  ;;  %v1876_v50 = vrot.slane %v7899_v46, 1  ;;  %v1878_v52 = vrot.slane %v7901_v47, 1  ;;  %v8048_v7 = vld [vmem:[#allocation2 + $0x118] sm:$0xff] }
  0x30   : > { %9861 = vst [vmem:[#allocation10_spill] sm:$0xff] %v7784_v31  ;;  %9862 = vst [vmem:[#allocation11_spill] sm:$0xff] %v7808_v39  ;;  %6637 = vmatmul.mubr.msk.f32.gmra.mrb[6].mxu0 %vm396_vm1, %v7808_v39  ;;  %v7910_v49 = vsel %vm1834_vm2, %v1870_v38, %v1872_v43 }
  0x31   : > { %9863 = vst [vmem:[#allocation12_spill] sm:$0xff] %v7815_v42  ;;  %9864 = vst [vmem:[#allocation13_spill] sm:$0xff] %v7821_v48  ;;  %6296 = vmatmul.mubr.msk.f32.gmra.mrb[8].mxu1 %vm396_vm1, %v7765_v27  ;;  %6639 = vmatprep.mubr.msk.f32.mxu0 %vm396_vm1, %v7815_v42 }
  0x32   : > { %441 = vst.msk [vmem:[#allocation2 + $0x160] sm:$0xff] %vm396_vm1, %v5700_v44  ;;  %442 = vst.msk [vmem:[#allocation2 + $0x168] sm:$0xff] %vm396_vm1, %v5701_v45  ;;  %6298 = vmatprep.mubr.msk.f32.mxu1 %vm396_vm1, %v7771_v28  ;;  %v7896_v44 = vsel %vm1834_vm2, %v1868_v32, %v1870_v38  ;;  %v1874_v45 = vrot.slane %v7880_v41, 1  ;;  %v7963_v32 = vld [vmem:[#allocation2 + $0xd8] sm:$0xff] }
  0x33   : > { %443 = vst.msk [vmem:[#allocation2 + $0x170] sm:$0xff] %vm396_vm1, %v5704_v51  ;;  %9865 = vst [vmem:[#allocation14_spill] sm:$0xff] %v7840_v5 }
  0x34   : > { %444 = vst.msk [vmem:[#allocation2 + $0x178] sm:$0xff] %vm396_vm1, %v5705_v53  ;;  %445 = vst.msk [vmem:[#allocation2 + $0x180] sm:$0xff] %vm396_vm1, %v5708_v54  ;;  %6640 = vmatmul.mubr.msk.f32.gmra.mrb[8].mxu0 %vm396_vm1, %v7821_v48  ;;  %v7916_v51 = vsel %vm1834_vm2, %v1872_v43, %v1874_v45  ;;  %v7919_v53 = vld [vmem:[#allocation2 + $0xb8] sm:$0xff]  ;;  %v7921_v54 = vld [vmem:[#allocation2 + $0xc0] sm:$0xff]  ;;  %v1888_v43 = vrot.slane %v7963_v32, 1 }
  0x35   : > { %446 = vst.msk [vmem:[#allocation2 + $0x188] sm:$0xff] %vm396_vm1, %v5709_v55  ;;  %447 = vst.msk [vmem:[#allocation2 + $0x190] sm:$0xff] %vm396_vm1, %v5712_v56  ;;  %6299 = vmatmul.mubr.msk.f32.gmra.mrb[10].mxu1 %vm396_vm1, %v7788_v34  ;;  %6642 = vmatprep.mubr.msk.f32.mxu0 %vm396_vm1, %v7840_v5  ;;  %v5766_v55 = vld [vmem:[%s7801_s20 + $0x10] sm:$0xff]   ;;  %v7931_v56 = vsel %vm1834_vm2, %v1874_v45, %v1876_v50  ;;  %v1880_v57 = vrot.slane %v7919_v53, 1 }
  0x36   : > { %448 = vst.msk [vmem:[#allocation2 + $0x198] sm:$0xff] %vm396_vm1, %v5713_v59  ;;  %449 = vst.msk [vmem:[#allocation2 + $0x1a0] sm:$0xff] %vm396_vm1, %v5716_v60  ;;  %6301 = vmatprep.mubr.msk.f32.mxu1 %vm396_vm1, %v7793_v36  ;;  %v7938_v59 = vsel %vm1834_vm2, %v1876_v50, %v1878_v52  ;;  %v1882_v60 = vrot.slane %v7921_v54, 1 }
  0x37   : > { %450 = vst.msk [vmem:[#allocation2 + $0x1a8] sm:$0xff] %vm396_vm1, %v5717_v0  ;;  %451 = vst.msk [vmem:[#allocation2 + $0x1b0] sm:$0xff] %vm396_vm1, %v5720_v1  ;;  %v7941_v0 = vld [vmem:[#allocation2 + $0xc8] sm:$0xff]  ;;  %v5732_v1 = vunpack.c.l.bf16 %v5766_v55 }
  0x38   : > { %452 = vst.msk [vmem:[#allocation2 + $0x1b8] sm:$0xff] %vm396_vm1, %v5721_v8  ;;  %469 = vst.msk [vmem:[#allocation2 + $0x1c0] sm:$0xff] %vm396_vm1, %v5724_v12  ;;  %6643 = vmatmul.mubr.msk.f32.gmra.mrb[10].mxu0 %vm396_vm1, %v7864_v30  ;;  %v7943_v8 = vld [vmem:[#allocation2 + $0xd0] sm:$0xff]  ;;  %v5733_v12 = vunpack.c.h.bf16 %v5766_v55 }
  0x39   : > { %470 = vst.msk [vmem:[#allocation2 + $0x1c8] sm:$0xff] %vm396_vm1, %v5725_v13  ;;  %9866 = vst [vmem:[#allocation15_spill] sm:$0xff] %v7864_v30  ;;  %6302 = vmatmul.mubr.msk.f32.gmra.mrb[12].mxu1 %vm396_vm1, %v7795_v37  ;;  %6645 = vmatprep.mubr.msk.f32.mxu0 %vm396_vm1, %v7874_v35  ;;  %v5736_v13 = vunpack.c.l.bf16 %v5767_v58  ;;  %v7986_v55 = vld [vmem:[#allocation2 + $0xf0] sm:$0xff] }
  0x3a   : > { %471 = vst.msk [vmem:[#allocation2 + $0x1d0] sm:$0xff] %vm396_vm1, %v5728_v17  ;;  %472 = vst.msk [vmem:[#allocation2 + $0x1d8] sm:$0xff] %vm396_vm1, %v5729_v19  ;;  %6304 = vmatprep.mubr.msk.f32.mxu1 %vm396_vm1, %v7842_v6  ;;  %v7953_v17 = vsel %vm1834_vm2, %v1878_v52, %v1880_v57  ;;  %v1884_v19 = vrot.slane %v7941_v0, 1  ;;  %v7984_v52 = vld [vmem:[#allocation2 + $0xe8] sm:$0xff] }
  0x3b   : > { %397 = vst.msk [vmem:[#allocation2] sm:$0xff] %vm396_vm1, %v5612_v24  ;;  %9867 = vst [vmem:[#allocation16_spill] sm:$0xff] %v7874_v35  ;;  %v7960_v24 = vsel %vm1834_vm2, %v1880_v57, %v1882_v60  ;;  %v1892_v58 = vrot.slane %v7984_v52, 1 }
  0x3c   : > { %398 = vst.msk [vmem:[#allocation2 + $0x8] sm:$0xff] %vm396_vm1, %v5613_v3  ;;  %399 = vst.msk [vmem:[#allocation2 + $0x10] sm:$0xff] %vm396_vm1, %v5616_v33  ;;  %6646 = vmatmul.mubr.msk.f32.gmra.mrb[12].mxu0 %vm396_vm1, %v7890_v4  ;;  %v1886_v3 = vrot.slane %v7943_v8, 1  ;;  %v7966_v33 = vld [vmem:[#allocation2 + $0xe0] sm:$0xff]  ;;  %v7975_v38 = vsel %vm1834_vm2, %v1882_v60, %v1884_v19 }
  0x3d   : > { %9868 = vst [vmem:[#allocation17_spill] sm:$0xff] %v7890_v4  ;;  %9869 = vst [vmem:[#allocation18_spill] sm:$0xff] %v7896_v44  ;;  %6305 = vmatmul.mubr.msk.f32.gmra.mrb[14].mxu1 %vm396_vm1, %v7848_v14  ;;  %6648 = vmatprep.mubr.msk.f32.mxu0 %vm396_vm1, %v7896_v44  ;;  %v1890_v50 = vrot.slane %v7966_v33, 1 }
  0x3e   : > { %9870 = vst [vmem:[#allocation19_spill] sm:$0xff] %v7910_v49  ;;  %6307 = vmatprep.mubr.msk.f32.mxu1 %vm396_vm1, %v7877_v40  ;;  %9871 = vst [vmem:[#allocation20_spill] sm:$0xff] %v7916_v51  ;;  %v7981_v45 = vsel %vm1834_vm2, %v1884_v19, %v1886_v3  ;;  %v7995_v57 = vsel %vm1834_vm2, %v1886_v3, %v1888_v43 }
  0x3f   : > { %9872 = vst [vmem:[#allocation21_spill] sm:$0xff] %v7931_v56  ;;  %9873 = vst [vmem:[#allocation22_spill] sm:$0xff] %v7938_v59  ;;  %v8001_v60 = vsel %vm1834_vm2, %v1888_v43, %v1890_v50 }
  0x40   : > { %6649 = vmatmul.mubr.msk.f32.gmra.mrb[14].mxu0 %vm396_vm1, %v7910_v49  ;;  %473 = vst.msk [vmem:[#allocation2 + $0x1e0] sm:$0xff] %vm396_vm1, %v5732_v1  ;;  %9874 = vst [vmem:[#allocation23_spill] sm:$0xff] %v7953_v17  ;;  %v1894_v1 = vrot.slane %v7986_v55, 1  ;;  %v8191_v20 = vld [vmem:[#allocation2 + $0x1c8] sm:$0xff] }
  0x41   : > { %6308 = vmatmul.mubr.msk.f32.gmra.mrb[16].mxu1 %vm396_vm1, %v7880_v41  ;;  %6651 = vmatprep.mubr.msk.f32.mxu0 %vm396_vm1, %v7916_v51  ;;  %474 = vst.msk [vmem:[#allocation2 + $0x1e8] sm:$0xff] %vm396_vm1, %v5733_v12  ;;  %9875 = vst [vmem:[#allocation24_spill] sm:$0xff] %v7960_v24  ;;  %v8004_v12 = vld [vmem:[#allocation2 + $0xf8] sm:$0xff] }
  0x42   : > { %6310 = vmatprep.mubr.msk.f32.mxu1 %vm396_vm1, %v7899_v46  ;;  %475 = vst.msk [vmem:[#allocation2 + $0x1f0] sm:$0xff] %vm396_vm1, %v5736_v13  ;;  %9876 = vst [vmem:[#allocation25_spill] sm:$0xff] %v7975_v38  ;;  %v8013_v13 = vsel %vm1834_vm2, %v1890_v50, %v1892_v58  ;;  %v9702_v19 = vrot.slane %v8004_v12, 1  ;;  %v8019_v3 = vsel %vm1834_vm2, %v1892_v58, %v1894_v1  ;;  %v8034_v50 = vld [vmem:[#allocation2 + $0x100] sm:$0xff]  ;;  %v8036_v58 = vld [vmem:[#allocation2 + $0x108] sm:$0xff] }
  0x43   : > { %9877 = vst [vmem:[#allocation26_spill] sm:$0xff] %v7981_v45  ;;  %9878 = vst [vmem:[#allocation27_spill] sm:$0xff] %v7995_v57  ;;  %v1900_v21 = vrot.slane %v8036_v58, 1 }
  0x44   : > { %6652 = vmatmul.mubr.msk.f32.gmra.mrb[16].mxu0 %vm396_vm1, %v7931_v56  ;;  %9879 = vst [vmem:[#allocation28_spill] sm:$0xff] %v8001_v60  ;;  %9880 = vst [vmem:[#allocation29_spill] sm:$0xff] %v8013_v13  ;;  %v8030_v43 = vsel %vm1834_vm2, %v1894_v1, %v9702_v19  ;;  %v8046_v1 = vld [vmem:[#allocation2 + $0x110] sm:$0xff] }
  0x45   : > { %6311 = vmatmul.mubr.msk.f32.gmra.mrb[18].mxu1 %vm396_vm1, %v7901_v47  ;;  %6654 = vmatprep.mubr.msk.f32.mxu0 %vm396_vm1, %v7938_v59  ;;  %9881 = vst [vmem:[#allocation30_spill] sm:$0xff] %v8019_v3  ;;  %9882 = vst [vmem:[#allocation31_spill] sm:$0xff] %v8030_v43  ;;  %v8055_v19 = vld [vmem:[%s9697_s2 + $0x14] sm:$0xf]  ;;  %v1902_v16 = vrot.slane %v8046_v1, 1 }
  0x46   : > { %6313 = vmatprep.mubr.msk.f32.mxu1 %vm396_vm1, %v7919_v53  ;;  %9883 = vst [vmem:[#allocation32_spill] sm:$0xff] %v8034_v50  ;;  %9884 = vst [vmem:[#allocation33_spill] sm:$0xff] %v8036_v58 }
  0x47   : > { %9885 = vst [vmem:[#allocation34_spill] sm:$0xff] %v8046_v1  ;;  %9886 = vst [vmem:[#allocation35_spill] sm:$0xff] %v8048_v7 }
  0x48   : > { %6655 = vmatmul.mubr.msk.f32.gmra.mrb[18].mxu0 %vm396_vm1, %v7953_v17  ;;  %9887 = vst [vmem:[#allocation36_spill] sm:$0xff] %v8055_v19  ;;  %9890 = vst [vmem:[#allocation39_spill] sm:$0xff] %v8191_v20 }
  0x49   : > { %6314 = vmatmul.mubr.msk.f32.gmra.mrb[20].mxu1 %vm396_vm1, %v7921_v54  ;;  %6657 = vmatprep.mubr.msk.f32.mxu0 %vm396_vm1, %v7960_v24 }
  0x4a   : > { %6316 = vmatprep.mubr.msk.f32.mxu1 %vm396_vm1, %v7941_v0 }
  0x4c   : > { %6658 = vmatmul.mubr.msk.f32.gmra.mrb[20].mxu0 %vm396_vm1, %v7975_v38 }
  0x4d   : > { %6317 = vmatmul.mubr.msk.f32.gmra.mrb[22].mxu1 %vm396_vm1, %v7943_v8  ;;  %6660 = vmatprep.mubr.msk.f32.mxu0 %vm396_vm1, %v7981_v45 }
  0x4e   : > { %6319 = vmatprep.mubr.msk.f32.mxu1 %vm396_vm1, %v7963_v32 }
  0x50   : > { %6661 = vmatmul.mubr.msk.f32.gmra.mrb[22].mxu0 %vm396_vm1, %v7995_v57 }
  0x51   : > { %6320 = vmatmul.mubr.msk.f32.gmra.mrb[24].mxu1 %vm396_vm1, %v7966_v33  ;;  %6663 = vmatprep.mubr.msk.f32.mxu0 %vm396_vm1, %v8001_v60 }
  0x52   : > { %6322 = vmatprep.mubr.msk.f32.mxu1 %vm396_vm1, %v7984_v52 }
  0x54   : > { %6664 = vmatmul.mubr.msk.f32.gmra.mrb[24].mxu0 %vm396_vm1, %v8013_v13 }
  0x55   : > { %6323 = vmatmul.mubr.msk.f32.gmra.mrb[26].mxu1 %vm396_vm1, %v7986_v55  ;;  %6666 = vmatprep.mubr.msk.f32.mxu0 %vm396_vm1, %v8019_v3 }
  0x56   : > { %6325 = vmatprep.mubr.msk.f32.mxu1 %vm396_vm1, %v8004_v12 }
  0x58   : > { %6667 = vmatmul.mubr.msk.f32.gmra.mrb[26].mxu0 %vm396_vm1, %v8030_v43 }
  0x59   : > { %6326 = vmatmul.mubr.msk.f32.gmra.mrb[28].mxu1 %vm396_vm1, %v8034_v50  ;;  %6713 = vmatprep.mubr.msk.f32.mxu0 %vm396_vm1, %v7748_v23  ;;  %v8065_v23 = vld [vmem:[#allocation2 + $0x120] sm:$0xff] }
  0x5a   : > { %6328 = vmatprep.mubr.msk.f32.mxu1 %vm396_vm1, %v8036_v58  ;;  %v8207_v58 = vld [vmem:[#allocation2 + $0x1d0] sm:$0xff] }
  0x5b   : > { %9893 = vst [vmem:[#allocation41_spill] sm:$0xff] %v8207_v58 }
  0x5c   : > { %6714 = vmatmul.mubr.msk.f32.vlgmr.msra.gmra.mrb[0].mxu0 %vm396_vm1, %v7760_v25  ;;  %v8067_v25 = vld [vmem:[#allocation2 + $0x128] sm:$0xff] }
  0x5d   : > { %6798 = vmatpush3.msk.msra.mxu0 %vm711_vm0, %v7740_v2  ;;  %6329 = vmatmul.mubr.msk.f32.gmra.mrb[30].mxu1 %vm396_vm1, %v8046_v1  ;;  %9888 = vst [vmem:[#allocation37_spill] sm:$0xff] %v8067_v25  ;;  %v8079_v2 = vld [vmem:[#allocation2 + $0x130] sm:$0xff] }
  0x5e   : > { %6716 = vmatprep.mubr.msk.f32.mxu0 %vm396_vm1, %v7778_v29  ;;  %6331 = vmatprep.mubr.msk.f32.mxu1 %vm396_vm1, %v8048_v7  ;;  %v8081_v29 = vld [vmem:[#allocation2 + $0x138] sm:$0xff]  ;;  %v8233_v1 = vld [vmem:[#allocation2 + $0x10] sm:$0xff] }
  0x5f   : > { %6883 = vmatprep.subr.msk.mxu0 %vm711_vm0, %v8055_v19  ;;  %v8213_v19 = vld [vmem:[#allocation2] sm:$0xff]  ;;  %9899 = vst [vmem:[#allocation47_spill] sm:$0xff] %v8233_v1 }
  0x60   : > { %6717 = vmatmul.mubr.msk.f32.gmra.mrb[2].mxu0 %vm396_vm1, %v7784_v31  ;;  %v8093_v31 = vld [vmem:[#allocation2 + $0x148] sm:$0xff]  ;;  %9895 = vst [vmem:[#allocation43_spill] sm:$0xff] %v8213_v19 }
  0x61   : > { %6332 = vmatmul.mubr.msk.f32.gmra.mrb[32].mxu1 %vm396_vm1, %v8065_v23  ;;  %6719 = vmatprep.mubr.msk.f32.mxu0 %vm396_vm1, %v7808_v39  ;;  %v8091_v39 = vld [vmem:[#allocation2 + $0x140] sm:$0xff] }
  0x62   : > { %6334 = vmatprep.mubr.msk.f32.mxu1 %vm396_vm1, %v8067_v25 }
  0x64   : > { %6720 = vmatmul.mubr.msk.f32.gmra.mrb[4].mxu0 %vm396_vm1, %v7815_v42  ;;  %v8105_v42 = vld [vmem:[#allocation2 + $0x158] sm:$0xff] }
  0x65   : > { %6335 = vmatmul.mubr.msk.f32.gmra.mrb[34].mxu1 %vm396_vm1, %v8079_v2  ;;  %6722 = vmatprep.mubr.msk.f32.mxu0 %vm396_vm1, %v7821_v48  ;;  %v8103_v48 = vld [vmem:[#allocation2 + $0x150] sm:$0xff] }
  0x66   : > { %6337 = vmatprep.mubr.msk.f32.mxu1 %vm396_vm1, %v8081_v29 }
  0x68   : > { %6723 = vmatmul.mubr.msk.f32.gmra.mrb[6].mxu0 %vm396_vm1, %v7840_v5  ;;  %v8117_v5 = vld [vmem:[#allocation2 + $0x168] sm:$0xff] }
  0x69   : > { %6338 = vmatmul.mubr.msk.f32.gmra.mrb[36].mxu1 %vm396_vm1, %v8091_v39  ;;  %6725 = vmatprep.mubr.msk.f32.mxu0 %vm396_vm1, %v7864_v30  ;;  %v8115_v30 = vld [vmem:[#allocation2 + $0x160] sm:$0xff] }
  0x6a   : > { %6340 = vmatprep.mubr.msk.f32.mxu1 %vm396_vm1, %v8093_v31 }
  0x6c   : > { %6726 = vmatmul.mubr.msk.f32.gmra.mrb[8].mxu0 %vm396_vm1, %v7874_v35  ;;  %v8129_v35 = vld [vmem:[#allocation2 + $0x178] sm:$0xff] }
  0x6d   : > { %6341 = vmatmul.mubr.msk.f32.gmra.mrb[38].mxu1 %vm396_vm1, %v8103_v48  ;;  %6728 = vmatprep.mubr.msk.f32.mxu0 %vm396_vm1, %v7890_v4  ;;  %v8127_v4 = vld [vmem:[#allocation2 + $0x170] sm:$0xff] }
  0x6e   : > { %6343 = vmatprep.mubr.msk.f32.mxu1 %vm396_vm1, %v8105_v42 }
  0x70   : > { %6729 = vmatmul.mubr.msk.f32.gmra.mrb[10].mxu0 %vm396_vm1, %v7896_v44  ;;  %v8141_v44 = vld [vmem:[#allocation2 + $0x188] sm:$0xff] }
  0x71   : > { %6344 = vmatmul.mubr.msk.f32.gmra.mrb[40].mxu1 %vm396_vm1, %v8115_v30  ;;  %6731 = vmatprep.mubr.msk.f32.mxu0 %vm396_vm1, %v7910_v49  ;;  %v8139_v49 = vld [vmem:[#allocation2 + $0x180] sm:$0xff] }
  0x72   : > { %6346 = vmatprep.mubr.msk.f32.mxu1 %vm396_vm1, %v8117_v5 }
  0x74   : > { %6732 = vmatmul.mubr.msk.f32.gmra.mrb[12].mxu0 %vm396_vm1, %v7916_v51  ;;  %v8153_v51 = vld [vmem:[#allocation2 + $0x198] sm:$0xff] }
  0x75   : > { %6347 = vmatmul.mubr.msk.f32.gmra.mrb[42].mxu1 %vm396_vm1, %v8127_v4  ;;  %6734 = vmatprep.mubr.msk.f32.mxu0 %vm396_vm1, %v7931_v56  ;;  %v8151_v56 = vld [vmem:[#allocation2 + $0x190] sm:$0xff] }
  0x76   : > { %6349 = vmatprep.mubr.msk.f32.mxu1 %vm396_vm1, %v8129_v35 }
  0x78   : > { %6735 = vmatmul.mubr.msk.f32.gmra.mrb[14].mxu0 %vm396_vm1, %v7938_v59  ;;  %v8165_v59 = vld [vmem:[#allocation2 + $0x1a8] sm:$0xff] }
  0x79   : > { %6350 = vmatmul.mubr.msk.f32.gmra.mrb[44].mxu1 %vm396_vm1, %v8139_v49  ;;  %6737 = vmatprep.mubr.msk.f32.mxu0 %vm396_vm1, %v7953_v17  ;;  %v8163_v17 = vld [vmem:[#allocation2 + $0x1a0] sm:$0xff] }
  0x7a   : > { %6352 = vmatprep.mubr.msk.f32.mxu1 %vm396_vm1, %v8141_v44 }
  0x7c   : > { %6738 = vmatmul.mubr.msk.f32.gmra.mrb[16].mxu0 %vm396_vm1, %v7960_v24  ;;  %v8177_v24 = vld [vmem:[#allocation2 + $0x1b8] sm:$0xff] }
  0x7d   : > { %6353 = vmatmul.mubr.msk.f32.gmra.mrb[46].mxu1 %vm396_vm1, %v8151_v56  ;;  %6740 = vmatprep.mubr.msk.f32.mxu0 %vm396_vm1, %v7975_v38  ;;  %v8175_v38 = vld [vmem:[#allocation2 + $0x1b0] sm:$0xff] }
  0x7e   : > { %6355 = vmatprep.mubr.msk.f32.mxu1 %vm396_vm1, %v8153_v51 }
  0x80   : > { %6741 = vmatmul.mubr.msk.f32.gmra.mrb[18].mxu0 %vm396_vm1, %v7981_v45  ;;  %v1898_v45 = vrot.slane %v8034_v50, 1  ;;  %v1904_v50 = vrot.slane %v8048_v7, 1 }
  0x81   : > { %6356 = vmatmul.mubr.msk.f32.gmra.mrb[48].mxu1 %vm396_vm1, %v8163_v17  ;;  %6743 = vmatprep.mubr.msk.f32.mxu0 %vm396_vm1, %v7995_v57  ;;  %v8188_v57 = vld [vmem:[#allocation2 + $0x1c0] sm:$0xff] }
  0x82   : > { %6358 = vmatprep.mubr.msk.f32.mxu1 %vm396_vm1, %v8165_v59  ;;  %9889 = vst [vmem:[#allocation38_spill] sm:$0xff] %v8188_v57  ;;  %v8230_v7 = vsel %vm1834_vm2, %v1902_v16, %v1904_v50 }
  0x83   : > { %9898 = vst [vmem:[#allocation46_spill] sm:$0xff] %v8230_v7 }
  0x84   : > { %6744 = vmatmul.mubr.msk.f32.gmra.mrb[20].mxu0 %vm396_vm1, %v8001_v60 }
  0x85   : > { %6359 = vmatmul.mubr.msk.f32.gmra.mrb[50].mxu1 %vm396_vm1, %v8175_v38  ;;  %6746 = vmatprep.mubr.msk.f32.mxu0 %vm396_vm1, %v8013_v13  ;;  %v9891_v13 = vrot.slane %v8004_v12, 1 }
  0x86   : > { %6361 = vmatprep.mubr.msk.f32.mxu1 %vm396_vm1, %v8177_v24 }
  0x87   : > { %v8202_v60 = vsel %vm1834_vm2, %v9891_v13, %v1898_v45  ;;  %v8222_v13 = vsel %vm1834_vm2, %v1900_v21, %v1902_v16 }
  0x88   : > { %6747 = vmatmul.mubr.msk.f32.gmra.mrb[22].mxu0 %vm396_vm1, %v8019_v3  ;;  %9892 = vst [vmem:[#allocation40_spill] sm:$0xff] %v8202_v60  ;;  %v8210_v3 = vsel %vm1834_vm2, %v1898_v45, %v1900_v21  ;;  %9896 = vst [vmem:[#allocation44_spill] sm:$0xff] %v8222_v13  ;;  %v8227_v45 = vld [vmem:[#allocation2 + $0x8] sm:$0xff]  ;;  %v8240_v21 = vld [vmem:[%s9697_s2 + $0x4] sm:$0xf] }
  0x89   : > { %6362 = vmatmul.mubr.msk.f32.gmra.mrb[52].mxu1 %vm396_vm1, %v8188_v57  ;;  %6749 = vmatprep.mubr.msk.f32.mxu0 %vm396_vm1, %v8030_v43  ;;  %9894 = vst [vmem:[#allocation42_spill] sm:$0xff] %v8210_v3  ;;  %v1906_v43 = vrot.slane %v8065_v23, 1  ;;  %9897 = vst [vmem:[#allocation45_spill] sm:$0xff] %v8227_v45 }
  0x8a   : > { %6364 = vmatprep.mubr.msk.f32.mxu1 %vm396_vm1, %v8191_v20 }
  0x8b   : > { %v8247_v16 = vsel %vm1834_vm2, %v1904_v50, %v1906_v43 }
  0x8c   : > { %6750 = vmatmul.mubr.msk.f32.gmra.mrb[24].mxu0 %vm396_vm1, %v8202_v60  ;;  %v1908_v60 = vrot.slane %v8067_v25, 1  ;;  %9900 = vst [vmem:[#allocation48_spill] sm:$0xff] %v8247_v16  ;;  %v1912_v25 = vrot.slane %v8081_v29, 1 }
  0x8d   : > { %6365 = vmatmul.mubr.msk.f32.gmra.mrb[54].mxu1 %vm396_vm1, %v8207_v58  ;;  %6752 = vmatprep.mubr.msk.f32.mxu0 %vm396_vm1, %v8210_v3  ;;  %v1910_v3 = vrot.slane %v8079_v2, 1 }
  0x8e   : > { %6369 = vmatprep.mubr.msk.f32.mxu1 %vm396_vm1, %v8213_v19 }
  0x8f   : > { %v8267_v50 = vsel %vm1834_vm2, %v1908_v60, %v1910_v3 }
  0x90   : > { %6753 = vmatmul.mubr.msk.f32.gmra.mrb[26].mxu0 %vm396_vm1, %v8222_v13  ;;  %v8255_v13 = vsel %vm1834_vm2, %v1906_v43, %v1908_v60  ;;  %9902 = vst [vmem:[#allocation50_spill] sm:$0xff] %v8267_v50  ;;  %v8273_v43 = vsel %vm1834_vm2, %v1910_v3, %v1912_v25 }
  0x91   : > { %6370 = vmatmul.mubr.msk.f32.vlgmr.msra.gmra.mrb[0].mxu1 %vm396_vm1, %v8227_v45  ;;  %6755 = vmatprep.mubr.msk.f32.mxu0 %vm396_vm1, %v8230_v7  ;;  %9901 = vst [vmem:[#allocation49_spill] sm:$0xff] %v8255_v13  ;;  %9903 = vst [vmem:[#allocation51_spill] sm:$0xff] %v8273_v43  ;;  %v1916_v7 = vrot.slane %v8093_v31, 1 }
  0x92   : > { %6372 = vmatprep.mubr.msk.f32.mxu1 %vm396_vm1, %v8233_v1  ;;  %6454 = vmatpush3.msk.msra.mxu1 %vm711_vm0, %v7691_v11  ;;  %v1914_v11 = vrot.slane %v8091_v39, 1 }
  0x93   : > { %6539 = vmatprep.subr.msk.mxu1 %vm711_vm0, %v8240_v21 }
  0x94   : > { %6756 = vmatmul.mubr.msk.f32.gmra.mrb[28].mxu0 %vm396_vm1, %v8247_v16  ;;  %v8283_v60 = vsel %vm1834_vm2, %v1912_v25, %v1914_v11  ;;  %v8289_v3 = vsel %vm1834_vm2, %v1914_v11, %v1916_v7  ;;  %v1920_v16 = vrot.slane %v8105_v42, 1 }
  0x95   : > { %6373 = vmatmul.mubr.msk.f32.gmra.mrb[2].mxu1 %vm396_vm1, %v7665_v61  ;;  %6758 = vmatprep.mubr.msk.f32.mxu0 %vm396_vm1, %v8255_v13  ;;  %9904 = vst [vmem:[#allocation52_spill] sm:$0xff] %v8283_v60  ;;  %v1918_v13 = vrot.slane %v8103_v48, 1  ;;  %9905 = vst [vmem:[#allocation53_spill] sm:$0xff] %v8289_v3 }
  0x96   : > { %6375 = vmatprep.mubr.msk.f32.mxu1 %vm396_vm1, %v7667_v62 }
  0x97   : > { %v8299_v25 = vsel %vm1834_vm2, %v1916_v7, %v1918_v13  ;;  %v8305_v11 = vsel %vm1834_vm2, %v1918_v13, %v1920_v16 }
  0x98   : > { %6759 = vmatmul.mubr.msk.f32.gmra.mrb[30].mxu0 %vm396_vm1, %v8267_v50  ;;  %9906 = vst [vmem:[#allocation54_spill] sm:$0xff] %v8299_v25  ;;  %9907 = vst [vmem:[#allocation55_spill] sm:$0xff] %v8305_v11  ;;  %v1924_v50 = vrot.slane %v8117_v5, 1 }
  0x99   : > { %6376 = vmatmul.mubr.msk.f32.gmra.mrb[4].mxu1 %vm396_vm1, %v7669_v63  ;;  %6761 = vmatprep.mubr.msk.f32.mxu0 %vm396_vm1, %v8273_v43  ;;  %v1922_v43 = vrot.slane %v8115_v30, 1 }
  0x9a   : > { %6378 = vmatprep.mubr.msk.f32.mxu1 %vm396_vm1, %v7680_v9 }
  0x9b   : > { %v8315_v7 = vsel %vm1834_vm2, %v1920_v16, %v1922_v43  ;;  %v8321_v13 = vsel %vm1834_vm2, %v1922_v43, %v1924_v50 }
  0x9c   : > { %6762 = vmatmul.mubr.msk.f32.gmra.mrb[32].mxu0 %vm396_vm1, %v8283_v60  ;;  %9908 = vst [vmem:[#allocation56_spill] sm:$0xff] %v8315_v7  ;;  %9909 = vst [vmem:[#allocation57_spill] sm:$0xff] %v8321_v13  ;;  %v1928_v60 = vrot.slane %v8129_v35, 1 }
  0x9d   : > { %6379 = vmatmul.mubr.msk.f32.gmra.mrb[6].mxu1 %vm396_vm1, %v7682_v10  ;;  %6764 = vmatprep.mubr.msk.f32.mxu0 %vm396_vm1, %v8289_v3  ;;  %v1926_v3 = vrot.slane %v8127_v4, 1 }
  0x9e   : > { %6381 = vmatprep.mubr.msk.f32.mxu1 %vm396_vm1, %v7698_v15 }
  0x9f   : > { %v8331_v16 = vsel %vm1834_vm2, %v1924_v50, %v1926_v3  ;;  %v8337_v43 = vsel %vm1834_vm2, %v1926_v3, %v1928_v60 }
  0xa0   : > { %6765 = vmatmul.mubr.msk.f32.gmra.mrb[34].mxu0 %vm396_vm1, %v8299_v25  ;;  %9910 = vst [vmem:[#allocation58_spill] sm:$0xff] %v8331_v16  ;;  %9911 = vst [vmem:[#allocation59_spill] sm:$0xff] %v8337_v43  ;;  %v1932_v25 = vrot.slane %v8141_v44, 1 }
  0xa1   : > { %6382 = vmatmul.mubr.msk.f32.gmra.mrb[8].mxu1 %vm396_vm1, %v7720_v18  ;;  %6767 = vmatprep.mubr.msk.f32.mxu0 %vm396_vm1, %v8305_v11  ;;  %v1930_v11 = vrot.slane %v8139_v49, 1 }
  0xa2   : > { %6384 = vmatprep.mubr.msk.f32.mxu1 %vm396_vm1, %v7731_v22 }
  0xa3   : > { %v8347_v50 = vsel %vm1834_vm2, %v1928_v60, %v1930_v11  ;;  %v8353_v3 = vsel %vm1834_vm2, %v1930_v11, %v1932_v25 }
  0xa4   : > { %6768 = vmatmul.mubr.msk.f32.gmra.mrb[36].mxu0 %vm396_vm1, %v8315_v7  ;;  %9912 = vst [vmem:[#allocation60_spill] sm:$0xff] %v8347_v50  ;;  %9913 = vst [vmem:[#allocation61_spill] sm:$0xff] %v8353_v3  ;;  %v1936_v7 = vrot.slane %v8153_v51, 1 }
  0xa5   : > { %6385 = vmatmul.mubr.msk.f32.gmra.mrb[10].mxu1 %vm396_vm1, %v7763_v26  ;;  %6770 = vmatprep.mubr.msk.f32.mxu0 %vm396_vm1, %v8321_v13  ;;  %v1934_v13 = vrot.slane %v8151_v56, 1 }
  0xa6   : > { %6387 = vmatprep.mubr.msk.f32.mxu1 %vm396_vm1, %v7765_v27 }
  0xa7   : > { %v8363_v60 = vsel %vm1834_vm2, %v1932_v25, %v1934_v13  ;;  %v8369_v11 = vsel %vm1834_vm2, %v1934_v13, %v1936_v7 }
  0xa8   : > { %6771 = vmatmul.mubr.msk.f32.gmra.mrb[38].mxu0 %vm396_vm1, %v8331_v16  ;;  %9914 = vst [vmem:[#allocation62_spill] sm:$0xff] %v8363_v60  ;;  %9915 = vst [vmem:[#allocation63_spill] sm:$0xff] %v8369_v11  ;;  %v1940_v16 = vrot.slane %v8165_v59, 1 }
  0xa9   : > { %6388 = vmatmul.mubr.msk.f32.gmra.mrb[12].mxu1 %vm396_vm1, %v7771_v28  ;;  %6773 = vmatprep.mubr.msk.f32.mxu0 %vm396_vm1, %v8337_v43  ;;  %v1938_v43 = vrot.slane %v8163_v17, 1 }
  0xaa   : > { %6390 = vmatprep.mubr.msk.f32.mxu1 %vm396_vm1, %v7788_v34 }
  0xab   : > { %v8379_v25 = vsel %vm1834_vm2, %v1936_v7, %v1938_v43  ;;  %v8385_v13 = vsel %vm1834_vm2, %v1938_v43, %v1940_v16 }
  0xac   : > { %6774 = vmatmul.mubr.msk.f32.gmra.mrb[40].mxu0 %vm396_vm1, %v8347_v50  ;;  %9916 = vst [vmem:[#allocation64_spill] sm:$0xff] %v8379_v25  ;;  %9917 = vst [vmem:[#allocation65_spill] sm:$0xff] %v8385_v13  ;;  %v1944_v50 = vrot.slane %v8177_v24, 1 }
  0xad   : > { %6391 = vmatmul.mubr.msk.f32.gmra.mrb[14].mxu1 %vm396_vm1, %v7793_v36  ;;  %6776 = vmatprep.mubr.msk.f32.mxu0 %vm396_vm1, %v8353_v3  ;;  %v1942_v3 = vrot.slane %v8175_v38, 1 }
  0xae   : > { %6393 = vmatprep.mubr.msk.f32.mxu1 %vm396_vm1, %v7795_v37 }
  0xaf   : > { %v8396_v7 = vsel %vm1834_vm2, %v1940_v16, %v1942_v3  ;;  %v8402_v43 = vsel %vm1834_vm2, %v1942_v3, %v1944_v50 }
  0xb0   : > { %6777 = vmatmul.mubr.msk.f32.gmra.mrb[42].mxu0 %vm396_vm1, %v8363_v60  ;;  %v1946_v60 = vrot.slane %v8188_v57, 1  ;;  %9918 = vst [vmem:[#allocation66_spill] sm:$0xff] %v8396_v7  ;;  %9919 = vst [vmem:[#allocation67_spill] sm:$0xff] %v8402_v43  ;;  %v2468_v57 = vrot.slane %v8207_v58, 1  ;;  %v8424_v58 = vld [vmem:[#allocation2 + $0x1e8] sm:$0xff] }
  0xb1   : > { %6394 = vmatmul.mubr.msk.f32.gmra.mrb[16].mxu1 %vm396_vm1, %v7842_v6  ;;  %6779 = vmatprep.mubr.msk.f32.mxu0 %vm396_vm1, %v8369_v11  ;;  %v2466_v11 = vrot.slane %v8191_v20, 1  ;;  %9924 = vst [vmem:[#allocation72_spill] sm:$0xff] %v8424_v58  ;;  %v3349_v20 = vrot.slane %v7919_v53, 2 }
  0xb2   : > { %6396 = vmatprep.mubr.msk.f32.mxu1 %vm396_vm1, %v7848_v14  ;;  %v8414_v16 = vsel %vm1834_vm2, %v1944_v50, %v1946_v60 }
  0xb3   : > { %9921 = vst [vmem:[#allocation69_spill] sm:$0xff] %v8414_v16  ;;  %v8419_v3 = vsel %vm1834_vm2, %v1946_v60, %v2466_v11  ;;  %v8433_v50 = vsel %vm1834_vm2, %v2466_v11, %v2468_v57 }
  0xb4   : > { %6780 = vmatmul.mubr.msk.f32.gmra.mrb[44].mxu0 %vm396_vm1, %v8379_v25  ;;  %v8404_v25 = vld [vmem:[#allocation2 + $0x1d8] sm:$0xff]  ;;  %9922 = vst [vmem:[#allocation70_spill] sm:$0xff] %v8419_v3  ;;  %9925 = vst [vmem:[#allocation73_spill] sm:$0xff] %v8433_v50 }
  0xb5   : > { %6397 = vmatmul.mubr.msk.f32.gmra.mrb[18].mxu1 %vm396_vm1, %v7877_v40  ;;  %6782 = vmatprep.mubr.msk.f32.mxu0 %vm396_vm1, %v8385_v13  ;;  %9920 = vst [vmem:[#allocation68_spill] sm:$0xff] %v8404_v25  ;;  %v2470_v13 = vrot.slane %v8404_v25, 1  ;;  %v2887_v25 = vrot.slane %v8424_v58, 1 }
  0xb6   : > { %6399 = vmatprep.mubr.msk.f32.mxu1 %vm396_vm1, %v7880_v41 }
  0xb8   : > { %6783 = vmatmul.mubr.msk.f32.gmra.mrb[46].mxu0 %vm396_vm1, %v8396_v7  ;;  %v8422_v7 = vld [vmem:[#allocation2 + $0x1e0] sm:$0xff] }
  0xb9   : > { %6400 = vmatmul.mubr.msk.f32.gmra.mrb[20].mxu1 %vm396_vm1, %v7899_v46  ;;  %6785 = vmatprep.mubr.msk.f32.mxu0 %vm396_vm1, %v8402_v43  ;;  %9923 = vst [vmem:[#allocation71_spill] sm:$0xff] %v8422_v7  ;;  %v2885_v60 = vrot.slane %v8422_v7, 1  ;;  %v8439_v43 = vsel %vm1834_vm2, %v2468_v57, %v2470_v13  ;;  %v3304_v57 = vrot.slane %v8213_v19, 2  ;;  %v3305_v7 = vrot.slane %v8227_v45, 2 }
  0xba   : > { %6402 = vmatprep.mubr.msk.f32.mxu1 %vm396_vm1, %v7901_v47  ;;  %9926 = vst [vmem:[#allocation74_spill] sm:$0xff] %v8439_v43  ;;  %v3345_v45 = vrot.slane %v7899_v46, 2  ;;  %v3347_v19 = vrot.slane %v7901_v47, 2 }
  0xbb   : > { %v2886_v11 = vsel %vm1834_vm2, %v2470_v13, %v2885_v60  ;;  %v2888_v58 = vsel %vm1834_vm2, %v2885_v60, %v2887_v25  ;;  %v3309_v60 = vrot.slane %v7665_v61, 2  ;;  %v3341_v61 = vrot.slane %v7877_v40, 2 }
  0xbc   : > { %6786 = vmatmul.mubr.msk.f32.gmra.mrb[48].mxu0 %vm396_vm1, %v8414_v16  ;;  %v8442_v16 = vld [vmem:[#allocation2 + $0x1f0] sm:$0xff] }
  0xbd   : > { %6403 = vmatmul.mubr.msk.f32.gmra.mrb[22].mxu1 %vm396_vm1, %v7919_v53  ;;  %6788 = vmatprep.mubr.msk.f32.mxu0 %vm396_vm1, %v8419_v3  ;;  %9927 = vst [vmem:[#allocation75_spill] sm:$0xff] %v8442_v16  ;;  %v2889_v3 = vrot.slane %v8442_v16, 1  ;;  %v9933_v16 = vld [vmem:[#allocation37_spill] sm:$0xff] }
  0xbe   : > { %6405 = vmatprep.mubr.msk.f32.mxu1 %vm396_vm1, %v7921_v54 }
  0xbf   : > { %v2890_v13 = vsel %vm1834_vm2, %v2887_v25, %v2889_v3  ;;  %v3313_v25 = vrot.slane %v7669_v63, 2 }
  0xc0   : > { %6789 = vmatmul.mubr.msk.f32.gmra.mrb[50].mxu0 %vm396_vm1, %v8433_v50  ;;  %v3307_v50 = vrot.slane %v8233_v1, 2  ;;  %v3343_v1 = vrot.slane %v7880_v41, 2 }
  0xc1   : > { %6406 = vmatmul.mubr.msk.f32.gmra.mrb[24].mxu1 %vm396_vm1, %v7941_v0  ;;  %6791 = vmatprep.mubr.msk.f32.mxu0 %vm396_vm1, %v8439_v43  ;;  %v3306_v43 = vsel %vm3303_vm3, %v3304_v57, %v3305_v7  ;;  %v9928_v57 = vld [vmem:[#allocation36_spill] sm:$0xff] }
  0xc2   : > { %6408 = vmatprep.mubr.msk.f32.mxu1 %vm396_vm1, %v7943_v8  ;;  %v3310_v3 = vsel %vm3303_vm3, %v3307_v50, %v3309_v60 }
  0xc4   : > { %6792 = vmatmul.mubr.msk.f32.gmra.mrb[52].mxu0 %vm396_vm1, %v2886_v11  ;;  %v3311_v11 = vrot.slane %v7667_v62, 2  ;;  %v8481_v62 = vld [vmem:[%s9697_s2 + $0x20] sm:$0xf] }
  0xc5   : > { %6409 = vmatmul.mubr.msk.f32.gmra.mrb[26].mxu1 %vm396_vm1, %v7963_v32  ;;  %6794 = vmatprep.mubr.msk.f32.mxu0 %vm396_vm1, %v2888_v58  ;;  %v3308_v58 = vsel %vm3303_vm3, %v3305_v7, %v3307_v50  ;;  %v3315_v7 = vrot.slane %v7680_v9, 2 }
  0xc6   : > { %6411 = vmatprep.mubr.msk.f32.mxu1 %vm396_vm1, %v7966_v33  ;;  %v8488_v63 = vsel %vm3303_vm3, %v3309_v60, %v3311_v11  ;;  %v8495_v50 = vsel %vm3303_vm3, %v3311_v11, %v3313_v25  ;;  %v9930_v60 = vld [vmem:[#allocation33_spill] sm:$0xff]  ;;  %v3319_v11 = vrot.slane %v7698_v15, 2  ;;  %v3323_v15 = vrot.slane %v7731_v22, 2 }
  0xc7   : > { %v8507_v9 = vsel %vm3303_vm3, %v3313_v25, %v3315_v7  ;;  %v3327_v22 = vrot.slane %v7765_v27, 2  ;;  %v3331_v27 = vrot.slane %v7788_v34, 2  ;;  %v3335_v34 = vrot.slane %v7795_v37, 2 }
  0xc8   : > { %6795 = vmatmul.mubr.msk.f32.gmra.mrb[54].mxu0 %vm396_vm1, %v2890_v13  ;;  %v3317_v13 = vrot.slane %v7682_v10, 2  ;;  %v3339_v37 = vrot.slane %v7848_v14, 2 }
  0xc9   : > { %6412 = vmatmul.mubr.msk.f32.gmra.mrb[28].mxu1 %vm396_vm1, %v7984_v52  ;;  %6799 = vmatprep.mubr.msk.f32.mxu0 %vm396_vm1, %v3306_v43  ;;  %v9929_v43 = vld [vmem:[#allocation32_spill] sm:$0xff] }
  0xca   : > { %6414 = vmatprep.mubr.msk.f32.mxu1 %vm396_vm1, %v7986_v55  ;;  %v8513_v10 = vsel %vm3303_vm3, %v3315_v7, %v3317_v13  ;;  %v8523_v25 = vsel %vm3303_vm3, %v3317_v13, %v3319_v11 }
  0xcc   : > { %6800 = vmatmul.mubr.msk.f32.vlgmr.msra.gmra.mrb[0].mxu0 %vm396_vm1, %v3308_v58  ;;  %v9931_v58 = vld [vmem:[#allocation34_spill] sm:$0xff] }
  0xcd   : > { %6884 = vmatpush3.msk.msra.mxu0 %vm711_vm0, %v9928_v57  ;;  %6415 = vmatmul.mubr.msk.f32.gmra.mrb[30].mxu1 %vm396_vm1, %v8004_v12  ;;  %v9932_v57 = vld [vmem:[#allocation35_spill] sm:$0xff] }
  0xce   : > { %6802 = vmatprep.mubr.msk.f32.mxu0 %vm396_vm1, %v3310_v3  ;;  %6417 = vmatprep.mubr.msk.f32.mxu1 %vm396_vm1, %v9929_v43  ;;  %v3321_v3 = vrot.slane %v7720_v18, 2  ;;  %v3325_v18 = vrot.slane %v7763_v26, 2  ;;  %v3329_v26 = vrot.slane %v7771_v28, 2  ;;  %v3333_v28 = vrot.slane %v7793_v36, 2 }
  0xcf   : > { %6969 = vmatprep.subr.msk.mxu0 %vm711_vm0, %v8481_v62  ;;  %v3337_v36 = vrot.slane %v7842_v6, 2 }
  0xd0   : > { %6803 = vmatmul.mubr.msk.f32.gmra.mrb[2].mxu0 %vm396_vm1, %v8488_v63  ;;  %v8529_v7 = vsel %vm3303_vm3, %v3319_v11, %v3321_v3  ;;  %v8539_v13 = vsel %vm3303_vm3, %v3321_v3, %v3323_v15  ;;  %v8545_v11 = vsel %vm3303_vm3, %v3323_v15, %v3325_v18  ;;  %v8555_v3 = vsel %vm3303_vm3, %v3325_v18, %v3327_v22 }
  0xd1   : > { %6418 = vmatmul.mubr.msk.f32.gmra.mrb[32].mxu1 %vm396_vm1, %v9930_v60  ;;  %6805 = vmatprep.mubr.msk.f32.mxu0 %vm396_vm1, %v8495_v50  ;;  %v8561_v15 = vsel %vm3303_vm3, %v3327_v22, %v3329_v26  ;;  %v8571_v18 = vsel %vm3303_vm3, %v3329_v26, %v3331_v27  ;;  %v8577_v22 = vsel %vm3303_vm3, %v3331_v27, %v3333_v28 }
  0xd2   : > { %6420 = vmatprep.mubr.msk.f32.mxu1 %vm396_vm1, %v9931_v58  ;;  %v8587_v26 = vsel %vm3303_vm3, %v3333_v28, %v3335_v34  ;;  %v8593_v27 = vsel %vm3303_vm3, %v3335_v34, %v3337_v36  ;;  %v8603_v28 = vsel %vm3303_vm3, %v3337_v36, %v3339_v37  ;;  %v8609_v34 = vsel %vm3303_vm3, %v3339_v37, %v3341_v61 }
  0xd3   : > { %9934 = vst [vmem:[#allocation36_spill] sm:$0xff] %v8593_v27  ;;  %9935 = vst [vmem:[#allocation32_spill] sm:$0xff] %v8603_v28  ;;  %v8619_v36 = vsel %vm3303_vm3, %v3341_v61, %v3343_v1  ;;  %v8625_v37 = vsel %vm3303_vm3, %v3343_v1, %v3345_v45  ;;  %v8635_v61 = vsel %vm3303_vm3, %v3345_v45, %v3347_v19 }
  0xd4   : > { %6806 = vmatmul.mubr.msk.f32.gmra.mrb[4].mxu0 %vm396_vm1, %v8507_v9  ;;  %9936 = vst [vmem:[#allocation33_spill] sm:$0xff] %v8609_v34  ;;  %9937 = vst [vmem:[#allocation34_spill] sm:$0xff] %v8619_v36  ;;  %v8641_v1 = vsel %vm3303_vm3, %v3347_v19, %v3349_v20 }
  0xd5   : > { %6421 = vmatmul.mubr.msk.f32.gmra.mrb[34].mxu1 %vm396_vm1, %v9932_v57  ;;  %6808 = vmatprep.mubr.msk.f32.mxu0 %vm396_vm1, %v8513_v10  ;;  %9938 = vst [vmem:[#allocation35_spill] sm:$0xff] %v8625_v37  ;;  %9939 = vst [vmem:[#allocation37_spill] sm:$0xff] %v8635_v61 }
  0xd6   : > { %6423 = vmatprep.mubr.msk.f32.mxu1 %vm396_vm1, %v8065_v23  ;;  %9940 = vst [vmem:[#allocation76_spill] sm:$0xff] %v8641_v1 }
  0xd8   : > { %6809 = vmatmul.mubr.msk.f32.gmra.mrb[6].mxu0 %vm396_vm1, %v8523_v25 }
  0xd9   : > { %6424 = vmatmul.mubr.msk.f32.gmra.mrb[36].mxu1 %vm396_vm1, %v9933_v16  ;;  %6811 = vmatprep.mubr.msk.f32.mxu0 %vm396_vm1, %v8529_v7 }
  0xda   : > { %6426 = vmatprep.mubr.msk.f32.mxu1 %vm396_vm1, %v8079_v2 }
  0xdc   : > { %6812 = vmatmul.mubr.msk.f32.gmra.mrb[8].mxu0 %vm396_vm1, %v8539_v13 }
  0xdd   : > { %6427 = vmatmul.mubr.msk.f32.gmra.mrb[38].mxu1 %vm396_vm1, %v8081_v29  ;;  %6814 = vmatprep.mubr.msk.f32.mxu0 %vm396_vm1, %v8545_v11 }
  0xde   : > { %6429 = vmatprep.mubr.msk.f32.mxu1 %vm396_vm1, %v8091_v39 }
  0xe0   : > { %6815 = vmatmul.mubr.msk.f32.gmra.mrb[10].mxu0 %vm396_vm1, %v8555_v3 }
  0xe1   : > { %6430 = vmatmul.mubr.msk.f32.gmra.mrb[40].mxu1 %vm396_vm1, %v8093_v31  ;;  %6817 = vmatprep.mubr.msk.f32.mxu0 %vm396_vm1, %v8561_v15 }
  0xe2   : > { %6432 = vmatprep.mubr.msk.f32.mxu1 %vm396_vm1, %v8103_v48 }
  0xe4   : > { %6818 = vmatmul.mubr.msk.f32.gmra.mrb[12].mxu0 %vm396_vm1, %v8571_v18 }
  0xe5   : > { %6433 = vmatmul.mubr.msk.f32.gmra.mrb[42].mxu1 %vm396_vm1, %v8105_v42  ;;  %6820 = vmatprep.mubr.msk.f32.mxu0 %vm396_vm1, %v8577_v22 }
  0xe6   : > { %6435 = vmatprep.mubr.msk.f32.mxu1 %vm396_vm1, %v8115_v30 }
  0xe8   : > { %6821 = vmatmul.mubr.msk.f32.gmra.mrb[14].mxu0 %vm396_vm1, %v8587_v26 }
  0xe9   : > { %6436 = vmatmul.mubr.msk.f32.gmra.mrb[44].mxu1 %vm396_vm1, %v8117_v5  ;;  %6823 = vmatprep.mubr.msk.f32.mxu0 %vm396_vm1, %v8593_v27  ;;  %v3365_v27 = vrot.slane %v8004_v12, 2 }
  0xea   : > { %6438 = vmatprep.mubr.msk.f32.mxu1 %vm396_vm1, %v8127_v4 }
  0xec   : > { %6824 = vmatmul.mubr.msk.f32.gmra.mrb[16].mxu0 %vm396_vm1, %v8603_v28  ;;  %v3353_v28 = vrot.slane %v7941_v0, 2 }
  0xed   : > { %6439 = vmatmul.mubr.msk.f32.gmra.mrb[46].mxu1 %vm396_vm1, %v8129_v35  ;;  %6826 = vmatprep.mubr.msk.f32.mxu0 %vm396_vm1, %v8609_v34  ;;  %v3351_v34 = vrot.slane %v7921_v54, 2 }
  0xee   : > { %6441 = vmatprep.mubr.msk.f32.mxu1 %vm396_vm1, %v8139_v49 }
  0xef   : > { %v8651_v45 = vsel %vm3303_vm3, %v3349_v20, %v3351_v34  ;;  %v8657_v19 = vsel %vm3303_vm3, %v3351_v34, %v3353_v28 }
  0xf0   : > { %6827 = vmatmul.mubr.msk.f32.gmra.mrb[18].mxu0 %vm396_vm1, %v8619_v36  ;;  %9941 = vst [vmem:[#allocation77_spill] sm:$0xff] %v8651_v45  ;;  %9942 = vst [vmem:[#allocation78_spill] sm:$0xff] %v8657_v19  ;;  %v3357_v36 = vrot.slane %v7963_v32, 2 }
  0xf1   : > { %6442 = vmatmul.mubr.msk.f32.gmra.mrb[48].mxu1 %vm396_vm1, %v8141_v44  ;;  %6829 = vmatprep.mubr.msk.f32.mxu0 %vm396_vm1, %v8625_v37  ;;  %v3355_v37 = vrot.slane %v7943_v8, 2 }
  0xf2   : > { %6444 = vmatprep.mubr.msk.f32.mxu1 %vm396_vm1, %v8151_v56 }
  0xf3   : > { %v8667_v20 = vsel %vm3303_vm3, %v3353_v28, %v3355_v37  ;;  %v8673_v34 = vsel %vm3303_vm3, %v3355_v37, %v3357_v36 }
  0xf4   : > { %6830 = vmatmul.mubr.msk.f32.gmra.mrb[20].mxu0 %vm396_vm1, %v8635_v61  ;;  %9943 = vst [vmem:[#allocation79_spill] sm:$0xff] %v8667_v20  ;;  %9944 = vst [vmem:[#allocation80_spill] sm:$0xff] %v8673_v34  ;;  %v3361_v61 = vrot.slane %v7984_v52, 2 }
  0xf5   : > { %6445 = vmatmul.mubr.msk.f32.gmra.mrb[50].mxu1 %vm396_vm1, %v8153_v51  ;;  %6832 = vmatprep.mubr.msk.f32.mxu0 %vm396_vm1, %v8641_v1  ;;  %v3359_v1 = vrot.slane %v7966_v33, 2 }
  0xf6   : > { %6447 = vmatprep.mubr.msk.f32.mxu1 %vm396_vm1, %v8163_v17 }
  0xf7   : > { %v8683_v28 = vsel %vm3303_vm3, %v3357_v36, %v3359_v1  ;;  %v8688_v37 = vsel %vm3303_vm3, %v3359_v1, %v3361_v61 }
  0xf8   : > { %6833 = vmatmul.mubr.msk.f32.gmra.mrb[22].mxu0 %vm396_vm1, %v8651_v45  ;;  %9945 = vst [vmem:[#allocation81_spill] sm:$0xff] %v8683_v28  ;;  %v7513_v45 = vld [vmem:[#allocation2 + $0x30] sm:$0xff]  ;;  %9946 = vst [vmem:[#allocation82_spill] sm:$0xff] %v8688_v37 }
  0xf9   : > { %6448 = vmatmul.mubr.msk.f32.gmra.mrb[52].mxu1 %vm396_vm1, %v8165_v59  ;;  %6835 = vmatprep.mubr.msk.f32.mxu0 %vm396_vm1, %v8657_v19  ;;  %v3363_v19 = vrot.slane %v7986_v55, 2 }
  0xfa   : > { %6450 = vmatprep.mubr.msk.f32.mxu1 %vm396_vm1, %v8175_v38 }
  0xfb   : > { %v8697_v36 = vsel %vm3303_vm3, %v3361_v61, %v3363_v19  ;;  %v8704_v1 = vsel %vm3303_vm3, %v3363_v19, %v3365_v27  ;;  %v7517_v61 = vld [vmem:[#allocation2 + $0x48] sm:$0xff]  ;;  %v3371_v19 = vrot.slane %v9931_v58, 2 }
  0xfc   : > { %6836 = vmatmul.mubr.msk.f32.gmra.mrb[24].mxu0 %vm396_vm1, %v8667_v20  ;;  %v7514_v20 = vld [vmem:[#allocation2 + $0x38] sm:$0xff]  ;;  %9947 = vst [vmem:[#allocation83_spill] sm:$0xff] %v8697_v36  ;;  %9948 = vst [vmem:[#allocation84_spill] sm:$0xff] %v8704_v1 }
  0xfd   : > { %6451 = vmatmul.mubr.msk.f32.gmra.mrb[54].mxu1 %vm396_vm1, %v8177_v24  ;;  %6838 = vmatprep.mubr.msk.f32.mxu0 %vm396_vm1, %v8673_v34  ;;  %v3367_v34 = vrot.slane %v9929_v43, 2 }
  0xfe   : > { %6455 = vmatprep.mubr.msk.f32.mxu1 %vm396_vm1, %v7513_v45  ;;  %v7515_v45 = vld [vmem:[#allocation2 + $0x40] sm:$0xff] }
 0x100   : > { %6839 = vmatmul.mubr.msk.f32.gmra.mrb[26].mxu0 %vm396_vm1, %v8683_v28  ;;  %v3369_v28 = vrot.slane %v9930_v60, 2 }
 0x101   : > { %6456 = vmatmul.mubr.msk.f32.vlgmr.msra.gmra.mrb[0].mxu1 %vm396_vm1, %v7514_v20  ;;  %6841 = vmatprep.mubr.msk.f32.mxu0 %vm396_vm1, %v8688_v37  ;;  %v8710_v20 = vld [vmem:[%s9697_s2 + $0x10] sm:$0xf] }
 0x102   : > { %6458 = vmatprep.mubr.msk.f32.mxu1 %vm396_vm1, %v7515_v45  ;;  %6540 = vmatpush3.msk.msra.mxu1 %vm711_vm0, %v8240_v21  ;;  %9949 = vst [vmem:[#allocation85_spill] sm:$0xff] %v8710_v20  ;;  %v8720_v21 = vsel %vm3303_vm3, %v3365_v27, %v3367_v34  ;;  %v7518_v45 = vld [vmem:[#allocation2 + $0x50] sm:$0xff]  ;;  %v8725_v37 = vsel %vm3303_vm3, %v3367_v34, %v3369_v28 }
 0x103   : > { %7055 = vmatprep.subr.msk.mxu1 %vm711_vm0, %v8710_v20  ;;  %9950 = vst [vmem:[#allocation86_spill] sm:$0xff] %v8720_v21  ;;  %9951 = vst [vmem:[#allocation87_spill] sm:$0xff] %v8725_v37  ;;  %v3373_v20 = vrot.slane %v9932_v57, 2  ;;  %v8734_v27 = vsel %vm3303_vm3, %v3369_v28, %v3371_v19 }
 0x104   : > { %6842 = vmatmul.mubr.msk.f32.gmra.mrb[28].mxu0 %vm396_vm1, %v8697_v36  ;;  %9952 = vst [vmem:[#allocation88_spill] sm:$0xff] %v8734_v27  ;;  %v3377_v36 = vrot.slane %v9933_v16, 2 }
 0x105   : > { %6459 = vmatmul.mubr.msk.f32.gmra.mrb[2].mxu1 %vm396_vm1, %v7517_v61  ;;  %6844 = vmatprep.mubr.msk.f32.mxu0 %vm396_vm1, %v8704_v1  ;;  %v7519_v61 = vld [vmem:[#allocation2 + $0x58] sm:$0xff]  ;;  %v3375_v1 = vrot.slane %v8065_v23, 2  ;;  %v8739_v34 = vsel %vm3303_vm3, %v3371_v19, %v3373_v20 }
 0x106   : > { %6461 = vmatprep.mubr.msk.f32.mxu1 %vm396_vm1, %v7518_v45  ;;  %v7520_v45 = vld [vmem:[#allocation2 + $0x60] sm:$0xff]  ;;  %9953 = vst [vmem:[#allocation89_spill] sm:$0xff] %v8739_v34 }
 0x107   : > { %v8748_v28 = vsel %vm3303_vm3, %v3373_v20, %v3375_v1  ;;  %v8753_v19 = vsel %vm3303_vm3, %v3375_v1, %v3377_v36 }
 0x108   : > { %6845 = vmatmul.mubr.msk.f32.gmra.mrb[30].mxu0 %vm396_vm1, %v8720_v21  ;;  %v3381_v21 = vrot.slane %v8081_v29, 2 }
 0x109   : > { %6462 = vmatmul.mubr.msk.f32.gmra.mrb[4].mxu1 %vm396_vm1, %v7519_v61  ;;  %6847 = vmatprep.mubr.msk.f32.mxu0 %vm396_vm1, %v8725_v37  ;;  %v7521_v61 = vld [vmem:[#allocation2 + $0x68] sm:$0xff]  ;;  %v3379_v37 = vrot.slane %v8079_v2, 2 }
 0x10a   : > { %6464 = vmatprep.mubr.msk.f32.mxu1 %vm396_vm1, %v7520_v45  ;;  %v7522_v45 = vld [vmem:[#allocation2 + $0x70] sm:$0xff] }
 0x10b   : > { %v8762_v20 = vsel %vm3303_vm3, %v3377_v36, %v3379_v37  ;;  %v8767_v1 = vsel %vm3303_vm3, %v3379_v37, %v3381_v21 }
 0x10c   : > { %6848 = vmatmul.mubr.msk.f32.gmra.mrb[32].mxu0 %vm396_vm1, %v8734_v27  ;;  %v3385_v27 = vrot.slane %v8093_v31, 2 }
 0x10d   : > { %6465 = vmatmul.mubr.msk.f32.gmra.mrb[6].mxu1 %vm396_vm1, %v7521_v61  ;;  %6850 = vmatprep.mubr.msk.f32.mxu0 %vm396_vm1, %v8739_v34  ;;  %v7523_v61 = vld [vmem:[#allocation2 + $0x78] sm:$0xff]  ;;  %v3383_v34 = vrot.slane %v8091_v39, 2 }
 0x10e   : > { %6467 = vmatprep.mubr.msk.f32.mxu1 %vm396_vm1, %v7522_v45  ;;  %v7524_v45 = vld [vmem:[#allocation2 + $0x80] sm:$0xff] }
 0x10f   : > { %v8777_v36 = vsel %vm3303_vm3, %v3381_v21, %v3383_v34  ;;  %v8783_v37 = vsel %vm3303_vm3, %v3383_v34, %v3385_v27  ;;  %v3391_v21 = vrot.slane %v8115_v30, 2  ;;  %v3393_v34 = vrot.slane %v8117_v5, 2 }
 0x110   : > { %6851 = vmatmul.mubr.msk.f32.gmra.mrb[34].mxu0 %vm396_vm1, %v8748_v28 }
 0x111   : > { %6468 = vmatmul.mubr.msk.f32.gmra.mrb[8].mxu1 %vm396_vm1, %v7523_v61  ;;  %6853 = vmatprep.mubr.msk.f32.mxu0 %vm396_vm1, %v8753_v19  ;;  %v3387_v61 = vrot.slane %v8103_v48, 2 }
 0x112   : > { %6470 = vmatprep.mubr.msk.f32.mxu1 %vm396_vm1, %v7524_v45  ;;  %v3389_v45 = vrot.slane %v8105_v42, 2 }
 0x114   : > { %6854 = vmatmul.mubr.msk.f32.gmra.mrb[36].mxu0 %vm396_vm1, %v8762_v20 }
 0x115   : > { %6471 = vmatmul.mubr.msk.f32.gmra.mrb[10].mxu1 %vm396_vm1, %v7842_v6  ;;  %6856 = vmatprep.mubr.msk.f32.mxu0 %vm396_vm1, %v8767_v1  ;;  %v8793_v6 = vsel %vm3303_vm3, %v3385_v27, %v3387_v61  ;;  %v3395_v27 = vrot.slane %v8127_v4, 2 }
 0x116   : > { %6473 = vmatprep.mubr.msk.f32.mxu1 %vm396_vm1, %v7848_v14  ;;  %v8799_v14 = vsel %vm3303_vm3, %v3387_v61, %v3389_v45  ;;  %v3397_v61 = vrot.slane %v8129_v35, 2 }
 0x118   : > { %6857 = vmatmul.mubr.msk.f32.gmra.mrb[38].mxu0 %vm396_vm1, %v8777_v36 }
 0x119   : > { %6474 = vmatmul.mubr.msk.f32.gmra.mrb[12].mxu1 %vm396_vm1, %v7877_v40  ;;  %6859 = vmatprep.mubr.msk.f32.mxu0 %vm396_vm1, %v8783_v37  ;;  %v8809_v40 = vsel %vm3303_vm3, %v3389_v45, %v3391_v21  ;;  %v3399_v45 = vrot.slane %v8139_v49, 2 }
 0x11a   : > { %6476 = vmatprep.mubr.msk.f32.mxu1 %vm396_vm1, %v7880_v41  ;;  %v8815_v41 = vsel %vm3303_vm3, %v3391_v21, %v3393_v34  ;;  %v3401_v21 = vrot.slane %v8141_v44, 2 }
 0x11c   : > { %6860 = vmatmul.mubr.msk.f32.gmra.mrb[40].mxu0 %vm396_vm1, %v8793_v6 }
 0x11d   : > { %6477 = vmatmul.mubr.msk.f32.gmra.mrb[14].mxu1 %vm396_vm1, %v7899_v46  ;;  %6862 = vmatprep.mubr.msk.f32.mxu0 %vm396_vm1, %v8799_v14  ;;  %v8825_v46 = vsel %vm3303_vm3, %v3393_v34, %v3395_v27  ;;  %v3403_v34 = vrot.slane %v8151_v56, 2 }
 0x11e   : > { %6479 = vmatprep.mubr.msk.f32.mxu1 %vm396_vm1, %v7901_v47  ;;  %v8831_v47 = vsel %vm3303_vm3, %v3395_v27, %v3397_v61  ;;  %v3405_v27 = vrot.slane %v8153_v51, 2 }
 0x120   : > { %6863 = vmatmul.mubr.msk.f32.gmra.mrb[42].mxu0 %vm396_vm1, %v8809_v40 }
 0x121   : > { %6480 = vmatmul.mubr.msk.f32.gmra.mrb[16].mxu1 %vm396_vm1, %v7919_v53  ;;  %6865 = vmatprep.mubr.msk.f32.mxu0 %vm396_vm1, %v8815_v41  ;;  %v8841_v53 = vsel %vm3303_vm3, %v3397_v61, %v3399_v45  ;;  %v3407_v61 = vrot.slane %v8163_v17, 2 }
 0x122   : > { %6482 = vmatprep.mubr.msk.f32.mxu1 %vm396_vm1, %v7921_v54  ;;  %v8847_v54 = vsel %vm3303_vm3, %v3399_v45, %v3401_v21  ;;  %v3409_v45 = vrot.slane %v8165_v59, 2 }
 0x124   : > { %6866 = vmatmul.mubr.msk.f32.gmra.mrb[44].mxu0 %vm396_vm1, %v8825_v46 }
 0x125   : > { %6483 = vmatmul.mubr.msk.f32.gmra.mrb[18].mxu1 %vm396_vm1, %v7941_v0  ;;  %6868 = vmatprep.mubr.msk.f32.mxu0 %vm396_vm1, %v8831_v47  ;;  %v8857_v0 = vsel %vm3303_vm3, %v3401_v21, %v3403_v34  ;;  %v3411_v21 = vrot.slane %v8175_v38, 2 }
 0x126   : > { %6485 = vmatprep.mubr.msk.f32.mxu1 %vm396_vm1, %v7943_v8  ;;  %9954 = vst [vmem:[#allocation90_spill] sm:$0xff] %v8857_v0  ;;  %v8863_v8 = vsel %vm3303_vm3, %v3403_v34, %v3405_v27  ;;  %v3413_v34 = vrot.slane %v8177_v24, 2 }
 0x128   : > { %6869 = vmatmul.mubr.msk.f32.gmra.mrb[46].mxu0 %vm396_vm1, %v8841_v53 }
 0x129   : > { %6486 = vmatmul.mubr.msk.f32.gmra.mrb[20].mxu1 %vm396_vm1, %v7963_v32  ;;  %6871 = vmatprep.mubr.msk.f32.mxu0 %vm396_vm1, %v8847_v54  ;;  %v8873_v32 = vsel %vm3303_vm3, %v3405_v27, %v3407_v61  ;;  %v8890_v27 = vsel %vm3303_vm3, %v3409_v45, %v3411_v21 }
 0x12a   : > { %6488 = vmatprep.mubr.msk.f32.mxu1 %vm396_vm1, %v7966_v33  ;;  %v8879_v33 = vsel %vm3303_vm3, %v3407_v61, %v3409_v45 }
 0x12c   : > { %6872 = vmatmul.mubr.msk.f32.gmra.mrb[48].mxu0 %vm396_vm1, %v8857_v0 }
 0x12d   : > { %6489 = vmatmul.mubr.msk.f32.gmra.mrb[22].mxu1 %vm396_vm1, %v7984_v52  ;;  %6874 = vmatprep.mubr.msk.f32.mxu0 %vm396_vm1, %v8863_v8  ;;  %v9955_v52 = vld [vmem:[#allocation38_spill] sm:$0xff] }
 0x12e   : > { %6491 = vmatprep.mubr.msk.f32.mxu1 %vm396_vm1, %v7986_v55  ;;  %v3415_v0 = vrot.slane %v9955_v52, 2  ;;  %v8895_v55 = vsel %vm3303_vm3, %v3411_v21, %v3413_v34  ;;  %v9980_v21 = vld [vmem:[#allocation84_spill] sm:$0xff] }
 0x130   : > { %6875 = vmatmul.mubr.msk.f32.gmra.mrb[50].mxu0 %vm396_vm1, %v8873_v32 }
 0x131   : > { %6492 = vmatmul.mubr.msk.f32.gmra.mrb[24].mxu1 %vm396_vm1, %v8004_v12  ;;  %6877 = vmatprep.mubr.msk.f32.mxu0 %vm396_vm1, %v8879_v33  ;;  %v8906_v12 = vsel %vm3303_vm3, %v3413_v34, %v3415_v0  ;;  %v9981_v34 = vld [vmem:[#allocation86_spill] sm:$0xff] }
 0x132   : > { %6494 = vmatprep.mubr.msk.f32.mxu1 %vm396_vm1, %v9929_v43 }
 0x134   : > { %6878 = vmatmul.mubr.msk.f32.gmra.mrb[52].mxu0 %vm396_vm1, %v8890_v27 }
 0x135   : > { %6495 = vmatmul.mubr.msk.f32.gmra.mrb[26].mxu1 %vm396_vm1, %v9930_v60  ;;  %6880 = vmatprep.mubr.msk.f32.mxu0 %vm396_vm1, %v8895_v55  ;;  %v9976_v60 = vld [vmem:[#allocation72_spill] sm:$0xff] }
 0x136   : > { %6497 = vmatprep.mubr.msk.f32.mxu1 %vm396_vm1, %v9931_v58 }
 0x138   : > { %6881 = vmatmul.mubr.msk.f32.gmra.mrb[54].mxu0 %vm396_vm1, %v8906_v12 }
 0x139   : > { %6498 = vmatmul.mubr.msk.f32.gmra.mrb[28].mxu1 %vm396_vm1, %v9932_v57  ;;  %6885 = vmatprep.mubr.msk.f32.mxu0 %vm396_vm1, %v8488_v63  ;;  %v9974_v63 = vld [vmem:[#allocation71_spill] sm:$0xff] }
 0x13a   : > { %6500 = vmatprep.mubr.msk.f32.mxu1 %vm396_vm1, %v8065_v23  ;;  %v9956_v23 = vld [vmem:[#allocation36_spill] sm:$0xff]  ;;  %v9978_v57 = vld [vmem:[#allocation3_spill] sm:$0xff] }
 0x13b   : > { %v9979_v61 = vrot.slane %v9978_v57, 1  ;;  %v9990_v57 = vld [vmem:[#allocation8_spill] sm:$0xff] }
 0x13c   : > { %6886 = vmatmul.mubr.msk.f32.vlgmr.msra.gmra.mrb[0].mxu0 %vm396_vm1, %v8495_v50  ;;  %v9975_v50 = vld [vmem:[#allocation82_spill] sm:$0xff] }
 0x13d   : > { %6970 = vmatpush3.msk.msra.mxu0 %vm711_vm0, %v8481_v62  ;;  %6501 = vmatmul.mubr.msk.f32.gmra.mrb[30].mxu1 %vm396_vm1, %v9933_v16  ;;  %v9973_v16 = vld [vmem:[#allocation47_spill] sm:$0xff] }
 0x13e   : > { %6888 = vmatprep.mubr.msk.f32.mxu0 %vm396_vm1, %v8507_v9  ;;  %6503 = vmatprep.mubr.msk.f32.mxu1 %vm396_vm1, %v8079_v2  ;;  %v9972_v2 = vld [vmem:[#allocation81_spill] sm:$0xff]  ;;  %v1838_v62 = vrot.slane %v9973_v16, 1  ;;  %v9977_v9 = vld [vmem:[#allocation83_spill] sm:$0xff] }
 0x13f   : > { %v9986_v16 = vld [vmem:[#allocation5_spill] sm:$0xff] }
 0x140   : > { %6889 = vmatmul.mubr.msk.f32.gmra.mrb[2].mxu0 %vm396_vm1, %v8513_v10  ;;  %v1841_v45 = vsel %vm1834_vm2, %v1838_v62, %v9979_v61  ;;  %v9991_v61 = vld [vmem:[#allocation9_spill] sm:$0xff] }
 0x141   : > { %6504 = vmatmul.mubr.msk.f32.gmra.mrb[32].mxu1 %vm396_vm1, %v8081_v29  ;;  %6891 = vmatprep.mubr.msk.f32.mxu0 %vm396_vm1, %v8523_v25  ;;  %v9957_v29 = vld [vmem:[#allocation32_spill] sm:$0xff] }
 0x142   : > { %6506 = vmatprep.mubr.msk.f32.mxu1 %vm396_vm1, %v8091_v39  ;;  %v9959_v39 = vld [vmem:[#allocation34_spill] sm:$0xff] }
 0x144   : > { %6892 = vmatmul.mubr.msk.f32.gmra.mrb[4].mxu0 %vm396_vm1, %v8529_v7 }
 0x145   : > { %6507 = vmatmul.mubr.msk.f32.gmra.mrb[34].mxu1 %vm396_vm1, %v8093_v31  ;;  %6894 = vmatprep.mubr.msk.f32.mxu0 %vm396_vm1, %v8539_v13  ;;  %v9958_v31 = vld [vmem:[#allocation33_spill] sm:$0xff] }
 0x146   : > { %6509 = vmatprep.mubr.msk.f32.mxu1 %vm396_vm1, %v8103_v48  ;;  %v9961_v48 = vld [vmem:[#allocation37_spill] sm:$0xff] }
 0x148   : > { %6895 = vmatmul.mubr.msk.f32.gmra.mrb[6].mxu0 %vm396_vm1, %v8545_v11 }
 0x149   : > { %6510 = vmatmul.mubr.msk.f32.gmra.mrb[36].mxu1 %vm396_vm1, %v8105_v42  ;;  %6897 = vmatprep.mubr.msk.f32.mxu0 %vm396_vm1, %v8555_v3  ;;  %v9960_v42 = vld [vmem:[#allocation35_spill] sm:$0xff] }
 0x14a   : > { %6512 = vmatprep.mubr.msk.f32.mxu1 %vm396_vm1, %v8115_v30  ;;  %v9963_v30 = vld [vmem:[#allocation77_spill] sm:$0xff] }
 0x14c   : > { %6898 = vmatmul.mubr.msk.f32.gmra.mrb[8].mxu0 %vm396_vm1, %v8561_v15 }
 0x14d   : > { %6513 = vmatmul.mubr.msk.f32.gmra.mrb[38].mxu1 %vm396_vm1, %v8117_v5  ;;  %6900 = vmatprep.mubr.msk.f32.mxu0 %vm396_vm1, %v8571_v18  ;;  %v9962_v5 = vld [vmem:[#allocation76_spill] sm:$0xff] }
 0x14e   : > { %6515 = vmatprep.mubr.msk.f32.mxu1 %vm396_vm1, %v8127_v4  ;;  %v9965_v4 = vld [vmem:[#allocation39_spill] sm:$0xff] }
 0x150   : > { %6901 = vmatmul.mubr.msk.f32.gmra.mrb[10].mxu0 %vm396_vm1, %v8577_v22 }
 0x151   : > { %6516 = vmatmul.mubr.msk.f32.gmra.mrb[40].mxu1 %vm396_vm1, %v8129_v35  ;;  %6903 = vmatprep.mubr.msk.f32.mxu0 %vm396_vm1, %v8587_v26  ;;  %v9964_v35 = vld [vmem:[#allocation78_spill] sm:$0xff] }
 0x152   : > { %6518 = vmatprep.mubr.msk.f32.mxu1 %vm396_vm1, %v8139_v49  ;;  %v9967_v49 = vld [vmem:[#allocation41_spill] sm:$0xff] }
 0x154   : > { %6904 = vmatmul.mubr.msk.f32.gmra.mrb[12].mxu0 %vm396_vm1, %v9956_v23 }
 0x155   : > { %6519 = vmatmul.mubr.msk.f32.gmra.mrb[42].mxu1 %vm396_vm1, %v8141_v44  ;;  %6906 = vmatprep.mubr.msk.f32.mxu0 %vm396_vm1, %v9957_v29  ;;  %v9966_v44 = vld [vmem:[#allocation79_spill] sm:$0xff] }
 0x156   : > { %6521 = vmatprep.mubr.msk.f32.mxu1 %vm396_vm1, %v8151_v56 }
 0x158   : > { %6907 = vmatmul.mubr.msk.f32.gmra.mrb[14].mxu0 %vm396_vm1, %v9958_v31 }
 0x159   : > { %6522 = vmatmul.mubr.msk.f32.gmra.mrb[44].mxu1 %vm396_vm1, %v8153_v51  ;;  %6909 = vmatprep.mubr.msk.f32.mxu0 %vm396_vm1, %v9959_v39  ;;  %v9968_v51 = vld [vmem:[#allocation43_spill] sm:$0xff] }
 0x15a   : > { %6524 = vmatprep.mubr.msk.f32.mxu1 %vm396_vm1, %v8163_v17  ;;  %v1835_v56 = vrot.slane %v9968_v51, 1  ;;  %v9982_v51 = vld [vmem:[#allocation85_spill] sm:$0xff] }
 0x15c   : > { %6910 = vmatmul.mubr.msk.f32.gmra.mrb[16].mxu0 %vm396_vm1, %v9960_v42 }
 0x15d   : > { %6525 = vmatmul.mubr.msk.f32.gmra.mrb[46].mxu1 %vm396_vm1, %v8165_v59  ;;  %6912 = vmatprep.mubr.msk.f32.mxu0 %vm396_vm1, %v9961_v48  ;;  %v9969_v59 = vld [vmem:[#allocation45_spill] sm:$0xff] }
 0x15e   : > { %6527 = vmatprep.mubr.msk.f32.mxu1 %vm396_vm1, %v8175_v38  ;;  %v1836_v17 = vrot.slane %v9969_v59, 1  ;;  %v9971_v38 = vld [vmem:[#allocation68_spill] sm:$0xff] }
 0x15f   : > { %v9984_v59 = vld [vmem:[#allocation4_spill] sm:$0xff] }
 0x160   : > { %6913 = vmatmul.mubr.msk.f32.gmra.mrb[18].mxu0 %vm396_vm1, %v9962_v5  ;;  %v1837_v43 = vsel %vm1834_vm2, %v1835_v56, %v1836_v17  ;;  %v1839_v58 = vsel %vm1834_vm2, %v1836_v17, %v1838_v62  ;;  %v9983_v56 = vld [vmem:[#allocation87_spill] sm:$0xff]  ;;  %v9985_v17 = vld [vmem:[#allocation88_spill] sm:$0xff]  ;;  %v9987_v62 = vld [vmem:[#allocation89_spill] sm:$0xff] }
 0x161   : > { %6528 = vmatmul.mubr.msk.f32.gmra.mrb[48].mxu1 %vm396_vm1, %v8177_v24  ;;  %6915 = vmatprep.mubr.msk.f32.mxu0 %vm396_vm1, %v9963_v30  ;;  %v9970_v24 = vld [vmem:[#allocation80_spill] sm:$0xff] }
 0x162   : > { %6530 = vmatprep.mubr.msk.f32.mxu1 %vm396_vm1, %v9955_v52  ;;  %v10012_v52 = vld [vmem:[#allocation29_spill] sm:$0xff] }
 0x164   : > { %6916 = vmatmul.mubr.msk.f32.gmra.mrb[20].mxu0 %vm396_vm1, %v9964_v35 }
 0x165   : > { %6531 = vmatmul.mubr.msk.f32.gmra.mrb[50].mxu1 %vm396_vm1, %v9965_v4  ;;  %6918 = vmatprep.mubr.msk.f32.mxu0 %vm396_vm1, %v9966_v44 }
 0x166   : > { %6533 = vmatprep.mubr.msk.f32.mxu1 %vm396_vm1, %v9967_v49 }
 0x168   : > { %6919 = vmatmul.mubr.msk.f32.gmra.mrb[22].mxu0 %vm396_vm1, %v9970_v24 }
 0x169   : > { %6534 = vmatmul.mubr.msk.f32.gmra.mrb[52].mxu1 %vm396_vm1, %v9971_v38  ;;  %6921 = vmatprep.mubr.msk.f32.mxu0 %vm396_vm1, %v9972_v2 }
 0x16a   : > { %6536 = vmatprep.mubr.msk.f32.mxu1 %vm396_vm1, %v9974_v63 }
 0x16c   : > { %6922 = vmatmul.mubr.msk.f32.gmra.mrb[24].mxu0 %vm396_vm1, %v9975_v50 }
 0x16d   : > { %6537 = vmatmul.mubr.msk.f32.gmra.mrb[54].mxu1 %vm396_vm1, %v9976_v60  ;;  %6924 = vmatprep.mubr.msk.f32.mxu0 %vm396_vm1, %v9977_v9 }
 0x16e   : > { %6541 = vmatprep.mubr.msk.f32.mxu1 %vm396_vm1, %v1837_v43  ;;  %v9988_v43 = vld [vmem:[#allocation6_spill] sm:$0xff] }
 0x170   : > { %6925 = vmatmul.mubr.msk.f32.gmra.mrb[26].mxu0 %vm396_vm1, %v9980_v21 }
 0x171   : > { %6542 = vmatmul.mubr.msk.f32.vlgmr.msra.gmra.mrb[0].mxu1 %vm396_vm1, %v1839_v58  ;;  %6927 = vmatprep.mubr.msk.f32.mxu0 %vm396_vm1, %v9981_v34  ;;  %v9989_v58 = vld [vmem:[#allocation7_spill] sm:$0xff] }
 0x172   : > { %6544 = vmatprep.mubr.msk.f32.mxu1 %vm396_vm1, %v1841_v45  ;;  %7056 = vmatpush3.msk.msra.mxu1 %vm711_vm0, %v9982_v51  ;;  %v9992_v45 = vld [vmem:[#allocation10_spill] sm:$0xff]  ;;  %v9993_v51 = vld [vmem:[#allocation11_spill] sm:$0xff] }
 0x174   : > { %6928 = vmatmul.mubr.msk.f32.gmra.mrb[28].mxu0 %vm396_vm1, %v9983_v56 }
 0x175   : > { %6545 = vmatmul.mubr.msk.f32.gmra.mrb[2].mxu1 %vm396_vm1, %v9984_v59  ;;  %6930 = vmatprep.mubr.msk.f32.mxu0 %vm396_vm1, %v9985_v17  ;;  %v9994_v59 = vld [vmem:[#allocation12_spill] sm:$0xff] }
 0x176   : > { %6547 = vmatprep.mubr.msk.f32.mxu1 %vm396_vm1, %v9986_v16  ;;  %v9995_v16 = vld [vmem:[#allocation13_spill] sm:$0xff] }
 0x178   : > { %6931 = vmatmul.mubr.msk.f32.gmra.mrb[30].mxu0 %vm396_vm1, %v9987_v62 }
 0x179   : > { %6548 = vmatmul.mubr.msk.f32.gmra.mrb[4].mxu1 %vm396_vm1, %v9988_v43  ;;  %6933 = vmatprep.mubr.msk.f32.mxu0 %vm396_vm1, %v8748_v28  ;;  %v9996_v43 = vld [vmem:[#allocation14_spill] sm:$0xff] }
 0x17a   : > { %6550 = vmatprep.mubr.msk.f32.mxu1 %vm396_vm1, %v9989_v58  ;;  %v9997_v58 = vld [vmem:[#allocation15_spill] sm:$0xff] }
 0x17c   : > { %6934 = vmatmul.mubr.msk.f32.gmra.mrb[32].mxu0 %vm396_vm1, %v8753_v19 }
 0x17d   : > { %6551 = vmatmul.mubr.msk.f32.gmra.mrb[6].mxu1 %vm396_vm1, %v9990_v57  ;;  %6936 = vmatprep.mubr.msk.f32.mxu0 %vm396_vm1, %v8762_v20  ;;  %v9998_v57 = vld [vmem:[#allocation16_spill] sm:$0xff] }
 0x17e   : > { %6553 = vmatprep.mubr.msk.f32.mxu1 %vm396_vm1, %v9991_v61  ;;  %v9999_v61 = vld [vmem:[#allocation17_spill] sm:$0xff] }
 0x180   : > { %6937 = vmatmul.mubr.msk.f32.gmra.mrb[34].mxu0 %vm396_vm1, %v8767_v1 }
 0x181   : > { %6554 = vmatmul.mubr.msk.f32.gmra.mrb[8].mxu1 %vm396_vm1, %v9992_v45  ;;  %6939 = vmatprep.mubr.msk.f32.mxu0 %vm396_vm1, %v8777_v36  ;;  %v10000_v45 = vld [vmem:[#allocation18_spill] sm:$0xff] }
 0x182   : > { %6556 = vmatprep.mubr.msk.f32.mxu1 %vm396_vm1, %v9993_v51  ;;  %v10001_v51 = vld [vmem:[#allocation19_spill] sm:$0xff] }
 0x184   : > { %6940 = vmatmul.mubr.msk.f32.gmra.mrb[36].mxu0 %vm396_vm1, %v8783_v37 }
 0x185   : > { %6557 = vmatmul.mubr.msk.f32.gmra.mrb[10].mxu1 %vm396_vm1, %v9994_v59  ;;  %6942 = vmatprep.mubr.msk.f32.mxu0 %vm396_vm1, %v8793_v6  ;;  %v10002_v59 = vld [vmem:[#allocation20_spill] sm:$0xff] }
 0x186   : > { %6559 = vmatprep.mubr.msk.f32.mxu1 %vm396_vm1, %v9995_v16  ;;  %v10003_v16 = vld [vmem:[#allocation90_spill] sm:$0xff] }
 0x188   : > { %6943 = vmatmul.mubr.msk.f32.gmra.mrb[38].mxu0 %vm396_vm1, %v8799_v14 }
 0x189   : > { %6560 = vmatmul.mubr.msk.f32.gmra.mrb[12].mxu1 %vm396_vm1, %v9996_v43  ;;  %6945 = vmatprep.mubr.msk.f32.mxu0 %vm396_vm1, %v8809_v40  ;;  %v10004_v43 = vld [vmem:[#allocation21_spill] sm:$0xff] }
 0x18a   : > { %6562 = vmatprep.mubr.msk.f32.mxu1 %vm396_vm1, %v9997_v58  ;;  %v10005_v58 = vld [vmem:[#allocation22_spill] sm:$0xff] }
 0x18c   : > { %6946 = vmatmul.mubr.msk.f32.gmra.mrb[40].mxu0 %vm396_vm1, %v8815_v41 }
 0x18d   : > { %6563 = vmatmul.mubr.msk.f32.gmra.mrb[14].mxu1 %vm396_vm1, %v9998_v57  ;;  %6948 = vmatprep.mubr.msk.f32.mxu0 %vm396_vm1, %v8825_v46  ;;  %v10006_v57 = vld [vmem:[#allocation23_spill] sm:$0xff] }
 0x18e   : > { %6565 = vmatprep.mubr.msk.f32.mxu1 %vm396_vm1, %v9999_v61  ;;  %v3935_v61 = vrot.slane %v9965_v4, 2 }
 0x190   : > { %6949 = vmatmul.mubr.msk.f32.gmra.mrb[42].mxu0 %vm396_vm1, %v8831_v47  ;;  %v9138_v4 = vsel %vm3303_vm3, %v3415_v0, %v3935_v61 }
 0x191   : > { %6566 = vmatmul.mubr.msk.f32.gmra.mrb[16].mxu1 %vm396_vm1, %v10000_v45  ;;  %6951 = vmatprep.mubr.msk.f32.mxu0 %vm396_vm1, %v8841_v53  ;;  %v10007_v45 = vld [vmem:[#allocation24_spill] sm:$0xff] }
 0x192   : > { %6568 = vmatprep.mubr.msk.f32.mxu1 %vm396_vm1, %v10001_v51  ;;  %v3937_v51 = vrot.slane %v9967_v49, 2  ;;  %v10010_v49 = vld [vmem:[#allocation27_spill] sm:$0xff] }
 0x194   : > { %6952 = vmatmul.mubr.msk.f32.gmra.mrb[44].mxu0 %vm396_vm1, %v8847_v54 }
 0x195   : > { %6569 = vmatmul.mubr.msk.f32.gmra.mrb[18].mxu1 %vm396_vm1, %v10002_v59  ;;  %6954 = vmatprep.mubr.msk.f32.mxu0 %vm396_vm1, %v10003_v16  ;;  %v10008_v59 = vld [vmem:[#allocation25_spill] sm:$0xff] }
 0x196   : > { %6571 = vmatprep.mubr.msk.f32.mxu1 %vm396_vm1, %v10004_v43  ;;  %v10009_v43 = vld [vmem:[#allocation26_spill] sm:$0xff] }
 0x198   : > { %6955 = vmatmul.mubr.msk.f32.gmra.mrb[46].mxu0 %vm396_vm1, %v8863_v8 }
 0x199   : > { %6572 = vmatmul.mubr.msk.f32.gmra.mrb[20].mxu1 %vm396_vm1, %v10005_v58  ;;  %6957 = vmatprep.mubr.msk.f32.mxu0 %vm396_vm1, %v8873_v32  ;;  %v3939_v58 = vrot.slane %v9971_v38, 2 }
 0x19a   : > { %6574 = vmatprep.mubr.msk.f32.mxu1 %vm396_vm1, %v10006_v57  ;;  %v9144_v57 = vsel %vm3303_vm3, %v3935_v61, %v3937_v51  ;;  %v10013_v61 = vld [vmem:[#allocation30_spill] sm:$0xff] }
 0x19b   : > { %v9155_v0 = vsel %vm3303_vm3, %v3937_v51, %v3939_v58  ;;  %v10015_v51 = vld [vmem:[#allocation40_spill] sm:$0xff] }
 0x19c   : > { %6958 = vmatmul.mubr.msk.f32.gmra.mrb[48].mxu0 %vm396_vm1, %v8879_v33 }
 0x19d   : > { %6575 = vmatmul.mubr.msk.f32.gmra.mrb[22].mxu1 %vm396_vm1, %v10007_v45  ;;  %6960 = vmatprep.mubr.msk.f32.mxu0 %vm396_vm1, %v8890_v27  ;;  %v10011_v45 = vld [vmem:[#allocation28_spill] sm:$0xff] }
 0x19e   : > { %6577 = vmatprep.mubr.msk.f32.mxu1 %vm396_vm1, %v10008_v59  ;;  %v10014_v59 = vld [vmem:[#allocation31_spill] sm:$0xff] }
 0x1a0   : > { %6961 = vmatmul.mubr.msk.f32.gmra.mrb[50].mxu0 %vm396_vm1, %v8895_v55 }
 0x1a1   : > { %6578 = vmatmul.mubr.msk.f32.gmra.mrb[24].mxu1 %vm396_vm1, %v10009_v43  ;;  %6963 = vmatprep.mubr.msk.f32.mxu0 %vm396_vm1, %v8906_v12  ;;  %v10016_v43 = vld [vmem:[#allocation42_spill] sm:$0xff] }
 0x1a2   : > { %6580 = vmatprep.mubr.msk.f32.mxu1 %vm396_vm1, %v10010_v49  ;;  %v10017_v49 = vld [vmem:[#allocation44_spill] sm:$0xff] }
 0x1a4   : > { %6964 = vmatmul.mubr.msk.f32.gmra.mrb[52].mxu0 %vm396_vm1, %v9138_v4 }
 0x1a5   : > { %6581 = vmatmul.mubr.msk.f32.gmra.mrb[26].mxu1 %vm396_vm1, %v10011_v45  ;;  %6966 = vmatprep.mubr.msk.f32.mxu0 %vm396_vm1, %v9144_v57 }
 0x1a6   : > { %6583 = vmatprep.mubr.msk.f32.mxu1 %vm396_vm1, %v10012_v52 }
 0x1a8   : > { %6967 = vmatmul.mubr.msk.f32.gmra.mrb[54].mxu0 %vm396_vm1, %v9155_v0 }
 0x1a9   : > { %6584 = vmatmul.mubr.msk.f32.gmra.mrb[28].mxu1 %vm396_vm1, %v10013_v61  ;;  %6971 = vmatprep.mubr.msk.f32.mxu0 %vm396_vm1, %v8513_v10  ;;  %v10018_v10 = vld [vmem:[#allocation46_spill] sm:$0xff] }
 0x1aa   : > { %6586 = vmatprep.mubr.msk.f32.mxu1 %vm396_vm1, %v10014_v59 }
 0x1ac   : > { %6972 = vmatmul.mubr.msk.f32.vlgmr.msra.gmra.mrb[0].mxu0 %vm396_vm1, %v8523_v25  ;;  %v10019_v25 = vld [vmem:[#allocation48_spill] sm:$0xff] }
 0x1ad   : > { %6587 = vmatmul.mubr.msk.f32.gmra.mrb[30].mxu1 %vm396_vm1, %v10015_v51  ;;  %6974 = vmatprep.mubr.msk.f32.mxu0 %vm396_vm1, %v8529_v7  ;;  %v10020_v7 = vld [vmem:[#allocation49_spill] sm:$0xff] }
 0x1ae   : > { %6589 = vmatprep.mubr.msk.f32.mxu1 %vm396_vm1, %v10016_v43 }
 0x1b0   : > { %6975 = vmatmul.mubr.msk.f32.gmra.mrb[2].mxu0 %vm396_vm1, %v8539_v13  ;;  %v10021_v13 = vld [vmem:[#allocation50_spill] sm:$0xff] }
 0x1b1   : > { %6590 = vmatmul.mubr.msk.f32.gmra.mrb[32].mxu1 %vm396_vm1, %v10017_v49  ;;  %6977 = vmatprep.mubr.msk.f32.mxu0 %vm396_vm1, %v8545_v11  ;;  %v10022_v11 = vld [vmem:[#allocation51_spill] sm:$0xff] }
 0x1b2   : > { %6592 = vmatprep.mubr.msk.f32.mxu1 %vm396_vm1, %v10018_v10 }
 0x1b4   : > { %6978 = vmatmul.mubr.msk.f32.gmra.mrb[4].mxu0 %vm396_vm1, %v8555_v3  ;;  %v10023_v3 = vld [vmem:[#allocation52_spill] sm:$0xff] }
 0x1b5   : > { %6593 = vmatmul.mubr.msk.f32.gmra.mrb[34].mxu1 %vm396_vm1, %v10019_v25  ;;  %6980 = vmatprep.mubr.msk.f32.mxu0 %vm396_vm1, %v8561_v15  ;;  %v10024_v15 = vld [vmem:[#allocation53_spill] sm:$0xff] }
 0x1b6   : > { %6595 = vmatprep.mubr.msk.f32.mxu1 %vm396_vm1, %v10020_v7 }
 0x1b8   : > { %6981 = vmatmul.mubr.msk.f32.gmra.mrb[6].mxu0 %vm396_vm1, %v8571_v18  ;;  %v10025_v18 = vld [vmem:[#allocation54_spill] sm:$0xff] }
 0x1b9   : > { %6596 = vmatmul.mubr.msk.f32.gmra.mrb[36].mxu1 %vm396_vm1, %v10021_v13  ;;  %6983 = vmatprep.mubr.msk.f32.mxu0 %vm396_vm1, %v8577_v22  ;;  %v10026_v22 = vld [vmem:[#allocation55_spill] sm:$0xff] }
 0x1ba   : > { %6598 = vmatprep.mubr.msk.f32.mxu1 %vm396_vm1, %v10022_v11 }
 0x1bc   : > { %6984 = vmatmul.mubr.msk.f32.gmra.mrb[8].mxu0 %vm396_vm1, %v8587_v26  ;;  %v10027_v26 = vld [vmem:[#allocation56_spill] sm:$0xff] }
 0x1bd   : > { %6599 = vmatmul.mubr.msk.f32.gmra.mrb[38].mxu1 %vm396_vm1, %v10023_v3  ;;  %6986 = vmatprep.mubr.msk.f32.mxu0 %vm396_vm1, %v9956_v23  ;;  %v10028_v23 = vld [vmem:[#allocation57_spill] sm:$0xff] }
 0x1be   : > { %6601 = vmatprep.mubr.msk.f32.mxu1 %vm396_vm1, %v10024_v15 }
 0x1c0   : > { %6987 = vmatmul.mubr.msk.f32.gmra.mrb[10].mxu0 %vm396_vm1, %v9957_v29  ;;  %v10029_v29 = vld [vmem:[#allocation58_spill] sm:$0xff] }
 0x1c1   : > { %6602 = vmatmul.mubr.msk.f32.gmra.mrb[40].mxu1 %vm396_vm1, %v10025_v18  ;;  %6989 = vmatprep.mubr.msk.f32.mxu0 %vm396_vm1, %v9958_v31  ;;  %v10030_v31 = vld [vmem:[#allocation59_spill] sm:$0xff] }
 0x1c2   : > { %6604 = vmatprep.mubr.msk.f32.mxu1 %vm396_vm1, %v10026_v22 }
 0x1c4   : > { %6990 = vmatmul.mubr.msk.f32.gmra.mrb[12].mxu0 %vm396_vm1, %v9959_v39  ;;  %v10031_v39 = vld [vmem:[#allocation60_spill] sm:$0xff] }
 0x1c5   : > { %6605 = vmatmul.mubr.msk.f32.gmra.mrb[42].mxu1 %vm396_vm1, %v10027_v26  ;;  %6992 = vmatprep.mubr.msk.f32.mxu0 %vm396_vm1, %v9960_v42  ;;  %v10032_v42 = vld [vmem:[#allocation61_spill] sm:$0xff] }
 0x1c6   : > { %6607 = vmatprep.mubr.msk.f32.mxu1 %vm396_vm1, %v10028_v23 }
 0x1c8   : > { %6993 = vmatmul.mubr.msk.f32.gmra.mrb[14].mxu0 %vm396_vm1, %v9961_v48  ;;  %v10033_v48 = vld [vmem:[#allocation62_spill] sm:$0xff] }
 0x1c9   : > { %6608 = vmatmul.mubr.msk.f32.gmra.mrb[44].mxu1 %vm396_vm1, %v10029_v29  ;;  %6995 = vmatprep.mubr.msk.f32.mxu0 %vm396_vm1, %v9962_v5  ;;  %v10034_v5 = vld [vmem:[#allocation63_spill] sm:$0xff] }
 0x1ca   : > { %6610 = vmatprep.mubr.msk.f32.mxu1 %vm396_vm1, %v10030_v31 }
 0x1cc   : > { %6996 = vmatmul.mubr.msk.f32.gmra.mrb[16].mxu0 %vm396_vm1, %v9963_v30  ;;  %v10035_v30 = vld [vmem:[#allocation64_spill] sm:$0xff] }
 0x1cd   : > { %6611 = vmatmul.mubr.msk.f32.gmra.mrb[46].mxu1 %vm396_vm1, %v10031_v39  ;;  %6998 = vmatprep.mubr.msk.f32.mxu0 %vm396_vm1, %v9964_v35  ;;  %v10036_v35 = vld [vmem:[#allocation65_spill] sm:$0xff] }
 0x1ce   : > { %6613 = vmatprep.mubr.msk.f32.mxu1 %vm396_vm1, %v10032_v42 }
 0x1d0   : > { %6999 = vmatmul.mubr.msk.f32.gmra.mrb[18].mxu0 %vm396_vm1, %v9966_v44  ;;  %v10037_v44 = vld [vmem:[#allocation66_spill] sm:$0xff] }
 0x1d1   : > { %6614 = vmatmul.mubr.msk.f32.gmra.mrb[48].mxu1 %vm396_vm1, %v10033_v48  ;;  %7001 = vmatprep.mubr.msk.f32.mxu0 %vm396_vm1, %v9970_v24  ;;  %v10038_v24 = vld [vmem:[#allocation67_spill] sm:$0xff] }
 0x1d2   : > { %6616 = vmatprep.mubr.msk.f32.mxu1 %vm396_vm1, %v10034_v5 }
 0x1d4   : > { %7002 = vmatmul.mubr.msk.f32.gmra.mrb[20].mxu0 %vm396_vm1, %v9972_v2  ;;  %v10039_v2 = vld [vmem:[#allocation69_spill] sm:$0xff] }
 0x1d5   : > { %6617 = vmatmul.mubr.msk.f32.gmra.mrb[50].mxu1 %vm396_vm1, %v10035_v30  ;;  %7004 = vmatprep.mubr.msk.f32.mxu0 %vm396_vm1, %v9975_v50 }
 0x1d6   : > { %6619 = vmatprep.mubr.msk.f32.mxu1 %vm396_vm1, %v10036_v35 }
 0x1d8   : > { %7005 = vmatmul.mubr.msk.f32.gmra.mrb[22].mxu0 %vm396_vm1, %v9977_v9 }
 0x1d9   : > { %6620 = vmatmul.mubr.msk.f32.gmra.mrb[52].mxu1 %vm396_vm1, %v10037_v44  ;;  %7007 = vmatprep.mubr.msk.f32.mxu0 %vm396_vm1, %v9980_v21 }
 0x1da   : > { %6622 = vmatprep.mubr.msk.f32.mxu1 %vm396_vm1, %v10038_v24 }
 0x1dc   : > { %7008 = vmatmul.mubr.msk.f32.gmra.mrb[24].mxu0 %vm396_vm1, %v9981_v34 }
 0x1dd   : > { %6623 = vmatmul.mubr.msk.f32.gmra.mrb[54].mxu1 %vm396_vm1, %v10039_v2  ;;  %7010 = vmatprep.mubr.msk.f32.mxu0 %vm396_vm1, %v9983_v56 }
 0x1de   : > { %6669 = vmatprep.mubr.msk.f32.mxu1 %vm396_vm1, %v10015_v51  ;;  %v9435_v51 = vld [vmem:[%s9698_s3] ss:$0 sm:$0xff] }
 0x1e0   : > { %7011 = vmatmul.mubr.msk.f32.gmra.mrb[26].mxu0 %vm396_vm1, %v9985_v17 }
 0x1e1   : > { %6670 = vmatmul.mubr.msk.f32.vlgmr.msra.gmra.mrb[28].mxu1 %vm396_vm1, %v10016_v43  ;;  %7013 = vmatprep.mubr.msk.f32.mxu0 %vm396_vm1, %v9987_v62 }
 0x1e2   : > { %6672 = vmatprep.mubr.msk.f32.mxu1 %vm396_vm1, %v10017_v49 }
 0x1e4   : > { %7014 = vmatmul.mubr.msk.f32.gmra.mrb[28].mxu0 %vm396_vm1, %v8748_v28  ;;  %v4353_v28 = vrot.slane %v9974_v63, 2 }
 0x1e5   : > { %6673 = vmatmul.mubr.msk.f32.gmra.mrb[30].mxu1 %vm396_vm1, %v10018_v10  ;;  %7016 = vmatprep.mubr.msk.f32.mxu0 %vm396_vm1, %v8753_v19  ;;  %v4355_v19 = vrot.slane %v9976_v60, 2  ;;  %v9440_v10 = vld [vmem:[%s9699_s4] ss:$0 sm:$0xff] }
 0x1e6   : > { %6675 = vmatprep.mubr.msk.f32.mxu1 %vm396_vm1, %v10019_v25 }
 0x1e8   : > { %7017 = vmatmul.mubr.msk.f32.gmra.mrb[30].mxu0 %vm396_vm1, %v8762_v20  ;;  %v10040_v20 = vld [vmem:[#allocation70_spill] sm:$0xff] }
 0x1e9   : > { %6676 = vmatmul.mubr.msk.f32.gmra.mrb[32].mxu1 %vm396_vm1, %v10020_v7  ;;  %7019 = vmatprep.mubr.msk.f32.mxu0 %vm396_vm1, %v8767_v1  ;;  %v4354_v1 = vsel %vm3303_vm3, %v3939_v58, %v4353_v28 }
 0x1ea   : > { %6678 = vmatprep.mubr.msk.f32.mxu1 %vm396_vm1, %v10021_v13 }
 0x1ec   : > { %7020 = vmatmul.mubr.msk.f32.gmra.mrb[32].mxu0 %vm396_vm1, %v8777_v36  ;;  %v10041_v36 = vld [vmem:[#allocation75_spill] sm:$0xff] }
 0x1ed   : > { %6679 = vmatmul.mubr.msk.f32.gmra.mrb[34].mxu1 %vm396_vm1, %v10022_v11  ;;  %7022 = vmatprep.mubr.msk.f32.mxu0 %vm396_vm1, %v8783_v37  ;;  %v4357_v37 = vrot.slane %v10041_v36, 2 }
 0x1ee   : > { %6681 = vmatprep.mubr.msk.f32.mxu1 %vm396_vm1, %v10023_v3 }
 0x1f0   : > { %7023 = vmatmul.mubr.msk.f32.gmra.mrb[34].mxu0 %vm396_vm1, %v8793_v6  ;;  %v10042_v6 = vld [vmem:[#allocation73_spill] sm:$0xff] }
 0x1f1   : > { %6682 = vmatmul.mubr.msk.f32.gmra.mrb[36].mxu1 %vm396_vm1, %v10024_v15  ;;  %7025 = vmatprep.mubr.msk.f32.mxu0 %vm396_vm1, %v8799_v14  ;;  %v4356_v14 = vsel %vm3303_vm3, %v4353_v28, %v4355_v19 }
 0x1f2   : > { %6684 = vmatprep.mubr.msk.f32.mxu1 %vm396_vm1, %v10025_v18 }
 0x1f4   : > { %7026 = vmatmul.mubr.msk.f32.gmra.mrb[36].mxu0 %vm396_vm1, %v8809_v40  ;;  %v10043_v40 = vld [vmem:[#allocation74_spill] sm:$0xff] }
 0x1f5   : > { %6685 = vmatmul.mubr.msk.f32.gmra.mrb[38].mxu1 %vm396_vm1, %v10026_v22  ;;  %7028 = vmatprep.mubr.msk.f32.mxu0 %vm396_vm1, %v8815_v41  ;;  %v4358_v41 = vsel %vm3303_vm3, %v4355_v19, %v4357_v37 }
 0x1f6   : > { %6687 = vmatprep.mubr.msk.f32.mxu1 %vm396_vm1, %v10027_v26 }
 0x1f8   : > { %7029 = vmatmul.mubr.msk.f32.gmra.mrb[38].mxu0 %vm396_vm1, %v8825_v46 }
 0x1f9   : > { %6688 = vmatmul.mubr.msk.f32.gmra.mrb[40].mxu1 %vm396_vm1, %v10028_v23  ;;  %7031 = vmatprep.mubr.msk.f32.mxu0 %vm396_vm1, %v8831_v47 }
 0x1fa   : > { %6690 = vmatprep.mubr.msk.f32.mxu1 %vm396_vm1, %v10029_v29 }
 0x1fc   : > { %7032 = vmatmul.mubr.msk.f32.gmra.mrb[40].mxu0 %vm396_vm1, %v8841_v53 }
 0x1fd   : > { %6691 = vmatmul.mubr.msk.f32.gmra.mrb[42].mxu1 %vm396_vm1, %v10030_v31  ;;  %7034 = vmatprep.mubr.msk.f32.mxu0 %vm396_vm1, %v8847_v54 }
 0x1fe   : > { %6693 = vmatprep.mubr.msk.f32.mxu1 %vm396_vm1, %v10031_v39 }
 0x200   : > { %7035 = vmatmul.mubr.msk.f32.gmra.mrb[42].mxu0 %vm396_vm1, %v10003_v16 }
 0x201   : > { %6694 = vmatmul.mubr.msk.f32.gmra.mrb[44].mxu1 %vm396_vm1, %v10032_v42  ;;  %7037 = vmatprep.mubr.msk.f32.mxu0 %vm396_vm1, %v8863_v8 }
 0x202   : > { %6696 = vmatprep.mubr.msk.f32.mxu1 %vm396_vm1, %v10033_v48 }
 0x204   : > { %7038 = vmatmul.mubr.msk.f32.gmra.mrb[44].mxu0 %vm396_vm1, %v8873_v32 }
 0x205   : > { %6697 = vmatmul.mubr.msk.f32.gmra.mrb[46].mxu1 %vm396_vm1, %v10034_v5  ;;  %7040 = vmatprep.mubr.msk.f32.mxu0 %vm396_vm1, %v8879_v33 }
 0x206   : > { %6699 = vmatprep.mubr.msk.f32.mxu1 %vm396_vm1, %v10035_v30 }
 0x208   : > { %7041 = vmatmul.mubr.msk.f32.gmra.mrb[46].mxu0 %vm396_vm1, %v8890_v27 }
 0x209   : > { %6700 = vmatmul.mubr.msk.f32.gmra.mrb[48].mxu1 %vm396_vm1, %v10036_v35  ;;  %7043 = vmatprep.mubr.msk.f32.mxu0 %vm396_vm1, %v8895_v55 }
 0x20a   : > { %6702 = vmatprep.mubr.msk.f32.mxu1 %vm396_vm1, %v10037_v44 }
 0x20c   : > { %7044 = vmatmul.mubr.msk.f32.gmra.mrb[48].mxu0 %vm396_vm1, %v8906_v12 }
 0x20d   : > { %6703 = vmatmul.mubr.msk.f32.gmra.mrb[50].mxu1 %vm396_vm1, %v10038_v24  ;;  %7046 = vmatprep.mubr.msk.f32.mxu0 %vm396_vm1, %v9138_v4 }
 0x20e   : > { %6705 = vmatprep.mubr.msk.f32.mxu1 %vm396_vm1, %v10039_v2 }
 0x210   : > { %7047 = vmatmul.mubr.msk.f32.gmra.mrb[50].mxu0 %vm396_vm1, %v9144_v57 }
 0x211   : > { %6706 = vmatmul.mubr.msk.f32.gmra.mrb[52].mxu1 %vm396_vm1, %v10040_v20  ;;  %7049 = vmatprep.mubr.msk.f32.mxu0 %vm396_vm1, %v9155_v0 }
 0x212   : > { %6708 = vmatprep.mubr.msk.f32.mxu1 %vm396_vm1, %v10042_v6 }
 0x214   : > { %7050 = vmatmul.mubr.msk.f32.gmra.mrb[52].mxu0 %vm396_vm1, %v4354_v1 }
 0x215   : > { %6709 = vmatmul.mubr.msk.f32.gmra.mrb[54].mxu1 %vm396_vm1, %v10043_v40  ;;  %7052 = vmatprep.mubr.msk.f32.mxu0 %vm396_vm1, %v4356_v14 }
 0x218   : > { %7053 = vmatmul.mubr.msk.f32.gmra.mrb[54].mxu0 %vm396_vm1, %v4358_v41 }
 0x244   : > { %v6543_v46 = vpop.f32.mrb[0].mxu1 }
 0x245   : > { %v2129_v47 = vpop.f32.mrb[1].mxu1 }
 0x248   : > { %v6546_v53 = vpop.f32.mrb[2].mxu1 }
 0x249   : > { %v2139_v54 = vpop.f32.mrb[3].mxu1 }
 0x24c   : > { %v6549_v8 = vpop.f32.mrb[4].mxu1 }
 0x24d   : > { %v2149_v32 = vpop.f32.mrb[5].mxu1 }
 0x250   : > { %v6552_v33 = vpop.f32.mrb[6].mxu1 }
 0x251   : > { %v9388_v27 = vpop.f32.mrb[7].mxu1 }
 0x254   : > { %v9390_v55 = vpop.f32.mrb[8].mxu1 }
 0x255   : > { %v9392_v12 = vpop.f32.mrb[9].mxu1 }
 0x258   : > { %v9394_v38 = vpop.f32.mrb[10].mxu1 }
 0x259   : > { %v9396_v63 = vpop.f32.mrb[11].mxu1 }
 0x25c   : > { %v9398_v50 = vpop.f32.mrb[12].mxu1 }
 0x25d   : > { %v9400_v60 = vpop.f32.mrb[13].mxu1 }
 0x260   : > { %v9402_v9 = vpop.f32.mrb[14].mxu1 }
 0x261   : > { %v9404_v21 = vpop.f32.mrb[15].mxu1 }
 0x264   : > { %v9406_v34 = vpop.f32.mrb[16].mxu1 }
 0x265   : > { %v9408_v56 = vpop.f32.mrb[17].mxu1 }
 0x268   : > { %v9410_v17 = vpop.f32.mrb[18].mxu1 }
 0x269   : > { %v9412_v62 = vpop.f32.mrb[19].mxu1 }
 0x26c   : > { %v9414_v16 = vpop.f32.mrb[20].mxu1 }
 0x26d   : > { %v9416_v4 = vpop.f32.mrb[21].mxu1 }
 0x270   : > { %v9418_v58 = vpop.f32.mrb[22].mxu1 }
 0x271   : > { %v9420_v57 = vpop.f32.mrb[23].mxu1 }
 0x274   : > { %v9422_v45 = vpop.f32.mrb[24].mxu1 }
 0x275   : > { %v9424_v0 = vpop.f32.mrb[25].mxu1 }
 0x278   : > { %v9426_v52 = vpop.f32.mrb[26].mxu1 }
 0x279   : > { %v9428_v61 = vpop.f32.mrb[27].mxu1 }
 0x27f   : > { %v6973_v59 = vpop.f32.mrb[0].mxu0 }
 0x280   : > { %v7057_v43 = vadd.f32 %v6973_v59, %v6543_v46  ;;  %v4434_v49 = vpop.f32.mrb[1].mxu0 }
 0x281   : > { %v7058_v25 = vadd.f32 %v4434_v49, %v2129_v47 }
 0x282   : > { %v4777_v7 = vmul.f32 %v7057_v43, %v9435_v51 }
 0x283   : > { %v4776_v13 = vmul.f32 %v7058_v25, %v9435_v51  ;;  %v6976_v11 = vpop.f32.mrb[2].mxu0 }
 0x284   : > { %v4840_v3 = vadd.f32 %v9440_v10, %v4777_v7  ;;  %v7059_v15 = vadd.f32 %v6976_v11, %v6546_v53  ;;  %v4444_v18 = vpop.f32.mrb[3].mxu0 }
 0x285   : > { %v4839_v22 = vadd.f32 %v9440_v10, %v4776_v13  ;;  %v7060_v26 = vadd.f32 %v4444_v18, %v2139_v54 }
 0x286   : > { %v4896_v23 = vmax.f32 %v4840_v3, 0.0  ;;  %v4779_v29 = vmul.f32 %v7059_v15, %v9435_v51 }
 0x287   : > { %v4895_v31 = vmax.f32 %v4839_v22, 0.0  ;;  %v4778_v39 = vmul.f32 %v7060_v26, %v9435_v51  ;;  %v6979_v42 = vpop.f32.mrb[4].mxu0 }
 0x288   : > { %4953 = vst.msk [vmem:[%s9448_s12 + $0x8] sm:$0xff] %vm4951_vm4, %v4896_v23  ;;  %v4842_v48 = vadd.f32 %v9440_v10, %v4779_v29  ;;  %v7061_v5 = vadd.f32 %v6979_v42, %v6549_v8  ;;  %v4454_v30 = vpop.f32.mrb[5].mxu0 }
 0x289   : > { %4952 = vst.msk [vmem:[%s9448_s12] sm:$0xff] %vm4951_vm4, %v4895_v31  ;;  %v4841_v35 = vadd.f32 %v9440_v10, %v4778_v39  ;;  %v7062_v44 = vadd.f32 %v4454_v30, %v2149_v32 }
 0x28a   : > { %v4898_v24 = vmax.f32 %v4842_v48, 0.0  ;;  %v4781_v2 = vmul.f32 %v7061_v5, %v9435_v51 }
 0x28b   : > { %v4897_v28 = vmax.f32 %v4841_v35, 0.0  ;;  %v4780_v19 = vmul.f32 %v7062_v44, %v9435_v51  ;;  %v6982_v20 = vpop.f32.mrb[6].mxu0 }
 0x28c   : > { %4955 = vst.msk [vmem:[%s9448_s12 + $0x18] sm:$0xff] %vm4951_vm4, %v4898_v24  ;;  %v4844_v1 = vadd.f32 %v9440_v10, %v4781_v2  ;;  %v7063_v36 = vadd.f32 %v6982_v20, %v6552_v33  ;;  %v4464_v37 = vpop.f32.mrb[7].mxu0 }
 0x28d   : > { %4954 = vst.msk [vmem:[%s9448_s12 + $0x10] sm:$0xff] %vm4951_vm4, %v4897_v28  ;;  %v4843_v6 = vadd.f32 %v9440_v10, %v4780_v19  ;;  %v7064_v14 = vadd.f32 %v4464_v37, %v9388_v27 }
 0x28e   : > { %v4900_v40 = vmax.f32 %v4844_v1, 0.0  ;;  %v4783_v41 = vmul.f32 %v7063_v36, %v9435_v51 }
 0x28f   : > { %v4899_v46 = vmax.f32 %v4843_v6, 0.0  ;;  %v4782_v47 = vmul.f32 %v7064_v14, %v9435_v51  ;;  %v6985_v53 = vpop.f32.mrb[8].mxu0 }
 0x290   : > { %4957 = vst.msk [vmem:[%s9448_s12 + $0x28] sm:$0xff] %vm4951_vm4, %v4900_v40  ;;  %v4846_v54 = vadd.f32 %v9440_v10, %v4783_v41  ;;  %v7065_v8 = vadd.f32 %v6985_v53, %v9390_v55  ;;  %v4474_v32 = vpop.f32.mrb[9].mxu0 }
 0x291   : > { %4956 = vst.msk [vmem:[%s9448_s12 + $0x20] sm:$0xff] %vm4951_vm4, %v4899_v46  ;;  %v4845_v33 = vadd.f32 %v9440_v10, %v4782_v47  ;;  %v7066_v27 = vadd.f32 %v4474_v32, %v9392_v12 }
 0x292   : > { %v4902_v59 = vmax.f32 %v4846_v54, 0.0  ;;  %v4785_v43 = vmul.f32 %v7065_v8, %v9435_v51 }
 0x293   : > { %v4901_v49 = vmax.f32 %v4845_v33, 0.0  ;;  %v4784_v25 = vmul.f32 %v7066_v27, %v9435_v51  ;;  %v6988_v7 = vpop.f32.mrb[10].mxu0 }
 0x294   : > { %4959 = vst.msk [vmem:[%s9448_s12 + $0x38] sm:$0xff] %vm4951_vm4, %v4902_v59  ;;  %v4848_v55 = vadd.f32 %v9440_v10, %v4785_v43  ;;  %v7067_v13 = vadd.f32 %v6988_v7, %v9394_v38  ;;  %v4484_v11 = vpop.f32.mrb[11].mxu0 }
 0x295   : > { %4958 = vst.msk [vmem:[%s9448_s12 + $0x30] sm:$0xff] %vm4951_vm4, %v4901_v49  ;;  %v4847_v12 = vadd.f32 %v9440_v10, %v4784_v25  ;;  %v7068_v3 = vadd.f32 %v4484_v11, %v9396_v63 }
 0x296   : > { %v4904_v15 = vmax.f32 %v4848_v55, 0.0  ;;  %v4787_v18 = vmul.f32 %v7067_v13, %v9435_v51 }
 0x297   : > { %v4903_v22 = vmax.f32 %v4847_v12, 0.0  ;;  %v4786_v26 = vmul.f32 %v7068_v3, %v9435_v51  ;;  %v6991_v23 = vpop.f32.mrb[12].mxu0 }
 0x298   : > { %4961 = vst.msk [vmem:[%s9448_s12 + $0x48] sm:$0xff] %vm4951_vm4, %v4904_v15  ;;  %v4850_v38 = vadd.f32 %v9440_v10, %v4787_v18  ;;  %v7069_v29 = vadd.f32 %v6991_v23, %v9398_v50  ;;  %v4494_v31 = vpop.f32.mrb[13].mxu0 }
 0x299   : > { %4960 = vst.msk [vmem:[%s9448_s12 + $0x40] sm:$0xff] %vm4951_vm4, %v4903_v22  ;;  %v4849_v63 = vadd.f32 %v9440_v10, %v4786_v26  ;;  %v7070_v39 = vadd.f32 %v4494_v31, %v9400_v60 }
 0x29a   : > { %v4906_v42 = vmax.f32 %v4850_v38, 0.0  ;;  %v4789_v48 = vmul.f32 %v7069_v29, %v9435_v51 }
 0x29b   : > { %v4905_v5 = vmax.f32 %v4849_v63, 0.0  ;;  %v4788_v30 = vmul.f32 %v7070_v39, %v9435_v51  ;;  %v6994_v35 = vpop.f32.mrb[14].mxu0 }
 0x29c   : > { %4963 = vst.msk [vmem:[%s9448_s12 + $0x58] sm:$0xff] %vm4951_vm4, %v4906_v42  ;;  %v4852_v50 = vadd.f32 %v9440_v10, %v4789_v48  ;;  %v7071_v44 = vadd.f32 %v6994_v35, %v9402_v9  ;;  %v4504_v24 = vpop.f32.mrb[15].mxu0 }
 0x29d   : > { %4962 = vst.msk [vmem:[%s9448_s12 + $0x50] sm:$0xff] %vm4951_vm4, %v4905_v5  ;;  %v4851_v60 = vadd.f32 %v9440_v10, %v4788_v30  ;;  %v7072_v2 = vadd.f32 %v4504_v24, %v9404_v21 }
 0x29e   : > { %v4908_v28 = vmax.f32 %v4852_v50, 0.0  ;;  %v4791_v19 = vmul.f32 %v7071_v44, %v9435_v51 }
 0x29f   : > { %v4907_v20 = vmax.f32 %v4851_v60, 0.0  ;;  %v4790_v1 = vmul.f32 %v7072_v2, %v9435_v51  ;;  %v6997_v36 = vpop.f32.mrb[16].mxu0 }
 0x2a0   : > { %4965 = vst.msk [vmem:[%s9448_s12 + $0x68] sm:$0xff] %vm4951_vm4, %v4908_v28  ;;  %v4854_v9 = vadd.f32 %v9440_v10, %v4791_v19  ;;  %v7073_v37 = vadd.f32 %v6997_v36, %v9406_v34  ;;  %v4514_v6 = vpop.f32.mrb[17].mxu0 }
 0x2a1   : > { %4964 = vst.msk [vmem:[%s9448_s12 + $0x60] sm:$0xff] %vm4951_vm4, %v4907_v20  ;;  %v4853_v21 = vadd.f32 %v9440_v10, %v4790_v1  ;;  %v7074_v14 = vadd.f32 %v4514_v6, %v9408_v56 }
 0x2a2   : > { %v4910_v40 = vmax.f32 %v4854_v9, 0.0  ;;  %v4793_v41 = vmul.f32 %v7073_v37, %v9435_v51 }
 0x2a3   : > { %v4909_v46 = vmax.f32 %v4853_v21, 0.0  ;;  %v4792_v47 = vmul.f32 %v7074_v14, %v9435_v51  ;;  %v7000_v53 = vpop.f32.mrb[18].mxu0 }
 0x2a4   : > { %4967 = vst.msk [vmem:[%s9448_s12 + $0x78] sm:$0xff] %vm4951_vm4, %v4910_v40  ;;  %v4856_v34 = vadd.f32 %v9440_v10, %v4793_v41  ;;  %v7075_v54 = vadd.f32 %v7000_v53, %v9410_v17  ;;  %v4524_v8 = vpop.f32.mrb[19].mxu0 }
 0x2a5   : > { %4966 = vst.msk [vmem:[%s9448_s12 + $0x70] sm:$0xff] %vm4951_vm4, %v4909_v46  ;;  %v4855_v56 = vadd.f32 %v9440_v10, %v4792_v47  ;;  %v7076_v32 = vadd.f32 %v4524_v8, %v9412_v62 }
 0x2a6   : > { %v4912_v33 = vmax.f32 %v4856_v34, 0.0  ;;  %v4795_v27 = vmul.f32 %v7075_v54, %v9435_v51 }
 0x2a7   : > { %v4911_v59 = vmax.f32 %v4855_v56, 0.0  ;;  %v4794_v43 = vmul.f32 %v7076_v32, %v9435_v51  ;;  %v7003_v49 = vpop.f32.mrb[20].mxu0 }
 0x2a8   : > { %4969 = vst.msk [vmem:[%s9448_s12 + $0x88] sm:$0xff] %vm4951_vm4, %v4912_v33  ;;  %v4858_v17 = vadd.f32 %v9440_v10, %v4795_v27  ;;  %v7077_v25 = vadd.f32 %v7003_v49, %v9414_v16  ;;  %v4534_v7 = vpop.f32.mrb[21].mxu0 }
 0x2a9   : > { %4968 = vst.msk [vmem:[%s9448_s12 + $0x80] sm:$0xff] %vm4951_vm4, %v4911_v59  ;;  %v4857_v62 = vadd.f32 %v9440_v10, %v4794_v43  ;;  %v7078_v55 = vadd.f32 %v4534_v7, %v9416_v4 }
 0x2aa   : > { %v4914_v13 = vmax.f32 %v4858_v17, 0.0  ;;  %v4797_v11 = vmul.f32 %v7077_v25, %v9435_v51 }
 0x2ab   : > { %v4913_v12 = vmax.f32 %v4857_v62, 0.0  ;;  %v4796_v3 = vmul.f32 %v7078_v55, %v9435_v51  ;;  %v7006_v15 = vpop.f32.mrb[22].mxu0 }
 0x2ac   : > { %4971 = vst.msk [vmem:[%s9448_s12 + $0x98] sm:$0xff] %vm4951_vm4, %v4914_v13  ;;  %v4860_v16 = vadd.f32 %v9440_v10, %v4797_v11  ;;  %v7079_v18 = vadd.f32 %v7006_v15, %v9418_v58  ;;  %v4544_v22 = vpop.f32.mrb[23].mxu0 }
 0x2ad   : > { %4970 = vst.msk [vmem:[%s9448_s12 + $0x90] sm:$0xff] %vm4951_vm4, %v4913_v12  ;;  %v4859_v4 = vadd.f32 %v9440_v10, %v4796_v3  ;;  %v7080_v26 = vadd.f32 %v4544_v22, %v9420_v57 }
 0x2ae   : > { %v4916_v23 = vmax.f32 %v4860_v16, 0.0  ;;  %v4799_v38 = vmul.f32 %v7079_v18, %v9435_v51 }
 0x2af   : > { %v4915_v29 = vmax.f32 %v4859_v4, 0.0  ;;  %v4798_v31 = vmul.f32 %v7080_v26, %v9435_v51  ;;  %v7009_v63 = vpop.f32.mrb[24].mxu0 }
 0x2b0   : > { %4973 = vst.msk [vmem:[%s9448_s12 + $0xa8] sm:$0xff] %vm4951_vm4, %v4916_v23  ;;  %v4862_v39 = vadd.f32 %v9440_v10, %v4799_v38  ;;  %v7081_v58 = vadd.f32 %v7009_v63, %v9422_v45  ;;  %v4554_v42 = vpop.f32.mrb[25].mxu0 }
 0x2b1   : > { %4972 = vst.msk [vmem:[%s9448_s12 + $0xa0] sm:$0xff] %vm4951_vm4, %v4915_v29  ;;  %v4861_v57 = vadd.f32 %v9440_v10, %v4798_v31  ;;  %v7082_v48 = vadd.f32 %v4554_v42, %v9424_v0 }
 0x2b2   : > { %v4918_v5 = vmax.f32 %v4862_v39, 0.0  ;;  %v4801_v30 = vmul.f32 %v7081_v58, %v9435_v51 }
 0x2b3   : > { %v4917_v35 = vmax.f32 %v4861_v57, 0.0  ;;  %v4800_v50 = vmul.f32 %v7082_v48, %v9435_v51  ;;  %v7012_v44 = vpop.f32.mrb[26].mxu0 }
 0x2b4   : > { %4975 = vst.msk [vmem:[%s9448_s12 + $0xb8] sm:$0xff] %vm4951_vm4, %v4918_v5  ;;  %v4864_v24 = vadd.f32 %v9440_v10, %v4801_v30  ;;  %v7083_v45 = vadd.f32 %v7012_v44, %v9426_v52  ;;  %v6671_v60 = vpop.f32.mrb[28].mxu1  ;;  %v4564_v2 = vpop.f32.mrb[27].mxu0 }
 0x2b5   : > { %4974 = vst.msk [vmem:[%s9448_s12 + $0xb0] sm:$0xff] %vm4951_vm4, %v4917_v35  ;;  %v4863_v0 = vadd.f32 %v9440_v10, %v4800_v50  ;;  %v7084_v28 = vadd.f32 %v4564_v2, %v9428_v61  ;;  %v2687_v19 = vpop.f32.mrb[29].mxu1 }
 0x2b6   : > { %v4920_v20 = vmax.f32 %v4864_v24, 0.0  ;;  %v4803_v1 = vmul.f32 %v7083_v45, %v9435_v51 }
 0x2b7   : > { %v4919_v36 = vmax.f32 %v4863_v0, 0.0  ;;  %v4802_v9 = vmul.f32 %v7084_v28, %v9435_v51  ;;  %v7015_v37 = vpop.f32.mrb[28].mxu0 }
 0x2b8   : > { %4977 = vst.msk [vmem:[%s9448_s12 + $0xc8] sm:$0xff] %vm4951_vm4, %v4920_v20  ;;  %v4866_v52 = vadd.f32 %v9440_v10, %v4803_v1  ;;  %v7085_v6 = vadd.f32 %v7015_v37, %v6671_v60  ;;  %v6674_v21 = vpop.f32.mrb[30].mxu1  ;;  %v4574_v14 = vpop.f32.mrb[29].mxu0 }
 0x2b9   : > { %4976 = vst.msk [vmem:[%s9448_s12 + $0xc0] sm:$0xff] %vm4951_vm4, %v4919_v36  ;;  %v4865_v61 = vadd.f32 %v9440_v10, %v4802_v9  ;;  %v7086_v40 = vadd.f32 %v4574_v14, %v2687_v19  ;;  %v2697_v41 = vpop.f32.mrb[31].mxu1 }
 0x2ba   : > { %v4922_v46 = vmax.f32 %v4866_v52, 0.0  ;;  %v4805_v47 = vmul.f32 %v7085_v6, %v9435_v51 }
 0x2bb   : > { %v4921_v53 = vmax.f32 %v4865_v61, 0.0  ;;  %v4804_v34 = vmul.f32 %v7086_v40, %v9435_v51  ;;  %v7018_v54 = vpop.f32.mrb[30].mxu0 }
 0x2bc   : > { %4979 = vst.msk [vmem:[%s9448_s12 + $0xd8] sm:$0xff] %vm4951_vm4, %v4922_v46  ;;  %v4868_v8 = vadd.f32 %v9440_v10, %v4805_v47  ;;  %v7087_v56 = vadd.f32 %v7018_v54, %v6674_v21  ;;  %v6677_v32 = vpop.f32.mrb[32].mxu1  ;;  %v4584_v33 = vpop.f32.mrb[31].mxu0 }
 0x2bd   : > { %4978 = vst.msk [vmem:[%s9448_s12 + $0xd0] sm:$0xff] %vm4951_vm4, %v4921_v53  ;;  %v4867_v27 = vadd.f32 %v9440_v10, %v4804_v34  ;;  %v7088_v59 = vadd.f32 %v4584_v33, %v2697_v41  ;;  %v2707_v43 = vpop.f32.mrb[33].mxu1 }
 0x2be   : > { %v4924_v49 = vmax.f32 %v4868_v8, 0.0  ;;  %v4807_v17 = vmul.f32 %v7087_v56, %v9435_v51 }
 0x2bf   : > { %v4923_v25 = vmax.f32 %v4867_v27, 0.0  ;;  %v4806_v7 = vmul.f32 %v7088_v59, %v9435_v51  ;;  %v7021_v62 = vpop.f32.mrb[32].mxu0 }
 0x2c0   : > { %4981 = vst.msk [vmem:[%s9448_s12 + $0xe8] sm:$0xff] %vm4951_vm4, %v4924_v49  ;;  %v4870_v55 = vadd.f32 %v9440_v10, %v4807_v17  ;;  %v7089_v13 = vadd.f32 %v7021_v62, %v6677_v32  ;;  %v6680_v11 = vpop.f32.mrb[34].mxu1  ;;  %v4594_v12 = vpop.f32.mrb[33].mxu0 }
 0x2c1   : > { %4980 = vst.msk [vmem:[%s9448_s12 + $0xe0] sm:$0xff] %vm4951_vm4, %v4923_v25  ;;  %v4869_v3 = vadd.f32 %v9440_v10, %v4806_v7  ;;  %v7090_v15 = vadd.f32 %v4594_v12, %v2707_v43  ;;  %v2717_v16 = vpop.f32.mrb[35].mxu1 }
 0x2c2   : > { %v4926_v18 = vmax.f32 %v4870_v55, 0.0  ;;  %v4809_v22 = vmul.f32 %v7089_v13, %v9435_v51 }
 0x2c3   : > { %v4925_v4 = vmax.f32 %v4869_v3, 0.0  ;;  %v4808_v26 = vmul.f32 %v7090_v15, %v9435_v51  ;;  %v7024_v23 = vpop.f32.mrb[34].mxu0 }
 0x2c4   : > { %4983 = vst.msk [vmem:[%s9448_s12 + $0xf8] sm:$0xff] %vm4951_vm4, %v4926_v18  ;;  %v4872_v38 = vadd.f32 %v9440_v10, %v4809_v22  ;;  %v7091_v29 = vadd.f32 %v7024_v23, %v6680_v11  ;;  %v6683_v31 = vpop.f32.mrb[36].mxu1  ;;  %v4604_v63 = vpop.f32.mrb[35].mxu0 }
 0x2c5   : > { %4982 = vst.msk [vmem:[%s9448_s12 + $0xf0] sm:$0xff] %vm4951_vm4, %v4925_v4  ;;  %v4871_v39 = vadd.f32 %v9440_v10, %v4808_v26  ;;  %v7092_v58 = vadd.f32 %v4604_v63, %v2717_v16  ;;  %v2727_v42 = vpop.f32.mrb[37].mxu1 }
 0x2c6   : > { %v4928_v57 = vmax.f32 %v4872_v38, 0.0  ;;  %v4811_v48 = vmul.f32 %v7091_v29, %v9435_v51 }
 0x2c7   : > { %v4927_v5 = vmax.f32 %v4871_v39, 0.0  ;;  %v4810_v30 = vmul.f32 %v7092_v58, %v9435_v51  ;;  %v7027_v35 = vpop.f32.mrb[36].mxu0 }
 0x2c8   : > { %4985 = vst.msk [vmem:[%s9448_s12 + $0x108] sm:$0xff] %vm4951_vm4, %v4928_v57  ;;  %v4874_v50 = vadd.f32 %v9440_v10, %v4811_v48  ;;  %v7093_v44 = vadd.f32 %v7027_v35, %v6683_v31  ;;  %v6686_v24 = vpop.f32.mrb[38].mxu1  ;;  %v4614_v45 = vpop.f32.mrb[37].mxu0 }
 0x2c9   : > { %4984 = vst.msk [vmem:[%s9448_s12 + $0x100] sm:$0xff] %vm4951_vm4, %v4927_v5  ;;  %v4873_v60 = vadd.f32 %v9440_v10, %v4810_v30  ;;  %v7094_v2 = vadd.f32 %v4614_v45, %v2727_v42  ;;  %v2737_v0 = vpop.f32.mrb[39].mxu1 }
 0x2ca   : > { %v4930_v28 = vmax.f32 %v4874_v50, 0.0  ;;  %v4813_v19 = vmul.f32 %v7093_v44, %v9435_v51 }
 0x2cb   : > { %v4929_v20 = vmax.f32 %v4873_v60, 0.0  ;;  %v4812_v1 = vmul.f32 %v7094_v2, %v9435_v51  ;;  %v7030_v36 = vpop.f32.mrb[38].mxu0 }
 0x2cc   : > { %4987 = vst.msk [vmem:[%s9448_s12 + $0x118] sm:$0xff] %vm4951_vm4, %v4930_v28  ;;  %v4876_v9 = vadd.f32 %v9440_v10, %v4813_v19  ;;  %v7095_v37 = vadd.f32 %v7030_v36, %v6686_v24  ;;  %v6689_v52 = vpop.f32.mrb[40].mxu1  ;;  %v4624_v6 = vpop.f32.mrb[39].mxu0 }
 0x2cd   : > { %4986 = vst.msk [vmem:[%s9448_s12 + $0x110] sm:$0xff] %vm4951_vm4, %v4929_v20  ;;  %v4875_v21 = vadd.f32 %v9440_v10, %v4812_v1  ;;  %v7096_v14 = vadd.f32 %v4624_v6, %v2737_v0  ;;  %v2747_v61 = vpop.f32.mrb[41].mxu1 }
 0x2ce   : > { %v4932_v40 = vmax.f32 %v4876_v9, 0.0  ;;  %v4815_v41 = vmul.f32 %v7095_v37, %v9435_v51 }
 0x2cf   : > { %v4931_v46 = vmax.f32 %v4875_v21, 0.0  ;;  %v4814_v47 = vmul.f32 %v7096_v14, %v9435_v51  ;;  %v7033_v53 = vpop.f32.mrb[40].mxu0 }
 0x2d0   : > { %4989 = vst.msk [vmem:[%s9448_s12 + $0x128] sm:$0xff] %vm4951_vm4, %v4932_v40  ;;  %v4878_v34 = vadd.f32 %v9440_v10, %v4815_v41  ;;  %v7097_v54 = vadd.f32 %v7033_v53, %v6689_v52  ;;  %v6692_v8 = vpop.f32.mrb[42].mxu1  ;;  %v4634_v56 = vpop.f32.mrb[41].mxu0 }
 0x2d1   : > { %4988 = vst.msk [vmem:[%s9448_s12 + $0x120] sm:$0xff] %vm4951_vm4, %v4931_v46  ;;  %v4877_v32 = vadd.f32 %v9440_v10, %v4814_v47  ;;  %v7098_v33 = vadd.f32 %v4634_v56, %v2747_v61  ;;  %v2757_v27 = vpop.f32.mrb[43].mxu1 }
 0x2d2   : > { %v4934_v59 = vmax.f32 %v4878_v34, 0.0  ;;  %v4817_v43 = vmul.f32 %v7097_v54, %v9435_v51 }
 0x2d3   : > { %v4933_v49 = vmax.f32 %v4877_v32, 0.0  ;;  %v4816_v17 = vmul.f32 %v7098_v33, %v9435_v51  ;;  %v7036_v25 = vpop.f32.mrb[42].mxu0 }
 0x2d4   : > { %4991 = vst.msk [vmem:[%s9448_s12 + $0x138] sm:$0xff] %vm4951_vm4, %v4934_v59  ;;  %v4880_v7 = vadd.f32 %v9440_v10, %v4817_v43  ;;  %v7099_v62 = vadd.f32 %v7036_v25, %v6692_v8  ;;  %v6695_v55 = vpop.f32.mrb[44].mxu1  ;;  %v4644_v13 = vpop.f32.mrb[43].mxu0 }
 0x2d5   : > { %4990 = vst.msk [vmem:[%s9448_s12 + $0x130] sm:$0xff] %vm4951_vm4, %v4933_v49  ;;  %v4879_v11 = vadd.f32 %v9440_v10, %v4816_v17  ;;  %v7100_v12 = vadd.f32 %v4644_v13, %v2757_v27  ;;  %v2767_v3 = vpop.f32.mrb[45].mxu1 }
 0x2d6   : > { %v4936_v15 = vmax.f32 %v4880_v7, 0.0  ;;  %v4819_v16 = vmul.f32 %v7099_v62, %v9435_v51 }
 0x2d7   : > { %v4935_v18 = vmax.f32 %v4879_v11, 0.0  ;;  %v4818_v22 = vmul.f32 %v7100_v12, %v9435_v51  ;;  %v7039_v4 = vpop.f32.mrb[44].mxu0 }
 0x2d8   : > { %4993 = vst.msk [vmem:[%s9448_s12 + $0x148] sm:$0xff] %vm4951_vm4, %v4936_v15  ;;  %v4882_v26 = vadd.f32 %v9440_v10, %v4819_v16  ;;  %v7101_v23 = vadd.f32 %v7039_v4, %v6695_v55  ;;  %v6698_v38 = vpop.f32.mrb[46].mxu1  ;;  %v4654_v29 = vpop.f32.mrb[45].mxu0 }
 0x2d9   : > { %4992 = vst.msk [vmem:[%s9448_s12 + $0x140] sm:$0xff] %vm4951_vm4, %v4935_v18  ;;  %v4881_v31 = vadd.f32 %v9440_v10, %v4818_v22  ;;  %v7102_v63 = vadd.f32 %v4654_v29, %v2767_v3  ;;  %v2777_v39 = vpop.f32.mrb[47].mxu1 }
 0x2da   : > { %v4938_v58 = vmax.f32 %v4882_v26, 0.0  ;;  %v4821_v42 = vmul.f32 %v7101_v23, %v9435_v51 }
 0x2db   : > { %v4937_v57 = vmax.f32 %v4881_v31, 0.0  ;;  %v4820_v48 = vmul.f32 %v7102_v63, %v9435_v51  ;;  %v7042_v5 = vpop.f32.mrb[46].mxu0 }
 0x2dc   : > { %4995 = vst.msk [vmem:[%s9448_s12 + $0x158] sm:$0xff] %vm4951_vm4, %v4938_v58  ;;  %v4884_v30 = vadd.f32 %v9440_v10, %v4821_v42  ;;  %v7103_v35 = vadd.f32 %v7042_v5, %v6698_v38  ;;  %v6701_v50 = vpop.f32.mrb[48].mxu1  ;;  %v4664_v44 = vpop.f32.mrb[47].mxu0 }
 0x2dd   : > { %4994 = vst.msk [vmem:[%s9448_s12 + $0x150] sm:$0xff] %vm4951_vm4, %v4937_v57  ;;  %v4883_v24 = vadd.f32 %v9440_v10, %v4820_v48  ;;  %v7104_v45 = vadd.f32 %v4664_v44, %v2777_v39  ;;  %v2787_v60 = vpop.f32.mrb[49].mxu1 }
 0x2de   : > { %v4940_v2 = vmax.f32 %v4884_v30, 0.0  ;;  %v4823_v0 = vmul.f32 %v7103_v35, %v9435_v51 }
 0x2df   : > { %v4939_v28 = vmax.f32 %v4883_v24, 0.0  ;;  %v4822_v19 = vmul.f32 %v7104_v45, %v9435_v51  ;;  %v7045_v20 = vpop.f32.mrb[48].mxu0 }
 0x2e0   : > { %4997 = vst.msk [vmem:[%s9448_s12 + $0x168] sm:$0xff] %vm4951_vm4, %v4940_v2  ;;  %v4886_v1 = vadd.f32 %v9440_v10, %v4823_v0  ;;  %v7105_v36 = vadd.f32 %v7045_v20, %v6701_v50  ;;  %v6704_v9 = vpop.f32.mrb[50].mxu1  ;;  %v4674_v37 = vpop.f32.mrb[49].mxu0 }
 0x2e1   : > { %4996 = vst.msk [vmem:[%s9448_s12 + $0x160] sm:$0xff] %vm4951_vm4, %v4939_v28  ;;  %v4885_v52 = vadd.f32 %v9440_v10, %v4822_v19  ;;  %v7106_v6 = vadd.f32 %v4674_v37, %v2787_v60  ;;  %v2797_v21 = vpop.f32.mrb[51].mxu1 }
 0x2e2   : > { %v4942_v14 = vmax.f32 %v4886_v1, 0.0  ;;  %v4825_v61 = vmul.f32 %v7105_v36, %v9435_v51 }
 0x2e3   : > { %v4941_v40 = vmax.f32 %v4885_v52, 0.0  ;;  %v4824_v41 = vmul.f32 %v7106_v6, %v9435_v51  ;;  %v7048_v46 = vpop.f32.mrb[50].mxu0 }
 0x2e4   : > { %4999 = vst.msk [vmem:[%s9448_s12 + $0x178] sm:$0xff] %vm4951_vm4, %v4942_v14  ;;  %v4888_v47 = vadd.f32 %v9440_v10, %v4825_v61  ;;  %v7107_v53 = vadd.f32 %v7048_v46, %v6704_v9  ;;  %v6707_v34 = vpop.f32.mrb[52].mxu1  ;;  %v4684_v54 = vpop.f32.mrb[51].mxu0 }
 0x2e5   : > { %4998 = vst.msk [vmem:[%s9448_s12 + $0x170] sm:$0xff] %vm4951_vm4, %v4941_v40  ;;  %v4887_v8 = vadd.f32 %v9440_v10, %v4824_v41  ;;  %v7108_v56 = vadd.f32 %v4684_v54, %v2797_v21  ;;  %v2807_v32 = vpop.f32.mrb[53].mxu1 }
 0x2e6   : > { %v4944_v33 = vmax.f32 %v4888_v47, 0.0  ;;  %v4827_v27 = vmul.f32 %v7107_v53, %v9435_v51 }
 0x2e7   : > { %v4943_v59 = vmax.f32 %v4887_v8, 0.0  ;;  %v4826_v43 = vmul.f32 %v7108_v56, %v9435_v51  ;;  %v7051_v49 = vpop.f32.mrb[52].mxu0 }
 0x2e8   : > { %5001 = vst.msk [vmem:[%s9448_s12 + $0x188] sm:$0xff] %vm4951_vm4, %v4944_v33  ;;  %v4890_v17 = vadd.f32 %v9440_v10, %v4827_v27  ;;  %v7109_v25 = vadd.f32 %v7051_v49, %v6707_v34  ;;  %v6710_v7 = vpop.f32.mrb[54].mxu1  ;;  %v4694_v62 = vpop.f32.mrb[53].mxu0 }
 0x2e9   : > { %5000 = vst.msk [vmem:[%s9448_s12 + $0x180] sm:$0xff] %vm4951_vm4, %v4943_v59  ;;  %v4889_v55 = vadd.f32 %v9440_v10, %v4826_v43  ;;  %v7110_v13 = vadd.f32 %v4694_v62, %v2807_v32  ;;  %v2817_v11 = vpop.f32.mrb[55].mxu1 }
 0x2ea   : > { %v4946_v12 = vmax.f32 %v4890_v17, 0.0  ;;  %v4829_v3 = vmul.f32 %v7109_v25, %v9435_v51 }
 0x2eb   : > { %v4945_v15 = vmax.f32 %v4889_v55, 0.0  ;;  %v4828_v16 = vmul.f32 %v7110_v13, %v9435_v51  ;;  %v7054_v18 = vpop.f32.mrb[54].mxu0 }
 0x2ec   : > { %5003 = vst.msk [vmem:[%s9448_s12 + $0x198] sm:$0xff] %vm4951_vm4, %v4946_v12  ;;  %v4892_v22 = vadd.f32 %v9440_v10, %v4829_v3  ;;  %v7111_v4 = vadd.f32 %v7054_v18, %v6710_v7  ;;  %v4704_v26 = vpop.f32.mrb[55].mxu0 }
 0x2ed   : > { %5002 = vst.msk [vmem:[%s9448_s12 + $0x190] sm:$0xff] %vm4951_vm4, %v4945_v15  ;;  %v4891_v23 = vadd.f32 %v9440_v10, %v4828_v16  ;;  %v7112_v38 = vadd.f32 %v4704_v26, %v2817_v11 }
 0x2ee   : > { %v4948_v29 = vmax.f32 %v4892_v22, 0.0  ;;  %v4831_v31 = vmul.f32 %v7111_v4, %v9435_v51 }
 0x2ef   : > { %v4947_v63 = vmax.f32 %v4891_v23, 0.0  ;;  %v4830_v39 = vmul.f32 %v7112_v38, %v9435_v51 }
 0x2f0   : > { %5005 = vst.msk [vmem:[%s9448_s12 + $0x1a8] sm:$0xff] %vm4951_vm4, %v4948_v29  ;;  %v4894_v58 = vadd.f32 %v9440_v10, %v4831_v31 }
 0x2f1   : > { %5004 = vst.msk [vmem:[%s9448_s12 + $0x1a0] sm:$0xff] %vm4951_vm4, %v4947_v63  ;;  %v4893_v42 = vadd.f32 %v9440_v10, %v4830_v39 }
 0x2f2   : > { %v4950_v57 = vmax.f32 %v4894_v58, 0.0 }
 0x2f3   : > { %v4949_v48 = vmax.f32 %v4893_v42, 0.0 }
 0x2f4   : > { %5007 = vst.msk [vmem:[%s9448_s12 + $0x1b8] sm:$0xff] %vm4951_vm4, %v4950_v57 }
 0x2f5   : > { %5006 = vst.msk [vmem:[%s9448_s12 + $0x1b0] sm:$0xff] %vm4951_vm4, %v4949_v48 }
 0x2f6 PF: > { %s15_s18 = sadd.s32 1, %s7531_s18  }
 0x2f7   : > { %p12_p6 = scmp.ge.s32.totalorder %s15_s18, 4  }
 0x2f9   :  { %14 = sbr.rel (!%p12_p6) target bundleno = 1 (0x1), region = 81 }

</bundles_post_ra>
